<compile_context>
chip_gen: v7x
topology: tpu7x:2x2x1
jax: 0.10.0
libtpu: 0.0.40
codegen_flags: <defaults>
</compile_context>

<pallas_src>
import jax
import jax.numpy as jnp
from jax.experimental import pallas as pl
from jax.experimental.pallas import tpu as pltpu


# ---------------------------------------------------------------------------
# Kernel
# ---------------------------------------------------------------------------
def _forward_kernel(sga_ref, can_ref, tbl_ref, ctbl_ref, va_ref, wo_ref,
                    bo_ref, out_ref):
    """One batch tile: one-hot x fused projection tables + MHA pooling + head.

    No embedding-dimension (D) tensor ever exists in the kernel; the gather
    and the Wa / Wh projections were folded into `tbl_ref` / `ctbl_ref`.
    """
    tbt = sga_ref.shape[0]                       # tb * T
    v_size = tbl_ref.shape[0]
    c_size, hid_pad = ctbl_ref.shape
    ha_pad, n_heads = va_ref.shape
    tb = out_ref.shape[0]
    seq = tbt // tb

    # --- One-hot gathers, built straight in bf16 (no f32 where/select pass).
    sga_oh = (sga_ref[...] ==
              jax.lax.broadcasted_iota(jnp.int32, (tbt, v_size), 1)
              ).astype(jnp.bfloat16)                                   # [TBT, V]
    can_oh = (can_ref[...] ==
              jax.lax.broadcasted_iota(jnp.int32, (tb, c_size), 1)
              ).astype(jnp.bfloat16)                                   # [TB, C]

    # --- Single wide MXU push: attention pre-activations AND Wh-projected
    #     embeddings come out of one [TBT, V] @ [V, ha_pad + hid_pad] matmul.
    proj = jnp.dot(sga_oh, tbl_ref[...],
                   preferred_element_type=jnp.float32)                 # [TBT, 256]
    s_pre = proj[:, :ha_pad]          # lane-tile-aligned split          [TBT, HA_pad]
    ewh = proj[:, ha_pad:]            # already scaled by 1/num_heads    [TBT, HID_pad]

    # --- Per-head attention scores via the block-diagonal va matrix.
    s = jnp.tanh(s_pre)
    score = jnp.dot(s.astype(jnp.bfloat16), va_ref[...],
                    preferred_element_type=jnp.float32)                # [TBT, H]

    # --- Softmax over the SGA axis per head; divide goes to the EUP.
    #     (This region is lane-sparse (H=4) but tiny; see review note.)
    score3 = score.reshape(tb, seq, n_heads)                           # [TB, T, H]
    m = jnp.max(score3, axis=1, keepdims=True)
    p = jnp.exp(score3 - m)
    inv = pl.reciprocal(jnp.sum(p, axis=1, keepdims=True), approx=True)
    attn = p * inv                                                     # [TB, T, H]
    w = jnp.sum(attn, axis=2, keepdims=True)       # [TB, T, 1]; 1/H folded in tbl

    # --- Hidden pre-activation entirely in Wh-projected space:
    #     pooled @ Wh == sum_t w_t * (emb_sga @ Wh)[sga_t]
    pooled_h = jnp.sum(w * ewh.reshape(tb, seq, hid_pad), axis=1)      # [TB, HID_pad]
    can_h = jnp.dot(can_oh, ctbl_ref[...],
                    preferred_element_type=jnp.float32)                # [TB, HID_pad] (+bh)
    hidden = jnp.maximum(pooled_h + can_h, 0.0)

    # --- DEG sigmoid head (bf16 MXU feed, f32 accumulation, lane-dense out).
    logits = jnp.dot(hidden.astype(jnp.bfloat16), wo_ref[...],
                     preferred_element_type=jnp.float32) + bo_ref[...]
    out_ref[...] = jax.nn.sigmoid(logits)                              # [TB, deg]


# ---------------------------------------------------------------------------
# One-time parameter preparation (hoisted out of the forward path)
# ---------------------------------------------------------------------------
def _round_up(x, m):
    return ((x + m - 1) // m) * m


def prepare_params(params):
    """Precompute the fused projection tables once (exact re-association)."""
    emb_sga = params['emb_sga'].astype(jnp.float32)      # [V, D]
    emb_can = params['emb_can'].astype(jnp.float32)      # [C, D]
    wa = params['wa'].astype(jnp.float32)                # [H, D, A]
    va = params['va'].astype(jnp.float32)                # [H, A]
    wh = params['wh'].astype(jnp.float32)                # [D, hidden]
    bh = params['bh'].astype(jnp.float32)                # [1, hidden]
    wo = params['wo'].astype(jnp.float32)                # [hidden, deg]
    bo = params['bo'].astype(jnp.float32)                # [1, deg]

    H, D, A = wa.shape
    V = emb_sga.shape[0]
    C = emb_can.shape[0]
    hidden = wh.shape[1]
    deg = wo.shape[1]
    ha = H * A
    ha_pad = _round_up(ha, 128)
    hid_pad = _round_up(hidden, 128)

    # Fused attention-projection table + (1/H)-scaled Wh-projection table,
    # concatenated into one lane-padded [V, ha_pad + hid_pad] MXU operand.
    wa_flat = jnp.transpose(wa, (1, 0, 2)).reshape(D, ha)   # head-major columns
    emb_wa = emb_sga @ wa_flat                               # [V, H*A]
    emb_wh = (emb_sga @ wh) * (1.0 / H)                      # [V, hidden]
    tbl = jnp.zeros((V, ha_pad + hid_pad), jnp.float32)
    tbl = tbl.at[:, :ha].set(emb_wa)
    tbl = tbl.at[:, ha_pad:ha_pad + hidden].set(emb_wh)

    # Cancer-type table with the hidden bias folded in (each can_oh row picks
    # exactly one table row, so adding bh per row is exact).
    ctbl = jnp.zeros((C, hid_pad), jnp.float32)
    ctbl = ctbl.at[:, :hidden].set(emb_can @ wh + bh)

    # Block-diagonal va: score[:, h] = s[:, h*A:(h+1)*A] @ va[h].
    va_blk = (va[:, :, None] *
              jnp.eye(H, dtype=jnp.float32)[:, None, :]).reshape(ha, H)
    va_pad = jnp.zeros((ha_pad, H), jnp.float32).at[:ha, :].set(va_blk)

    # Output projection padded so K matches the padded hidden width.
    wo_pad = jnp.zeros((hid_pad, deg), jnp.float32).at[:hidden, :].set(wo)

    return {
        'tbl': tbl.astype(jnp.bfloat16),     # [V, ha_pad + hid_pad]
        'ctbl': ctbl.astype(jnp.bfloat16),   # [C, hid_pad]
        'va': va_pad.astype(jnp.bfloat16),   # [ha_pad, H]
        'wo': wo_pad.astype(jnp.bfloat16),   # [hid_pad, deg]
        'bo': bo,                            # [1, deg] f32
    }


# ---------------------------------------------------------------------------
# Forward wrapper
# ---------------------------------------------------------------------------
def _default_batch_tile(B):
    """>=2 fat 'parallel' grid steps (feeds both v7x TensorCores) while keeping
    tiles <=1024 rows: per-step pipeline overhead (~0.35us) dominates at these
    tiny per-tile FLOP counts.  Always returns a divisor of B."""
    tile = B
    while tile % 2 == 0 and (tile // 2) % 8 == 0 and (tile > 1024 or tile == B):
        tile //= 2
    return tile


def model_forward(prepped, sga_idx, can_idx, *, batch_tile=None):
    B, T = sga_idx.shape
    V, W = prepped['tbl'].shape
    C, hid_pad = prepped['ctbl'].shape
    ha_pad, H = prepped['va'].shape
    deg = prepped['wo'].shape[1]

    tb = _default_batch_tile(B) if batch_tile is None else batch_tile
    assert B % tb == 0, "batch must be a multiple of batch_tile"
    assert tb % 8 == 0 or tb == B, "batch_tile must be a multiple of 8"

    # TODO(synk): for realistic sga_size, prefetch these indices into SMEM
    # (num_scalar_prefetch=2) and DMA-gather table rows instead of one-hots.
    sga_flat = sga_idx.reshape(B * T, 1).astype(jnp.int32)
    can_2d = can_idx.reshape(B, 1).astype(jnp.int32)

    def build(single_buffer_weights):
        # Resident operands never change block index -> single-buffer them
        # (halves their VMEM footprint; matters on v7x's 32 MiB scoped VMEM
        # once the tables grow).
        rkw = {'pipeline_mode': pl.Buffered(1)} if single_buffer_weights else {}
        resident = lambda i: (0, 0)
        grid_spec = pltpu.PrefetchScalarGridSpec(
            num_scalar_prefetch=0,
            grid=(B // tb,),
            in_specs=[
                pl.BlockSpec((tb * T, 1), lambda i: (i, 0)),    # SGA indices
                pl.BlockSpec((tb, 1), lambda i: (i, 0)),        # cancer indices
                pl.BlockSpec((V, W), resident, **rkw),          # emb@[Wa | Wh/H]
                pl.BlockSpec((C, hid_pad), resident, **rkw),    # emb_can@Wh + bh
                pl.BlockSpec((ha_pad, H), resident, **rkw),     # block-diag va
                pl.BlockSpec((hid_pad, deg), resident, **rkw),  # padded Wo
                pl.BlockSpec((1, deg), resident, **rkw),        # bo
            ],
            out_specs=pl.BlockSpec((tb, deg), lambda i: (i, 0)),
        )
        return pl.pallas_call(
            _forward_kernel,
            out_shape=jax.ShapeDtypeStruct((B, deg), jnp.float32),
            grid_spec=grid_spec,
            compiler_params=pltpu.CompilerParams(
                dimension_semantics=("parallel",),       # batch across TCs (v7x)
                vmem_limit_bytes=32 * 1024 * 1024),      # raise v5e's 16 MiB default
        )

    args = (sga_flat, can_2d, prepped['tbl'], prepped['ctbl'], prepped['va'],
            prepped['wo'], prepped['bo'])
    try:
        # block_until_ready only to surface any lowering/runtime issue with
        # Buffered(1) here so the fallback below can take over; production
        # code would pick one variant up front.
        return jax.block_until_ready(build(True)(*args))
    except Exception:
        # Fallback: identical kernel/grid without the pipeline_mode request.
        return build(False)(*args)


# ---------------------------------------------------------------------------
# Parameter init + pure-JAX reference
# ---------------------------------------------------------------------------
def init_params(key, *, sga_size, can_size, deg_size, embedding_size,
                hidden_size, attention_size, attention_head):
    ks = jax.random.split(key, 8)
    scale = 0.1
    return {
        'emb_sga': scale * jax.random.normal(
            ks[0], (sga_size, embedding_size), jnp.float32),
        'emb_can': scale * jax.random.normal(
            ks[1], (can_size, embedding_size), jnp.float32),
        'wa': scale * jax.random.normal(
            ks[2], (attention_head, embedding_size, attention_size), jnp.float32),
        'va': scale * jax.random.normal(
            ks[3], (attention_head, attention_size), jnp.float32),
        'wh': scale * jax.random.normal(
            ks[4], (embedding_size, hidden_size), jnp.float32),
        'bh': jnp.zeros((1, hidden_size), jnp.float32),
        'wo': scale * jax.random.normal(
            ks[5], (hidden_size, deg_size), jnp.float32),
        'bo': jnp.zeros((1, deg_size), jnp.float32),
    }


def _reference_forward(params, sga_idx, can_idx):
    """Pure-JAX f32 reference (per-head loop) for a correctness check."""
    e = params['emb_sga'][sga_idx]              # [B, T, D]
    c = params['emb_can'][can_idx]              # [B, D]
    H = params['wa'].shape[0]
    pooled = jnp.zeros(c.shape, jnp.float32)
    for h in range(H):
        s = jnp.tanh(jnp.einsum('btd,da->bta', e, params['wa'][h]))
        score = jnp.einsum('bta,a->bt', s, params['va'][h])
        attn = jax.nn.softmax(score, axis=-1)
        pooled = pooled + jnp.einsum('bt,btd->bd', attn, e)
    pooled = pooled / H
    hidden = jax.nn.relu((pooled + c) @ params['wh'] + params['bh'])
    return jax.nn.sigmoid(hidden @ params['wo'] + params['bo'])


if __name__ == "__main__":
    # Small, deterministic hyperparameters consistent with the module's args.
    B = 128             # batch (default tiling -> 2 parallel grid steps of 64)
    num_max_sga = 8     # T
    sga_size = 64
    can_size = 4
    deg_size = 128
    embedding_size = 32
    hidden_size = 32
    attention_size = 16
    attention_head = 4

    key = jax.random.PRNGKey(0)
    k_param, k_sga, k_can = jax.random.split(key, 3)

    params = init_params(
        k_param, sga_size=sga_size, can_size=can_size, deg_size=deg_size,
        embedding_size=embedding_size, hidden_size=hidden_size,
        attention_size=attention_size, attention_head=attention_head)
    prepped = prepare_params(params)        # one-time re-layout (hoisted)

    sga_idx = jax.random.randint(k_sga, (B, num_max_sga), 0, sga_size,
                                 dtype=jnp.int32)
    can_idx = jax.random.randint(k_can, (B,), 0, can_size, dtype=jnp.int32)

    out = model_forward(prepped, sga_idx, can_idx)
    out = jax.block_until_ready(out)

    assert out.shape == (B, deg_size) and out.dtype == jnp.float32
    assert bool(jnp.all(jnp.isfinite(out)))

    ref = _reference_forward(params, sga_idx, can_idx)
    max_err = float(jnp.max(jnp.abs(out - ref)))
    assert max_err < 2e-2, f"kernel/reference mismatch: max abs err {max_err}"

    print("KERNEL_OK")
</pallas_src>

<mosaic_0001>
module attributes {stable_mosaic.version = 11 : i64} {
  func.func @_forward_kernel(%arg0: i32, %arg1: memref<512x1xi32, #tpu.memory_space<vmem>>, %arg2: memref<64x1xi32, #tpu.memory_space<vmem>>, %arg3: memref<64x256xbf16, #tpu.memory_space<vmem>>, %arg4: memref<4x128xbf16, #tpu.memory_space<vmem>>, %arg5: memref<128x4xbf16, #tpu.memory_space<vmem>>, %arg6: memref<128x128xbf16, #tpu.memory_space<vmem>>, %arg7: memref<1x128xf32, #tpu.memory_space<vmem>>, %arg8: memref<64x128xf32, #tpu.memory_space<vmem>>) attributes {dimension_semantics = [#tpu.dimension_semantics<parallel>], iteration_bounds = array<i64: 2>, scalar_prefetch = 0 : i64, scratch_operands = 0 : i64, tpu.core_type = #tpu.core_type<tc>, window_params = [{transform_indices = @transform_0, window_bounds = array<i64: 512, 1>}, {transform_indices = @transform_1, window_bounds = array<i64: 64, 1>}, {pipeline_mode = #tpu.pipeline_mode<synchronous>, transform_indices = @transform_2, window_bounds = array<i64: 64, 256>}, {pipeline_mode = #tpu.pipeline_mode<synchronous>, transform_indices = @transform_3, window_bounds = array<i64: 4, 128>}, {pipeline_mode = #tpu.pipeline_mode<synchronous>, transform_indices = @transform_4, window_bounds = array<i64: 128, 4>}, {pipeline_mode = #tpu.pipeline_mode<synchronous>, transform_indices = @transform_5, window_bounds = array<i64: 128, 128>}, {pipeline_mode = #tpu.pipeline_mode<synchronous>, transform_indices = @transform_6, window_bounds = array<i64: 1, 128>}, {transform_indices = @transform_7, window_bounds = array<i64: 64, 128>}]} {
    %c0 = arith.constant 0 : index
    %c0_0 = arith.constant 0 : index
    %0 = vector.load %arg1[%c0, %c0_0] : memref<512x1xi32, #tpu.memory_space<vmem>>, vector<512x1xi32>
    %1 = tpu.iota {dimensions = array<i32: 1>} : vector<512x64xi32>
    %2 = vector.broadcast %0 : vector<512x1xi32> to vector<512x64xi32>
    %3 = arith.cmpi eq, %2, %1 : vector<512x64xi32>
    %4 = arith.extui %3 : vector<512x64xi1> to vector<512x64xi32>
    %5 = arith.sitofp %4 : vector<512x64xi32> to vector<512x64xf32>
    %6 = arith.truncf %5 : vector<512x64xf32> to vector<512x64xbf16>
    %c0_1 = arith.constant 0 : index
    %c0_2 = arith.constant 0 : index
    %7 = vector.load %arg2[%c0_1, %c0_2] : memref<64x1xi32, #tpu.memory_space<vmem>>, vector<64x1xi32>
    %8 = tpu.iota {dimensions = array<i32: 1>} : vector<64x4xi32>
    %9 = vector.broadcast %7 : vector<64x1xi32> to vector<64x4xi32>
    %10 = arith.cmpi eq, %9, %8 : vector<64x4xi32>
    %11 = arith.extui %10 : vector<64x4xi1> to vector<64x4xi32>
    %12 = arith.sitofp %11 : vector<64x4xi32> to vector<64x4xf32>
    %13 = arith.truncf %12 : vector<64x4xf32> to vector<64x4xbf16>
    %c0_3 = arith.constant 0 : index
    %c0_4 = arith.constant 0 : index
    %14 = vector.load %arg3[%c0_3, %c0_4] : memref<64x256xbf16, #tpu.memory_space<vmem>>, vector<64x256xbf16>
    %cst = arith.constant dense<0.000000e+00> : vector<512x256xf32>
    %15 = tpu.matmul %6, %14, %cst {dimension_numbers = #tpu.dot_dimension_numbers<[1], [0], [0], [1], [0, 0, 1, 1], [], []>} : vector<512x64xbf16>, vector<64x256xbf16>, vector<512x256xf32> -> vector<512x256xf32>
    %16 = vector.extract_strided_slice %15 {offsets = [0, 0], sizes = [512, 128], strides = [1, 1]} : vector<512x256xf32> to vector<512x128xf32>
    %17 = vector.extract_strided_slice %15 {offsets = [0, 128], sizes = [512, 128], strides = [1, 1]} : vector<512x256xf32> to vector<512x128xf32>
    %18 = math.tanh %16 : vector<512x128xf32>
    %19 = arith.truncf %18 : vector<512x128xf32> to vector<512x128xbf16>
    %c0_5 = arith.constant 0 : index
    %c0_6 = arith.constant 0 : index
    %20 = vector.load %arg5[%c0_5, %c0_6] : memref<128x4xbf16, #tpu.memory_space<vmem>>, vector<128x4xbf16>
    %cst_7 = arith.constant dense<0.000000e+00> : vector<512x4xf32>
    %21 = tpu.matmul %19, %20, %cst_7 {dimension_numbers = #tpu.dot_dimension_numbers<[1], [0], [0], [1], [0, 0, 1, 1], [], []>} : vector<512x128xbf16>, vector<128x4xbf16>, vector<512x4xf32> -> vector<512x4xf32>
    %22 = vector.shape_cast %21 : vector<512x4xf32> to vector<64x8x4xf32>
    %cst_8 = arith.constant dense<0xFF800000> : vector<64x4xf32>
    %23 = vector.multi_reduction <maximumf>, %22, %cst_8 [1] : vector<64x8x4xf32> to vector<64x4xf32>
    %24 = vector.shape_cast %23 : vector<64x4xf32> to vector<64x1x4xf32>
    %25 = vector.broadcast %24 : vector<64x1x4xf32> to vector<64x8x4xf32>
    %26 = arith.subf %22, %25 : vector<64x8x4xf32>
    %27 = math.exp %26 : vector<64x8x4xf32>
    %cst_9 = arith.constant dense<0.000000e+00> : vector<64x4xf32>
    %28 = vector.multi_reduction <add>, %27, %cst_9 [1] : vector<64x8x4xf32> to vector<64x4xf32>
    %29 = vector.shape_cast %28 : vector<64x4xf32> to vector<64x1x4xf32>
    %30 = tpu.reciprocal %29 {approx = true} : vector<64x1x4xf32> -> vector<64x1x4xf32>
    %31 = vector.broadcast %30 : vector<64x1x4xf32> to vector<64x8x4xf32>
    %32 = arith.mulf %27, %31 : vector<64x8x4xf32>
    %cst_10 = arith.constant dense<0.000000e+00> : vector<64x8xf32>
    %33 = vector.multi_reduction <add>, %32, %cst_10 [2] : vector<64x8x4xf32> to vector<64x8xf32>
    %34 = vector.shape_cast %33 : vector<64x8xf32> to vector<64x8x1xf32>
    %35 = vector.shape_cast %17 : vector<512x128xf32> to vector<64x8x128xf32>
    %36 = vector.broadcast %34 : vector<64x8x1xf32> to vector<64x8x128xf32>
    %37 = arith.mulf %36, %35 : vector<64x8x128xf32>
    %cst_11 = arith.constant dense<0.000000e+00> : vector<64x128xf32>
    %38 = vector.multi_reduction <add>, %37, %cst_11 [1] : vector<64x8x128xf32> to vector<64x128xf32>
    %c0_12 = arith.constant 0 : index
    %c0_13 = arith.constant 0 : index
    %39 = vector.load %arg4[%c0_12, %c0_13] : memref<4x128xbf16, #tpu.memory_space<vmem>>, vector<4x128xbf16>
    %cst_14 = arith.constant dense<0.000000e+00> : vector<64x128xf32>
    %40 = tpu.matmul %13, %39, %cst_14 {dimension_numbers = #tpu.dot_dimension_numbers<[1], [0], [0], [1], [0, 0, 1, 1], [], []>} : vector<64x4xbf16>, vector<4x128xbf16>, vector<64x128xf32> -> vector<64x128xf32>
    %41 = arith.addf %38, %40 : vector<64x128xf32>
    %cst_15 = arith.constant 0.000000e+00 : f32
    %42 = vector.broadcast %cst_15 : f32 to vector<64x128xf32>
    %43 = arith.maximumf %41, %42 : vector<64x128xf32>
    %44 = arith.truncf %43 : vector<64x128xf32> to vector<64x128xbf16>
    %c0_16 = arith.constant 0 : index
    %c0_17 = arith.constant 0 : index
    %45 = vector.load %arg6[%c0_16, %c0_17] : memref<128x128xbf16, #tpu.memory_space<vmem>>, vector<128x128xbf16>
    %cst_18 = arith.constant dense<0.000000e+00> : vector<64x128xf32>
    %46 = tpu.matmul %44, %45, %cst_18 {dimension_numbers = #tpu.dot_dimension_numbers<[1], [0], [0], [1], [0, 0, 1, 1], [], []>} : vector<64x128xbf16>, vector<128x128xbf16>, vector<64x128xf32> -> vector<64x128xf32>
    %c0_19 = arith.constant 0 : index
    %c0_20 = arith.constant 0 : index
    %47 = vector.load %arg7[%c0_19, %c0_20] : memref<1x128xf32, #tpu.memory_space<vmem>>, vector<1x128xf32>
    %48 = vector.broadcast %47 : vector<1x128xf32> to vector<64x128xf32>
    %49 = arith.addf %46, %48 : vector<64x128xf32>
    %50 = arith.negf %49 : vector<64x128xf32>
    %51 = math.exp %50 : vector<64x128xf32>
    %cst_21 = arith.constant 1.000000e+00 : f32
    %52 = vector.broadcast %cst_21 : f32 to vector<64x128xf32>
    %53 = arith.addf %52, %51 : vector<64x128xf32>
    %54 = arith.divf %52, %53 : vector<64x128xf32>
    %c0_22 = arith.constant 0 : index
    %c0_23 = arith.constant 0 : index
    %55 = vector.load %arg8[%c0_22, %c0_23] : memref<64x128xf32, #tpu.memory_space<vmem>>, vector<64x128xf32>
    tpu.vector_store %arg8[%c0_22, %c0_23], %54 {strides = array<i32>} : memref<64x128xf32, #tpu.memory_space<vmem>>, vector<64x128xf32>,
    return
  }
  func.func @transform_0(%arg0: i32) -> (i32, i32) {
    %c0_i32 = arith.constant 0 : i32
    %c0_i32_0 = arith.constant 0 : i32
    return %arg0, %c0_i32 : i32, i32
  }
  func.func @transform_1(%arg0: i32) -> (i32, i32) {
    %c0_i32 = arith.constant 0 : i32
    %c0_i32_0 = arith.constant 0 : i32
    return %arg0, %c0_i32 : i32, i32
  }
  func.func @transform_2(%arg0: i32) -> (i32, i32) {
    %c0_i32 = arith.constant 0 : i32
    %c0_i32_0 = arith.constant 0 : i32
    %c0_i32_1 = arith.constant 0 : i32
    return %c0_i32, %c0_i32_0 : i32, i32
  }
  func.func @transform_3(%arg0: i32) -> (i32, i32) {
    %c0_i32 = arith.constant 0 : i32
    %c0_i32_0 = arith.constant 0 : i32
    %c0_i32_1 = arith.constant 0 : i32
    return %c0_i32, %c0_i32_0 : i32, i32
  }
  func.func @transform_4(%arg0: i32) -> (i32, i32) {
    %c0_i32 = arith.constant 0 : i32
    %c0_i32_0 = arith.constant 0 : i32
    %c0_i32_1 = arith.constant 0 : i32
    return %c0_i32, %c0_i32_0 : i32, i32
  }
  func.func @transform_5(%arg0: i32) -> (i32, i32) {
    %c0_i32 = arith.constant 0 : i32
    %c0_i32_0 = arith.constant 0 : i32
    %c0_i32_1 = arith.constant 0 : i32
    return %c0_i32, %c0_i32_0 : i32, i32
  }
  func.func @transform_6(%arg0: i32) -> (i32, i32) {
    %c0_i32 = arith.constant 0 : i32
    %c0_i32_0 = arith.constant 0 : i32
    %c0_i32_1 = arith.constant 0 : i32
    return %c0_i32, %c0_i32_0 : i32, i32
  }
  func.func @transform_7(%arg0: i32) -> (i32, i32) {
    %c0_i32 = arith.constant 0 : i32
    %c0_i32_0 = arith.constant 0 : i32
    return %arg0, %c0_i32 : i32, i32
  }
}

module attributes {stable_mosaic.version = 11 : i64} {
  func.func @_forward_kernel(%arg0: i32, %arg1: memref<512x1xi32, #tpu.memory_space<vmem>>, %arg2: memref<64x1xi32, #tpu.memory_space<vmem>>, %arg3: memref<64x256xbf16, #tpu.memory_space<vmem>>, %arg4: memref<4x128xbf16, #tpu.memory_space<vmem>>, %arg5: memref<128x4xbf16, #tpu.memory_space<vmem>>, %arg6: memref<128x128xbf16, #tpu.memory_space<vmem>>, %arg7: memref<1x128xf32, #tpu.memory_space<vmem>>, %arg8: memref<64x128xf32, #tpu.memory_space<vmem>>) attributes {dimension_semantics = [#tpu.dimension_semantics<parallel>], iteration_bounds = array<i64: 2>, scalar_prefetch = 0 : i64, scratch_operands = 0 : i64, tpu.core_type = #tpu.core_type<tc>, window_params = [{transform_indices = @transform_0, window_bounds = array<i64: 512, 1>}, {transform_indices = @transform_1, window_bounds = array<i64: 64, 1>}, {pipeline_mode = #tpu.pipeline_mode<synchronous>, transform_indices = @transform_2, window_bounds = array<i64: 64, 256>}, {pipeline_mode = #tpu.pipeline_mode<synchronous>, transform_indices = @transform_3, window_bounds = array<i64: 4, 128>}, {pipeline_mode = #tpu.pipeline_mode<synchronous>, transform_indices = @transform_4, window_bounds = array<i64: 128, 4>}, {pipeline_mode = #tpu.pipeline_mode<synchronous>, transform_indices = @transform_5, window_bounds = array<i64: 128, 128>}, {pipeline_mode = #tpu.pipeline_mode<synchronous>, transform_indices = @transform_6, window_bounds = array<i64: 1, 128>}, {transform_indices = @transform_7, window_bounds = array<i64: 64, 128>}]} {
    %c0 = arith.constant 0 : index
    %c0_0 = arith.constant 0 : index
    %0 = vector.load %arg1[%c0, %c0_0] : memref<512x1xi32, #tpu.memory_space<vmem>>, vector<512x1xi32>
    %1 = tpu.iota {dimensions = array<i32: 1>} : vector<512x64xi32>
    %2 = vector.broadcast %0 : vector<512x1xi32> to vector<512x64xi32>
    %3 = arith.cmpi eq, %2, %1 : vector<512x64xi32>
    %4 = arith.extui %3 : vector<512x64xi1> to vector<512x64xi32>
    %5 = arith.sitofp %4 : vector<512x64xi32> to vector<512x64xf32>
    %6 = arith.truncf %5 : vector<512x64xf32> to vector<512x64xbf16>
    %c0_1 = arith.constant 0 : index
    %c0_2 = arith.constant 0 : index
    %7 = vector.load %arg2[%c0_1, %c0_2] : memref<64x1xi32, #tpu.memory_space<vmem>>, vector<64x1xi32>
    %8 = tpu.iota {dimensions = array<i32: 1>} : vector<64x4xi32>
    %9 = vector.broadcast %7 : vector<64x1xi32> to vector<64x4xi32>
    %10 = arith.cmpi eq, %9, %8 : vector<64x4xi32>
    %11 = arith.extui %10 : vector<64x4xi1> to vector<64x4xi32>
    %12 = arith.sitofp %11 : vector<64x4xi32> to vector<64x4xf32>
    %13 = arith.truncf %12 : vector<64x4xf32> to vector<64x4xbf16>
    %c0_3 = arith.constant 0 : index
    %c0_4 = arith.constant 0 : index
    %14 = vector.load %arg3[%c0_3, %c0_4] : memref<64x256xbf16, #tpu.memory_space<vmem>>, vector<64x256xbf16>
    %cst = arith.constant dense<0.000000e+00> : vector<512x256xf32>
    %15 = tpu.matmul %6, %14, %cst {dimension_numbers = #tpu.dot_dimension_numbers<[1], [0], [0], [1], [0, 0, 1, 1], [], []>} : vector<512x64xbf16>, vector<64x256xbf16>, vector<512x256xf32> -> vector<512x256xf32>
    %16 = vector.extract_strided_slice %15 {offsets = [0, 0], sizes = [512, 128], strides = [1, 1]} : vector<512x256xf32> to vector<512x128xf32>
    %17 = vector.extract_strided_slice %15 {offsets = [0, 128], sizes = [512, 128], strides = [1, 1]} : vector<512x256xf32> to vector<512x128xf32>
    %18 = math.tanh %16 : vector<512x128xf32>
    %19 = arith.truncf %18 : vector<512x128xf32> to vector<512x128xbf16>
    %c0_5 = arith.constant 0 : index
    %c0_6 = arith.constant 0 : index
    %20 = vector.load %arg5[%c0_5, %c0_6] : memref<128x4xbf16, #tpu.memory_space<vmem>>, vector<128x4xbf16>
    %cst_7 = arith.constant dense<0.000000e+00> : vector<512x4xf32>
    %21 = tpu.matmul %19, %20, %cst_7 {dimension_numbers = #tpu.dot_dimension_numbers<[1], [0], [0], [1], [0, 0, 1, 1], [], []>} : vector<512x128xbf16>, vector<128x4xbf16>, vector<512x4xf32> -> vector<512x4xf32>
    %22 = vector.shape_cast %21 : vector<512x4xf32> to vector<64x8x4xf32>
    %cst_8 = arith.constant dense<0xFF800000> : vector<64x4xf32>
    %23 = vector.multi_reduction <maximumf>, %22, %cst_8 [1] : vector<64x8x4xf32> to vector<64x4xf32>
    %24 = vector.shape_cast %23 : vector<64x4xf32> to vector<64x1x4xf32>
    %25 = vector.broadcast %24 : vector<64x1x4xf32> to vector<64x8x4xf32>
    %26 = arith.subf %22, %25 : vector<64x8x4xf32>
    %27 = math.exp %26 : vector<64x8x4xf32>
    %cst_9 = arith.constant dense<0.000000e+00> : vector<64x4xf32>
    %28 = vector.multi_reduction <add>, %27, %cst_9 [1] : vector<64x8x4xf32> to vector<64x4xf32>
    %29 = vector.shape_cast %28 : vector<64x4xf32> to vector<64x1x4xf32>
    %30 = tpu.reciprocal %29 {approx = true} : vector<64x1x4xf32> -> vector<64x1x4xf32>
    %31 = vector.broadcast %30 : vector<64x1x4xf32> to vector<64x8x4xf32>
    %32 = arith.mulf %27, %31 : vector<64x8x4xf32>
    %cst_10 = arith.constant dense<0.000000e+00> : vector<64x8xf32>
    %33 = vector.multi_reduction <add>, %32, %cst_10 [2] : vector<64x8x4xf32> to vector<64x8xf32>
    %34 = vector.shape_cast %33 : vector<64x8xf32> to vector<64x8x1xf32>
    %35 = vector.shape_cast %17 : vector<512x128xf32> to vector<64x8x128xf32>
    %36 = vector.broadcast %34 : vector<64x8x1xf32> to vector<64x8x128xf32>
    %37 = arith.mulf %36, %35 : vector<64x8x128xf32>
    %cst_11 = arith.constant dense<0.000000e+00> : vector<64x128xf32>
    %38 = vector.multi_reduction <add>, %37, %cst_11 [1] : vector<64x8x128xf32> to vector<64x128xf32>
    %c0_12 = arith.constant 0 : index
    %c0_13 = arith.constant 0 : index
    %39 = vector.load %arg4[%c0_12, %c0_13] : memref<4x128xbf16, #tpu.memory_space<vmem>>, vector<4x128xbf16>
    %cst_14 = arith.constant dense<0.000000e+00> : vector<64x128xf32>
    %40 = tpu.matmul %13, %39, %cst_14 {dimension_numbers = #tpu.dot_dimension_numbers<[1], [0], [0], [1], [0, 0, 1, 1], [], []>} : vector<64x4xbf16>, vector<4x128xbf16>, vector<64x128xf32> -> vector<64x128xf32>
    %41 = arith.addf %38, %40 : vector<64x128xf32>
    %cst_15 = arith.constant 0.000000e+00 : f32
    %42 = vector.broadcast %cst_15 : f32 to vector<64x128xf32>
    %43 = arith.maximumf %41, %42 : vector<64x128xf32>
    %44 = arith.truncf %43 : vector<64x128xf32> to vector<64x128xbf16>
    %c0_16 = arith.constant 0 : index
    %c0_17 = arith.constant 0 : index
    %45 = vector.load %arg6[%c0_16, %c0_17] : memref<128x128xbf16, #tpu.memory_space<vmem>>, vector<128x128xbf16>
    %cst_18 = arith.constant dense<0.000000e+00> : vector<64x128xf32>
    %46 = tpu.matmul %44, %45, %cst_18 {dimension_numbers = #tpu.dot_dimension_numbers<[1], [0], [0], [1], [0, 0, 1, 1], [], []>} : vector<64x128xbf16>, vector<128x128xbf16>, vector<64x128xf32> -> vector<64x128xf32>
    %c0_19 = arith.constant 0 : index
    %c0_20 = arith.constant 0 : index
    %47 = vector.load %arg7[%c0_19, %c0_20] : memref<1x128xf32, #tpu.memory_space<vmem>>, vector<1x128xf32>
    %48 = vector.broadcast %47 : vector<1x128xf32> to vector<64x128xf32>
    %49 = arith.addf %46, %48 : vector<64x128xf32>
    %50 = arith.negf %49 : vector<64x128xf32>
    %51 = math.exp %50 : vector<64x128xf32>
    %cst_21 = arith.constant 1.000000e+00 : f32
    %52 = vector.broadcast %cst_21 : f32 to vector<64x128xf32>
    %53 = arith.addf %52, %51 : vector<64x128xf32>
    %54 = arith.divf %52, %53 : vector<64x128xf32>
    %c0_22 = arith.constant 0 : index
    %c0_23 = arith.constant 0 : index
    %55 = vector.load %arg8[%c0_22, %c0_23] : memref<64x128xf32, #tpu.memory_space<vmem>>, vector<64x128xf32>
    tpu.vector_store %arg8[%c0_22, %c0_23], %54 {strides = array<i32>} : memref<64x128xf32, #tpu.memory_space<vmem>>, vector<64x128xf32>,
    return
  }
  func.func @transform_0(%arg0: i32) -> (i32, i32) {
    %c0_i32 = arith.constant 0 : i32
    %c0_i32_0 = arith.constant 0 : i32
    return %arg0, %c0_i32 : i32, i32
  }
  func.func @transform_1(%arg0: i32) -> (i32, i32) {
    %c0_i32 = arith.constant 0 : i32
    %c0_i32_0 = arith.constant 0 : i32
    return %arg0, %c0_i32 : i32, i32
  }
  func.func @transform_2(%arg0: i32) -> (i32, i32) {
    %c0_i32 = arith.constant 0 : i32
    %c0_i32_0 = arith.constant 0 : i32
    %c0_i32_1 = arith.constant 0 : i32
    return %c0_i32, %c0_i32_0 : i32, i32
  }
  func.func @transform_3(%arg0: i32) -> (i32, i32) {
    %c0_i32 = arith.constant 0 : i32
    %c0_i32_0 = arith.constant 0 : i32
    %c0_i32_1 = arith.constant 0 : i32
    return %c0_i32, %c0_i32_0 : i32, i32
  }
  func.func @transform_4(%arg0: i32) -> (i32, i32) {
    %c0_i32 = arith.constant 0 : i32
    %c0_i32_0 = arith.constant 0 : i32
    %c0_i32_1 = arith.constant 0 : i32
    return %c0_i32, %c0_i32_0 : i32, i32
  }
  func.func @transform_5(%arg0: i32) -> (i32, i32) {
    %c0_i32 = arith.constant 0 : i32
    %c0_i32_0 = arith.constant 0 : i32
    %c0_i32_1 = arith.constant 0 : i32
    return %c0_i32, %c0_i32_0 : i32, i32
  }
  func.func @transform_6(%arg0: i32) -> (i32, i32) {
    %c0_i32 = arith.constant 0 : i32
    %c0_i32_0 = arith.constant 0 : i32
    %c0_i32_1 = arith.constant 0 : i32
    return %c0_i32, %c0_i32_0 : i32, i32
  }
  func.func @transform_7(%arg0: i32) -> (i32, i32) {
    %c0_i32 = arith.constant 0 : i32
    %c0_i32_0 = arith.constant 0 : i32
    return %arg0, %c0_i32 : i32, i32
  }
}

</mosaic_0001>

<bundles_post_ra>
// kernel: tpu_custom_call.1
= control target key start
LH: loop header
LB: loop body
LE: loop exit
PB: predicated region body
PF: predicated region fallthrough
CT: control target
= control target key end

     0   :  { %12 = vsyncpa [#allocation3], 0  ;;  %s7663_s0 = inlined_call_operand.vmem [shape: s32[1024,1], index: 0, kind: input, shape index: {}]   ;;  %s7664_s1 = inlined_call_operand.vmem [shape: s32[128,1], index: 1, kind: input, shape index: {}]   ;;  %s7665_s2 = inlined_call_operand.vmem [shape: bf16[64,256], index: 2, kind: input, shape index: {}]   ;;  %s7666_s3 = inlined_call_operand.vmem [shape: bf16[4,128], index: 3, kind: input, shape index: {}]   ;;  %s7667_s4 = inlined_call_operand.vmem [shape: bf16[128,4], index: 4, kind: input, shape index: {}]   ;;  %s7668_s5 = inlined_call_operand.vmem [shape: bf16[128,128], index: 5, kind: input, shape index: {}]   ;;  %s7669_s6 = inlined_call_operand.vmem [shape: f32[1,128], index: 6, kind: input, shape index: {}]   ;;  %s7670_s7 = inlined_call_operand.hbm [shape: f32[128,128], index: 7, kind: output, shape index: {}]  }
   0x1   :  { %14 = vsyncpa [#allocation3 + $0x1], 0  ;;  %s5520_s24 = smov 0   ;;  %s5522_s25 = smov 0  }
   0x2   :  { %s5524_s26 = smov 0   ;;  %s5526_s27 = smov 0  }
   0x3 LB: > { %s5541_s28 = sadd.s32 4294967295, %s5473_s27   ;;  %s4586_s29 = sadd.s32 4294967294, %s5473_s27   ;;  %s5473_s27 = sphi %s5526_s27, %s7907_s27   ;;  %s5469_s26 = sphi %s5524_s26, %s7906_s26   ;;  %s5465_s25 = sphi %s5522_s25, %s7905_s25   ;;  %s5461_s24 = sphi %s5520_s24, %s7904_s24  }
   0x4   : > { %s5545_s30 = sadd.s32 1, %s5473_s27   ;;  %s184_s8 = sadd.s32 1, %s5469_s26 }
   0x5   : > { %s181_s9 = ssub.s32 %s5473_s27, %s5545_s30  ;;  %p194_p0 = scmp.ne.s32.totalorder %s5469_s26, %s5465_s25 }
   0x6   : > { %p182_p1 = scmp.eq.s32.totalorder %s181_s9, 0  ;;  %p195_p2 = scmp.eq.s32.totalorder %s5541_s28, 1 }
   0x7   : > { %p200_p3 = scmp.ne.s32.totalorder %s5465_s25, %s5461_s24  ;;  %p201_p4 = scmp.eq.s32.totalorder %s4586_s29, 1 }
   0x8   : > { %s5556_s10 = scalar_select %p182_p1, %s5469_s26, %s184_s8  }
   0x9   : > { %p5558_p5 = por %p195_p2, %p194_p0  ;;  %p5562_p6 = por %p201_p4, %p200_p3 }
   0xa   : > { %p4589_p7 = scmp.ge.s32.totalorder %s5473_s27, 1  ;;  %p252_p8 = scmp.lt.s32.totalorder %s5473_s27, 3 }
   0xc   : > { %p253_p9 = pnand %p4589_p7, %p252_p8 }
   0xe   : > { %256 = sbr.rel (%p253_p9) target bundleno = 1463 (0x5b7), region = 48 }
  0x15   : > { %s4591_s13 = sshll.u32 %s5541_s28, 6  ;;  %v4967_v0 = vld [vmem:[%s7665_s2 + $0x4] ss:$8 sps:$4 sm:$0xff]   ;;  %v5475_v1 = vmov 0   ;;  %v4969_v2 = vld [vmem:[%s7665_s2] ss:$8 sps:$4 sm:$0xff]  }
  0x16   : > { %4966 = vset.pattern.permute.xlu1 %v5475_v1  ;;  %4965 = vset.pattern.permute.xlu0 %v5475_v1  ;;  %p290_p10 = scmp.lt.s32.totalorder %s4591_s13, 127  ;;  %v4970_v3 = vld [vmem:[%s7665_s2 + $0x14] ss:$8 sps:$4 sm:$0xff]   ;;  %v4972_v4 = vld [vmem:[%s7665_s2 + $0x10] ss:$8 sps:$4 sm:$0xff]   ;;  %s4593_s20 = sshll.u32 %s5541_s28, 3 }
  0x17   : > { %990 = vmatprep.subr.bf16.mxu0 %v4967_v0  ;;  %1022 = vmatprep.mubr.bf16.mxu0 %v5475_v1  ;;  %v4973_v5 = vld [vmem:[%s7665_s2 + $0x24] ss:$8 sps:$4 sm:$0xff]   ;;  %v4975_v20 = vld [vmem:[%s7665_s2 + $0x20] ss:$8 sps:$4 sm:$0xff]   ;;  %v4976_v21 = vld [vmem:[%s7665_s2 + $0x34] ss:$8 sps:$4 sm:$0xff]  }
  0x18   : > { %s7909_s13 = smov (!%p290_p10, %s4591_s13), 127  ;;  %991 = vmatpush1.bf16.msra.mxu0 %v4969_v2  ;;  %4913 = vmatprep.subr.bf16.mxu1 %v4967_v0  ;;  %v4978_v24 = vld [vmem:[%s7665_s2 + $0x30] ss:$8 sps:$4 sm:$0xff]   ;;  %p296_p11 = scmp.lt.s32.totalorder %s4593_s20, 15  ;;  %vm893_vm2 = vcmask 523264  }
  0x19   : > { %992 = vmatprep.subr.bf16.mxu0 %v4970_v3  ;;  %4917 = vmatpush1.bf16.msra.mxu1 %v4969_v2  ;;  %s4592_s22 = sshll.u32 %s7909_s13, 3  ;;  %s286_s19 = sand.u32 1, %s5465_s25  }
  0x1a   : > { %4914 = vmatprep.subr.bf16.mxu1 %v4970_v3  ;;  %1292 = vmatprep.mubr.bf16.mxu1 %v5475_v1  ;;  %s5588_s8 = scalar_lea.vmem %s7663_s0, %s4592_s22  ;;  %s7911_s20 = smov (!%p296_p11, %s4593_s20), 15 }
  0x1b   : > { %v305_v6 = vld [vmem:[%s5588_s8 + $0x10] sm:$0xff]  ;;  %v303_v7 = vld [vmem:[%s5588_s8] sm:$0xff]  ;;  %v306_v8 = vld [vmem:[%s5588_s8 + $0x18] sm:$0xff]  ;;  %s4594_s21 = sshll.u32 %s7911_s20, 3  ;;  %s4590_s20 = sshll.u32 %s286_s19, 6 }
  0x1c   : > { %993 = vmatpush1.bf16.msra.mxu0 %v4972_v4  ;;  %376 = vperm.xlu1 %4966, %v305_v6   ;;  %v304_v9 = vld [vmem:[%s5588_s8 + $0x8] sm:$0xff]  ;;  %v307_v11 = vld [vmem:[%s5588_s8 + $0x20] sm:$0xff]  ;;  %v310_v12 = vld [vmem:[%s5588_s8 + $0x38] sm:$0xff]  ;;  %s5670_s29 = scalar_lea.vmem %s7664_s1, %s4594_s21  ;;  %s7601_s21 = scalar_lea.vmem [#allocation2], %s4590_s20 }
  0x1d   : > { %370 = vperm.xlu0 %4965, %v303_v7   ;;  %994 = vmatprep.subr.bf16.mxu0 %v4973_v5  ;;  %v308_v10 = vld [vmem:[%s5588_s8 + $0x28] sm:$0xff]  ;;  %v309_v13 = vld [vmem:[%s5588_s8 + $0x30] sm:$0xff]  ;;  %v311_v15 = vld [vmem:[%s5588_s8 + $0x40] sm:$0xff]  ;;  %s4741_s22 = sshll.u32 %s5541_s28, 10  ;;  %s4512_s23 = sshll.u32 %s7601_s21, 4  ;;  %s7615_s23 = int_to_ptr.vmem [resolvable:$true] %s4512_s23 }
  0x1e   : > { %4918 = vmatpush1.bf16.msra.mxu1 %v4972_v4  ;;  %v312_v14 = vld [vmem:[%s5588_s8 + $0x48] sm:$0xff]  ;;  %v314_v16 = vld [vmem:[%s5588_s8 + $0x58] sm:$0xff]  ;;  %v313_v17 = vld [vmem:[%s5588_s8 + $0x50] sm:$0xff]  ;;  %s7613_s9 = scalar_lea.hbm %s7670_s7, %s4741_s22  ;;  %s7622_s28 = scalar_lea.sflag [#allocation3], %s286_s19 }
  0x1f   : > { %4915 = vmatprep.subr.bf16.mxu1 %v4973_v5  ;;  %v316_v18 = vld [vmem:[%s5588_s8 + $0x68] sm:$0xff]  ;;  %v315_v19 = vld [vmem:[%s5588_s8 + $0x60] sm:$0xff]  ;;  %v318_v22 = vld [vmem:[%s5588_s8 + $0x78] sm:$0xff]  ;;  %s5411_s14 = scalar_lea.vmem %s7615_s23, 1024  ;;  %s5477_s13 = smov [#allocation2]  }
  0x20   : > { %379 = vperm.xlu1 %4966, %v306_v8   ;;  %v317_v23 = vld [vmem:[%s5588_s8 + $0x70] sm:$0xff]  ;;  %995 = vmatpush1.bf16.msra.mxu0 %v4975_v20  ;;  %v320_v25 = vld [vmem:[%s5588_s8 + $0x88] sm:$0xff]  ;;  %v319_v26 = vld [vmem:[%s5588_s8 + $0x80] sm:$0xff]  ;;  %p5412_p12 = scmp.ne.s32.totalorder %s7615_s23, %s5411_s14  ;;  %s5415_s15 = sshll.u32 %s5477_s13, 4  ;;  %s5416_s15 = int_to_ptr.vmem [resolvable:$false] %s5415_s15 }
  0x21   : > { %373 = vperm.xlu0 %4965, %v304_v9   ;;  %996 = vmatprep.subr.bf16.mxu0 %v4976_v21  ;;  %v322_v27 = vld [vmem:[%s5588_s8 + $0x98] sm:$0xff]  ;;  %v321_v28 = vld [vmem:[%s5588_s8 + $0x90] sm:$0xff]  ;;  %v324_v29 = vld [vmem:[%s5588_s8 + $0xa8] sm:$0xff]  ;;  %s5417_s16 = scalar_lea.vmem %s5416_s15, 2048  ;;  %p5418_p1 = scmp.lt.s32.totalorder %s7615_s23, %s5416_s15 }
  0x22   : > { %4919 = vmatpush1.bf16.msra.mxu1 %v4975_v20  ;;  %v323_v30 = vld [vmem:[%s5588_s8 + $0xa0] sm:$0xff]  ;;  %v326_v31 = vld [vmem:[%s5588_s8 + $0xb8] sm:$0xff]  ;;  %v325_v32 = vld [vmem:[%s5588_s8 + $0xb0] sm:$0xff]  ;;  %v7671_v20 = vmov 0.0   ;;  %p5413_p13 = pnand %p5412_p12, %p5558_p5  ;;  %p5419_p2 = scmp.lt.s32.totalorder %s5417_s16, %s5411_s14 }
  0x23   : > { %4916 = vmatprep.subr.bf16.mxu1 %v4976_v21  ;;  %v328_v33 = vld [vmem:[%s5588_s8 + $0xc8] sm:$0xff]  ;;  %v327_v34 = vld [vmem:[%s5588_s8 + $0xc0] sm:$0xff]  ;;  %v330_v35 = vld [vmem:[%s5588_s8 + $0xd8] sm:$0xff] }
  0x24   : > { %385 = vperm.xlu1 %4966, %v308_v10   ;;  %997 = vmatpush1.bf16.msra.mxu0 %v4978_v24  ;;  %v329_v36 = vld [vmem:[%s5588_s8 + $0xd0] sm:$0xff]  ;;  %v332_v37 = vld [vmem:[%s5588_s8 + $0xe8] sm:$0xff]  ;;  %v331_v38 = vld [vmem:[%s5588_s8 + $0xe0] sm:$0xff]  ;;  %v367_v10 = vlaneseq  ;;  %p5414_p0 = pneg %p5413_p13  ;;  %p5420_p3 = por %p5419_p2, %p5418_p1 }
  0x25   : > { %382 = vperm.xlu0 %4965, %v307_v11   ;;  %v334_v39 = vld [vmem:[%s5588_s8 + $0xf8] sm:$0xff]  ;;  %v333_v40 = vld [vmem:[%s5588_s8 + $0xf0] sm:$0xff]  ;;  %v336_v41 = vld [vmem:[%s5588_s8 + $0x108] sm:$0xff] }
  0x26   : > { %4920 = vmatpush1.bf16.msra.mxu1 %v4978_v24  ;;  %v335_v42 = vld [vmem:[%s5588_s8 + $0x100] sm:$0xff]  ;;  %v338_v43 = vld [vmem:[%s5588_s8 + $0x118] sm:$0xff]  ;;  %v337_v44 = vld [vmem:[%s5588_s8 + $0x110] sm:$0xff]  ;;  %p5421_p4 = pnand %p5420_p3, %p5414_p0 }
  0x27   : > { %v340_v45 = vld [vmem:[%s5588_s8 + $0x128] sm:$0xff]  ;;  %v339_v46 = vld [vmem:[%s5588_s8 + $0x120] sm:$0xff]  ;;  %v342_v47 = vld [vmem:[%s5588_s8 + $0x138] sm:$0xff] }
  0x28   : > { %391 = vperm.xlu1 %4966, %v310_v12   ;;  %v341_v48 = vld [vmem:[%s5588_s8 + $0x130] sm:$0xff]  ;;  %v344_v49 = vld [vmem:[%s5588_s8 + $0x148] sm:$0xff]  ;;  %v343_v50 = vld [vmem:[%s5588_s8 + $0x140] sm:$0xff] }
  0x29   : > { %388 = vperm.xlu0 %4965, %v309_v13   ;;  %v346_v51 = vld [vmem:[%s5588_s8 + $0x158] sm:$0xff]  ;;  %v345_v52 = vld [vmem:[%s5588_s8 + $0x150] sm:$0xff]  ;;  %v348_v53 = vld [vmem:[%s5588_s8 + $0x168] sm:$0xff]  ;;  %v5674_v13 = vand.u32 127, %v367_v10 }
  0x2a   : > { %v347_v54 = vld [vmem:[%s5588_s8 + $0x160] sm:$0xff]  ;;  %v350_v55 = vld [vmem:[%s5588_s8 + $0x178] sm:$0xff]  ;;  %v349_v56 = vld [vmem:[%s5588_s8 + $0x170] sm:$0xff] }
  0x2b   : > { %v352_v57 = vld [vmem:[%s5588_s8 + $0x188] sm:$0xff]  ;;  %v351_v58 = vld [vmem:[%s5588_s8 + $0x180] sm:$0xff]  ;;  %v358_v59 = vld [vmem:[%s5588_s8 + $0x1b8] sm:$0xff] }
  0x2c   : > { %397 = vperm.xlu1 %4966, %v312_v14   ;;  %v357_v60 = vld [vmem:[%s5588_s8 + $0x1b0] sm:$0xff]  ;;  %v354_v61 = vld [vmem:[%s5588_s8 + $0x198] sm:$0xff]  ;;  %v360_v63 = vld [vmem:[%s5588_s8 + $0x1c8] sm:$0xff] }
  0x2d   : > { %394 = vperm.xlu0 %4965, %v311_v15   ;;  %v353_v62 = vld [vmem:[%s5588_s8 + $0x190] sm:$0xff]  ;;  %v359_v0 = vld [vmem:[%s5588_s8 + $0x1c0] sm:$0xff]  ;;  %v356_v2 = vld [vmem:[%s5588_s8 + $0x1a8] sm:$0xff] }
  0x2e   : > { %v355_v3 = vld [vmem:[%s5588_s8 + $0x1a0] sm:$0xff]  ;;  %v362_v4 = vld [vmem:[%s5588_s8 + $0x1d8] sm:$0xff]  ;;  %v361_v5 = vld [vmem:[%s5588_s8 + $0x1d0] sm:$0xff] }
  0x2f   : > { %v364_v6 = vld [vmem:[%s5588_s8 + $0x1e8] sm:$0xff]  ;;  %v363_v7 = vld [vmem:[%s5588_s8 + $0x1e0] sm:$0xff]  ;;  %v366_v8 = vld [vmem:[%s5588_s8 + $0x1f8] sm:$0xff] }
  0x30   : > { %403 = vperm.xlu1 %4966, %v314_v16   ;;  %v365_v9 = vld [vmem:[%s5588_s8 + $0x1f0] sm:$0xff]  ;;  %v786_v11 = vld [vmem:[%s5670_s29 + $0x8] sm:$0xff]  ;;  %v785_v12 = vld [vmem:[%s5670_s29] sm:$0xff] }
  0x31   : > { %400 = vperm.xlu0 %4965, %v313_v17   ;;  %v788_v16 = vld [vmem:[%s5670_s29 + $0x18] sm:$0xff]  ;;  %v787_v17 = vld [vmem:[%s5670_s29 + $0x10] sm:$0xff]  ;;  %v789_v24 = vld [vmem:[%s5670_s29 + $0x20] sm:$0xff] }
  0x34   : > { %409 = vperm.xlu1 %4966, %v316_v18  }
  0x35   : > { %406 = vperm.xlu0 %4965, %v315_v19  }
  0x38   : > { %415 = vperm.xlu1 %4966, %v318_v22  }
  0x39   : > { %412 = vperm.xlu0 %4965, %v317_v23   ;;  %v790_v23 = vld [vmem:[%s5670_s29 + $0x28] sm:$0xff] }
  0x3c   : > { %421 = vperm.xlu1 %4966, %v320_v25  }
  0x3d   : > { %418 = vperm.xlu0 %4965, %v319_v26  }
  0x40   : > { %427 = vperm.xlu1 %4966, %v322_v27  }
  0x41   : > { %424 = vperm.xlu0 %4965, %v321_v28   ;;  %v792_v28 = vld [vmem:[%s5670_s29 + $0x38] sm:$0xff] }
  0x44   : > { %433 = vperm.xlu1 %4966, %v324_v29   ;;  %v791_v29 = vld [vmem:[%s5670_s29 + $0x30] sm:$0xff] }
  0x45   : > { %430 = vperm.xlu0 %4965, %v323_v30  }
  0x48   : > { %439 = vperm.xlu1 %4966, %v326_v31  }
  0x49   : > { %436 = vperm.xlu0 %4965, %v325_v32  }
  0x4c   : > { %445 = vperm.xlu1 %4966, %v328_v33  }
  0x4d   : > { %442 = vperm.xlu0 %4965, %v327_v34  }
  0x50   : > { %451 = vperm.xlu1 %4966, %v330_v35  }
  0x51   : > { %448 = vperm.xlu0 %4965, %v329_v36  }
  0x54   : > { %457 = vperm.xlu1 %4966, %v332_v37  }
  0x55   : > { %454 = vperm.xlu0 %4965, %v331_v38  }
  0x58   : > { %463 = vperm.xlu1 %4966, %v334_v39  }
  0x59   : > { %460 = vperm.xlu0 %4965, %v333_v40  }
  0x5c   : > { %469 = vperm.xlu1 %4966, %v336_v41  }
  0x5d   : > { %466 = vperm.xlu0 %4965, %v335_v42  }
  0x60   : > { %475 = vperm.xlu1 %4966, %v338_v43  }
  0x61   : > { %472 = vperm.xlu0 %4965, %v337_v44  }
  0x64   : > { %481 = vperm.xlu1 %4966, %v340_v45  }
  0x65   : > { %478 = vperm.xlu0 %4965, %v339_v46  }
  0x68   : > { %487 = vperm.xlu1 %4966, %v342_v47  }
  0x69   : > { %484 = vperm.xlu0 %4965, %v341_v48  }
  0x6c   : > { %493 = vperm.xlu1 %4966, %v344_v49  }
  0x6d   : > { %490 = vperm.xlu0 %4965, %v343_v50  }
  0x70   : > { %499 = vperm.xlu1 %4966, %v346_v51  }
  0x71   : > { %496 = vperm.xlu0 %4965, %v345_v52  }
  0x74   : > { %505 = vperm.xlu1 %4966, %v348_v53  }
  0x75   : > { %502 = vperm.xlu0 %4965, %v347_v54  }
  0x78   : > { %511 = vperm.xlu1 %4966, %v350_v55  }
  0x79   : > { %508 = vperm.xlu0 %4965, %v349_v56  }
  0x7c   : > { %517 = vperm.xlu1 %4966, %v352_v57  }
  0x7d   : > { %514 = vperm.xlu0 %4965, %v351_v58  }
  0x80   : > { %535 = vperm.xlu1 %4966, %v358_v59  }
  0x81   : > { %532 = vperm.xlu0 %4965, %v357_v60  }
  0x84   : > { %523 = vperm.xlu1 %4966, %v354_v61  }
  0x85   : > { %520 = vperm.xlu0 %4965, %v353_v62  }
  0x88   : > { %541 = vperm.xlu1 %4966, %v360_v63  }
  0x89   : > { %538 = vperm.xlu0 %4965, %v359_v0  }
  0x8c   : > { %529 = vperm.xlu1 %4966, %v356_v2  }
  0x8d   : > { %526 = vperm.xlu0 %4965, %v355_v3  }
  0x90   : > { %547 = vperm.xlu1 %4966, %v362_v4  }
  0x91   : > { %544 = vperm.xlu0 %4965, %v361_v5  }
  0x94   : > { %553 = vperm.xlu1 %4966, %v364_v6  }
  0x95   : > { %550 = vperm.xlu0 %4965, %v363_v7  }
  0x98   : > { %559 = vperm.xlu1 %4966, %v366_v8  }
  0x99   : > { %556 = vperm.xlu0 %4965, %v365_v9  }
  0x9b   : > { %v377_v14 = vpop.permute.xlu1 %376 }
  0x9c   : > { %v371_v15 = vpop.permute.xlu0 %370  ;;  %797 = vperm.xlu1 %4966, %v786_v11   ;;  %vm563_vm3 = vcmp.eq.s32.totalorder %v377_v14, %v5674_v13 }
  0x9d   : > { %794 = vperm.xlu0 %4965, %v785_v12   ;;  %vm561_vm0 = vcmp.eq.s32.totalorder %v371_v15, %v5674_v13  ;;  %v4597_v32 = vsel %vm563_vm3, 1.0, %v7671_v20 }
  0x9e   : > { %v4595_v21 = vsel %vm561_vm0, 1.0, %v7671_v20 }
  0x9f   : > { %v380_v18 = vpop.permute.xlu1 %379 }
  0xa0   : > { %v374_v19 = vpop.permute.xlu0 %373  ;;  %803 = vperm.xlu1 %4966, %v788_v16   ;;  %vm564_vm4 = vcmp.eq.s32.totalorder %v380_v18, %v5674_v13 }
  0xa1   : > { %vm562_vm1 = vcmp.eq.s32.totalorder %v374_v19, %v5674_v13  ;;  %800 = vperm.xlu0 %4965, %v787_v17   ;;  %v4598_v33 = vsel %vm564_vm4, 1.0, %v7671_v20 }
  0xa2   : > { %v4596_v22 = vsel %vm562_vm1, 1.0, %v7671_v20  ;;  %v754_v34 = vpack.c.bf16 %v4598_v33, %v4597_v32 }
  0xa3   : > { %v753_v25 = vpack.c.bf16 %v4596_v22, %v4595_v21  ;;  %v386_v26 = vpop.permute.xlu1 %385 }
  0xa4   : > { %v383_v27 = vpop.permute.xlu0 %382  ;;  %809 = vperm.xlu1 %4966, %v790_v23   ;;  %vm566_vm5 = vcmp.eq.s32.totalorder %v386_v26, %v5674_v13 }
  0xa5   : > { %806 = vperm.xlu0 %4965, %v789_v24   ;;  %4675 = vmatmul.mubr.msk.bf16.vlgmr.msra.gmra.mrb[0].mxu0 %vm893_vm2, %v753_v25  ;;  %vm565_vm6 = vcmp.eq.s32.totalorder %v383_v27, %v5674_v13  ;;  %v4600_v39 = vsel %vm566_vm5, 1.0, %v7671_v20 }
  0xa6   : > { %1032 = vmatprep.mubr.bf16.mxu0 %v5475_v1  ;;  %v4599_v40 = vsel %vm565_vm6, 1.0, %v7671_v20 }
  0xa7   : > { %v392_v30 = vpop.permute.xlu1 %391  ;;  %v755_v41 = vpack.c.bf16 %v4600_v39, %v4599_v40 }
  0xa8   : > { %v389_v31 = vpop.permute.xlu0 %388  ;;  %815 = vperm.xlu1 %4966, %v792_v28   ;;  %vm568_vm7 = vcmp.eq.s32.totalorder %v392_v30, %v5674_v13 }
  0xa9   : > { %812 = vperm.xlu0 %4965, %v791_v29   ;;  %vm567_vm8 = vcmp.eq.s32.totalorder %v389_v31, %v5674_v13  ;;  %v4602_v46 = vsel %vm568_vm7, 1.0, %v7671_v20 }
  0xaa   : > { %v4601_v47 = vsel %vm567_vm8, 1.0, %v7671_v20 }
  0xab   : > { %v398_v35 = vpop.permute.xlu1 %397  ;;  %v756_v48 = vpack.c.bf16 %v4602_v46, %v4601_v47 }
  0xac   : > { %v395_v36 = vpop.permute.xlu0 %394  ;;  %vm570_vm9 = vcmp.eq.s32.totalorder %v398_v35, %v5674_v13 }
  0xad   : > { %4676 = vmatmul.mubr.msk.bf16.gmra.mrb[4].mxu0 %vm893_vm2, %v754_v34  ;;  %vm569_vm10 = vcmp.eq.s32.totalorder %v395_v36, %v5674_v13  ;;  %v4604_v53 = vsel %vm570_vm9, 1.0, %v7671_v20  ;;  %v5796_v34 = vld [vmem:[%s7667_s4] sm:$0xff]  }
  0xae   : > { %1042 = vmatprep.mubr.bf16.mxu0 %v5475_v1  ;;  %v4603_v54 = vsel %vm569_vm10, 1.0, %v7671_v20  ;;  %4799 = vmatprep.subr.bf16.mxu1 %v5796_v34 }
  0xaf   : > { %v404_v37 = vpop.permute.xlu1 %403  ;;  %v757_v55 = vpack.c.bf16 %v4604_v53, %v4603_v54 }
  0xb0   : > { %v401_v38 = vpop.permute.xlu0 %400  ;;  %vm572_vm11 = vcmp.eq.s32.totalorder %v404_v37, %v5674_v13 }
  0xb1   : > { %vm571_vm12 = vcmp.eq.s32.totalorder %v401_v38, %v5674_v13  ;;  %v4606_v60 = vsel %vm572_vm11, 1.0, %v7671_v20 }
  0xb2   : > { %v4605_v61 = vsel %vm571_vm12, 1.0, %v7671_v20 }
  0xb3   : > { %v410_v42 = vpop.permute.xlu1 %409  ;;  %v758_v62 = vpack.c.bf16 %v4606_v60, %v4605_v61 }
  0xb4   : > { %v407_v43 = vpop.permute.xlu0 %406  ;;  %vm574_vm13 = vcmp.eq.s32.totalorder %v410_v42, %v5674_v13 }
  0xb5   : > { %4677 = vmatmul.mubr.msk.bf16.gmra.mrb[8].mxu0 %vm893_vm2, %v755_v41  ;;  %vm573_vm14 = vcmp.eq.s32.totalorder %v407_v43, %v5674_v13  ;;  %v4608_v4 = vsel %vm574_vm13, 1.0, %v7671_v20 }
  0xb6   : > { %1052 = vmatprep.mubr.bf16.mxu0 %v5475_v1  ;;  %v4607_v5 = vsel %vm573_vm14, 1.0, %v7671_v20 }
  0xb7   : > { %v416_v44 = vpop.permute.xlu1 %415  ;;  %v759_v6 = vpack.c.bf16 %v4608_v4, %v4607_v5 }
  0xb8   : > { %v413_v45 = vpop.permute.xlu0 %412  ;;  %vm576_vm15 = vcmp.eq.s32.totalorder %v416_v44, %v5674_v13 }
  0xb9   : > { %vm575_vm0 = vcmp.eq.s32.totalorder %v413_v45, %v5674_v13  ;;  %v4610_v11 = vsel %vm576_vm15, 1.0, %v7671_v20 }
  0xba   : > { %v4609_v12 = vsel %vm575_vm0, 1.0, %v7671_v20 }
  0xbb   : > { %v422_v49 = vpop.permute.xlu1 %421  ;;  %v760_v14 = vpack.c.bf16 %v4610_v11, %v4609_v12 }
  0xbc   : > { %v419_v50 = vpop.permute.xlu0 %418  ;;  %vm578_vm1 = vcmp.eq.s32.totalorder %v422_v49, %v5674_v13 }
  0xbd   : > { %4678 = vmatmul.mubr.msk.bf16.gmra.mrb[12].mxu0 %vm893_vm2, %v756_v48  ;;  %vm577_vm3 = vcmp.eq.s32.totalorder %v419_v50, %v5674_v13  ;;  %v4612_v19 = vsel %vm578_vm1, 1.0, %v7671_v20 }
  0xbe   : > { %1062 = vmatprep.mubr.bf16.mxu0 %v5475_v1  ;;  %v4611_v21 = vsel %vm577_vm3, 1.0, %v7671_v20 }
  0xbf   : > { %v428_v51 = vpop.permute.xlu1 %427  ;;  %v761_v22 = vpack.c.bf16 %v4612_v19, %v4611_v21  ;;  %v4980_v21 = vld [vmem:[%s7667_s4 + $0x8] sm:$0xff]  }
  0xc0   : > { %v425_v52 = vpop.permute.xlu0 %424  ;;  %vm580_vm4 = vcmp.eq.s32.totalorder %v428_v51, %v5674_v13 }
  0xc1   : > { %vm579_vm5 = vcmp.eq.s32.totalorder %v425_v52, %v5674_v13  ;;  %v4614_v27 = vsel %vm580_vm4, 1.0, %v7671_v20 }
  0xc2   : > { %v4613_v28 = vsel %vm579_vm5, 1.0, %v7671_v20 }
  0xc3   : > { %v5710_v56 = vpop.permute.xlu1 %433  ;;  %v762_v29 = vpack.c.bf16 %v4614_v27, %v4613_v28 }
  0xc4   : > { %v5712_v57 = vpop.permute.xlu0 %430  ;;  %vm582_vm8 = vcmp.eq.s32.totalorder %v5710_v56, %v5674_v13 }
  0xc5   : > { %4679 = vmatmul.mubr.msk.bf16.gmra.mrb[16].mxu0 %vm893_vm2, %v757_v55  ;;  %vm581_vm9 = vcmp.eq.s32.totalorder %v5712_v57, %v5674_v13  ;;  %v4616_v38 = vsel %vm582_vm8, 1.0, %v7671_v20 }
  0xc6   : > { %1072 = vmatprep.mubr.bf16.mxu0 %v5475_v1  ;;  %v4615_v39 = vsel %vm581_vm9, 1.0, %v7671_v20 }
  0xc7   : > { %v5718_v58 = vpop.permute.xlu1 %439  ;;  %v763_v43 = vpack.c.bf16 %v4616_v38, %v4615_v39 }
  0xc8   : > { %v5720_v59 = vpop.permute.xlu0 %436  ;;  %vm584_vm14 = vcmp.eq.s32.totalorder %v5718_v58, %v5674_v13 }
  0xc9   : > { %vm583_vm15 = vcmp.eq.s32.totalorder %v5720_v59, %v5674_v13  ;;  %v4618_v51 = vsel %vm584_vm14, 1.0, %v7671_v20 }
  0xca   : > { %v4617_v52 = vsel %vm583_vm15, 1.0, %v7671_v20 }
  0xcb   : > { %v5724_v63 = vpop.permute.xlu1 %445  ;;  %v764_v56 = vpack.c.bf16 %v4618_v51, %v4617_v52 }
  0xcc   : > { %v5726_v0 = vpop.permute.xlu0 %442  ;;  %vm586_vm5 = vcmp.eq.s32.totalorder %v5724_v63, %v5674_v13 }
  0xcd   : > { %4680 = vmatmul.mubr.msk.bf16.gmra.mrb[20].mxu0 %vm893_vm2, %v758_v62  ;;  %v4620_v63 = vsel %vm586_vm5, 1.0, %v7671_v20 }
  0xce   : > { %1082 = vmatprep.mubr.bf16.mxu0 %v5475_v1 }
  0xcf   : > { %v5732_v2 = vpop.permute.xlu1 %451 }
  0xd0   : > { %v5734_v3 = vpop.permute.xlu0 %448 }
  0xd3   : > { %v5738_v7 = vpop.permute.xlu1 %457 }
  0xd4   : > { %v5740_v8 = vpop.permute.xlu0 %454 }
  0xd5   : > { %4681 = vmatmul.mubr.msk.bf16.gmra.mrb[24].mxu0 %vm893_vm2, %v759_v6 }
  0xd6   : > { %1092 = vmatprep.mubr.bf16.mxu0 %v5475_v1 }
  0xd7   : > { %v5746_v9 = vpop.permute.xlu1 %463 }
  0xd8   : > { %v5748_v10 = vpop.permute.xlu0 %460 }
  0xdb   : > { %v5752_v15 = vpop.permute.xlu1 %469 }
  0xdc   : > { %v5754_v16 = vpop.permute.xlu0 %466 }
  0xdd   : > { %4682 = vmatmul.mubr.msk.bf16.gmra.mrb[28].mxu0 %vm893_vm2, %v760_v14 }
  0xde   : > { %1102 = vmatprep.mubr.bf16.mxu0 %v5475_v1 }
  0xdf   : > { %v5760_v17 = vpop.permute.xlu1 %475 }
  0xe0   : > { %v5762_v18 = vpop.permute.xlu0 %472 }
  0xe3   : > { %v5766_v23 = vpop.permute.xlu1 %481 }
  0xe4   : > { %v5768_v24 = vpop.permute.xlu0 %478 }
  0xe5   : > { %4683 = vmatmul.mubr.msk.bf16.gmra.mrb[32].mxu0 %vm893_vm2, %v761_v22 }
  0xe6   : > { %1112 = vmatprep.mubr.bf16.mxu0 %v5475_v1 }
  0xe7   : > { %v5774_v25 = vpop.permute.xlu1 %487 }
  0xe8   : > { %v5776_v26 = vpop.permute.xlu0 %484 }
  0xeb   : > { %v494_v30 = vpop.permute.xlu1 %493 }
  0xec   : > { %v491_v31 = vpop.permute.xlu0 %490  ;;  %vm602_vm6 = vcmp.eq.s32.totalorder %v494_v30, %v5674_v13 }
  0xed   : > { %vm601_vm7 = vcmp.eq.s32.totalorder %v491_v31, %v5674_v13  ;;  %v5787_v32 = vsel %vm602_vm6, 1.0, %v7671_v20  ;;  %4684 = vmatmul.mubr.msk.bf16.gmra.mrb[36].mxu0 %vm893_vm2, %v762_v29  ;;  %vm585_vm6 = vcmp.eq.s32.totalorder %v5726_v0, %v5674_v13 }
  0xee   : > { %v5790_v33 = vsel %vm601_vm7, 1.0, %v7671_v20  ;;  %1122 = vmatprep.mubr.bf16.mxu0 %v5475_v1  ;;  %v4619_v5 = vsel %vm585_vm6, 1.0, %v7671_v20 }
  0xef   : > { %v773_v35 = vpack.c.bf16 %v5787_v32, %v5790_v33  ;;  %v500_v36 = vpop.permute.xlu1 %499  ;;  %v765_v12 = vpack.c.bf16 %v4620_v63, %v4619_v5 }
  0xf0   : > { %v497_v37 = vpop.permute.xlu0 %496  ;;  %vm604_vm10 = vcmp.eq.s32.totalorder %v500_v36, %v5674_v13 }
  0xf1   : > { %vm603_vm11 = vcmp.eq.s32.totalorder %v497_v37, %v5674_v13  ;;  %v5807_v40 = vsel %vm604_vm10, 1.0, %v7671_v20 }
  0xf2   : > { %v5810_v41 = vsel %vm603_vm11, 1.0, %v7671_v20  ;;  %vm588_vm11 = vcmp.eq.s32.totalorder %v5732_v2, %v5674_v13 }
  0xf3   : > { %v774_v42 = vpack.c.bf16 %v5807_v40, %v5810_v41  ;;  %v506_v44 = vpop.permute.xlu1 %505  ;;  %v4622_v30 = vsel %vm588_vm11, 1.0, %v7671_v20 }
  0xf4   : > { %v503_v45 = vpop.permute.xlu0 %502  ;;  %vm606_vm12 = vcmp.eq.s32.totalorder %v506_v44, %v5674_v13  ;;  %v4982_v44 = vld [vmem:[%s7667_s4 + $0x18] sm:$0xff]  }
  0xf5   : > { %vm605_vm13 = vcmp.eq.s32.totalorder %v503_v45, %v5674_v13  ;;  %v5821_v46 = vsel %vm606_vm12, 1.0, %v7671_v20  ;;  %4685 = vmatmul.mubr.msk.bf16.gmra.mrb[40].mxu0 %vm893_vm2, %v763_v43  ;;  %vm587_vm12 = vcmp.eq.s32.totalorder %v5734_v3, %v5674_v13  ;;  %v4981_v3 = vld [vmem:[%s7667_s4 + $0x10] sm:$0xff]  }
  0xf6   : > { %v5824_v47 = vsel %vm605_vm13, 1.0, %v7671_v20  ;;  %1132 = vmatprep.mubr.bf16.mxu0 %v5475_v1  ;;  %v4621_v31 = vsel %vm587_vm12, 1.0, %v7671_v20  ;;  %vm594_vm12 = vcmp.eq.s32.totalorder %v5752_v15, %v5674_v13 }
  0xf7   : > { %v775_v48 = vpack.c.bf16 %v5821_v46, %v5824_v47  ;;  %v512_v49 = vpop.permute.xlu1 %511  ;;  %v766_v38 = vpack.c.bf16 %v4622_v30, %v4621_v31  ;;  %v4628_v31 = vsel %vm594_vm12, 1.0, %v7671_v20 }
  0xf8   : > { %v509_v50 = vpop.permute.xlu0 %508  ;;  %vm608_vm0 = vcmp.eq.s32.totalorder %v512_v49, %v5674_v13 }
  0xf9   : > { %vm607_vm1 = vcmp.eq.s32.totalorder %v509_v50, %v5674_v13  ;;  %v5835_v53 = vsel %vm608_vm0, 1.0, %v7671_v20 }
  0xfa   : > { %v5838_v54 = vsel %vm607_vm1, 1.0, %v7671_v20  ;;  %vm590_vm1 = vcmp.eq.s32.totalorder %v5738_v7, %v5674_v13 }
  0xfb   : > { %v776_v55 = vpack.c.bf16 %v5835_v53, %v5838_v54  ;;  %v518_v57 = vpop.permute.xlu1 %517  ;;  %v4624_v52 = vsel %vm590_vm1, 1.0, %v7671_v20  ;;  %vm597_vm1 = vcmp.eq.s32.totalorder %v5768_v24, %v5674_v13 }
  0xfc   : > { %v515_v58 = vpop.permute.xlu0 %514  ;;  %vm610_vm3 = vcmp.eq.s32.totalorder %v518_v57, %v5674_v13 }
  0xfd   : > { %vm609_vm4 = vcmp.eq.s32.totalorder %v515_v58, %v5674_v13  ;;  %v5849_v59 = vsel %vm610_vm3, 1.0, %v7671_v20  ;;  %4686 = vmatmul.mubr.msk.bf16.gmra.mrb[44].mxu0 %vm893_vm2, %v764_v56  ;;  %vm589_vm3 = vcmp.eq.s32.totalorder %v5740_v8, %v5674_v13  ;;  %v4983_v8 = vld [vmem:[%s7667_s4 + $0x20] sm:$0xff]  }
  0xfe   : > { %v5852_v60 = vsel %vm609_vm4, 1.0, %v7671_v20  ;;  %1142 = vmatprep.mubr.bf16.mxu0 %v5475_v1  ;;  %v4623_v56 = vsel %vm589_vm3, 1.0, %v7671_v20  ;;  %vm600_vm3 = vcmp.eq.s32.totalorder %v5774_v25, %v5674_v13 }
  0xff   : > { %v777_v61 = vpack.c.bf16 %v5849_v59, %v5852_v60  ;;  %v536_v62 = vpop.permute.xlu1 %535 }
 0x100   : > { %v533_v4 = vpop.permute.xlu0 %532  ;;  %vm616_vm7 = vcmp.eq.s32.totalorder %v536_v62, %v5674_v13 }
 0x101   : > { %vm615_vm8 = vcmp.eq.s32.totalorder %v533_v4, %v5674_v13  ;;  %v4650_v0 = vsel %vm616_vm7, 1.0, %v7671_v20  ;;  %v767_v4 = vpack.c.bf16 %v4624_v52, %v4623_v56 }
 0x102   : > { %v4649_v6 = vsel %vm615_vm8, 1.0, %v7671_v20  ;;  %vm592_vm8 = vcmp.eq.s32.totalorder %v5746_v9, %v5674_v13 }
 0x103   : > { %v780_v11 = vpack.c.bf16 %v4650_v0, %v4649_v6  ;;  %v524_v14 = vpop.permute.xlu1 %523  ;;  %v4984_v0 = vld [vmem:[%s7667_s4 + $0x28] sm:$0xff]   ;;  %v4626_v9 = vsel %vm592_vm8, 1.0, %v7671_v20 }
 0x104   : > { %v521_v19 = vpop.permute.xlu0 %520  ;;  %vm612_vm9 = vcmp.eq.s32.totalorder %v524_v14, %v5674_v13 }
 0x105   : > { %vm611_vm10 = vcmp.eq.s32.totalorder %v521_v19, %v5674_v13  ;;  %4702 = vmatmul.mubr.msk.bf16.vlgmr.msra.gmra.mrb[0].mxu1 %vm893_vm2, %v780_v11  ;;  %v5875_v22 = vsel %vm612_vm9, 1.0, %v7671_v20  ;;  %4687 = vmatmul.mubr.msk.bf16.gmra.mrb[48].mxu0 %vm893_vm2, %v765_v12  ;;  %vm591_vm9 = vcmp.eq.s32.totalorder %v5748_v10, %v5674_v13  ;;  %v4985_v12 = vld [vmem:[%s7667_s4 + $0x30] sm:$0xff]  }
 0x106   : > { %v5878_v27 = vsel %vm611_vm10, 1.0, %v7671_v20  ;;  %1302 = vmatprep.mubr.bf16.mxu1 %v5475_v1  ;;  %1152 = vmatprep.mubr.bf16.mxu0 %v5475_v1  ;;  %v4625_v10 = vsel %vm591_vm9, 1.0, %v7671_v20 }
 0x107   : > { %v778_v28 = vpack.c.bf16 %v5875_v22, %v5878_v27  ;;  %4800 = vmatpush3.bf16.msra.mxu1 %v5796_v34  ;;  %v542_v2 = vpop.permute.xlu1 %541 }
 0x108   : > { %v539_v29 = vpop.permute.xlu0 %538  ;;  %4801 = vmatprep.subr.bf16.mxu1 %v4980_v21  ;;  %vm618_vm13 = vcmp.eq.s32.totalorder %v542_v2, %v5674_v13  ;;  %v768_v2 = vpack.c.bf16 %v4626_v9, %v4625_v10 }
 0x109   : > { %vm617_vm14 = vcmp.eq.s32.totalorder %v539_v29, %v5674_v13  ;;  %v4652_v36 = vsel %vm618_vm13, 1.0, %v7671_v20  ;;  %v4986_v29 = vld [vmem:[%s7667_s4 + $0x38] sm:$0xff]   ;;  %vm593_vm13 = vcmp.eq.s32.totalorder %v5754_v16, %v5674_v13 }
 0x10a   : > { %v4651_v37 = vsel %vm617_vm14, 1.0, %v7671_v20  ;;  %vm596_vm14 = vcmp.eq.s32.totalorder %v5760_v17, %v5674_v13 }
 0x10b   : > { %v781_v34 = vpack.c.bf16 %v4652_v36, %v4651_v37  ;;  %4802 = vmatpush3.bf16.msra.mxu1 %v4980_v21  ;;  %v530_v39 = vpop.permute.xlu1 %529  ;;  %v4627_v36 = vsel %vm593_vm13, 1.0, %v7671_v20  ;;  %v4630_v16 = vsel %vm596_vm14, 1.0, %v7671_v20  ;;  %vm4203_vm14 = vcmask 1041409  }
 0x10c   : > { %v527_v43 = vpop.permute.xlu0 %526  ;;  %4803 = vmatprep.subr.bf16.mxu1 %v4981_v3  ;;  %vm614_vm15 = vcmp.eq.s32.totalorder %v530_v39, %v5674_v13  ;;  %v769_v37 = vpack.c.bf16 %v4628_v31, %v4627_v36 }
 0x10d   : > { %vm613_vm0 = vcmp.eq.s32.totalorder %v527_v43, %v5674_v13  ;;  %4703 = vmatmul.mubr.msk.bf16.gmra.mrb[4].mxu1 %vm893_vm2, %v781_v34  ;;  %v5906_v45 = vsel %vm614_vm15, 1.0, %v7671_v20  ;;  %4688 = vmatmul.mubr.msk.bf16.gmra.mrb[52].mxu0 %vm893_vm2, %v766_v38  ;;  %vm595_vm15 = vcmp.eq.s32.totalorder %v5762_v18, %v5674_v13  ;;  %v4631_v18 = vsel %vm597_vm1, 1.0, %v7671_v20 }
 0x10e   : > { %v5909_v49 = vsel %vm613_vm0, 1.0, %v7671_v20  ;;  %1312 = vmatprep.mubr.bf16.mxu1 %v5475_v1  ;;  %1162 = vmatprep.mubr.bf16.mxu0 %v5475_v1  ;;  %v4629_v34 = vsel %vm595_vm15, 1.0, %v7671_v20  ;;  %vm598_vm0 = vcmp.eq.s32.totalorder %v5766_v23, %v5674_v13  ;;  %v4634_v23 = vsel %vm600_vm3, 1.0, %v7671_v20 }
 0x10f   : > { %v779_v50 = vpack.c.bf16 %v5906_v45, %v5909_v49  ;;  %4804 = vmatpush3.bf16.msra.mxu1 %v4981_v3  ;;  %v548_v7 = vpop.permute.xlu1 %547  ;;  %v770_v38 = vpack.c.bf16 %v4630_v16, %v4629_v34  ;;  %v4632_v17 = vsel %vm598_vm0, 1.0, %v7671_v20  ;;  %vm4206_vm15 = vcmask 1042434  }
 0x110   : > { %v545_v51 = vpop.permute.xlu0 %544  ;;  %4805 = vmatprep.subr.bf16.mxu1 %v4982_v44  ;;  %vm620_vm4 = vcmp.eq.s32.totalorder %v548_v7, %v5674_v13  ;;  %v771_v39 = vpack.c.bf16 %v4632_v17, %v4631_v18  ;;  %vm4209_vm0 = vcmask 1043459   ;;  %vm4212_vm1 = vcmask 1044484  }
 0x111   : > { %vm619_vm5 = vcmp.eq.s32.totalorder %v545_v51, %v5674_v13  ;;  %v4654_v57 = vsel %vm620_vm4, 1.0, %v7671_v20  ;;  %vm599_vm4 = vcmp.eq.s32.totalorder %v5776_v26, %v5674_v13  ;;  %vm4215_vm3 = vcmask 1045509  }
 0x112   : > { %v4653_v58 = vsel %vm619_vm5, 1.0, %v7671_v20  ;;  %v4633_v24 = vsel %vm599_vm4, 1.0, %v7671_v20  ;;  %vm1792_vm5 = vcmask 31744   ;;  %vm4218_vm4 = vcmask 1046534  }
 0x113   : > { %v782_v62 = vpack.c.bf16 %v4654_v57, %v4653_v58  ;;  %4806 = vmatpush3.bf16.msra.mxu1 %v4982_v44  ;;  %v554_v63 = vpop.permute.xlu1 %553  ;;  %v772_v43 = vpack.c.bf16 %v4634_v23, %v4633_v24 }
 0x114   : > { %v551_v5 = vpop.permute.xlu0 %550  ;;  %4807 = vmatprep.subr.bf16.mxu1 %v4983_v8  ;;  %vm622_vm6 = vcmp.eq.s32.totalorder %v554_v63, %v5674_v13 }
 0x115   : > { %vm621_vm7 = vcmp.eq.s32.totalorder %v551_v5, %v5674_v13  ;;  %4704 = vmatmul.mubr.msk.bf16.gmra.mrb[8].mxu1 %vm893_vm2, %v782_v62  ;;  %4689 = vmatmul.mubr.msk.bf16.gmra.mrb[56].mxu0 %vm893_vm2, %v767_v4  ;;  %v4656_v6 = vsel %vm622_vm6, 1.0, %v7671_v20 }
 0x116   : > { %1322 = vmatprep.mubr.bf16.mxu1 %v5475_v1  ;;  %1172 = vmatprep.mubr.bf16.mxu0 %v5475_v1  ;;  %v4655_v11 = vsel %vm621_vm7, 1.0, %v7671_v20 }
 0x117   : > { %4808 = vmatpush3.bf16.msra.mxu1 %v4983_v8  ;;  %v560_v14 = vpop.permute.xlu1 %559  ;;  %v783_v21 = vpack.c.bf16 %v4656_v6, %v4655_v11 }
 0x118   : > { %4809 = vmatprep.subr.bf16.mxu1 %v4984_v0  ;;  %v557_v19 = vpop.permute.xlu0 %556  ;;  %vm624_vm10 = vcmp.eq.s32.totalorder %v560_v14, %v5674_v13 }
 0x119   : > { %vm623_vm11 = vcmp.eq.s32.totalorder %v557_v19, %v5674_v13  ;;  %v4658_v3 = vsel %vm624_vm10, 1.0, %v7671_v20 }
 0x11a   : > { %v4657_v30 = vsel %vm623_vm11, 1.0, %v7671_v20 }
 0x11b   : > { %4810 = vmatpush3.bf16.msra.mxu1 %v4984_v0  ;;  %v784_v15 = vpack.c.bf16 %v4658_v3, %v4657_v30 }
 0x11c   : > { %4811 = vmatprep.subr.bf16.mxu1 %v4985_v12 }
 0x11d   : > { %4705 = vmatmul.mubr.msk.bf16.gmra.mrb[12].mxu1 %vm893_vm2, %v783_v21  ;;  %4690 = vmatmul.mubr.msk.bf16.gmra.mrb[60].mxu0 %vm893_vm2, %v768_v2 }
 0x11e   : > { %1332 = vmatprep.mubr.bf16.mxu1 %v5475_v1  ;;  %1182 = vmatprep.mubr.bf16.mxu0 %v5475_v1 }
 0x11f   : > { %4812 = vmatpush3.bf16.msra.mxu1 %v4985_v12 }
 0x120   : > { %4813 = vmatprep.subr.bf16.mxu1 %v4986_v29 }
 0x123   : > { %4814 = vmatpush3.bf16.msra.mxu1 %v4986_v29 }
 0x125   : > { %4706 = vmatmul.mubr.msk.bf16.gmra.mrb[16].mxu1 %vm893_vm2, %v784_v15  ;;  %4691 = vmatmul.mubr.msk.bf16.gmra.mrb[64].mxu0 %vm893_vm2, %v769_v37 }
 0x126   : > { %1192 = vmatprep.mubr.bf16.mxu0 %v5475_v1 }
 0x12d   : > { %4692 = vmatmul.mubr.msk.bf16.gmra.mrb[68].mxu0 %vm893_vm2, %v770_v38 }
 0x12e   : > { %1202 = vmatprep.mubr.bf16.mxu0 %v5475_v1 }
 0x135   : > { %4693 = vmatmul.mubr.msk.bf16.gmra.mrb[72].mxu0 %vm893_vm2, %v771_v39 }
 0x136   : > { %1212 = vmatprep.mubr.bf16.mxu0 %v5475_v1 }
 0x13d   : > { %4694 = vmatmul.mubr.msk.bf16.gmra.mrb[76].mxu0 %vm893_vm2, %v772_v43 }
 0x13e   : > { %1222 = vmatprep.mubr.bf16.mxu0 %v5475_v1 }
 0x145   : > { %4695 = vmatmul.mubr.msk.bf16.gmra.mrb[80].mxu0 %vm893_vm2, %v773_v35 }
 0x146   : > { %1232 = vmatprep.mubr.bf16.mxu0 %v5475_v1 }
 0x14d   : > { %4696 = vmatmul.mubr.msk.bf16.gmra.mrb[84].mxu0 %vm893_vm2, %v774_v42 }
 0x14e   : > { %1242 = vmatprep.mubr.bf16.mxu0 %v5475_v1 }
 0x155   : > { %4697 = vmatmul.mubr.msk.bf16.gmra.mrb[88].mxu0 %vm893_vm2, %v775_v48 }
 0x156   : > { %1252 = vmatprep.mubr.bf16.mxu0 %v5475_v1 }
 0x15d   : > { %4698 = vmatmul.mubr.msk.bf16.gmra.mrb[92].mxu0 %vm893_vm2, %v776_v55 }
 0x15e   : > { %1262 = vmatprep.mubr.bf16.mxu0 %v5475_v1 }
 0x165   : > { %4699 = vmatmul.mubr.msk.bf16.gmra.mrb[96].mxu0 %vm893_vm2, %v777_v61 }
 0x166   : > { %1272 = vmatprep.mubr.bf16.mxu0 %v5475_v1 }
 0x16d   : > { %4700 = vmatmul.mubr.msk.bf16.gmra.mrb[100].mxu0 %vm893_vm2, %v778_v28 }
 0x16e   : > { %1282 = vmatprep.mubr.bf16.mxu0 %v5475_v1 }
 0x175   : > { %4701 = vmatmul.mubr.msk.bf16.gmra.mrb[104].mxu0 %vm893_vm2, %v779_v50  ;;  %vm3662_vm2 = vcmask 1041408  }
 0x178   : > { %v1024_v25 = vpop.f32.mrb[0].mxu0 }
 0x179   : > { %v6023_v26 = vpop.f32.mrb[1].mxu0  ;;  %4995 = vtanh.f32 %v1024_v25 }
 0x17a   : > { %v1028_v32 = vpop.f32.mrb[2].mxu0 }
 0x17b   : > { %4997 = vtanh.f32 %v1028_v32  ;;  %v6025_v33 = vpop.f32.mrb[3].mxu0 }
 0x180   : > { %v1034_v35 = vpop.f32.mrb[4].mxu0 }
 0x181   : > { %v6027_v40 = vpop.f32.mrb[5].mxu0  ;;  %4999 = vtanh.f32 %v1034_v35 }
 0x182   : > { %v1038_v41 = vpop.f32.mrb[6].mxu0 }
 0x183   : > { %5001 = vtanh.f32 %v1038_v41  ;;  %v6029_v1 = vpop.f32.mrb[7].mxu0  ;;  %v4996_v42 = vpop.eup %4995 }
 0x185   : > { %v4998_v46 = vpop.eup %4997 }
 0x186   : > { %v1407_v47 = vpack.c.bf16 %v4998_v46, %v4996_v42 }
 0x188   : > { %v1044_v48 = vpop.f32.mrb[8].mxu0  ;;  %4815 = vmatprep.mubr.bf16.mxu1 %v1407_v47 }
 0x189   : > { %v6031_v53 = vpop.f32.mrb[9].mxu0  ;;  %5003 = vtanh.f32 %v1044_v48 }
 0x18a   : > { %7703 = vst [vmem:[#allocation5_spill] sm:$0xff] %v6031_v53  ;;  %v1048_v54 = vpop.f32.mrb[10].mxu0 }
 0x18b   : > { %5005 = vtanh.f32 %v1048_v54  ;;  %v6033_v55 = vpop.f32.mrb[11].mxu0  ;;  %v5000_v59 = vpop.eup %4999 }
 0x18c   : > { %7704 = vst [vmem:[#allocation6_spill] sm:$0xff] %v6033_v55 }
 0x18d   : > { %v5002_v60 = vpop.eup %5001 }
 0x18e   : > { %v1408_v61 = vpack.c.bf16 %v5002_v60, %v5000_v59 }
 0x190   : > { %v1054_v22 = vpop.f32.mrb[12].mxu0  ;;  %4816 = vmatmul.mubr.bf16.vlgmr.msra.gmra.mrb[20].mxu1 %v1408_v61 }
 0x191   : > { %v6035_v27 = vpop.f32.mrb[13].mxu0  ;;  %5007 = vtanh.f32 %v1054_v22 }
 0x192   : > { %7705 = vst [vmem:[#allocation7_spill] sm:$0xff] %v6035_v27  ;;  %v1058_v28 = vpop.f32.mrb[14].mxu0 }
 0x193   : > { %5009 = vtanh.f32 %v1058_v28  ;;  %v6037_v44 = vpop.f32.mrb[15].mxu0  ;;  %v5004_v45 = vpop.eup %5003 }
 0x194   : > { %7706 = vst [vmem:[#allocation8_spill] sm:$0xff] %v6037_v44 }
 0x195   : > { %v5006_v49 = vpop.eup %5005 }
 0x196   : > { %v1409_v50 = vpack.c.bf16 %v5006_v49, %v5004_v45 }
 0x198   : > { %v1064_v7 = vpop.f32.mrb[16].mxu0  ;;  %4819 = vmatprep.mubr.bf16.mxu1 %v1409_v50 }
 0x199   : > { %v6039_v51 = vpop.f32.mrb[17].mxu0  ;;  %5011 = vtanh.f32 %v1064_v7 }
 0x19a   : > { %7707 = vst [vmem:[#allocation9_spill] sm:$0xff] %v6039_v51  ;;  %v1068_v8 = vpop.f32.mrb[18].mxu0 }
 0x19b   : > { %5013 = vtanh.f32 %v1068_v8  ;;  %v6041_v52 = vpop.f32.mrb[19].mxu0  ;;  %v5008_v56 = vpop.eup %5007 }
 0x19c   : > { %7708 = vst [vmem:[#allocation10_spill] sm:$0xff] %v6041_v52 }
 0x19d   : > { %v5010_v57 = vpop.eup %5009 }
 0x19e   : > { %v1410_v58 = vpack.c.bf16 %v5010_v57, %v5008_v56 }
 0x1a0   : > { %v1074_v62 = vpop.f32.mrb[20].mxu0  ;;  %4820 = vmatmul.mubr.bf16.gmra.mrb[24].mxu1 %v1410_v58 }
 0x1a1   : > { %v6043_v4 = vpop.f32.mrb[21].mxu0  ;;  %5015 = vtanh.f32 %v1074_v62 }
 0x1a2   : > { %7709 = vst [vmem:[#allocation11_spill] sm:$0xff] %v6043_v4  ;;  %v1078_v63 = vpop.f32.mrb[22].mxu0 }
 0x1a3   : > { %5017 = vtanh.f32 %v1078_v63  ;;  %v6045_v5 = vpop.f32.mrb[23].mxu0  ;;  %v5012_v0 = vpop.eup %5011 }
 0x1a4   : > { %7710 = vst [vmem:[#allocation12_spill] sm:$0xff] %v6045_v5 }
 0x1a5   : > { %v5014_v6 = vpop.eup %5013 }
 0x1a6   : > { %v1411_v11 = vpack.c.bf16 %v5014_v6, %v5012_v0 }
 0x1a8   : > { %v1084_v12 = vpop.f32.mrb[24].mxu0  ;;  %4823 = vmatprep.mubr.bf16.mxu1 %v1411_v11 }
 0x1a9   : > { %v6047_v9 = vpop.f32.mrb[25].mxu0  ;;  %5019 = vtanh.f32 %v1084_v12 }
 0x1aa   : > { %7711 = vst [vmem:[#allocation13_spill] sm:$0xff] %v6047_v9  ;;  %v1088_v10 = vpop.f32.mrb[26].mxu0 }
 0x1ab   : > { %5021 = vtanh.f32 %v1088_v10  ;;  %v6049_v14 = vpop.f32.mrb[27].mxu0  ;;  %v5016_v19 = vpop.eup %5015 }
 0x1ac   : > { %7712 = vst [vmem:[#allocation14_spill] sm:$0xff] %v6049_v14 }
 0x1ad   : > { %v5018_v21 = vpop.eup %5017 }
 0x1ae   : > { %v1412_v2 = vpack.c.bf16 %v5018_v21, %v5016_v19 }
 0x1b0   : > { %v1094_v29 = vpop.f32.mrb[28].mxu0  ;;  %4824 = vmatmul.mubr.bf16.gmra.mrb[28].mxu1 %v1412_v2 }
 0x1b1   : > { %v6051_v3 = vpop.f32.mrb[29].mxu0  ;;  %5023 = vtanh.f32 %v1094_v29 }
 0x1b2   : > { %7713 = vst [vmem:[#allocation15_spill] sm:$0xff] %v6051_v3  ;;  %v1098_v30 = vpop.f32.mrb[30].mxu0 }
 0x1b3   : > { %5025 = vtanh.f32 %v1098_v30  ;;  %v6053_v31 = vpop.f32.mrb[31].mxu0  ;;  %v5020_v36 = vpop.eup %5019 }
 0x1b4   : > { %7714 = vst [vmem:[#allocation16_spill] sm:$0xff] %v6053_v31 }
 0x1b5   : > { %v5022_v15 = vpop.eup %5021 }
 0x1b6   : > { %v1413_v37 = vpack.c.bf16 %v5022_v15, %v5020_v36 }
 0x1b8   : > { %v1104_v16 = vpop.f32.mrb[32].mxu0  ;;  %4827 = vmatprep.mubr.bf16.mxu1 %v1413_v37 }
 0x1b9   : > { %v6055_v34 = vpop.f32.mrb[33].mxu0  ;;  %5027 = vtanh.f32 %v1104_v16 }
 0x1ba   : > { %7715 = vst [vmem:[#allocation17_spill] sm:$0xff] %v6055_v34  ;;  %v1108_v38 = vpop.f32.mrb[34].mxu0 }
 0x1bb   : > { %5029 = vtanh.f32 %v1108_v38  ;;  %v6057_v17 = vpop.f32.mrb[35].mxu0  ;;  %v5024_v18 = vpop.eup %5023 }
 0x1bc   : > { %7716 = vst [vmem:[#allocation18_spill] sm:$0xff] %v6057_v17 }
 0x1bd   : > { %v5026_v39 = vpop.eup %5025 }
 0x1be   : > { %v1414_v23 = vpack.c.bf16 %v5026_v39, %v5024_v18 }
 0x1c0   : > { %v1114_v24 = vpop.f32.mrb[36].mxu0  ;;  %4828 = vmatmul.mubr.bf16.gmra.mrb[32].mxu1 %v1414_v23 }
 0x1c1   : > { %v6059_v43 = vpop.f32.mrb[37].mxu0  ;;  %5031 = vtanh.f32 %v1114_v24 }
 0x1c2   : > { %7717 = vst [vmem:[#allocation19_spill] sm:$0xff] %v6059_v43  ;;  %v1118_v25 = vpop.f32.mrb[38].mxu0 }
 0x1c3   : > { %5033 = vtanh.f32 %v1118_v25  ;;  %v6061_v32 = vpop.f32.mrb[39].mxu0  ;;  %v5028_v35 = vpop.eup %5027 }
 0x1c4   : > { %7718 = vst [vmem:[#allocation20_spill] sm:$0xff] %v6061_v32 }
 0x1c5   : > { %v5030_v41 = vpop.eup %5029 }
 0x1c6   : > { %v1415_v42 = vpack.c.bf16 %v5030_v41, %v5028_v35 }
 0x1c8   : > { %v1124_v46 = vpop.f32.mrb[40].mxu0  ;;  %4831 = vmatprep.mubr.bf16.mxu1 %v1415_v42 }
 0x1c9   : > { %v6063_v47 = vpop.f32.mrb[41].mxu0  ;;  %5035 = vtanh.f32 %v1124_v46 }
 0x1ca   : > { %7719 = vst [vmem:[#allocation21_spill] sm:$0xff] %v6063_v47  ;;  %v1128_v48 = vpop.f32.mrb[42].mxu0 }
 0x1cb   : > { %5037 = vtanh.f32 %v1128_v48  ;;  %v6065_v54 = vpop.f32.mrb[43].mxu0  ;;  %v5032_v59 = vpop.eup %5031 }
 0x1cc   : > { %7720 = vst [vmem:[#allocation22_spill] sm:$0xff] %v6065_v54 }
 0x1cd   : > { %v5034_v60 = vpop.eup %5033 }
 0x1ce   : > { %v1416_v61 = vpack.c.bf16 %v5034_v60, %v5032_v59 }
 0x1d0   : > { %v1134_v22 = vpop.f32.mrb[44].mxu0  ;;  %4832 = vmatmul.mubr.bf16.gmra.mrb[36].mxu1 %v1416_v61 }
 0x1d1   : > { %v6067_v28 = vpop.f32.mrb[45].mxu0  ;;  %5039 = vtanh.f32 %v1134_v22 }
 0x1d2   : > { %7721 = vst [vmem:[#allocation23_spill] sm:$0xff] %v6067_v28  ;;  %v1138_v45 = vpop.f32.mrb[46].mxu0 }
 0x1d3   : > { %5041 = vtanh.f32 %v1138_v45  ;;  %v6069_v49 = vpop.f32.mrb[47].mxu0  ;;  %v5036_v50 = vpop.eup %5035 }
 0x1d4   : > { %7722 = vst [vmem:[#allocation24_spill] sm:$0xff] %v6069_v49 }
 0x1d5   : > { %v5038_v7 = vpop.eup %5037 }
 0x1d6   : > { %v1417_v8 = vpack.c.bf16 %v5038_v7, %v5036_v50  ;;  %v3649_v7 = vld [vmem:[%s7666_s3] sm:$0x3] }
 0x1d7   : > { %4921 = vmatprep.subr.msk.bf16.mxu1 %vm3662_vm2, %v3649_v7 }
 0x1d8   : > { %v1294_v56 = vpop.f32.mrb[0].mxu1  ;;  %v1144_v57 = vpop.f32.mrb[48].mxu0  ;;  %4835 = vmatprep.mubr.bf16.mxu1 %v1417_v8 }
 0x1d9   : > { %5043 = vtanh.f32 %v1294_v56  ;;  %v6071_v58 = vpop.f32.mrb[1].mxu1  ;;  %v6073_v62 = vpop.f32.mrb[49].mxu0 }
 0x1da   : > { %7723 = vst [vmem:[#allocation25_spill] sm:$0xff] %v6071_v58  ;;  %5045 = vtanh.f32 %v1144_v57  ;;  %7724 = vst [vmem:[#allocation26_spill] sm:$0xff] %v6073_v62  ;;  %v1298_v63 = vpop.f32.mrb[2].mxu1  ;;  %v1148_v0 = vpop.f32.mrb[50].mxu0  ;;  %v3664_v57 = vsel %vm3662_vm2, %v3649_v7, 0  ;;  %vm4221_vm2 = vcmask 1047559  }
 0x1db   : > { %5047 = vtanh.f32 %v1298_v63  ;;  %v6075_v6 = vpop.f32.mrb[3].mxu1  ;;  %v6077_v11 = vpop.f32.mrb[51].mxu0  ;;  %4880 = vmatpush3.bf16.msra.mxu1 %v3664_v57 }
 0x1dc   : > { %7725 = vst [vmem:[#allocation27_spill] sm:$0xff] %v6075_v6  ;;  %5049 = vtanh.f32 %v1148_v0  ;;  %7726 = vst [vmem:[#allocation28_spill] sm:$0xff] %v6077_v11  ;;  %v5040_v12 = vpop.eup %5039 }
 0x1dd   : > { %v5042_v10 = vpop.eup %5041 }
 0x1de   : > { %v1418_v19 = vpack.c.bf16 %v5042_v10, %v5040_v12 }
 0x1e0   : > { %v1304_v21 = vpop.f32.mrb[4].mxu1  ;;  %v1154_v2 = vpop.f32.mrb[52].mxu0  ;;  %4836 = vmatmul.mubr.bf16.gmra.mrb[40].mxu1 %v1418_v19 }
 0x1e1   : > { %5051 = vtanh.f32 %v1304_v21  ;;  %v6079_v29 = vpop.f32.mrb[5].mxu1  ;;  %v6081_v30 = vpop.f32.mrb[53].mxu0 }
 0x1e2   : > { %7727 = vst [vmem:[#allocation29_spill] sm:$0xff] %v6079_v29  ;;  %5053 = vtanh.f32 %v1154_v2  ;;  %7728 = vst [vmem:[#allocation30_spill] sm:$0xff] %v6081_v30  ;;  %v1308_v36 = vpop.f32.mrb[6].mxu1  ;;  %v1158_v37 = vpop.f32.mrb[54].mxu0 }
 0x1e3   : > { %v6083_v15 = vpop.eup %5043  ;;  %5055 = vtanh.f32 %v1308_v36  ;;  %v6085_v16 = vpop.f32.mrb[7].mxu1 }
 0x1e4   : > { %7729 = vst [vmem:[#allocation31_spill] sm:$0xff] %v6085_v16  ;;  %v5046_v38 = vpop.eup %5045  ;;  %5057 = vtanh.f32 %v1158_v37  ;;  %v6087_v18 = vpop.f32.mrb[55].mxu0 }
 0x1e5   : > { %7730 = vst [vmem:[#allocation32_spill] sm:$0xff] %v6087_v18  ;;  %v6089_v39 = vpop.eup %5047 }
 0x1e6   : > { %v5050_v23 = vpop.eup %5049 }
 0x1e7   : > { %v1419_v25 = vpack.c.bf16 %v5050_v23, %v5046_v38 }
 0x1e8   : > { %v1314_v35 = vpop.f32.mrb[8].mxu1  ;;  %v1164_v41 = vpop.f32.mrb[56].mxu0 }
 0x1e9   : > { %5059 = vtanh.f32 %v1314_v35  ;;  %4839 = vmatprep.mubr.bf16.mxu1 %v1419_v25  ;;  %v6093_v42 = vpop.f32.mrb[9].mxu1  ;;  %v6095_v46 = vpop.f32.mrb[57].mxu0 }
 0x1ea   : > { %7731 = vst [vmem:[#allocation33_spill] sm:$0xff] %v6093_v42  ;;  %5061 = vtanh.f32 %v1164_v41  ;;  %7732 = vst [vmem:[#allocation34_spill] sm:$0xff] %v6095_v46  ;;  %v1318_v48 = vpop.f32.mrb[10].mxu1  ;;  %v1168_v60 = vpop.f32.mrb[58].mxu0 }
 0x1eb   : > { %v6097_v59 = vpop.eup %5051  ;;  %5063 = vtanh.f32 %v1318_v48  ;;  %v6099_v61 = vpop.f32.mrb[11].mxu1 }
 0x1ec   : > { %7733 = vst [vmem:[#allocation35_spill] sm:$0xff] %v6099_v61  ;;  %v5054_v22 = vpop.eup %5053  ;;  %5065 = vtanh.f32 %v1168_v60  ;;  %v6101_v45 = vpop.f32.mrb[59].mxu0 }
 0x1ed   : > { %7734 = vst [vmem:[#allocation36_spill] sm:$0xff] %v6101_v45  ;;  %v6103_v50 = vpop.eup %5055 }
 0x1ee   : > { %v5058_v8 = vpop.eup %5057 }
 0x1ef   : > { %v1420_v63 = vpack.c.bf16 %v5058_v8, %v5054_v22 }
 0x1f0   : > { %v1324_v0 = vpop.f32.mrb[12].mxu1  ;;  %v1174_v12 = vpop.f32.mrb[60].mxu0 }
 0x1f1   : > { %5067 = vtanh.f32 %v1324_v0  ;;  %4840 = vmatmul.mubr.bf16.gmra.mrb[44].mxu1 %v1420_v63  ;;  %v6110_v10 = vpop.f32.mrb[13].mxu1  ;;  %v6112_v19 = vpop.f32.mrb[61].mxu0 }
 0x1f2   : > { %7735 = vst [vmem:[#allocation37_spill] sm:$0xff] %v6110_v10  ;;  %5069 = vtanh.f32 %v1174_v12  ;;  %7736 = vst [vmem:[#allocation38_spill] sm:$0xff] %v6112_v19  ;;  %v1328_v21 = vpop.f32.mrb[14].mxu1  ;;  %v1178_v36 = vpop.f32.mrb[62].mxu0 }
 0x1f3   : > { %v6114_v2 = vpop.eup %5059  ;;  %5071 = vtanh.f32 %v1328_v21  ;;  %v6116_v37 = vpop.f32.mrb[15].mxu1 }
 0x1f4   : > { %7737 = vst [vmem:[#allocation39_spill] sm:$0xff] %v6116_v37  ;;  %v5062_v38 = vpop.eup %5061  ;;  %5073 = vtanh.f32 %v1178_v36  ;;  %v6118_v23 = vpop.f32.mrb[63].mxu0 }
 0x1f5   : > { %7738 = vst [vmem:[#allocation40_spill] sm:$0xff] %v6118_v23  ;;  %v6120_v25 = vpop.eup %5063 }
 0x1f6   : > { %v5066_v35 = vpop.eup %5065 }
 0x1f7   : > { %v1421_v48 = vpack.c.bf16 %v5066_v35, %v5062_v38 }
 0x1f8   : > { %v1334_v60 = vpop.f32.mrb[16].mxu1  ;;  %v1184_v22 = vpop.f32.mrb[64].mxu0 }
 0x1f9   : > { %5075 = vtanh.f32 %v1334_v60  ;;  %4843 = vmatprep.mubr.bf16.mxu1 %v1421_v48  ;;  %v6124_v7 = vpop.f32.mrb[17].mxu1  ;;  %v6126_v8 = vpop.f32.mrb[65].mxu0 }
 0x1fa   : > { %7739 = vst [vmem:[#allocation41_spill] sm:$0xff] %v6124_v7  ;;  %5077 = vtanh.f32 %v1184_v22  ;;  %7740 = vst [vmem:[#allocation42_spill] sm:$0xff] %v6126_v8  ;;  %v1338_v57 = vpop.f32.mrb[18].mxu1  ;;  %v1188_v0 = vpop.f32.mrb[66].mxu0 }
 0x1fb   : > { %v6128_v63 = vpop.eup %5067  ;;  %5079 = vtanh.f32 %v1338_v57  ;;  %v6130_v12 = vpop.f32.mrb[19].mxu1 }
 0x1fc   : > { %7741 = vst [vmem:[#allocation43_spill] sm:$0xff] %v6130_v12  ;;  %v5070_v21 = vpop.eup %5069  ;;  %5081 = vtanh.f32 %v1188_v0  ;;  %v6132_v36 = vpop.f32.mrb[67].mxu0 }
 0x1fd   : > { %7742 = vst [vmem:[#allocation44_spill] sm:$0xff] %v6132_v36  ;;  %v6134_v38 = vpop.eup %5071 }
 0x1fe   : > { %v5074_v35 = vpop.eup %5073 }
 0x1ff   : > { %v1422_v60 = vpack.c.bf16 %v5074_v35, %v5070_v21 }
 0x200   : > { %v1194_v22 = vpop.f32.mrb[68].mxu0 }
 0x201   : > { %4844 = vmatmul.mubr.bf16.gmra.mrb[48].mxu1 %v1422_v60  ;;  %v6138_v20 = vpop.f32.mrb[69].mxu0  ;;  %5083 = vtanh.f32 %v1194_v22 }
 0x202   : > { %7743 = vst [vmem:[#allocation45_spill] sm:$0xff] %v6138_v20  ;;  %v1198_v57 = vpop.f32.mrb[70].mxu0 }
 0x203   : > { %v6140_v41 = vpop.eup %5075  ;;  %5085 = vtanh.f32 %v1198_v57  ;;  %v6142_v0 = vpop.f32.mrb[71].mxu0 }
 0x204   : > { %v5078_v56 = vpop.eup %5077  ;;  %7744 = vst [vmem:[#allocation46_spill] sm:$0xff] %v6142_v0 }
 0x205   : > { %v6144_v24 = vpop.eup %5079 }
 0x206   : > { %v5082_v12 = vpop.eup %5081 }
 0x207   : > { %v1423_v48 = vpack.c.bf16 %v5082_v12, %v5078_v56 }
 0x208   : > { %v1204_v21 = vpop.f32.mrb[72].mxu0 }
 0x209   : > { %4847 = vmatprep.mubr.bf16.mxu1 %v1423_v48  ;;  %v6148_v35 = vpop.f32.mrb[73].mxu0  ;;  %5087 = vtanh.f32 %v1204_v21 }
 0x20a   : > { %7745 = vst [vmem:[#allocation47_spill] sm:$0xff] %v6148_v35  ;;  %v1208_v60 = vpop.f32.mrb[74].mxu0 }
 0x20b   : > { %5089 = vtanh.f32 %v1208_v60  ;;  %v6150_v22 = vpop.f32.mrb[75].mxu0  ;;  %v5084_v10 = vpop.eup %5083 }
 0x20c   : > { %7746 = vst [vmem:[#allocation48_spill] sm:$0xff] %v6150_v22 }
 0x20d   : > { %v5086_v57 = vpop.eup %5085 }
 0x20e   : > { %v1424_v7 = vpack.c.bf16 %v5086_v57, %v5084_v10 }
 0x210   : > { %v1214_v6 = vpop.f32.mrb[76].mxu0  ;;  %4848 = vmatmul.mubr.bf16.gmra.mrb[52].mxu1 %v1424_v7 }
 0x211   : > { %v6152_v16 = vpop.f32.mrb[77].mxu0  ;;  %5091 = vtanh.f32 %v1214_v6 }
 0x212   : > { %7747 = vst [vmem:[#allocation49_spill] sm:$0xff] %v6152_v16  ;;  %v1218_v29 = vpop.f32.mrb[78].mxu0  ;;  %v7768_v16 = vpack.c.bf16 %v6144_v24, %v6140_v41 }
 0x213   : > { %5093 = vtanh.f32 %v1218_v29  ;;  %v6154_v56 = vpop.f32.mrb[79].mxu0  ;;  %v5088_v12 = vpop.eup %5087 }
 0x214   : > { %7748 = vst [vmem:[#allocation50_spill] sm:$0xff] %v6154_v56  ;;  %v795_v56 = vpop.permute.xlu0 %794 }
 0x215   : > { %v5090_v48 = vpop.eup %5089  ;;  %vm817_vm7 = vcmp.eq.s32.totalorder %v795_v56, %v5674_v13 }
 0x216   : > { %v1425_v37 = vpack.c.bf16 %v5090_v48, %v5088_v12 }
 0x218   : > { %v1224_v21 = vpop.f32.mrb[80].mxu0  ;;  %4851 = vmatprep.mubr.bf16.mxu1 %v1425_v37 }
 0x219   : > { %v6156_v60 = vpop.f32.mrb[81].mxu0  ;;  %5095 = vtanh.f32 %v1224_v21 }
 0x21a   : > { %7749 = vst [vmem:[#allocation51_spill] sm:$0xff] %v6156_v60  ;;  %v1228_v61 = vpop.f32.mrb[82].mxu0 }
 0x21b   : > { %5097 = vtanh.f32 %v1228_v61  ;;  %v6158_v10 = vpop.f32.mrb[83].mxu0  ;;  %v5092_v7 = vpop.eup %5091 }
 0x21c   : > { %7750 = vst [vmem:[#allocation52_spill] sm:$0xff] %v6158_v10 }
 0x21d   : > { %v5094_v57 = vpop.eup %5093 }
 0x21e   : > { %v1426_v42 = vpack.c.bf16 %v5094_v57, %v5092_v7 }
 0x220   : > { %v1234_v6 = vpop.f32.mrb[84].mxu0  ;;  %4852 = vmatmul.mubr.bf16.gmra.mrb[56].mxu1 %v1426_v42 }
 0x221   : > { %v6160_v29 = vpop.f32.mrb[85].mxu0  ;;  %5099 = vtanh.f32 %v1234_v6 }
 0x222   : > { %7751 = vst [vmem:[#allocation53_spill] sm:$0xff] %v6160_v29  ;;  %v1238_v58 = vpop.f32.mrb[86].mxu0 }
 0x223   : > { %5101 = vtanh.f32 %v1238_v58  ;;  %v6162_v12 = vpop.f32.mrb[87].mxu0  ;;  %v5096_v37 = vpop.eup %5095 }
 0x224   : > { %7752 = vst [vmem:[#allocation54_spill] sm:$0xff] %v6162_v12 }
 0x225   : > { %v5098_v48 = vpop.eup %5097 }
 0x226   : > { %v1427_v60 = vpack.c.bf16 %v5098_v48, %v5096_v37 }
 0x228   : > { %v1244_v21 = vpop.f32.mrb[88].mxu0  ;;  %4855 = vmatprep.mubr.bf16.mxu1 %v1427_v60 }
 0x229   : > { %v6164_v61 = vpop.f32.mrb[89].mxu0  ;;  %5103 = vtanh.f32 %v1244_v21 }
 0x22a   : > { %7753 = vst [vmem:[#allocation55_spill] sm:$0xff] %v6164_v61  ;;  %v1248_v10 = vpop.f32.mrb[90].mxu0 }
 0x22b   : > { %5105 = vtanh.f32 %v1248_v10  ;;  %v6166_v7 = vpop.f32.mrb[91].mxu0  ;;  %v5100_v42 = vpop.eup %5099 }
 0x22c   : > { %7754 = vst [vmem:[#allocation56_spill] sm:$0xff] %v6166_v7 }
 0x22d   : > { %v5102_v57 = vpop.eup %5101 }
 0x22e   : > { %v1428_v29 = vpack.c.bf16 %v5102_v57, %v5100_v42 }
 0x230   : > { %v1254_v6 = vpop.f32.mrb[92].mxu0  ;;  %4856 = vmatmul.mubr.bf16.gmra.mrb[60].mxu1 %v1428_v29 }
 0x231   : > { %v6168_v58 = vpop.f32.mrb[93].mxu0  ;;  %5107 = vtanh.f32 %v1254_v6 }
 0x232   : > { %7755 = vst [vmem:[#allocation57_spill] sm:$0xff] %v6168_v58  ;;  %v1258_v12 = vpop.f32.mrb[94].mxu0 }
 0x233   : > { %5109 = vtanh.f32 %v1258_v12  ;;  %v6170_v37 = vpop.f32.mrb[95].mxu0  ;;  %v5104_v60 = vpop.eup %5103 }
 0x234   : > { %7756 = vst [vmem:[#allocation58_spill] sm:$0xff] %v6170_v37 }
 0x235   : > { %v5106_v48 = vpop.eup %5105 }
 0x236   : > { %v1429_v61 = vpack.c.bf16 %v5106_v48, %v5104_v60 }
 0x238   : > { %v1264_v21 = vpop.f32.mrb[96].mxu0  ;;  %4859 = vmatprep.mubr.bf16.mxu1 %v1429_v61 }
 0x239   : > { %v6172_v10 = vpop.f32.mrb[97].mxu0  ;;  %5111 = vtanh.f32 %v1264_v21 }
 0x23a   : > { %7757 = vst [vmem:[#allocation59_spill] sm:$0xff] %v6172_v10  ;;  %v1268_v7 = vpop.f32.mrb[98].mxu0 }
 0x23b   : > { %5113 = vtanh.f32 %v1268_v7  ;;  %v6174_v42 = vpop.f32.mrb[99].mxu0  ;;  %v5108_v29 = vpop.eup %5107 }
 0x23c   : > { %7758 = vst [vmem:[#allocation60_spill] sm:$0xff] %v6174_v42 }
 0x23d   : > { %v5110_v57 = vpop.eup %5109 }
 0x23e   : > { %v1430_v58 = vpack.c.bf16 %v5110_v57, %v5108_v29 }
 0x240   : > { %v1274_v6 = vpop.f32.mrb[100].mxu0  ;;  %4860 = vmatmul.mubr.bf16.gmra.mrb[64].mxu1 %v1430_v58 }
 0x241   : > { %v6176_v12 = vpop.f32.mrb[101].mxu0  ;;  %5115 = vtanh.f32 %v1274_v6 }
 0x242   : > { %7759 = vst [vmem:[#allocation61_spill] sm:$0xff] %v6176_v12  ;;  %v1278_v37 = vpop.f32.mrb[102].mxu0 }
 0x243   : > { %5117 = vtanh.f32 %v1278_v37  ;;  %v6178_v60 = vpop.f32.mrb[103].mxu0  ;;  %v5112_v61 = vpop.eup %5111 }
 0x244   : > { %7760 = vst [vmem:[#allocation62_spill] sm:$0xff] %v6178_v60  ;;  %v798_v60 = vpop.permute.xlu1 %797 }
 0x245   : > { %v5114_v48 = vpop.eup %5113  ;;  %vm818_vm6 = vcmp.eq.s32.totalorder %v798_v60, %v5674_v13 }
 0x246   : > { %v1431_v10 = vpack.c.bf16 %v5114_v48, %v5112_v61  ;;  %v7764_v61 = vpack.c.bf16 %v6103_v50, %v6097_v59  ;;  %v801_v48 = vpop.permute.xlu0 %800 }
 0x247   : > { %vm819_vm9 = vcmp.eq.s32.totalorder %v801_v48, %v5674_v13 }
 0x248   : > { %v1284_v21 = vpop.f32.mrb[104].mxu0  ;;  %4863 = vmatprep.mubr.bf16.mxu1 %v1431_v10  ;;  %v7763_v10 = vpack.c.bf16 %v6089_v39, %v6083_v15 }
 0x249   : > { %v6180_v7 = vpop.f32.mrb[105].mxu0  ;;  %5119 = vtanh.f32 %v1284_v21  ;;  %v7765_v21 = vpack.c.bf16 %v6120_v25, %v6114_v2 }
 0x24a   : > { %7761 = vst [vmem:[#allocation63_spill] sm:$0xff] %v6180_v7  ;;  %v1288_v42 = vpop.f32.mrb[106].mxu0  ;;  %v807_v2 = vpop.permute.xlu0 %806 }
 0x24b   : > { %5121 = vtanh.f32 %v1288_v42  ;;  %v6182_v29 = vpop.f32.mrb[107].mxu0  ;;  %v5116_v58 = vpop.eup %5115  ;;  %vm821_vm11 = vcmp.eq.s32.totalorder %v807_v2, %v5674_v13 }
 0x24c   : > { %7762 = vst [vmem:[#allocation64_spill] sm:$0xff] %v6182_v29  ;;  %v804_v42 = vpop.permute.xlu1 %803 }
 0x24d   : > { %v5118_v57 = vpop.eup %5117  ;;  %vm820_vm8 = vcmp.eq.s32.totalorder %v804_v42, %v5674_v13 }
 0x24e   : > { %v1432_v12 = vpack.c.bf16 %v5118_v57, %v5116_v58 }
 0x250   : > { %4864 = vmatmul.mubr.bf16.gmra.mrb[68].mxu1 %v1432_v12  ;;  %v810_v39 = vpop.permute.xlu1 %809  ;;  %v7767_v12 = vmov 0.0  }
 0x251   : > { %v4660_v58 = vsel %vm818_vm6, 1.0, %v7767_v12  ;;  %v4659_v57 = vsel %vm817_vm7, 1.0, %v7767_v12  ;;  %vm822_vm10 = vcmp.eq.s32.totalorder %v810_v39, %v5674_v13  ;;  %v4662_v48 = vsel %vm820_vm8, 1.0, %v7767_v12 }
 0x252   : > { %v4663_v24 = vsel %vm821_vm11, 1.0, %v7767_v12 }
 0x253   : > { %v5120_v6 = vpop.eup %5119 }
 0x255   : > { %v5122_v37 = vpop.eup %5121 }
 0x256   : > { %v1433_v22 = vpack.c.bf16 %v5122_v37, %v5120_v6 }
 0x258   : > { %4867 = vmatprep.mubr.bf16.mxu1 %v1433_v22  ;;  %v7766_v22 = vpack.c.bf16 %v6134_v38, %v6128_v63 }
 0x259   : > { %4868 = vmatmul.mubr.bf16.gmra.mrb[72].mxu1 %v7763_v10 }
 0x25a   : > { %4871 = vmatprep.mubr.bf16.mxu1 %v7764_v61 }
 0x261   : > { %4872 = vmatmul.mubr.bf16.gmra.mrb[76].mxu1 %v7765_v21  ;;  %v841_v21 = vpack.c.bf16 %v4660_v58, %v4659_v57  ;;  %v816_v58 = vpop.permute.xlu1 %815  ;;  %v813_v57 = vpop.permute.xlu0 %812 }
 0x262   : > { %4875 = vmatprep.mubr.bf16.mxu1 %v7766_v22  ;;  %vm824_vm12 = vcmp.eq.s32.totalorder %v816_v58, %v5674_v13  ;;  %vm823_vm13 = vcmp.eq.s32.totalorder %v813_v57, %v5674_v13 }
 0x263   : > { %v4817_v15 = vpop.f32.mrb[20].mxu1 }
 0x264   : > { %v1807_v59 = vsel %vm1792_vm5, %v4817_v15, -inf  ;;  %v1537_v50 = vpop.f32.mrb[21].mxu1 }
 0x265   : > { %v1808_v25 = vrot.slane %v1807_v59, 4  ;;  %v1793_v6 = vsel %vm1792_vm5, %v1537_v50, -inf  ;;  %v4818_v60 = vpop.f32.mrb[22].mxu1 }
 0x266   : > { %v1794_v37 = vrot.slane %v1793_v6, 4  ;;  %v1814_v56 = vsel %vm1792_vm5, %v4818_v60, -inf  ;;  %v1540_v10 = vpop.f32.mrb[23].mxu1 }
 0x267   : > { %v1809_v63 = vmax.f32 %v1807_v59, %v1808_v25  ;;  %v1815_v38 = vrot.slane %v1814_v56, 4  ;;  %v1800_v61 = vsel %vm1792_vm5, %v1540_v10, -inf }
 0x268   : > { %v1795_v22 = vmax.f32 %v1793_v6, %v1794_v37  ;;  %v1801_v29 = vrot.slane %v1800_v61, 4  ;;  %v4661_v37 = vsel %vm819_vm9, 1.0, %v7767_v12 }
 0x269   : > { %v1810_v7 = vrot.slane %v1809_v63, 2  ;;  %v1816_v35 = vmax.f32 %v1814_v56, %v1815_v38  ;;  %4876 = vmatmul.mubr.bf16.gmra.mrb[80].mxu1 %v7768_v16  ;;  %v4664_v16 = vsel %vm822_vm10, 1.0, %v7767_v12 }
 0x26a   : > { %v1796_v59 = vrot.slane %v1795_v22, 2  ;;  %v1802_v25 = vmax.f32 %v1800_v61, %v1801_v29  ;;  %4881 = vmatprep.mubr.msk.bf16.mxu1 %vm1792_vm5, %v841_v21  ;;  %v843_v21 = vpack.c.bf16 %v4664_v16, %v4663_v24 }
 0x26b   : > { %v1811_v6 = vmax.f32 %v1809_v63, %v1810_v7  ;;  %v1817_v42 = vrot.slane %v1816_v35, 2  ;;  %v842_v7 = vpack.c.bf16 %v4662_v48, %v4661_v37 }
 0x26c   : > { %v1797_v56 = vmax.f32 %v1795_v22, %v1796_v59  ;;  %v1803_v38 = vrot.slane %v1802_v25, 2  ;;  %v4666_v22 = vsel %vm824_vm12, 1.0, %v7767_v12  ;;  %v4665_v59 = vsel %vm823_vm13, 1.0, %v7767_v12 }
 0x26d   : > { %v1812_v41 = vrot.slane %v1811_v6, 1  ;;  %v1818_v39 = vmax.f32 %v1816_v35, %v1817_v42 }
 0x26e   : > { %v1798_v29 = vrot.slane %v1797_v56, 1  ;;  %v1804_v2 = vmax.f32 %v1802_v25, %v1803_v38 }
 0x26f   : > { %v1813_v63 = vmax.f32 %v1811_v6, %v1812_v41  ;;  %v1819_v61 = vrot.slane %v1818_v39, 1  ;;  %v844_v6 = vpack.c.bf16 %v4666_v22, %v4665_v59 }
 0x270   : > { %v1799_v36 = vmax.f32 %v1797_v56, %v1798_v29  ;;  %v1805_v8 = vrot.slane %v1804_v2, 1 }
 0x271   : > { %v2243_v0 = vsub.f32 %v4817_v15, %v1813_v63  ;;  %v1820_v20 = vmax.f32 %v1818_v39, %v1819_v61  ;;  %4882 = vmatmul.mubr.msk.bf16.vlgmr.msra.gmra.mrb[84].mxu1 %vm1792_vm5, %v842_v7 }
 0x272   : > { %v2241_v35 = vsub.f32 %v1537_v50, %v1799_v36  ;;  %v1806_v58 = vmax.f32 %v1804_v2, %v1805_v8  ;;  %4885 = vmatprep.mubr.msk.bf16.mxu1 %vm1792_vm5, %v843_v21 }
 0x273   : > { %v2309_v13 = vmul.f32 1.442695, %v2243_v0  ;;  %v2244_v25 = vsub.f32 %v4818_v60, %v1820_v20  ;;  %v4821_v57 = vpop.f32.mrb[24].mxu1 }
 0x274   : > { %v2305_v42 = vmul.f32 1.442695, %v2241_v35  ;;  %v2242_v48 = vsub.f32 %v1540_v10, %v1806_v58  ;;  %v1835_v37 = vsel %vm1792_vm5, %v4821_v57, -inf  ;;  %v1553_v56 = vpop.f32.mrb[25].mxu1 }
 0x275   : > { %5123 = vpow2.f32 %v2309_v13  ;;  %v2311_v38 = vmul.f32 1.442695, %v2244_v25  ;;  %v1836_v12 = vrot.slane %v1835_v37, 4  ;;  %v1821_v15 = vsel %vm1792_vm5, %v1553_v56, -inf  ;;  %v4822_v16 = vpop.f32.mrb[26].mxu1 }
 0x276   : > { %5125 = vpow2.f32 %v2305_v42  ;;  %v2307_v36 = vmul.f32 1.442695, %v2242_v48  ;;  %v1822_v8 = vrot.slane %v1821_v15, 4  ;;  %v1842_v50 = vsel %vm1792_vm5, %v4822_v16, -inf  ;;  %v1556_v0 = vpop.f32.mrb[27].mxu1 }
 0x277   : > { %5127 = vpow2.f32 %v2311_v38  ;;  %v1837_v20 = vmax.f32 %v1835_v37, %v1836_v12  ;;  %v1843_v60 = vrot.slane %v1842_v50, 4  ;;  %v1828_v10 = vsel %vm1792_vm5, %v1556_v0, -inf }
 0x278   : > { %5129 = vpow2.f32 %v2307_v36  ;;  %v1823_v24 = vmax.f32 %v1821_v15, %v1822_v8  ;;  %v1829_v41 = vrot.slane %v1828_v10, 4 }
 0x279   : > { %v1838_v39 = vrot.slane %v1837_v20, 2  ;;  %v1844_v29 = vmax.f32 %v1842_v50, %v1843_v60  ;;  %4886 = vmatmul.mubr.msk.bf16.gmra.mrb[88].mxu1 %vm1792_vm5, %v844_v6 }
 0x27a   : > { %v1824_v2 = vrot.slane %v1823_v24, 2  ;;  %v1830_v7 = vmax.f32 %v1828_v10, %v1829_v41 }
 0x27b   : > { %v1839_v63 = vmax.f32 %v1837_v20, %v1838_v39  ;;  %v1845_v61 = vrot.slane %v1844_v29, 2 }
 0x27c   : > { %v1825_v21 = vmax.f32 %v1823_v24, %v1824_v2  ;;  %v1831_v22 = vrot.slane %v1830_v7, 2 }
 0x27d   : > { %v1840_v59 = vrot.slane %v1839_v63, 1  ;;  %v1846_v35 = vmax.f32 %v1844_v29, %v1845_v61 }
 0x27e   : > { %v1826_v58 = vrot.slane %v1825_v21, 1  ;;  %v1832_v13 = vmax.f32 %v1830_v7, %v1831_v22 }
 0x27f   : > { %v6227_v25 = vpop.eup %5123  ;;  %v1841_v42 = vmax.f32 %v1839_v63, %v1840_v59  ;;  %v1847_v48 = vrot.slane %v1846_v35, 1 }
 0x280   : > { %v6229_v37 = vpop.eup %5125  ;;  %v2447_v38 = vsel %vm1792_vm5, %v6227_v25, 0.0  ;;  %v1827_v6 = vmax.f32 %v1825_v21, %v1826_v58  ;;  %v1833_v12 = vrot.slane %v1832_v13, 1 }
 0x281   : > { %v6233_v15 = vpop.eup %5127  ;;  %v2448_v36 = vrot.slane %v2447_v38, 4  ;;  %v2433_v8 = vsel %vm1792_vm5, %v6229_v37, 0.0  ;;  %v2247_v50 = vsub.f32 %v4821_v57, %v1841_v42  ;;  %v1848_v20 = vmax.f32 %v1846_v35, %v1847_v48 }
 0x282   : > { %v6237_v60 = vpop.eup %5129  ;;  %v2434_v10 = vrot.slane %v2433_v8, 4  ;;  %v2454_v24 = vsel %vm1792_vm5, %v6233_v15, 0.0  ;;  %v2245_v41 = vsub.f32 %v1553_v56, %v1827_v6  ;;  %v1834_v39 = vmax.f32 %v1832_v13, %v1833_v12 }
 0x283   : > { %v2449_v29 = vadd.f32 %v2448_v36, %v2447_v38  ;;  %v2455_v2 = vrot.slane %v2454_v24, 4  ;;  %v2440_v7 = vsel %vm1792_vm5, %v6237_v60, 0.0  ;;  %v2317_v63 = vmul.f32 1.442695, %v2247_v50  ;;  %v6243_v61 = vpop.f32.mrb[28].mxu1 }
 0x284   : > { %v2435_v21 = vadd.f32 %v2434_v10, %v2433_v8  ;;  %v2441_v22 = vrot.slane %v2440_v7, 4  ;;  %v2313_v57 = vmul.f32 1.442695, %v2245_v41  ;;  %v2248_v59 = vsub.f32 %v4822_v16, %v1848_v20  ;;  %v6245_v35 = vpop.f32.mrb[29].mxu1 }
 0x285   : > { %v2450_v58 = vrot.slane %v2449_v29, 2  ;;  %v2456_v42 = vadd.f32 %v2455_v2, %v2454_v24  ;;  %5131 = vpow2.f32 %v2317_v63  ;;  %v2246_v48 = vsub.f32 %v1556_v0, %v1834_v39  ;;  %v6247_v56 = vpop.f32.mrb[30].mxu1 }
 0x286   : > { %v2436_v13 = vrot.slane %v2435_v21, 2  ;;  %v2442_v38 = vadd.f32 %v2441_v22, %v2440_v7  ;;  %5133 = vpow2.f32 %v2313_v57  ;;  %v2319_v6 = vmul.f32 1.442695, %v2248_v59  ;;  %v6249_v12 = vpop.f32.mrb[31].mxu1 }
 0x287   : > { %v2457_v36 = vrot.slane %v2456_v42, 2  ;;  %v2315_v50 = vmul.f32 1.442695, %v2246_v48  ;;  %v1863_v8 = vsel %vm1792_vm5, %v6243_v61, -inf  ;;  %v1849_v16 = vsel %vm1792_vm5, %v6245_v35, -inf }
 0x288   : > { %v2443_v20 = vrot.slane %v2442_v38, 2  ;;  %5135 = vpow2.f32 %v2319_v6  ;;  %v1864_v10 = vrot.slane %v1863_v8, 4  ;;  %v1850_v0 = vrot.slane %v1849_v16, 4 }
 0x289   : > { %5137 = vpow2.f32 %v2315_v50  ;;  %v1870_v24 = vsel %vm1792_vm5, %v6247_v56, -inf  ;;  %v1856_v41 = vsel %vm1792_vm5, %v6249_v12, -inf  ;;  %v2451_v39 = vadd.f32 %v2450_v58, %v2449_v29 }
 0x28a   : > { %v1865_v2 = vmax.f32 %v1863_v8, %v1864_v10  ;;  %v1851_v7 = vmax.f32 %v1849_v16, %v1850_v0  ;;  %v1871_v63 = vrot.slane %v1870_v24, 4  ;;  %v1857_v22 = vrot.slane %v1856_v41, 4 }
 0x28b   : > { %v2452_v57 = vrot.slane %v2451_v39, 1  ;;  %v2437_v59 = vadd.f32 %v2436_v13, %v2435_v21  ;;  %v2458_v48 = vadd.f32 %v2457_v36, %v2456_v42  ;;  %v2444_v45 = vadd.f32 %v2443_v20, %v2442_v38 }
 0x28c   : > { %v1866_v23 = vrot.slane %v1865_v2, 2  ;;  %v1852_v6 = vrot.slane %v1851_v7, 2  ;;  %v1872_v46 = vmax.f32 %v1870_v24, %v1871_v63  ;;  %v1858_v19 = vmax.f32 %v1856_v41, %v1857_v22 }
 0x28d   : > { %v2453_v50 = vadd.f32 %v2452_v57, %v2451_v39  ;;  %v2438_v11 = vrot.slane %v2437_v59, 1  ;;  %v2459_v18 = vrot.slane %v2458_v48, 1  ;;  %v2445_v16 = vrot.slane %v2444_v45, 1 }
 0x28e   : > { %v1867_v62 = vmax.f32 %v1865_v2, %v1866_v23  ;;  %v1853_v30 = vmax.f32 %v1851_v7, %v1852_v6  ;;  %v1873_v54 = vrot.slane %v1872_v46, 2  ;;  %v1859_v49 = vrot.slane %v1858_v19, 2 }
 0x28f   : > { %v6259_v29 = vpop.eup %5131  ;;  %5139 = vrcp.f32 %v2453_v50  ;;  %v2439_v58 = vadd.f32 %v2438_v11, %v2437_v59  ;;  %v2460_v8 = vadd.f32 %v2459_v18, %v2458_v48 }
 0x290   : > { %v6261_v21 = vpop.eup %5133  ;;  %v2475_v42 = vsel %vm1792_vm5, %v6259_v29, 0.0  ;;  %v1868_v13 = vrot.slane %v1867_v62, 1  ;;  %v1854_v38 = vrot.slane %v1853_v30, 1  ;;  %v1874_v36 = vmax.f32 %v1872_v46, %v1873_v54 }
 0x291   : > { %v2476_v20 = vrot.slane %v2475_v42, 4  ;;  %v2461_v23 = vsel %vm1792_vm5, %v6261_v21, 0.0  ;;  %v1860_v10 = vmax.f32 %v1858_v19, %v1859_v49  ;;  %5141 = vrcp.f32 %v2439_v58 }
 0x292   : > { %v6267_v0 = vpop.eup %5135  ;;  %v2462_v24 = vrot.slane %v2461_v23, 4  ;;  %v1869_v11 = vmax.f32 %v1867_v62, %v1868_v13  ;;  %v1855_v18 = vmax.f32 %v1853_v30, %v1854_v38  ;;  %v1875_v41 = vrot.slane %v1874_v36, 1 }
 0x293   : > { %v6269_v39 = vpop.eup %5137  ;;  %v6271_v2 = vadd.f32 %v2476_v20, %v2475_v42  ;;  %v2482_v7 = vsel %vm1792_vm5, %v6267_v0, 0.0  ;;  %v1861_v54 = vrot.slane %v1860_v10, 1  ;;  %v6275_v46 = vpop.f32.mrb[32].mxu1  ;;  %5143 = vrcp.f32 %v2460_v8 }
 0x294   : > { %v2463_v63 = vadd.f32 %v2462_v24, %v2461_v23  ;;  %v2468_v49 = vsel %vm1792_vm5, %v6269_v39, 0.0  ;;  %v2251_v19 = vsub.f32 %v6243_v61, %v1869_v11  ;;  %v6280_v62 = vpop.f32.mrb[33].mxu1  ;;  %v2483_v30 = vrot.slane %v2482_v7, 4 }
 0x295   : > { %v2249_v22 = vsub.f32 %v6245_v35, %v1855_v18  ;;  %v1876_v57 = vmax.f32 %v1874_v36, %v1875_v41  ;;  %v6283_v59 = vpop.f32.mrb[34].mxu1  ;;  %v2478_v48 = vrot.slane %v6271_v2, 2  ;;  %v1862_v50 = vmax.f32 %v1860_v10, %v1861_v54 }
 0x296   : > { %v2325_v6 = vmul.f32 1.442695, %v2251_v19  ;;  %v6286_v58 = vpop.f32.mrb[35].mxu1  ;;  %v2446_v8 = vadd.f32 %v2445_v16, %v2444_v45  ;;  %v2469_v42 = vrot.slane %v2468_v49, 4  ;;  %v1891_v61 = vsel %vm1792_vm5, %v6275_v46, -inf }
 0x297   : > { %v2321_v13 = vmul.f32 1.442695, %v2249_v22  ;;  %v2252_v38 = vsub.f32 %v6247_v56, %v1876_v57  ;;  %v2464_v20 = vrot.slane %v2463_v63, 2  ;;  %v2250_v35 = vsub.f32 %v6249_v12, %v1862_v50 }
 0x298   : > { %5145 = vpow2.f32 %v2325_v6  ;;  %v1892_v36 = vrot.slane %v1891_v61, 4  ;;  %v6292_v24 = vadd.f32 %v2483_v30, %v2482_v7  ;;  %v1877_v45 = vsel %vm1792_vm5, %v6280_v62, -inf }
 0x299   : > { %v5140_v23 = vpop.eup %5139  ;;  %5147 = vpow2.f32 %v2321_v13  ;;  %v2327_v10 = vmul.f32 1.442695, %v2252_v38  ;;  %v2323_v16 = vmul.f32 1.442695, %v2250_v35  ;;  %v1878_v18 = vrot.slane %v1877_v45, 4 }
 0x29a   : > { %v1893_v11 = vmax.f32 %v1891_v61, %v1892_v36  ;;  %v1898_v56 = vsel %vm1792_vm5, %v6283_v59, -inf  ;;  %v1884_v12 = vsel %vm1792_vm5, %v6286_v58, -inf  ;;  %v2947_v7 = vmul.f32 %v5140_v23, %v6227_v25 }
 0x29b   : > { %v5142_v41 = vpop.eup %5141  ;;  %5149 = vpow2.f32 %v2327_v10  ;;  %v1899_v54 = vrot.slane %v1898_v56, 4  ;;  %v1879_v30 = vmax.f32 %v1877_v45, %v1878_v18  ;;  %v1885_v22 = vrot.slane %v1884_v12, 4 }
 0x29c   : > { %5151 = vpow2.f32 %v2323_v16  ;;  %v1894_v19 = vrot.slane %v1893_v11, 2  ;;  %v3015_v50 = vsel %vm1792_vm5, %v2947_v7, 0.0  ;;  %v2945_v13 = vmul.f32 %v5142_v41, %v6229_v37 }
 0x29d   : > { %v5144_v57 = vpop.eup %5143  ;;  %v1900_v6 = vmax.f32 %v1898_v56, %v1899_v54  ;;  %5153 = vrcp.f32 %v2446_v8  ;;  %v1880_v61 = vrot.slane %v1879_v30, 2  ;;  %v1886_v35 = vmax.f32 %v1884_v12, %v1885_v22  ;;  %3016 = vadd.xlane.f32.xlu0 %v3015_v50 }
 0x29e   : > { %v1895_v38 = vmax.f32 %v1893_v11, %v1894_v19  ;;  %v2948_v36 = vmul.f32 %v5144_v57, %v6233_v15  ;;  %v2470_v10 = vadd.f32 %v2469_v42, %v2468_v49  ;;  %v3009_v25 = vsel %vm1792_vm5, %v2945_v13, 0.0 }
 0x29f   : > { %v1901_v47 = vrot.slane %v1900_v6, 2  ;;  %v1881_v45 = vmax.f32 %v1879_v30, %v1880_v61  ;;  %v1887_v16 = vrot.slane %v1886_v35, 2  ;;  %3010 = vadd.xlane.f32.xlu1 %v3009_v25  ;;  %v2479_v37 = vadd.f32 %v2478_v48, %v6271_v2 }
 0x2a0   : > { %v1896_v23 = vrot.slane %v1895_v38, 1  ;;  %v3018_v56 = vsel %vm1792_vm5, %v2948_v36, 0.0  ;;  %v2465_v8 = vadd.f32 %v2464_v20, %v2463_v63  ;;  %v2485_v41 = vrot.slane %v6292_v24, 2 }
 0x2a1   : > { %v1902_v18 = vmax.f32 %v1900_v6, %v1901_v47  ;;  %v1882_v15 = vrot.slane %v1881_v45, 1  ;;  %v1888_v49 = vmax.f32 %v1886_v35, %v1887_v16  ;;  %3019 = vadd.xlane.f32.xlu0 %v3018_v56  ;;  %v2471_v12 = vrot.slane %v2470_v10, 2 }
 0x2a2   : > { %v6307_v11 = vpop.eup %5145  ;;  %v1897_v54 = vmax.f32 %v1895_v38, %v1896_v23  ;;  %v2480_v13 = vrot.slane %v2479_v37, 1  ;;  %v2466_v38 = vrot.slane %v2465_v8, 1 }
 0x2a3   : > { %v6310_v42 = vpop.eup %5147  ;;  %v2503_v7 = vsel %vm1792_vm5, %v6307_v11, 0.0  ;;  %v1903_v47 = vrot.slane %v1902_v18, 1  ;;  %v6314_v19 = vpop.f32.mrb[36].mxu1  ;;  %v1883_v48 = vmax.f32 %v1881_v45, %v1882_v15  ;;  %v1889_v6 = vrot.slane %v1888_v49, 1 }
 0x2a4   : > { %v2504_v30 = vrot.slane %v2503_v7, 4  ;;  %v2489_v2 = vsel %vm1792_vm5, %v6310_v42, 0.0  ;;  %v2255_v63 = vsub.f32 %v6275_v46, %v1897_v54  ;;  %v6319_v20 = vpop.f32.mrb[37].mxu1  ;;  %v2486_v46 = vadd.f32 %v2485_v41, %v6292_v24 }
 0x2a5   : > { %v6321_v22 = vpop.eup %5149  ;;  %v1904_v57 = vmax.f32 %v1902_v18, %v1903_v47  ;;  %v6323_v50 = vpop.f32.mrb[38].mxu1  ;;  %v2490_v35 = vrot.slane %v2489_v2, 4  ;;  %v2253_v25 = vsub.f32 %v6280_v62, %v1883_v48  ;;  %v1919_v54 = vsel %vm1792_vm5, %v6314_v19, -inf }
 0x2a6   : > { %v6325_v61 = vpop.eup %5151  ;;  %v2333_v36 = vmul.f32 1.442695, %v2255_v63  ;;  %v6328_v23 = vpop.f32.mrb[39].mxu1  ;;  %v2505_v16 = vadd.f32 %v2504_v30, %v2503_v7  ;;  %v2510_v18 = vsel %vm1792_vm5, %v6321_v22, 0.0  ;;  %v2472_v62 = vadd.f32 %v2471_v12, %v2470_v10 }
 0x2a7   : > { %v5154_v45 = vpop.eup %5153  ;;  %v2256_v56 = vsub.f32 %v6283_v59, %v1904_v57  ;;  %v2496_v15 = vsel %vm1792_vm5, %v6325_v61, 0.0  ;;  %v2329_v47 = vmul.f32 1.442695, %v2253_v25  ;;  %v1890_v48 = vmax.f32 %v1888_v49, %v1889_v6 }
 0x2a8   : > { %5155 = vpow2.f32 %v2333_v36  ;;  %v2481_v28 = vadd.f32 %v2480_v13, %v2479_v37  ;;  %v2467_v24 = vadd.f32 %v2466_v38, %v2465_v8  ;;  %v6338_v41 = vadd.f32 %v2490_v35, %v2489_v2 }
 0x2a9   : > { %v2335_v63 = vmul.f32 1.442695, %v2256_v56  ;;  %v2511_v7 = vrot.slane %v2510_v18, 4  ;;  %v2946_v30 = vmul.f32 %v5154_v45, %v6237_v60  ;;  %v1920_v17 = vrot.slane %v1919_v54, 4 }
 0x2aa   : > { %v2506_v59 = vrot.slane %v2505_v16, 2  ;;  %v2497_v57 = vrot.slane %v2496_v15, 4  ;;  %5157 = vpow2.f32 %v2329_v47  ;;  %v1905_v34 = vsel %vm1792_vm5, %v6319_v20, -inf }
 0x2ab   : > { %5159 = vpow2.f32 %v2335_v63  ;;  %v3012_v36 = vsel %vm1792_vm5, %v2946_v30, 0.0  ;;  %v1921_v10 = vmax.f32 %v1919_v54, %v1920_v17  ;;  %v1906_v12 = vrot.slane %v1905_v34, 4 }
 0x2ac   : > { %v2254_v37 = vsub.f32 %v6286_v58, %v1890_v48  ;;  %3013 = vadd.xlane.f32.xlu0 %v3012_v36  ;;  %v1926_v8 = vsel %vm1792_vm5, %v6323_v50, -inf  ;;  %v1912_v60 = vsel %vm1792_vm5, %v6328_v23, -inf  ;;  %5161 = vrcp.f32 %v2481_v28 }
 0x2ad   : > { %v1922_v49 = vrot.slane %v1921_v10, 2  ;;  %v1907_v2 = vmax.f32 %v1905_v34, %v1906_v12  ;;  %v1927_v6 = vrot.slane %v1926_v8, 4  ;;  %v1913_v13 = vrot.slane %v1912_v60, 4 }
 0x2ae   : > { %v6349_v38 = vadd.f32 %v2511_v7, %v2510_v18  ;;  %v6351_v35 = vadd.f32 %v2497_v57, %v2496_v15  ;;  %v2487_v17 = vrot.slane %v2486_v46, 1  ;;  %v2507_v25 = vadd.f32 %v2506_v59, %v2505_v16 }
 0x2af   : > { %v1923_v45 = vmax.f32 %v1921_v10, %v1922_v49  ;;  %v1908_v58 = vrot.slane %v1907_v2, 2  ;;  %v1928_v56 = vmax.f32 %v1926_v8, %v1927_v6  ;;  %v1914_v54 = vmax.f32 %v1912_v60, %v1913_v13 }
 0x2b0   : > { %v2331_v47 = vmul.f32 1.442695, %v2254_v37  ;;  %5163 = vrcp.f32 %v2467_v24  ;;  %v2488_v63 = vadd.f32 %v2487_v17, %v2486_v46  ;;  %v2473_v48 = vrot.slane %v2472_v62, 1 }
 0x2b1   : > { %v1924_v28 = vrot.slane %v1923_v45, 1  ;;  %v1909_v34 = vmax.f32 %v1907_v2, %v1908_v58  ;;  %v1929_v36 = vrot.slane %v1928_v56, 2  ;;  %v1915_v12 = vrot.slane %v1914_v54, 2 }
 0x2b2   : > { %v6353_v30 = vpop.eup %5155  ;;  %5165 = vrcp.f32 %v2488_v63  ;;  %v2508_v15 = vrot.slane %v2507_v25, 1  ;;  %v2492_v24 = vrot.slane %v6338_v41, 2  ;;  %v2513_v37 = vrot.slane %v6349_v38, 2 }
 0x2b3   : > { %v6355_v18 = vpop.f32.mrb[40].mxu1  ;;  %v2531_v16 = vsel %vm1792_vm5, %v6353_v30, 0.0  ;;  %v1925_v7 = vmax.f32 %v1923_v45, %v1924_v28  ;;  %v1910_v59 = vrot.slane %v1909_v34, 1  ;;  %v1930_v57 = vmax.f32 %v1928_v56, %v1929_v36 }
 0x2b4   : > { %v6359_v10 = vpop.f32.mrb[41].mxu1  ;;  %v6361_v46 = vpop.eup %5157  ;;  %v1916_v8 = vmax.f32 %v1914_v54, %v1915_v12  ;;  %5167 = vpow2.f32 %v2331_v47  ;;  %v2474_v17 = vadd.f32 %v2473_v48, %v2472_v62  ;;  %v2532_v58 = vrot.slane %v2531_v16, 4 }
 0x2b5   : > { %v6365_v60 = vpop.f32.mrb[42].mxu1  ;;  %v6367_v49 = vpop.eup %5159  ;;  %v2259_v6 = vsub.f32 %v6314_v19, %v1925_v7  ;;  %v1911_v56 = vmax.f32 %v1909_v34, %v1910_v59  ;;  %v1931_v63 = vrot.slane %v1930_v57, 1  ;;  %v1947_v12 = vsel %vm1792_vm5, %v6355_v18, -inf }
 0x2b6   : > { %v6371_v13 = vpop.f32.mrb[43].mxu1  ;;  %v5162_v45 = vpop.eup %5161  ;;  %v1917_v28 = vrot.slane %v1916_v8, 1  ;;  %v2509_v32 = vadd.f32 %v2508_v15, %v2507_v25  ;;  %v1933_v19 = vsel %vm1792_vm5, %v6359_v10, -inf  ;;  %v2517_v62 = vsel %vm1792_vm5, %v6361_v46, 0.0 }
 0x2b7   : > { %v2341_v36 = vmul.f32 1.442695, %v2259_v6  ;;  %v2951_v54 = vmul.f32 %v5162_v45, %v6259_v29  ;;  %v2257_v2 = vsub.f32 %v6319_v20, %v1911_v56  ;;  %v1932_v47 = vmax.f32 %v1930_v57, %v1931_v63 }
 0x2b8   : > { %v1918_v43 = vmax.f32 %v1916_v8, %v1917_v28  ;;  %v2493_v34 = vadd.f32 %v2492_v24, %v6338_v41  ;;  %v6383_v7 = vadd.f32 %v2532_v58, %v2531_v16  ;;  %v2538_v25 = vsel %vm1792_vm5, %v6367_v49, 0.0 }
 0x2b9   : > { %5169 = vpow2.f32 %v2341_v36  ;;  %v3027_v48 = vsel %vm1792_vm5, %v2951_v54, 0.0  ;;  %v2337_v20 = vmul.f32 1.442695, %v2257_v2  ;;  %v2260_v15 = vsub.f32 %v6323_v50, %v1932_v47 }
 0x2ba   : > { %v5164_v29 = vpop.eup %5163  ;;  %3028 = vadd.xlane.f32.xlu1 %v3027_v48  ;;  %v2258_v59 = vsub.f32 %v6328_v23, %v1918_v43  ;;  %v1948_v8 = vrot.slane %v1947_v12, 4  ;;  %v1934_v6 = vrot.slane %v1933_v19, 4  ;;  %v2518_v56 = vrot.slane %v2517_v62, 4 }
 0x2bb   : > { %v2949_v57 = vmul.f32 %v5164_v29, %v6261_v21  ;;  %5171 = vpow2.f32 %v2337_v20  ;;  %v2343_v41 = vmul.f32 1.442695, %v2260_v15  ;;  %v1954_v16 = vsel %vm1792_vm5, %v6365_v60, -inf }
 0x2bc   : > { %v5166_v45 = vpop.eup %5165  ;;  %v2339_v24 = vmul.f32 1.442695, %v2258_v59  ;;  %v1949_v50 = vmax.f32 %v1947_v12, %v1948_v8  ;;  %v2539_v63 = vrot.slane %v2538_v25, 4  ;;  %v1935_v43 = vmax.f32 %v1933_v19, %v1934_v6 }
 0x2bd   : > { %v3021_v58 = vsel %vm1792_vm5, %v2949_v57, 0.0  ;;  %v2952_v2 = vmul.f32 %v5166_v45, %v6267_v0  ;;  %5173 = vpow2.f32 %v2343_v41  ;;  %v1955_v21 = vrot.slane %v1954_v16, 4 }
 0x2be   : > { %3022 = vadd.xlane.f32.xlu1 %v3021_v58  ;;  %v6394_v23 = vpop.eup %5167  ;;  %5175 = vpow2.f32 %v2339_v24  ;;  %v1950_v36 = vrot.slane %v1949_v50, 2  ;;  %v1940_v54 = vsel %vm1792_vm5, %v6371_v13, -inf  ;;  %v1936_v47 = vrot.slane %v1935_v43, 2 }
 0x2bf   : > { %v3030_v28 = vsel %vm1792_vm5, %v2952_v2, 0.0  ;;  %v1956_v48 = vmax.f32 %v1954_v16, %v1955_v21  ;;  %v1941_v29 = vrot.slane %v1940_v54, 4  ;;  %5177 = vrcp.f32 %v2474_v17 }
 0x2c0   : > { %v1951_v0 = vmax.f32 %v1949_v50, %v1950_v36  ;;  %5179 = vrcp.f32 %v2509_v32  ;;  %v2494_v12 = vrot.slane %v2493_v34, 1  ;;  %v2514_v20 = vadd.f32 %v2513_v37, %v6349_v38 }
 0x2c1   : > { %v1937_v19 = vmax.f32 %v1935_v43, %v1936_v47  ;;  %v1957_v15 = vrot.slane %v1956_v48, 2  ;;  %v1942_v59 = vmax.f32 %v1940_v54, %v1941_v29  ;;  %v7769_v57 = vrot.slane %v6351_v35, 2 }
 0x2c2   : > { %3031 = vadd.xlane.f32.xlu1 %v3030_v28  ;;  %v6407_v41 = vadd.f32 %v2518_v56, %v2517_v62  ;;  %v1952_v17 = vrot.slane %v1951_v0, 1  ;;  %v2495_v16 = vadd.f32 %v2494_v12, %v2493_v34  ;;  %v2515_v32 = vrot.slane %v2514_v20, 1 }
 0x2c3   : > { %v2500_v8 = vadd.f32 %v7769_v57, %v6351_v35  ;;  %v6405_v45 = vpop.eup %5169  ;;  %v2524_v38 = vsel %vm1792_vm5, %v6394_v23, 0.0  ;;  %v1938_v37 = vrot.slane %v1937_v19, 1  ;;  %v1958_v58 = vmax.f32 %v1956_v48, %v1957_v15 }
 0x2c4   : > { %v6403_v6 = vpop.f32.mrb[44].mxu1  ;;  %v1943_v2 = vrot.slane %v1942_v59, 2  ;;  %v2559_v35 = vsel %vm1792_vm5, %v6405_v45, 0.0  ;;  %v1953_v43 = vmax.f32 %v1951_v0, %v1952_v17  ;;  %5181 = vrcp.f32 %v2495_v16 }
 0x2c5   : > { %v6409_v24 = vpop.f32.mrb[45].mxu1  ;;  %v2516_v62 = vadd.f32 %v2515_v32, %v2514_v20  ;;  %v6419_v34 = vpop.eup %5171  ;;  %v1939_v21 = vmax.f32 %v1937_v19, %v1938_v37  ;;  %v1959_v28 = vrot.slane %v1958_v58, 1  ;;  %v2501_v54 = vrot.slane %v2500_v8, 1 }
 0x2c6   : > { %v6413_v50 = vpop.f32.mrb[46].mxu1  ;;  %v1944_v36 = vmax.f32 %v1942_v59, %v1943_v2  ;;  %v6421_v47 = vadd.f32 %v2539_v63, %v2538_v25  ;;  %v2525_v48 = vrot.slane %v2524_v38, 4  ;;  %v2263_v29 = vsub.f32 %v6355_v18, %v1953_v43 }
 0x2c7   : > { %v6417_v56 = vpop.f32.mrb[47].mxu1  ;;  %5183 = vrcp.f32 %v2516_v62  ;;  %v6424_v12 = vpop.eup %5173  ;;  %v2560_v15 = vrot.slane %v2559_v35, 4  ;;  %v2261_v0 = vsub.f32 %v6359_v10, %v1939_v21  ;;  %v1960_v20 = vmax.f32 %v1958_v58, %v1959_v28 }
 0x2c8   : > { %v1945_v57 = vrot.slane %v1944_v36, 1  ;;  %v6427_v17 = vpop.eup %5175  ;;  %v2534_v19 = vrot.slane %v6383_v7, 2  ;;  %v2349_v16 = vmul.f32 1.442695, %v2263_v29  ;;  %v2545_v63 = vsel %vm1792_vm5, %v6419_v34, 0.0 }
 0x2c9   : > { %v5178_v25 = vpop.eup %5177  ;;  %v2345_v18 = vmul.f32 1.442695, %v2261_v0  ;;  %v2502_v32 = vadd.f32 %v2501_v54, %v2500_v8  ;;  %v1975_v37 = vsel %vm1792_vm5, %v6403_v6, -inf  ;;  %v2566_v10 = vsel %vm1792_vm5, %v6424_v12, 0.0 }
 0x2ca   : > { %v5180_v2 = vpop.eup %5179  ;;  %5185 = vpow2.f32 %v2349_v16  ;;  %v2264_v58 = vsub.f32 %v6365_v60, %v1960_v20  ;;  %v1946_v43 = vmax.f32 %v1944_v36, %v1945_v57  ;;  %v6439_v21 = vadd.f32 %v2525_v48, %v2524_v38 }
 0x2cb   : > { %v6441_v28 = vadd.f32 %v2560_v15, %v2559_v35  ;;  %v2950_v29 = vmul.f32 %v5178_v25, %v6269_v39  ;;  %v2546_v8 = vrot.slane %v2545_v63, 4  ;;  %5187 = vpow2.f32 %v2345_v18 }
 0x2cc   : > { %v2262_v54 = vsub.f32 %v6371_v13, %v1946_v43  ;;  %v2955_v0 = vmul.f32 %v5180_v2, %v6307_v11  ;;  %v2567_v59 = vrot.slane %v2566_v10, 4  ;;  %5189 = vrcp.f32 %v2502_v32 }
 0x2cd   : > { %v3024_v16 = vsel %vm1792_vm5, %v2950_v29, 0.0  ;;  %v1976_v60 = vrot.slane %v1975_v37, 4  ;;  %v2552_v38 = vsel %vm1792_vm5, %v6427_v17, 0.0  ;;  %v2351_v48 = vmul.f32 1.442695, %v2264_v58 }
 0x2ce   : > { %v5182_v36 = vpop.eup %5181  ;;  %v2347_v35 = vmul.f32 1.442695, %v2262_v54  ;;  %3025 = vadd.xlane.f32.xlu1 %v3024_v16  ;;  %v3039_v39 = vsel %vm1792_vm5, %v2955_v0, 0.0  ;;  %v1961_v11 = vsel %vm1792_vm5, %v6409_v24, -inf  ;;  %v1982_v20 = vsel %vm1792_vm5, %v6413_v50, -inf }
 0x2cf   : > { %3040 = vadd.xlane.f32.xlu0 %v3039_v39  ;;  %v2953_v15 = vmul.f32 %v5182_v36, %v6310_v42  ;;  %v1977_v13 = vmax.f32 %v1975_v37, %v1976_v60  ;;  %v1962_v25 = vrot.slane %v1961_v11, 4  ;;  %v1983_v18 = vrot.slane %v1982_v20, 4 }
 0x2d0   : > { %5191 = vpow2.f32 %v2347_v35  ;;  %v1968_v32 = vsel %vm1792_vm5, %v6417_v56, -inf  ;;  %v2553_v29 = vrot.slane %v2552_v38, 4  ;;  %v2535_v39 = vadd.f32 %v2534_v19, %v6383_v7 }
 0x2d1   : > { %v5184_v57 = vpop.eup %5183  ;;  %v3033_v2 = vsel %vm1792_vm5, %v2953_v15, 0.0  ;;  %v1978_v43 = vrot.slane %v1977_v13, 2  ;;  %v1969_v42 = vrot.slane %v1968_v32, 4  ;;  %5193 = vpow2.f32 %v2351_v48 }
 0x2d2   : > { %v2956_v58 = vmul.f32 %v5184_v57, %v6321_v22  ;;  %3034 = vadd.xlane.f32.xlu1 %v3033_v2  ;;  %v1963_v54 = vmax.f32 %v1961_v11, %v1962_v25  ;;  %v1984_v0 = vmax.f32 %v1982_v20, %v1983_v18  ;;  %v6473_v25 = vadd.f32 %v2546_v8, %v2545_v63 }
 0x2d3   : > { %v1979_v36 = vmax.f32 %v1977_v13, %v1978_v43  ;;  %v1970_v35 = vmax.f32 %v1968_v32, %v1969_v42  ;;  %v7770_v7 = vrot.slane %v6407_v41, 2  ;;  %v6480_v2 = vadd.f32 %v2567_v59, %v2566_v10 }
 0x2d4   : > { %v6459_v37 = vpop.f32.mrb[48].mxu1  ;;  %v3042_v60 = vsel %vm1792_vm5, %v2956_v58, 0.0  ;;  %v6467_v22 = vpop.eup %5185  ;;  %v1964_v48 = vrot.slane %v1963_v54, 2  ;;  %v1985_v11 = vrot.slane %v1984_v0, 2  ;;  %v6482_v58 = vadd.f32 %v2553_v29, %v2552_v38 }
 0x2d5   : > { %v6461_v16 = vpop.f32.mrb[49].mxu1  ;;  %3043 = vadd.xlane.f32.xlu0 %v3042_v60  ;;  %v1980_v18 = vrot.slane %v1979_v36, 1  ;;  %v1971_v13 = vrot.slane %v1970_v35, 2  ;;  %v2521_v19 = vadd.f32 %v7770_v7, %v6407_v41  ;;  %v6478_v32 = vpop.eup %5187  ;;  %v2587_v62 = vsel %vm1792_vm5, %v6467_v22, 0.0 }
 0x2d6   : > { %v6465_v15 = vpop.f32.mrb[50].mxu1  ;;  %v1965_v43 = vmax.f32 %v1963_v54, %v1964_v48  ;;  %v1986_v42 = vmax.f32 %v1984_v0, %v1985_v11  ;;  %v5190_v60 = vpop.eup %5189  ;;  %v2536_v57 = vrot.slane %v2535_v39, 1  ;;  %v7771_v41 = vrot.slane %v6421_v47, 2 }
 0x2d7   : > { %v6471_v20 = vpop.f32.mrb[51].mxu1  ;;  %v1981_v63 = vmax.f32 %v1979_v36, %v1980_v18  ;;  %v1972_v8 = vmax.f32 %v1970_v35, %v1971_v13  ;;  %v2954_v14 = vmul.f32 %v5190_v60, %v6325_v61  ;;  %v2522_v54 = vrot.slane %v2521_v19, 1 }
 0x2d8   : > { %v1966_v31 = vrot.slane %v1965_v43, 1  ;;  %v1987_v9 = vrot.slane %v1986_v42, 1  ;;  %v2542_v59 = vadd.f32 %v7771_v41, %v6421_v47  ;;  %v2588_v48 = vrot.slane %v2587_v62, 4 }
 0x2d9   : > { %v2267_v38 = vsub.f32 %v6403_v6, %v1981_v63  ;;  %v1973_v29 = vrot.slane %v1972_v8, 1  ;;  %v2573_v36 = vsel %vm1792_vm5, %v6478_v32, 0.0  ;;  %v3036_v61 = vsel %vm1792_vm5, %v2954_v14, 0.0 }
 0x2da   : > { %v6492_v0 = vpop.eup %5191  ;;  %v1967_v35 = vmax.f32 %v1965_v43, %v1966_v31  ;;  %3037 = vadd.xlane.f32.xlu1 %v3036_v61  ;;  %v1988_v47 = vmax.f32 %v1986_v42, %v1987_v9  ;;  %v2537_v13 = vadd.f32 %v2536_v57, %v2535_v39  ;;  %v2543_v41 = vrot.slane %v2542_v59, 1 }
 0x2db   : > { %v2357_v18 = vmul.f32 1.442695, %v2267_v38  ;;  %v6498_v7 = vpop.eup %5193  ;;  %v1974_v63 = vmax.f32 %v1972_v8, %v1973_v29  ;;  %v2574_v10 = vrot.slane %v2573_v36, 4  ;;  %v2580_v3 = vsel %vm1792_vm5, %v6492_v0, 0.0 }
 0x2dc   : > { %v2265_v60 = vsub.f32 %v6409_v24, %v1967_v35  ;;  %v2268_v14 = vsub.f32 %v6413_v50, %v1988_v47  ;;  %v6505_v31 = vadd.f32 %v2588_v48, %v2587_v62  ;;  %v2523_v39 = vadd.f32 %v2522_v54, %v2521_v19 }
 0x2dd   : > { %5195 = vpow2.f32 %v2357_v18  ;;  %v2266_v9 = vsub.f32 %v6417_v56, %v1974_v63  ;;  %v2003_v24 = vsel %vm1792_vm5, %v6459_v37, -inf  ;;  %v1989_v42 = vsel %vm1792_vm5, %v6461_v16, -inf }
 0x2de   : > { %v2353_v43 = vmul.f32 1.442695, %v2265_v60  ;;  %v2359_v57 = vmul.f32 1.442695, %v2268_v14  ;;  %5197 = vrcp.f32 %v2537_v13  ;;  %v2594_v8 = vsel %vm1792_vm5, %v6498_v7, 0.0 }
 0x2df   : > { %v2581_v38 = vrot.slane %v2580_v3, 4  ;;  %v2544_v29 = vadd.f32 %v2543_v41, %v2542_v59  ;;  %v2004_v50 = vrot.slane %v2003_v24, 4  ;;  %v1990_v62 = vrot.slane %v1989_v42, 4 }
 0x2e0   : > { %5199 = vpow2.f32 %v2353_v43  ;;  %v2010_v56 = vsel %vm1792_vm5, %v6465_v15, -inf  ;;  %v1996_v19 = vsel %vm1792_vm5, %v6471_v20, -inf  ;;  %v2355_v48 = vmul.f32 1.442695, %v2266_v9 }
 0x2e1   : > { %5201 = vpow2.f32 %v2359_v57  ;;  %v2005_v61 = vmax.f32 %v2003_v24, %v2004_v50  ;;  %v2011_v35 = vrot.slane %v2010_v56, 4  ;;  %v1991_v47 = vmax.f32 %v1989_v42, %v1990_v62 }
 0x2e2   : > { %5203 = vrcp.f32 %v2523_v39  ;;  %v1997_v59 = vrot.slane %v1996_v19, 4  ;;  %v7772_v13 = vrot.slane %v6439_v21, 2  ;;  %v7773_v43 = vrot.slane %v6441_v28, 2 }
 0x2e3   : > { %v6518_v54 = vpop.f32.mrb[52].mxu1  ;;  %5205 = vrcp.f32 %v2544_v29  ;;  %v2006_v41 = vrot.slane %v2005_v61, 2  ;;  %v2012_v14 = vmax.f32 %v2010_v56, %v2011_v35  ;;  %v6532_v24 = vadd.f32 %v2574_v10, %v2573_v36 }
 0x2e4   : > { %v6520_v18 = vpop.f32.mrb[53].mxu1  ;;  %v2528_v60 = vadd.f32 %v7772_v13, %v6439_v21  ;;  %v2563_v9 = vadd.f32 %v7773_v43, %v6441_v28  ;;  %v1992_v39 = vrot.slane %v1991_v47, 2  ;;  %v1998_v42 = vmax.f32 %v1996_v19, %v1997_v59 }
 0x2e5   : > { %v6525_v63 = vpop.f32.mrb[54].mxu1  ;;  %v2595_v62 = vrot.slane %v2594_v8, 4  ;;  %v2007_v6 = vmax.f32 %v2005_v61, %v2006_v41  ;;  %v2013_v11 = vrot.slane %v2012_v14, 2  ;;  %v2582_v29 = vadd.f32 %v2581_v38, %v2580_v3 }
 0x2e6   : > { %v6530_v57 = vpop.f32.mrb[55].mxu1  ;;  %v2529_v50 = vrot.slane %v2528_v60, 1  ;;  %v2564_v21 = vrot.slane %v2563_v9, 1  ;;  %v1993_v52 = vmax.f32 %v1991_v47, %v1992_v39  ;;  %v1999_v56 = vrot.slane %v1998_v42, 2 }
 0x2e7   : > { %v6534_v13 = vpop.eup %5195  ;;  %5207 = vpow2.f32 %v2355_v48  ;;  %v2008_v5 = vrot.slane %v2007_v6, 1  ;;  %v2014_v28 = vmax.f32 %v2012_v14, %v2013_v11  ;;  %v7774_v19 = vrot.slane %v6480_v2, 2 }
 0x2e8   : > { %v2530_v35 = vadd.f32 %v2529_v50, %v2528_v60  ;;  %v2565_v43 = vadd.f32 %v2564_v21, %v2563_v9  ;;  %v5198_v51 = vpop.eup %5197  ;;  %v2615_v10 = vsel %vm1792_vm5, %v6534_v13, 0.0  ;;  %v1994_v36 = vrot.slane %v1993_v52, 1 }
 0x2e9   : > { %v2570_v61 = vadd.f32 %v7774_v19, %v6480_v2  ;;  %v2959_v59 = vmul.f32 %v5198_v51, %v6353_v30  ;;  %v2009_v3 = vmax.f32 %v2007_v6, %v2008_v5  ;;  %v2000_v38 = vmax.f32 %v1998_v42, %v1999_v56 }
 0x2ea   : > { %5209 = vrcp.f32 %v2530_v35  ;;  %v6542_v47 = vpop.eup %5199  ;;  %v2590_v11 = vrot.slane %v6505_v31, 2  ;;  %v2576_v48 = vrot.slane %v6532_v24, 2  ;;  %v1995_v60 = vmax.f32 %v1993_v52, %v1994_v36 }
 0x2eb   : > { %5211 = vrcp.f32 %v2565_v43  ;;  %v2015_v41 = vrot.slane %v2014_v28, 1  ;;  %v6546_v14 = vpop.eup %5201  ;;  %v6548_v9 = vadd.f32 %v2595_v62, %v2594_v8  ;;  %v2583_v39 = vrot.slane %v2582_v29, 2 }
 0x2ec   : > { %v3051_v2 = vsel %vm1792_vm5, %v2959_v59, 0.0  ;;  %v2271_v51 = vsub.f32 %v6459_v37, %v2009_v3  ;;  %v5204_v5 = vpop.eup %5203  ;;  %v2616_v30 = vrot.slane %v2615_v10, 4  ;;  %v2269_v6 = vsub.f32 %v6461_v16, %v1995_v60 }
 0x2ed   : > { %3052 = vadd.xlane.f32.xlu0 %v3051_v2  ;;  %v2571_v42 = vrot.slane %v2570_v61, 1  ;;  %v7775_v50 = vrot.slane %v6473_v25, 2  ;;  %v5206_v21 = vpop.eup %5205  ;;  %v2601_v8 = vsel %vm1792_vm5, %v6542_v47, 0.0  ;;  %v2957_v62 = vmul.f32 %v5204_v5, %v6361_v46 }
 0x2ee   : > { %v2365_v56 = vmul.f32 1.442695, %v2271_v51  ;;  %v2001_v35 = vrot.slane %v2000_v38, 1  ;;  %v6561_v37 = vsel %vm1792_vm5, %v6546_v14, 0.0  ;;  %v2960_v43 = vmul.f32 %v5206_v21, %v6367_v49 }
 0x2ef   : > { %v2549_v52 = vadd.f32 %v7775_v50, %v6473_v25  ;;  %v2361_v16 = vmul.f32 1.442695, %v2269_v6  ;;  %v2016_v36 = vmax.f32 %v2014_v28, %v2015_v41  ;;  %v6565_v59 = vadd.f32 %v2583_v39, %v2582_v29 }
 0x2f0   : > { %v3045_v25 = vsel %vm1792_vm5, %v2957_v62, 0.0  ;;  %5213 = vpow2.f32 %v2365_v56  ;;  %v6568_v3 = vadd.f32 %v2616_v30, %v2615_v10  ;;  %v2602_v46 = vrot.slane %v2601_v8, 4 }
 0x2f1   : > { %3046 = vadd.xlane.f32.xlu0 %v3045_v25  ;;  %5215 = vpow2.f32 %v2361_v16  ;;  %v2272_v60 = vsub.f32 %v6465_v15, %v2016_v36  ;;  %v6573_v51 = vpop.eup %5207  ;;  %v2623_v49 = vrot.slane %v6561_v37, 4  ;;  %v3054_v28 = vsel %vm1792_vm5, %v2960_v43, 0.0 }
 0x2f2   : > { %v2002_v29 = vmax.f32 %v2000_v38, %v2001_v35  ;;  %v2572_v41 = vadd.f32 %v2571_v42, %v2570_v61  ;;  %v2550_v30 = vrot.slane %v2549_v52, 1  ;;  %v7776_v6 = vrot.slane %v6482_v58, 2 }
 0x2f3   : > { %v6571_v2 = vpop.f32.mrb[56].mxu1  ;;  %v2367_v10 = vmul.f32 1.442695, %v2272_v60  ;;  %v2031_v15 = vsel %vm1792_vm5, %v6518_v54, -inf  ;;  %v2608_v35 = vsel %vm1792_vm5, %v6573_v51, 0.0 }
 0x2f4   : > { %v6577_v39 = vpop.f32.mrb[57].mxu1  ;;  %v5210_v5 = vpop.eup %5209  ;;  %v2556_v50 = vadd.f32 %v7776_v6, %v6482_v58  ;;  %v2270_v56 = vsub.f32 %v6471_v20, %v2002_v29  ;;  %5217 = vrcp.f32 %v2572_v41  ;;  %v2032_v61 = vrot.slane %v2031_v15, 4 }
 0x2f5   : > { %v6584_v21 = vpop.f32.mrb[58].mxu1  ;;  %v5212_v62 = vpop.eup %5211  ;;  %v2958_v38 = vmul.f32 %v5210_v5, %v6394_v23  ;;  %3055 = vadd.xlane.f32.xlu0 %v3054_v28  ;;  %v2551_v43 = vadd.f32 %v2550_v30, %v2549_v52  ;;  %5219 = vpow2.f32 %v2367_v10  ;;  %v2017_v20 = vsel %vm1792_vm5, %v6520_v18, -inf }
 0x2f6   : > { %v6588_v42 = vpop.f32.mrb[59].mxu1  ;;  %v2963_v58 = vmul.f32 %v5212_v62, %v6405_v45  ;;  %v2557_v16 = vrot.slane %v2556_v50, 1  ;;  %v2363_v36 = vmul.f32 1.442695, %v2270_v56  ;;  %v2033_v25 = vmax.f32 %v2031_v15, %v2032_v61 }
 0x2f7   : > { %5221 = vrcp.f32 %v2551_v43  ;;  %v2018_v29 = vrot.slane %v2017_v20, 4  ;;  %v3048_v41 = vsel %vm1792_vm5, %v2958_v38, 0.0  ;;  %v2038_v45 = vsel %vm1792_vm5, %v6525_v63, -inf }
 0x2f8   : > { %v3063_v23 = vsel %vm1792_vm5, %v2963_v58, 0.0  ;;  %v2558_v60 = vadd.f32 %v2557_v16, %v2556_v50  ;;  %v2034_v5 = vrot.slane %v2033_v25, 2  ;;  %v2024_v52 = vsel %vm1792_vm5, %v6530_v57, -inf }
 0x2f9   : > { %3064 = vadd.xlane.f32.xlu1 %v3063_v23  ;;  %3049 = vadd.xlane.f32.xlu0 %v3048_v41  ;;  %v2019_v28 = vmax.f32 %v2017_v20, %v2018_v29  ;;  %v2039_v10 = vrot.slane %v2038_v45, 4  ;;  %v2025_v30 = vrot.slane %v2024_v52, 4  ;;  %v2603_v15 = vadd.f32 %v2602_v46, %v2601_v8 }
 0x2fa   : > { %5223 = vrcp.f32 %v2558_v60  ;;  %v6601_v6 = vpop.eup %5213  ;;  %v2609_v50 = vrot.slane %v2608_v35, 4  ;;  %v2035_v62 = vmax.f32 %v2033_v25, %v2034_v5  ;;  %v2591_v56 = vadd.f32 %v2590_v11, %v6505_v31 }
 0x2fb   : > { %v6606_v38 = vpop.eup %5215  ;;  %v2643_v61 = vsel %vm1792_vm5, %v6601_v6, 0.0  ;;  %v2020_v58 = vrot.slane %v2019_v28, 2  ;;  %v2040_v43 = vmax.f32 %v2038_v45, %v2039_v10  ;;  %v2026_v16 = vmax.f32 %v2024_v52, %v2025_v30 }
 0x2fc   : > { %v2644_v20 = vrot.slane %v2643_v61, 4  ;;  %v2629_v23 = vsel %vm1792_vm5, %v6606_v38, 0.0  ;;  %5225 = vpow2.f32 %v2363_v36  ;;  %v2036_v8 = vrot.slane %v2035_v62, 1 }
 0x2fd   : > { %v2021_v46 = vmax.f32 %v2019_v28, %v2020_v58  ;;  %v2041_v25 = vrot.slane %v2040_v43, 2  ;;  %v2027_v60 = vrot.slane %v2026_v16, 2  ;;  %v2592_v29 = vrot.slane %v2591_v56, 1 }
 0x2fe   : > { %v5218_v41 = vpop.eup %5217  ;;  %v2604_v31 = vrot.slane %v2603_v15, 2  ;;  %v6613_v11 = vadd.f32 %v2623_v49, %v6561_v37  ;;  %v2037_v5 = vmax.f32 %v2035_v62, %v2036_v8  ;;  %v2577_v45 = vadd.f32 %v2576_v48, %v6532_v24 }
 0x2ff   : > { %v2630_v52 = vrot.slane %v2629_v23, 4  ;;  %v2964_v10 = vmul.f32 %v5218_v41, %v6424_v12  ;;  %v2022_v30 = vrot.slane %v2021_v46, 1  ;;  %v2042_v36 = vmax.f32 %v2040_v43, %v2041_v25  ;;  %v6619_v19 = vpop.eup %5219 }
 0x300   : > { %v2618_v28 = vrot.slane %v6568_v3, 2  ;;  %v6622_v58 = vadd.f32 %v2609_v50, %v2608_v35  ;;  %v6624_v4 = vadd.f32 %v2644_v20, %v2643_v61  ;;  %v2275_v37 = vsub.f32 %v6518_v54, %v2037_v5 }
 0x301   : > { %v5222_v49 = vpop.eup %5221  ;;  %v3066_v62 = vsel %vm1792_vm5, %v2964_v10, 0.0  ;;  %v2023_v8 = vmax.f32 %v2021_v46, %v2022_v30  ;;  %v2028_v24 = vmax.f32 %v2026_v16, %v2027_v60  ;;  %v2593_v48 = vadd.f32 %v2592_v29, %v2591_v56 }
 0x302   : > { %3067 = vadd.xlane.f32.xlu0 %v3066_v62  ;;  %v2961_v12 = vmul.f32 %v5222_v49, %v6419_v34  ;;  %v2373_v43 = vmul.f32 1.442695, %v2275_v37  ;;  %v2043_v25 = vrot.slane %v2042_v36, 1  ;;  %v2578_v41 = vrot.slane %v2577_v45, 1 }
 0x303   : > { %v6628_v55 = vpop.f32.mrb[60].mxu1  ;;  %v6633_v61 = vadd.f32 %v2604_v31, %v2603_v15  ;;  %v2625_v54 = vrot.slane %v6613_v11, 2  ;;  %v6636_v20 = vadd.f32 %v2630_v52, %v2629_v23  ;;  %v2273_v16 = vsub.f32 %v6520_v18, %v2023_v8 }
 0x304   : > { %v6631_v35 = vpop.f32.mrb[61].mxu1  ;;  %v5224_v50 = vpop.eup %5223  ;;  %v3057_v46 = vsel %vm1792_vm5, %v2961_v12, 0.0  ;;  %5227 = vpow2.f32 %v2373_v43  ;;  %v7777_v60 = vrot.slane %v6548_v9, 2  ;;  %v2044_v31 = vmax.f32 %v2042_v36, %v2043_v25 }
 0x305   : > { %v6639_v56 = vpop.f32.mrb[62].mxu1  ;;  %v2962_v34 = vmul.f32 %v5224_v50, %v6427_v17  ;;  %3058 = vadd.xlane.f32.xlu1 %v3057_v46  ;;  %v2369_v23 = vmul.f32 1.442695, %v2273_v16  ;;  %v2029_v52 = vrot.slane %v2028_v24, 1  ;;  %v2646_v10 = vrot.slane %v6624_v4, 2 }
 0x306   : > { %v2598_v29 = vadd.f32 %v7777_v60, %v6548_v9  ;;  %v6646_v5 = vpop.f32.mrb[63].mxu1  ;;  %v6649_v18 = vpop.eup %5225  ;;  %v6654_v17 = vsel %vm1792_vm5, %v6619_v19, 0.0  ;;  %5229 = vrcp.f32 %v2593_v48  ;;  %v2579_v30 = vadd.f32 %v2578_v41, %v2577_v45 }
 0x307   : > { %v2632_v9 = vrot.slane %v6636_v20, 2  ;;  %5231 = vpow2.f32 %v2369_v23  ;;  %v2276_v37 = vsub.f32 %v6525_v63, %v2044_v31  ;;  %v2030_v49 = vmax.f32 %v2028_v24, %v2029_v52 }
 0x308   : > { %v3060_v62 = vsel %vm1792_vm5, %v2962_v34, 0.0  ;;  %5233 = vrcp.f32 %v2579_v30  ;;  %v2599_v36 = vrot.slane %v2598_v29, 1  ;;  %v2059_v8 = vsel %vm1792_vm5, %v6571_v2, -inf }
 0x309   : > { %3061 = vadd.xlane.f32.xlu1 %v3060_v62  ;;  %v2375_v12 = vmul.f32 1.442695, %v2276_v37  ;;  %v2274_v43 = vsub.f32 %v6530_v57, %v2030_v49  ;;  %v2060_v25 = vrot.slane %v2059_v8, 4  ;;  %v2045_v45 = vsel %vm1792_vm5, %v6577_v39, -inf }
 0x30a   : > { %v2636_v48 = vsel %vm1792_vm5, %v6649_v18, 0.0  ;;  %v2600_v63 = vadd.f32 %v2599_v36, %v2598_v29  ;;  %v2046_v24 = vrot.slane %v2045_v45, 4  ;;  %v2066_v41 = vsel %vm1792_vm5, %v6584_v21, -inf }
 0x30b   : > { %5235 = vpow2.f32 %v2375_v12  ;;  %v2371_v50 = vmul.f32 1.442695, %v2274_v43  ;;  %v2061_v16 = vmax.f32 %v2059_v8, %v2060_v25  ;;  %v2067_v46 = vrot.slane %v2066_v41, 4 }
 0x30c   : > { %5237 = vrcp.f32 %v2600_v63  ;;  %v2047_v34 = vmax.f32 %v2045_v45, %v2046_v24  ;;  %v2052_v57 = vsel %vm1792_vm5, %v6588_v42, -inf  ;;  %v2585_v60 = vrot.slane %v6565_v59, 1 }
 0x30d   : > { %5239 = vpow2.f32 %v2371_v50  ;;  %v2062_v23 = vrot.slane %v2061_v16, 2  ;;  %v2068_v31 = vmax.f32 %v2066_v41, %v2067_v46  ;;  %v2053_v52 = vrot.slane %v2052_v57, 4 }
 0x30e   : > { %v6671_v29 = vpop.eup %5227  ;;  %v2651_v30 = vrot.slane %v6654_v17, 4  ;;  %v2048_v37 = vrot.slane %v2047_v34, 2  ;;  %v2586_v49 = vadd.f32 %v2585_v60, %v6565_v59  ;;  %v2619_v62 = vadd.f32 %v2618_v28, %v6568_v3 }
 0x30f   : > { %v2637_v36 = vrot.slane %v2636_v48, 4  ;;  %v2063_v8 = vmax.f32 %v2061_v16, %v2062_v23  ;;  %v2069_v12 = vrot.slane %v2068_v31, 2  ;;  %v2054_v43 = vmax.f32 %v2052_v57, %v2053_v52 }
 0x310   : > { %v5230_v25 = vpop.eup %5229  ;;  %v2671_v45 = vsel %vm1792_vm5, %v6671_v29, 0.0  ;;  %v2049_v63 = vmax.f32 %v2047_v34, %v2048_v37  ;;  %5241 = vrcp.f32 %v2586_v49  ;;  %v2620_v24 = vrot.slane %v2619_v62, 1 }
 0x311   : > { %v6680_v41 = vpop.eup %5231  ;;  %v2967_v50 = vmul.f32 %v5230_v25, %v6467_v22  ;;  %v2064_v59 = vrot.slane %v2063_v8, 1  ;;  %v2070_v46 = vmax.f32 %v2068_v31, %v2069_v12  ;;  %v2055_v60 = vrot.slane %v2054_v43, 2 }
 0x312   : > { %v5234_v3 = vpop.eup %5233  ;;  %v6686_v28 = vadd.f32 %v2646_v10, %v6624_v4  ;;  %v6689_v16 = vadd.f32 %v2632_v9, %v6636_v20  ;;  %v2050_v57 = vrot.slane %v2049_v63, 1  ;;  %v2621_v34 = vadd.f32 %v2620_v24, %v2619_v62 }
 0x313   : > { %v6683_v15 = vpop.f32.mrb[64].mxu1  ;;  %v2672_v52 = vrot.slane %v2671_v45, 4  ;;  %v3075_v37 = vsel %vm1792_vm5, %v2967_v50, 0.0  ;;  %v2965_v22 = vmul.f32 %v5234_v3, %v6478_v32  ;;  %v2065_v31 = vmax.f32 %v2063_v8, %v2064_v59 }
 0x314   : > { %v6691_v23 = vpop.f32.mrb[65].mxu1  ;;  %v6698_v12 = vadd.f32 %v2651_v30, %v6654_v17  ;;  %3076 = vadd.xlane.f32.xlu1 %v3075_v37  ;;  %v2051_v4 = vmax.f32 %v2049_v63, %v2050_v57  ;;  %v2071_v10 = vrot.slane %v2070_v46, 1  ;;  %v2056_v20 = vmax.f32 %v2054_v43, %v2055_v60 }
 0x315   : > { %v6695_v49 = vpop.f32.mrb[66].mxu1  ;;  %v6702_v62 = vpop.eup %5235  ;;  %v6704_v25 = vadd.f32 %v2637_v36, %v2636_v48  ;;  %v2279_v24 = vsub.f32 %v6571_v2, %v2065_v31  ;;  %5243 = vrcp.f32 %v2621_v34  ;;  %v2606_v32 = vrot.slane %v6633_v61, 1 }
 0x316   : > { %v6700_v9 = vpop.f32.mrb[67].mxu1  ;;  %v5238_v8 = vpop.eup %5237  ;;  %v2657_v17 = vsel %vm1792_vm5, %v6680_v41, 0.0  ;;  %v2678_v30 = vsel %vm1792_vm5, %v6702_v62, 0.0  ;;  %v2277_v43 = vsub.f32 %v6577_v39, %v2051_v4  ;;  %v2072_v63 = vmax.f32 %v2070_v46, %v2071_v10 }
 0x317   : > { %v6713_v50 = vpop.eup %5239  ;;  %v6715_v59 = vadd.f32 %v2672_v52, %v2671_v45  ;;  %v3069_v48 = vsel %vm1792_vm5, %v2965_v22, 0.0  ;;  %v2968_v2 = vmul.f32 %v5238_v8, %v6498_v7  ;;  %v2381_v36 = vmul.f32 1.442695, %v2279_v24 }
 0x318   : > { %v2653_v60 = vrot.slane %v6698_v12, 2  ;;  %3070 = vadd.xlane.f32.xlu1 %v3069_v48  ;;  %v2377_v3 = vmul.f32 1.442695, %v2277_v43  ;;  %v2280_v57 = vsub.f32 %v6584_v21, %v2072_v63  ;;  %v2057_v34 = vrot.slane %v2056_v20, 1 }
 0x319   : > { %v2639_v37 = vrot.slane %v6704_v25, 2  ;;  %v2658_v39 = vrot.slane %v2657_v17, 4  ;;  %v2679_v46 = vrot.slane %v2678_v30, 4  ;;  %v2664_v45 = vsel %vm1792_vm5, %v6713_v50, 0.0 }
 0x31a   : > { %v5242_v52 = vpop.eup %5241  ;;  %5245 = vpow2.f32 %v2381_v36  ;;  %v2383_v22 = vmul.f32 1.442695, %v2280_v57  ;;  %v2058_v31 = vmax.f32 %v2056_v20, %v2057_v34  ;;  %v2607_v7 = vadd.f32 %v2606_v32, %v6633_v61 }
 0x31b   : > { %v2674_v4 = vrot.slane %v6715_v59, 2  ;;  %v3078_v10 = vsel %vm1792_vm5, %v2968_v2, 0.0  ;;  %5247 = vpow2.f32 %v2377_v3  ;;  %v2966_v21 = vmul.f32 %v5242_v52, %v6492_v0 }
 0x31c   : > { %3079 = vadd.xlane.f32.xlu1 %v3078_v10  ;;  %5249 = vpow2.f32 %v2383_v22  ;;  %v2278_v24 = vsub.f32 %v6588_v42, %v2058_v31  ;;  %v2626_v8 = vadd.f32 %v2625_v54, %v6613_v11  ;;  %v7778_v20 = vrot.slane %v6622_v58, 2 }
 0x31d   : > { %v2659_v61 = vadd.f32 %v2658_v39, %v2657_v17  ;;  %v6735_v32 = vadd.f32 %v2679_v46, %v2678_v30  ;;  %v2665_v63 = vrot.slane %v2664_v45, 4  ;;  %5251 = vrcp.f32 %v2607_v7 }
 0x31e   : > { %v2612_v43 = vadd.f32 %v7778_v20, %v6622_v58  ;;  %v2379_v48 = vmul.f32 1.442695, %v2278_v24  ;;  %v2627_v2 = vrot.slane %v2626_v8, 1  ;;  %v2087_v36 = vsel %vm1792_vm5, %v6628_v55, -inf }
 0x31f   : > { %v5244_v42 = vpop.eup %5243  ;;  %v3072_v3 = vsel %vm1792_vm5, %v2966_v21, 0.0  ;;  %v2088_v57 = vrot.slane %v2087_v36, 4  ;;  %v2073_v11 = vsel %vm1792_vm5, %v6631_v35, -inf  ;;  %v2094_v58 = vsel %vm1792_vm5, %v6639_v56, -inf }
 0x320   : > { %v2613_v0 = vrot.slane %v2612_v43, 1  ;;  %5253 = vpow2.f32 %v2379_v48  ;;  %3073 = vadd.xlane.f32.xlu1 %v3072_v3  ;;  %v2971_v54 = vmul.f32 %v5244_v42, %v6534_v13  ;;  %v2628_v17 = vadd.f32 %v2627_v2, %v2626_v8 }
 0x321   : > { %v2089_v34 = vmax.f32 %v2087_v36, %v2088_v57  ;;  %v2074_v39 = vrot.slane %v2073_v11, 4  ;;  %v2095_v46 = vrot.slane %v2094_v58, 4  ;;  %v2080_v52 = vsel %vm1792_vm5, %v6646_v5, -inf }
 0x322   : > { %v2614_v30 = vadd.f32 %v2613_v0, %v2612_v43  ;;  %v3087_v31 = vsel %vm1792_vm5, %v2971_v54, 0.0  ;;  %5255 = vrcp.f32 %v2628_v17  ;;  %v2081_v7 = vrot.slane %v2080_v52, 4 }
 0x323   : > { %v6747_v22 = vpop.f32.mrb[68].mxu1  ;;  %v2648_v10 = vrot.slane %v6686_v28, 1  ;;  %3088 = vadd.xlane.f32.xlu0 %v3087_v31  ;;  %v2090_v13 = vrot.slane %v2089_v34, 2  ;;  %v2075_v24 = vmax.f32 %v2073_v11, %v2074_v39  ;;  %v2096_v8 = vmax.f32 %v2094_v58, %v2095_v46 }
 0x324   : > { %v6751_v21 = vpop.f32.mrb[69].mxu1  ;;  %5257 = vrcp.f32 %v2614_v30  ;;  %v6755_v43 = vpop.eup %5245  ;;  %v2660_v48 = vrot.slane %v2659_v61, 2  ;;  %v2666_v2 = vadd.f32 %v2665_v63, %v2664_v45  ;;  %v2082_v0 = vmax.f32 %v2080_v52, %v2081_v7 }
 0x325   : > { %v6753_v20 = vpop.f32.mrb[70].mxu1  ;;  %v2649_v36 = vadd.f32 %v2648_v10, %v6686_v28  ;;  %v6760_v3 = vpop.eup %5247  ;;  %v2699_v57 = vsel %vm1792_vm5, %v6755_v43, 0.0  ;;  %v2091_v54 = vmax.f32 %v2089_v34, %v2090_v13  ;;  %v2076_v17 = vrot.slane %v2075_v24, 2 }
 0x326   : > { %v6758_v42 = vpop.f32.mrb[71].mxu1  ;;  %v2097_v11 = vrot.slane %v2096_v8, 2  ;;  %v6764_v58 = vpop.eup %5249  ;;  %v2654_v30 = vadd.f32 %v2653_v60, %v6698_v12  ;;  %v6772_v28 = vadd.f32 %v2639_v37, %v6704_v25  ;;  %v2681_v45 = vrot.slane %v6735_v32, 2 }
 0x327   : > { %7779 = vst [vmem:[#allocation65_spill] sm:$0xff] %v6764_v58  ;;  %5259 = vrcp.f32 %v2649_v36  ;;  %v5252_v63 = vpop.eup %5251  ;;  %v2685_v34 = vsel %vm1792_vm5, %v6760_v3, 0.0  ;;  %v2092_v39 = vrot.slane %v2091_v54, 1  ;;  %v2077_v46 = vmax.f32 %v2075_v24, %v2076_v17 }
 0x328   : > { %v2083_v52 = vrot.slane %v2082_v0, 2  ;;  %v2667_v31 = vrot.slane %v2666_v2, 2  ;;  %v2700_v7 = vrot.slane %v2699_v57, 4  ;;  %v2969_v10 = vmul.f32 %v5252_v63, %v6542_v47 }
 0x329   : > { %v2098_v12 = vmax.f32 %v2096_v8, %v2097_v11  ;;  %v6781_v25 = vadd.f32 %v2674_v4, %v6715_v59  ;;  %v6783_v60 = vadd.f32 %v2660_v48, %v2659_v61  ;;  %v2093_v37 = vmax.f32 %v2091_v54, %v2092_v39 }
 0x32a   : > { %v2078_v13 = vrot.slane %v2077_v46, 1  ;;  %v6785_v36 = vpop.eup %5253  ;;  %v6788_v44 = vadd.f32 %v2681_v45, %v6735_v32  ;;  %v2686_v24 = vrot.slane %v2685_v34, 4  ;;  %v3081_v17 = vsel %vm1792_vm5, %v2969_v10, 0.0 }
 0x32b   : > { %7780 = vst [vmem:[#allocation66_spill] sm:$0xff] %v6785_v36  ;;  %v2099_v53 = vrot.slane %v2098_v12, 1  ;;  %v2706_v8 = vsel %vm1792_vm5, %v6764_v58, 0.0  ;;  %3082 = vadd.xlane.f32.xlu1 %v3081_v17  ;;  %v2283_v59 = vsub.f32 %v6628_v55, %v2093_v37  ;;  %v2084_v61 = vmax.f32 %v2082_v0, %v2083_v52 }
 0x32c   : > { %v6791_v47 = vpop.f32.mrb[72].mxu1  ;;  %v2079_v4 = vmax.f32 %v2077_v46, %v2078_v13  ;;  %v5256_v54 = vpop.eup %5255  ;;  %v6798_v11 = vadd.f32 %v2667_v31, %v2666_v2  ;;  %v6800_v32 = vadd.f32 %v2700_v7, %v2699_v57  ;;  %v2634_v63 = vrot.slane %v6689_v16, 1 }
 0x32d   : > { %v6796_v48 = vpop.f32.mrb[73].mxu1  ;;  %v2100_v45 = vmax.f32 %v2098_v12, %v2099_v53  ;;  %v2972_v58 = vmul.f32 %v5256_v54, %v6546_v14  ;;  %v2389_v17 = vmul.f32 1.442695, %v2283_v59  ;;  %v2655_v46 = vrot.slane %v2654_v30, 1 }
 0x32e   : > { %v6803_v39 = vpop.f32.mrb[74].mxu1  ;;  %v5258_v10 = vpop.eup %5257  ;;  %v2281_v55 = vsub.f32 %v6631_v35, %v2079_v4  ;;  %v6809_v52 = vadd.f32 %v2686_v24, %v2685_v34  ;;  %v2707_v2 = vrot.slane %v2706_v8, 4  ;;  %v2085_v12 = vrot.slane %v2084_v61, 1 }
 0x32f   : > { %v6807_v0 = vpop.f32.mrb[75].mxu1  ;;  %v2970_v57 = vmul.f32 %v5258_v10, %v6573_v51  ;;  %v2284_v53 = vsub.f32 %v6639_v56, %v2100_v45  ;;  %v3090_v31 = vsel %vm1792_vm5, %v2972_v58, 0.0  ;;  %5261 = vpow2.f32 %v2389_v17 }
 0x330   : > { %v2385_v7 = vmul.f32 1.442695, %v2281_v55  ;;  %v2702_v14 = vrot.slane %v6800_v32, 2  ;;  %v2692_v35 = vsel %vm1792_vm5, %v6785_v36, 0.0  ;;  %3091 = vadd.xlane.f32.xlu0 %v3090_v31  ;;  %v2635_v34 = vadd.f32 %v2634_v63, %v6689_v16 }
 0x331   : > { %v5260_v37 = vpop.eup %5259  ;;  %v2391_v13 = vmul.f32 1.442695, %v2284_v53  ;;  %v2086_v24 = vmax.f32 %v2084_v61, %v2085_v12  ;;  %v2656_v56 = vadd.f32 %v2655_v46, %v2654_v30  ;;  %v3084_v58 = vsel %vm1792_vm5, %v2970_v57, 0.0 }
 0x332   : > { %5263 = vpow2.f32 %v2385_v7  ;;  %v2975_v51 = vmul.f32 %v5260_v37, %v6601_v6  ;;  %v2115_v59 = vsel %vm1792_vm5, %v6683_v15, -inf  ;;  %v2101_v4 = vsel %vm1792_vm5, %v6691_v23, -inf }
 0x333   : > { %5265 = vpow2.f32 %v2391_v13  ;;  %v2282_v45 = vsub.f32 %v6646_v5, %v2086_v24  ;;  %v2116_v61 = vrot.slane %v2115_v59, 4  ;;  %v2102_v6 = vrot.slane %v2101_v4, 4 }
 0x334   : > { %v6824_v54 = vpop.f32.mrb[76].mxu1  ;;  %v3099_v16 = vsel %vm1792_vm5, %v2975_v51, 0.0  ;;  %5267 = vrcp.f32 %v2635_v34  ;;  %3085 = vadd.xlane.f32.xlu0 %v3084_v58  ;;  %v2122_v30 = vsel %vm1792_vm5, %v6695_v49, -inf  ;;  %v2108_v10 = vsel %vm1792_vm5, %v6700_v9, -inf }
 0x335   : > { %v6828_v63 = vpop.f32.mrb[77].mxu1  ;;  %5269 = vrcp.f32 %v2656_v56  ;;  %v2387_v55 = vmul.f32 1.442695, %v2282_v45  ;;  %v2117_v46 = vmax.f32 %v2115_v59, %v2116_v61  ;;  %v2123_v5 = vrot.slane %v2122_v30, 4 }
 0x336   : > { %v6834_v17 = vpop.f32.mrb[78].mxu1  ;;  %v2109_v57 = vrot.slane %v2108_v10, 4  ;;  %v6838_v31 = vadd.f32 %v2707_v2, %v2706_v8  ;;  %v2103_v7 = vmax.f32 %v2101_v4, %v2102_v6  ;;  %v2641_v12 = vrot.slane %v6772_v28, 1 }
 0x337   : > { %v6836_v53 = vpop.f32.mrb[79].mxu1  ;;  %v2676_v37 = vrot.slane %v6781_v25, 1  ;;  %v2688_v13 = vrot.slane %v6809_v52, 2  ;;  %v2118_v34 = vrot.slane %v2117_v46, 2  ;;  %v2124_v24 = vmax.f32 %v2122_v30, %v2123_v5 }
 0x338   : > { %v2110_v51 = vmax.f32 %v2108_v10, %v2109_v57  ;;  %v2693_v56 = vrot.slane %v2692_v35, 4  ;;  %3100 = vadd.xlane.f32.xlu0 %v3099_v16  ;;  %v2104_v58 = vrot.slane %v2103_v7, 2  ;;  %v2642_v59 = vadd.f32 %v2641_v12, %v6772_v28 }
 0x339   : > { %v2677_v45 = vadd.f32 %v2676_v37, %v6781_v25  ;;  %v6845_v61 = vpop.eup %5261  ;;  %v6848_v8 = vadd.f32 %v2702_v14, %v6800_v32  ;;  %5271 = vpow2.f32 %v2387_v55  ;;  %v2119_v2 = vmax.f32 %v2117_v46, %v2118_v34 }
 0x33a   : > { %7781 = vst [vmem:[#allocation67_spill] sm:$0xff] %v6845_v61  ;;  %v2125_v4 = vrot.slane %v2124_v24, 2  ;;  %v2727_v6 = vsel %vm1792_vm5, %v6845_v61, 0.0  ;;  %v2105_v30 = vmax.f32 %v2103_v7, %v2104_v58  ;;  %v2111_v10 = vrot.slane %v2110_v51, 2 }
 0x33b   : > { %5273 = vrcp.f32 %v2642_v59  ;;  %v2728_v25 = vrot.slane %v2727_v6, 4  ;;  %v2120_v57 = vrot.slane %v2119_v2, 1  ;;  %v6861_v55 = vadd.f32 %v2693_v56, %v2692_v35 }
 0x33c   : > { %v6852_v16 = vpop.f32.mrb[80].mxu1  ;;  %v6854_v5 = vpop.eup %5263  ;;  %v2126_v12 = vmax.f32 %v2124_v24, %v2125_v4  ;;  %v2106_v7 = vrot.slane %v2105_v30, 1  ;;  %5275 = vrcp.f32 %v2677_v45  ;;  %v2683_v24 = vrot.slane %v6788_v44, 1 }
 0x33d   : > { %7782 = vst [vmem:[#allocation68_spill] sm:$0xff] %v6852_v16  ;;  %7783 = vst [vmem:[#allocation69_spill] sm:$0xff] %v6854_v5  ;;  %v6857_v32 = vpop.f32.mrb[81].mxu1  ;;  %v6859_v14 = vpop.eup %5265  ;;  %v2713_v46 = vsel %vm1792_vm5, %v6854_v5, 0.0  ;;  %v2121_v59 = vmax.f32 %v2119_v2, %v2120_v57  ;;  %v2662_v4 = vrot.slane %v6783_v60, 1  ;;  %v6874_v45 = vadd.f32 %v2728_v25, %v2727_v6 }
 0x33e   : > { %7784 = vst [vmem:[#allocation70_spill] sm:$0xff] %v6857_v32  ;;  %7785 = vst [vmem:[#allocation71_spill] sm:$0xff] %v6859_v14  ;;  %v6865_v37 = vpop.f32.mrb[82].mxu1  ;;  %v5268_v34 = vpop.eup %5267  ;;  %v2734_v58 = vsel %vm1792_vm5, %v6859_v14, 0.0  ;;  %v2107_v61 = vmax.f32 %v2105_v30, %v2106_v7  ;;  %v2127_v5 = vrot.slane %v2126_v12, 1  ;;  %v2112_v32 = vmax.f32 %v2110_v51, %v2111_v10 }
 0x33f   : > { %7786 = vst [vmem:[#allocation72_spill] sm:$0xff] %v6865_v37  ;;  %v6871_v28 = vpop.f32.mrb[83].mxu1  ;;  %v5270_v35 = vpop.eup %5269  ;;  %v2973_v56 = vmul.f32 %v5268_v34, %v6606_v38  ;;  %v2714_v37 = vrot.slane %v2713_v46, 4  ;;  %v2735_v16 = vrot.slane %v2734_v58, 4  ;;  %v2287_v36 = vsub.f32 %v6683_v15, %v2121_v59 }
 0x340   : > { %7787 = vst [vmem:[#allocation73_spill] sm:$0xff] %v6871_v28  ;;  %v2976_v57 = vmul.f32 %v5270_v35, %v6619_v19  ;;  %v2285_v14 = vsub.f32 %v6691_v23, %v2107_v61  ;;  %v2128_v27 = vmax.f32 %v2126_v12, %v2127_v5  ;;  %v6881_v28 = vadd.f32 %v2688_v13, %v6809_v52 }
 0x341   : > { %v3093_v2 = vsel %vm1792_vm5, %v2973_v56, 0.0  ;;  %v2397_v38 = vmul.f32 1.442695, %v2287_v36  ;;  %v2684_v51 = vadd.f32 %v2683_v24, %v6788_v44  ;;  %v2669_v6 = vrot.slane %v6798_v11, 1 }
 0x342   : > { %3094 = vadd.xlane.f32.xlu0 %v3093_v2  ;;  %v2695_v30 = vrot.slane %v6861_v55, 2  ;;  %v2393_v10 = vmul.f32 1.442695, %v2285_v14  ;;  %v2288_v15 = vsub.f32 %v6695_v49, %v2128_v27  ;;  %v2663_v25 = vadd.f32 %v2662_v4, %v6783_v60 }
 0x343   : > { %v6890_v23 = vpop.eup %5271  ;;  %v2730_v52 = vrot.slane %v6874_v45, 2  ;;  %v6893_v13 = vadd.f32 %v2714_v37, %v2713_v46  ;;  %5277 = vpow2.f32 %v2397_v38  ;;  %v2113_v36 = vrot.slane %v2112_v32, 1 }
 0x344   : > { %v6888_v19 = vpop.f32.mrb[84].mxu1  ;;  %v2736_v5 = vadd.f32 %v2735_v16, %v2734_v58  ;;  %v3102_v12 = vsel %vm1792_vm5, %v2976_v57, 0.0  ;;  %5279 = vpow2.f32 %v2393_v10  ;;  %v2399_v27 = vmul.f32 1.442695, %v2288_v15 }
 0x345   : > { %7788 = vst [vmem:[#allocation74_spill] sm:$0xff] %v6888_v19  ;;  %v6895_v44 = vpop.f32.mrb[85].mxu1  ;;  %v5274_v61 = vpop.eup %5273  ;;  %v2114_v60 = vmax.f32 %v2112_v32, %v2113_v36  ;;  %5281 = vrcp.f32 %v2684_v51  ;;  %v2670_v46 = vadd.f32 %v2669_v6, %v6798_v11  ;;  %v2720_v34 = vsel %vm1792_vm5, %v6890_v23, 0.0 }
 0x346   : > { %v6898_v49 = vpop.f32.mrb[86].mxu1  ;;  %3103 = vadd.xlane.f32.xlu0 %v3102_v12  ;;  %v2974_v14 = vmul.f32 %v5274_v61, %v6649_v18  ;;  %v5276_v37 = vpop.eup %5275  ;;  %v2143_v16 = vsel %vm1792_vm5, %v6747_v22, -inf  ;;  %v2129_v58 = vsel %vm1792_vm5, %v6751_v21, -inf  ;;  %v2150_v32 = vsel %vm1792_vm5, %v6753_v20, -inf }
 0x347   : > { %7789 = vst [vmem:[#allocation75_spill] sm:$0xff] %v6898_v49  ;;  %v6902_v7 = vpop.f32.mrb[87].mxu1  ;;  %5283 = vpow2.f32 %v2399_v27  ;;  %v2286_v18 = vsub.f32 %v6700_v9, %v2114_v60  ;;  %v2979_v59 = vmul.f32 %v5276_v37, %v6671_v29  ;;  %v2144_v24 = vrot.slane %v2143_v16, 4  ;;  %v3017_v36 = vpop.xlane.xlu0 %3016 }
 0x348   : > { %v3096_v11 = vsel %vm1792_vm5, %v2974_v14, 0.0  ;;  %5285 = vrcp.f32 %v2663_v25  ;;  %v2130_v4 = vrot.slane %v2129_v58, 4  ;;  %v2151_v35 = vrot.slane %v2150_v32, 4 }
 0x349   : > { %v2721_v56 = vrot.slane %v2720_v34, 4  ;;  %v2395_v2 = vmul.f32 1.442695, %v2286_v18  ;;  %v3111_v57 = vsel %vm1792_vm5, %v2979_v59, 0.0  ;;  %5287 = vrcp.f32 %v2670_v46  ;;  %v3011_v59 = vpop.xlane.xlu1 %3010 }
 0x34a   : > { %3097 = vadd.xlane.f32.xlu0 %v3096_v11  ;;  %3112 = vadd.xlane.f32.xlu1 %v3111_v57  ;;  %v2145_v38 = vmax.f32 %v2143_v16, %v2144_v24  ;;  %v2131_v51 = vmax.f32 %v2129_v58, %v2130_v4  ;;  %v2152_v6 = vmax.f32 %v2150_v32, %v2151_v35  ;;  %v2136_v9 = vsel %vm1792_vm5, %v6758_v42, -inf }
 0x34b   : > { %v2716_v29 = vrot.slane %v6893_v13, 2  ;;  %v2737_v15 = vrot.slane %v2736_v5, 2  ;;  %5289 = vpow2.f32 %v2395_v2  ;;  %v2137_v25 = vrot.slane %v2136_v9, 4 }
 0x34c   : > { %v6918_v10 = vpop.f32.mrb[88].mxu1  ;;  %v7792_v12 = vrot.slane %v6838_v31, 2  ;;  %v2146_v60 = vrot.slane %v2145_v38, 2  ;;  %v2132_v14 = vrot.slane %v2131_v51, 2  ;;  %v2153_v46 = vrot.slane %v2152_v6, 2 }
 0x34d   : > { %7790 = vst [vmem:[#allocation76_spill] sm:$0xff] %v6918_v10  ;;  %v6921_v61 = vpop.f32.mrb[89].mxu1  ;;  %v6930_v16 = vpop.eup %5277  ;;  %v6933_v58 = vadd.f32 %v2695_v30, %v6861_v55  ;;  %v6936_v32 = vadd.f32 %v2730_v52, %v6874_v45  ;;  %v2722_v18 = vadd.f32 %v2721_v56, %v2720_v34  ;;  %v2138_v11 = vmax.f32 %v2136_v9, %v2137_v25 }
 0x34e   : > { %7791 = vst [vmem:[#allocation77_spill] sm:$0xff] %v6921_v61  ;;  %v6926_v27 = vadd.f32 %v7792_v12, %v6838_v31  ;;  %v6928_v37 = vpop.f32.mrb[90].mxu1  ;;  %v6940_v31 = vpop.eup %5279  ;;  %v2147_v4 = vmax.f32 %v2145_v38, %v2146_v60  ;;  %v2133_v35 = vmax.f32 %v2131_v51, %v2132_v14  ;;  %v2154_v2 = vmax.f32 %v2152_v6, %v2153_v46 }
 0x34f   : > { %7793 = vst [vmem:[#allocation78_spill] sm:$0xff] %v6928_v37  ;;  %v6938_v24 = vpop.f32.mrb[91].mxu1  ;;  %v3203_v57 = vmul.f32 %v3017_v36, %v6027_v40  ;;  %v5282_v12 = vpop.eup %5281  ;;  %v6944_v37 = vadd.f32 %v2716_v29, %v6893_v13  ;;  %v6946_v55 = vadd.f32 %v2737_v15, %v2736_v5  ;;  %v2755_v45 = vsel %vm1792_vm5, %v6930_v16, 0.0 }
 0x350   : > { %7794 = vst [vmem:[#allocation79_spill] sm:$0xff] %v6938_v24  ;;  %v2139_v30 = vrot.slane %v2138_v11, 2  ;;  %v2980_v52 = vmul.f32 %v5282_v12, %v6702_v62  ;;  %v2148_v34 = vrot.slane %v2147_v4, 1  ;;  %v2134_v56 = vrot.slane %v2133_v35, 1 }
 0x351   : > { %v3201_v38 = vmul.f32 %v3011_v59, %v6023_v26  ;;  %v6952_v51 = vpop.eup %5283  ;;  %v2723_v6 = vrot.slane %v2722_v18, 2  ;;  %v2741_v40 = vsel %vm1792_vm5, %v6940_v31, 0.0  ;;  %v2155_v13 = vrot.slane %v2154_v2, 1 }
 0x352   : > { %v2704_v5 = vrot.slane %v6848_v8, 1  ;;  %v5286_v9 = vpop.eup %5285  ;;  %v2756_v29 = vrot.slane %v2755_v45, 4  ;;  %v3114_v15 = vsel %vm1792_vm5, %v2980_v52, 0.0  ;;  %v2149_v25 = vmax.f32 %v2147_v4, %v2148_v34 }
 0x353   : > { %v3277_v36 = vrot.slane %v3203_v57, 4  ;;  %v5288_v62 = vpop.eup %5287  ;;  %3115 = vadd.xlane.f32.xlu0 %v3114_v15  ;;  %v2977_v60 = vmul.f32 %v5286_v9, %v6680_v41  ;;  %v2135_v26 = vmax.f32 %v2133_v35, %v2134_v56  ;;  %v2156_v14 = vmax.f32 %v2154_v2, %v2155_v13 }
 0x354   : > { %v2140_v46 = vmax.f32 %v2138_v11, %v2139_v30  ;;  %v2742_v59 = vrot.slane %v2741_v40, 4  ;;  %v2762_v12 = vsel %vm1792_vm5, %v6952_v51, 0.0  ;;  %v2291_v10 = vsub.f32 %v6747_v22, %v2149_v25 }
 0x355   : > { %v3265_v24 = vrot.slane %v3201_v38, 4  ;;  %v6962_v61 = vpop.eup %5289  ;;  %v3105_v52 = vsel %vm1792_vm5, %v2977_v60, 0.0  ;;  %v2978_v4 = vmul.f32 %v5288_v62, %v6713_v50  ;;  %v2289_v34 = vsub.f32 %v6751_v21, %v2135_v26  ;;  %v3020_v62 = vpop.xlane.xlu0 %3019 }
 0x356   : > { %v2292_v41 = vsub.f32 %v6753_v20, %v2156_v14  ;;  %v6968_v35 = vadd.f32 %v2723_v6, %v2722_v18  ;;  %v2757_v11 = vadd.f32 %v2756_v29, %v2755_v45  ;;  %3106 = vadd.xlane.f32.xlu1 %v3105_v52  ;;  %v3278_v2 = vadd.f32 %v3277_v36, %v3203_v57 }
 0x357   : > { %v2171_v30 = vsel %vm1792_vm5, %v6791_v47, -inf  ;;  %v2748_v22 = vsel %vm1792_vm5, %v6962_v61, 0.0  ;;  %v2405_v56 = vmul.f32 1.442695, %v2291_v10  ;;  %v2401_v13 = vmul.f32 1.442695, %v2289_v34 }
 0x358   : > { %v2141_v9 = vrot.slane %v2140_v46, 1  ;;  %v2743_v15 = vadd.f32 %v2742_v59, %v2741_v40  ;;  %v2763_v50 = vrot.slane %v2762_v12, 4  ;;  %v2407_v25 = vmul.f32 1.442695, %v2292_v41 }
 0x359   : > { %v3266_v21 = vadd.f32 %v3265_v24, %v3201_v38  ;;  %v3108_v20 = vsel %vm1792_vm5, %v2978_v4, 0.0  ;;  %5291 = vpow2.f32 %v2405_v56  ;;  %v2705_v57 = vadd.f32 %v2704_v5, %v6848_v8 }
 0x35a   : > { %v2142_v18 = vmax.f32 %v2140_v46, %v2141_v9  ;;  %v2758_v45 = vrot.slane %v2757_v11, 2  ;;  %v2749_v6 = vrot.slane %v2748_v22, 4  ;;  %3109 = vadd.xlane.f32.xlu1 %v3108_v20  ;;  %5293 = vpow2.f32 %v2401_v13 }
 0x35b   : > { %v2172_v29 = vrot.slane %v2171_v30, 4  ;;  %5295 = vpow2.f32 %v2407_v25  ;;  %v3279_v36 = vrot.slane %v3278_v2, 2  ;;  %v3204_v40 = vmul.f32 %v3020_v62, %v6029_v1 }
 0x35c   : > { %v2290_v10 = vsub.f32 %v6758_v42, %v2142_v18  ;;  %v2744_v60 = vrot.slane %v2743_v15, 2  ;;  %v3267_v24 = vrot.slane %v3266_v21, 2  ;;  %5297 = vrcp.f32 %v2705_v57 }
 0x35d   : > { %v2173_v38 = vmax.f32 %v2171_v30, %v2172_v29  ;;  %v2764_v26 = vadd.f32 %v2763_v50, %v2762_v12  ;;  %v3283_v46 = vrot.slane %v3204_v40, 4  ;;  %v2157_v8 = vsel %vm1792_vm5, %v6796_v48, -inf }
 0x35e   : > { %v2403_v14 = vmul.f32 1.442695, %v2290_v10  ;;  %v6980_v5 = vadd.f32 %v2758_v45, %v2757_v11  ;;  %v2750_v59 = vadd.f32 %v2749_v6, %v2748_v22  ;;  %v2158_v4 = vrot.slane %v2157_v8, 4 }
 0x35f   : > { %v2174_v52 = vrot.slane %v2173_v38, 2  ;;  %v3280_v34 = vadd.f32 %v3279_v36, %v3278_v2  ;;  %v3284_v42 = vadd.f32 %v3283_v46, %v3204_v40  ;;  %v2178_v1 = vsel %vm1792_vm5, %v6803_v39, -inf  ;;  %v3014_v36 = vpop.xlane.xlu0 %3013 }
 0x360   : > { %v2690_v41 = vrot.slane %v6881_v28, 1  ;;  %v3268_v56 = vadd.f32 %v3267_v24, %v3266_v21  ;;  %v2159_v12 = vmax.f32 %v2157_v8, %v2158_v4  ;;  %v2179_v13 = vrot.slane %v2178_v1, 4 }
 0x361   : > { %v2175_v30 = vmax.f32 %v2173_v38, %v2174_v52  ;;  %5299 = vpow2.f32 %v2403_v14  ;;  %v3285_v9 = vrot.slane %v3284_v42, 2  ;;  %v2164_v11 = vsel %vm1792_vm5, %v6807_v0, -inf }
 0x362   : > { %v2691_v50 = vadd.f32 %v2690_v41, %v6881_v28  ;;  %v2160_v25 = vrot.slane %v2159_v12, 2  ;;  %v2180_v2 = vmax.f32 %v2178_v1, %v2179_v13  ;;  %v2165_v62 = vrot.slane %v2164_v11, 4 }
 0x363   : > { %v2176_v22 = vrot.slane %v2175_v30, 1  ;;  %v6988_v20 = vpop.eup %5291  ;;  %v6990_v18 = vadd.f32 %v2744_v60, %v2743_v15  ;;  %v2765_v57 = vrot.slane %v2764_v26, 2  ;;  %v2751_v21 = vrot.slane %v2750_v59, 2  ;;  %v3041_v19 = vpop.xlane.xlu0 %3040 }
 0x364   : > { %5301 = vrcp.f32 %v2691_v50  ;;  %v6992_v45 = vpop.eup %5293  ;;  %v2783_v6 = vsel %vm1792_vm5, %v6988_v20, 0.0  ;;  %v2161_v29 = vmax.f32 %v2159_v12, %v2160_v25  ;;  %v2181_v10 = vrot.slane %v2180_v2, 2 }
 0x365   : > { %v2177_v28 = vmax.f32 %v2175_v30, %v2176_v22  ;;  %v6996_v40 = vpop.eup %5295  ;;  %v2784_v24 = vrot.slane %v2783_v6, 4  ;;  %v2769_v38 = vsel %vm1792_vm5, %v6992_v45, 0.0  ;;  %v3286_v15 = vadd.f32 %v3285_v9, %v3284_v42 }
 0x366   : > { %v2166_v60 = vmax.f32 %v2164_v11, %v2165_v62  ;;  %v5298_v14 = vpop.eup %5297  ;;  %v3281_v46 = vrot.slane %v3280_v34, 1  ;;  %v3269_v8 = vrot.slane %v3268_v56, 1  ;;  %v2162_v4 = vrot.slane %v2161_v29, 1 }
 0x367   : > { %v2295_v52 = vsub.f32 %v6791_v47, %v2177_v28  ;;  %v2770_v1 = vrot.slane %v2769_v38, 4  ;;  %v2790_v41 = vsel %vm1792_vm5, %v6996_v40, 0.0  ;;  %v2983_v30 = vmul.f32 %v5298_v14, %v6755_v43 }
 0x368   : > { %v3202_v12 = vmul.f32 %v3014_v36, %v6025_v33  ;;  %v2163_v50 = vmax.f32 %v2161_v29, %v2162_v4  ;;  %v2182_v22 = vmax.f32 %v2180_v2, %v2181_v10  ;;  %v2711_v42 = vrot.slane %v6926_v27, 1 }
 0x369   : > { %v2413_v13 = vmul.f32 1.442695, %v2295_v52  ;;  %v2785_v9 = vadd.f32 %v2784_v24, %v2783_v6  ;;  %v3123_v11 = vsel %vm1792_vm5, %v2983_v30, 0.0  ;;  %v3287_v25 = vrot.slane %v3286_v15, 1 }
 0x36a   : > { %v2167_v62 = vrot.slane %v2166_v60, 2  ;;  %v7007_v47 = vadd.f32 %v2765_v57, %v2764_v26  ;;  %v2791_v28 = vrot.slane %v2790_v41, 4  ;;  %3124 = vadd.xlane.f32.xlu1 %v3123_v11  ;;  %v2293_v49 = vsub.f32 %v6796_v48, %v2163_v50 }
 0x36b   : > { %5303 = vpow2.f32 %v2413_v13  ;;  %v7010_v43 = vpop.eup %5299  ;;  %v7012_v33 = vadd.f32 %v2751_v21, %v2750_v59  ;;  %v2771_v29 = vadd.f32 %v2770_v1, %v2769_v38  ;;  %v7014_v2 = vadd.f32 %v3281_v46, %v3280_v34 }
 0x36c   : > { %v2183_v10 = vrot.slane %v2182_v22, 1  ;;  %v7016_v6 = vadd.f32 %v3269_v8, %v3268_v56  ;;  %v2409_v36 = vmul.f32 1.442695, %v2293_v49  ;;  %v2168_v24 = vmax.f32 %v2166_v60, %v2167_v62 }
 0x36d   : > { %v3271_v14 = vrot.slane %v3202_v12, 4  ;;  %v2786_v57 = vrot.slane %v2785_v9, 2  ;;  %v7018_v52 = vadd.f32 %v3287_v25, %v3286_v15  ;;  %v2712_v48 = vadd.f32 %v2711_v42, %v6926_v27 }
 0x36e   : > { %v5302_v26 = vpop.eup %5301  ;;  %v2184_v4 = vmax.f32 %v2182_v22, %v2183_v10  ;;  %v7021_v30 = vadd.f32 %v2791_v28, %v2790_v41  ;;  %5305 = vpow2.f32 %v2409_v36  ;;  %v2169_v34 = vrot.slane %v2168_v24, 1  ;;  %v3029_v36 = vpop.xlane.xlu1 %3028 }
 0x36f   : > { %7795 = vst [vmem:[#allocation80_spill] sm:$0xff] %v7018_v52  ;;  %v2981_v59 = vmul.f32 %v5302_v26, %v6760_v3  ;;  %v2772_v21 = vrot.slane %v2771_v29, 2  ;;  %5307 = vrcp.f32 %v2712_v48  ;;  %v2199_v49 = vsel %vm1792_vm5, %v6824_v54, -inf }
 0x370   : > { %v2296_v56 = vsub.f32 %v6803_v39, %v2184_v4  ;;  %v2776_v38 = vsel %vm1792_vm5, %v7010_v43, 0.0  ;;  %v2170_v60 = vmax.f32 %v2168_v24, %v2169_v34  ;;  %v2200_v27 = vrot.slane %v2199_v49, 4 }
 0x371   : > { %v3117_v15 = vsel %vm1792_vm5, %v2981_v59, 0.0  ;;  %v7030_v46 = vadd.f32 %v2786_v57, %v2785_v9  ;;  %v2185_v3 = vsel %vm1792_vm5, %v6828_v63, -inf  ;;  %v2206_v39 = vsel %vm1792_vm5, %v6834_v17, -inf }
 0x372   : > { %v2415_v8 = vmul.f32 1.442695, %v2296_v56  ;;  %3118 = vadd.xlane.f32.xlu1 %v3117_v15  ;;  %v2294_v1 = vsub.f32 %v6807_v0, %v2170_v60  ;;  %v3272_v41 = vadd.f32 %v3271_v14, %v3202_v12  ;;  %v2201_v13 = vmax.f32 %v2199_v49, %v2200_v27  ;;  %v7797_v56 = vld [vmem:[#allocation7_spill] sm:$0xff] }
 0x373   : > { %v2186_v50 = vrot.slane %v2185_v3, 4  ;;  %v2207_v22 = vrot.slane %v2206_v39, 4  ;;  %v2697_v42 = vrot.slane %v6933_v58, 1  ;;  %v2192_v9 = vsel %vm1792_vm5, %v6836_v53, -inf }
 0x374   : > { %5309 = vpow2.f32 %v2415_v8  ;;  %v2411_v62 = vmul.f32 1.442695, %v2294_v1  ;;  %v2202_v28 = vrot.slane %v2201_v13, 2  ;;  %v2193_v14 = vrot.slane %v2192_v9, 4 }
 0x375   : > { %v7040_v11 = vpop.eup %5303  ;;  %v2187_v10 = vmax.f32 %v2185_v3, %v2186_v50  ;;  %v2208_v12 = vmax.f32 %v2206_v39, %v2207_v22  ;;  %v2698_v24 = vadd.f32 %v2697_v42, %v6933_v58  ;;  %v2777_v26 = vrot.slane %v2776_v38, 4  ;;  %v7799_v42 = vld [vmem:[#allocation65_spill] sm:$0xff] }
 0x376   : > { %7796 = vst [vmem:[#allocation81_spill] sm:$0xff] %v7040_v11  ;;  %v2811_v0 = vsel %vm1792_vm5, %v7040_v11, 0.0  ;;  %v3273_v57 = vrot.slane %v3272_v41, 2  ;;  %v2203_v4 = vmax.f32 %v2201_v13, %v2202_v28  ;;  %v2194_v34 = vmax.f32 %v2192_v9, %v2193_v14 }
 0x377   : > { %v2188_v48 = vrot.slane %v2187_v10, 2  ;;  %v2209_v59 = vrot.slane %v2208_v12, 2  ;;  %5311 = vrcp.f32 %v2698_v24  ;;  %v3207_v49 = vmul.f32 %v3029_v36, %v7797_v56 }
 0x378   : > { %v7047_v15 = vpop.eup %5305  ;;  %v7049_v60 = vadd.f32 %v2772_v21, %v2771_v29  ;;  %v2812_v27 = vrot.slane %v2811_v0, 4  ;;  %v2204_v8 = vrot.slane %v2203_v4, 1  ;;  %5313 = vpow2.f32 %v2411_v62 }
 0x379   : > { %7798 = vst [vmem:[#allocation7_spill] sm:$0xff] %v7047_v15  ;;  %v2189_v3 = vmax.f32 %v2187_v10, %v2188_v48  ;;  %v5308_v39 = vpop.eup %5307  ;;  %v2797_v58 = vsel %vm1792_vm5, %v7047_v15, 0.0  ;;  %v2210_v1 = vmax.f32 %v2208_v12, %v2209_v59  ;;  %v2195_v13 = vrot.slane %v2194_v34, 2 }
 0x37a   : > { %v2778_v50 = vadd.f32 %v2777_v26, %v2776_v38  ;;  %v3274_v22 = vadd.f32 %v3273_v57, %v3272_v41  ;;  %v2984_v9 = vmul.f32 %v5308_v39, %v7799_v42  ;;  %v2205_v28 = vmax.f32 %v2203_v4, %v2204_v8  ;;  %v3023_v26 = vpop.xlane.xlu1 %3022 }
 0x37b   : > { %v2190_v36 = vrot.slane %v2189_v3, 1  ;;  %v2211_v24 = vrot.slane %v2210_v1, 1  ;;  %v2196_v14 = vmax.f32 %v2194_v34, %v2195_v13  ;;  %v3301_v29 = vrot.slane %v3207_v49, 4 }
 0x37c   : > { %v2813_v21 = vadd.f32 %v2812_v27, %v2811_v0  ;;  %v2798_v56 = vrot.slane %v2797_v58, 4  ;;  %v3126_v10 = vsel %vm1792_vm5, %v2984_v9, 0.0  ;;  %v2299_v48 = vsub.f32 %v6824_v54, %v2205_v28 }
 0x37d   : > { %3127 = vadd.xlane.f32.xlu1 %v3126_v10  ;;  %v2191_v62 = vmax.f32 %v2189_v3, %v2190_v36  ;;  %v2212_v12 = vmax.f32 %v2210_v1, %v2211_v24  ;;  %v2197_v38 = vrot.slane %v2196_v14, 1  ;;  %v2732_v41 = vrot.slane %v6936_v32, 1  ;;  %v7801_v3 = vld [vmem:[#allocation5_spill] sm:$0xff] }
 0x37e   : > { %v7056_v25 = vpop.eup %5309  ;;  %v2779_v57 = vrot.slane %v2778_v50, 2  ;;  %v3275_v59 = vrot.slane %v3274_v22, 1  ;;  %v2421_v0 = vmul.f32 1.442695, %v2299_v48  ;;  %v3302_v8 = vadd.f32 %v3301_v29, %v3207_v49 }
 0x37f   : > { %7800 = vst [vmem:[#allocation65_spill] sm:$0xff] %v7056_v25  ;;  %v2818_v4 = vsel %vm1792_vm5, %v7056_v25, 0.0  ;;  %v2297_v34 = vsub.f32 %v6828_v63, %v2191_v62  ;;  %v2300_v27 = vsub.f32 %v6834_v17, %v2212_v12  ;;  %v2198_v54 = vmax.f32 %v2196_v14, %v2197_v38  ;;  %v7803_v17 = vld [vmem:[#allocation66_spill] sm:$0xff] }
 0x380   : > { %v2814_v39 = vrot.slane %v2813_v21, 2  ;;  %v2799_v13 = vadd.f32 %v2798_v56, %v2797_v58  ;;  %5315 = vpow2.f32 %v2421_v0  ;;  %v3205_v1 = vmul.f32 %v3023_v26, %v7801_v3  ;;  %v7805_v26 = vld [vmem:[#allocation68_spill] sm:$0xff] }
 0x381   : > { %v5312_v42 = vpop.eup %5311  ;;  %v2819_v9 = vrot.slane %v2818_v4, 4  ;;  %v2417_v28 = vmul.f32 1.442695, %v2297_v34  ;;  %v2423_v36 = vmul.f32 1.442695, %v2300_v27  ;;  %v2733_v24 = vadd.f32 %v2732_v41, %v6936_v32  ;;  %v7806_v34 = vld [vmem:[#allocation70_spill] sm:$0xff] }
 0x382   : > { %v7802_v10 = vrot.slane %v7021_v30, 2  ;;  %v7070_v63 = vadd.f32 %v2779_v57, %v2778_v50  ;;  %v2982_v49 = vmul.f32 %v5312_v42, %v7803_v17  ;;  %v2298_v58 = vsub.f32 %v6836_v53, %v2198_v54  ;;  %v7074_v14 = vpop.eup %5313  ;;  %v7807_v27 = vld [vmem:[#allocation72_spill] sm:$0xff] }
 0x383   : > { %7804 = vst [vmem:[#allocation5_spill] sm:$0xff] %v7074_v14  ;;  %v7076_v29 = vadd.f32 %v3275_v59, %v3274_v22  ;;  %5317 = vpow2.f32 %v2417_v28  ;;  %v3303_v56 = vrot.slane %v3302_v8, 2  ;;  %v2718_v62 = vrot.slane %v6944_v37, 1  ;;  %v7808_v28 = vld [vmem:[#allocation73_spill] sm:$0xff] }
 0x384   : > { %v7068_v48 = vadd.f32 %v7802_v10, %v7021_v30  ;;  %5319 = vpow2.f32 %v2423_v36  ;;  %v3120_v32 = vsel %vm1792_vm5, %v2982_v49, 0.0  ;;  %v2419_v12 = vmul.f32 1.442695, %v2298_v58 }
 0x385   : > { %v3289_v30 = vrot.slane %v3205_v1, 4  ;;  %v7080_v38 = vadd.f32 %v2814_v39, %v2813_v21  ;;  %v2800_v50 = vrot.slane %v2799_v13, 2  ;;  %v2820_v41 = vadd.f32 %v2819_v9, %v2818_v4  ;;  %3121 = vadd.xlane.f32.xlu1 %v3120_v32 }
 0x386   : > { %5321 = vrcp.f32 %v2733_v24  ;;  %v2804_v53 = vsel %vm1792_vm5, %v7074_v14, 0.0  ;;  %v2719_v22 = vadd.f32 %v2718_v62, %v6944_v37  ;;  %v2227_v57 = vsel %vm1792_vm5, %v7805_v26, -inf  ;;  %v7813_v14 = vld [vmem:[#allocation8_spill] sm:$0xff] }
 0x387   : > { %5323 = vpow2.f32 %v2419_v12  ;;  %v7087_v59 = vadd.f32 %v3303_v56, %v3302_v8  ;;  %v2228_v0 = vrot.slane %v2227_v57, 4  ;;  %v2213_v21 = vsel %vm1792_vm5, %v7806_v34, -inf }
 0x388   : > { %v2234_v4 = vsel %vm1792_vm5, %v7807_v27, -inf  ;;  %v3290_v54 = vadd.f32 %v3289_v30, %v3205_v1  ;;  %5325 = vrcp.f32 %v2719_v22  ;;  %v2214_v39 = vrot.slane %v2213_v21, 4 }
 0x389   : > { %v2235_v3 = vrot.slane %v2234_v4, 4  ;;  %v2805_v42 = vrot.slane %v2804_v53, 4  ;;  %v2229_v9 = vmax.f32 %v2227_v57, %v2228_v0  ;;  %v2739_v37 = vrot.slane %v6946_v55, 1  ;;  %v3032_v57 = vpop.xlane.xlu1 %3031 }
 0x38a   : > { %v2220_v36 = vsel %vm1792_vm5, %v7808_v28, -inf  ;;  %v7096_v8 = vpop.eup %5315  ;;  %v2821_v24 = vrot.slane %v2820_v41, 2  ;;  %v2215_v10 = vmax.f32 %v2213_v21, %v2214_v39  ;;  %v7098_v58 = vadd.f32 %v2800_v50, %v2799_v13 }
 0x38b   : > { %7809 = vst [vmem:[#allocation66_spill] sm:$0xff] %v7096_v8  ;;  %v2236_v17 = vmax.f32 %v2234_v4, %v2235_v3  ;;  %v2221_v49 = vrot.slane %v2220_v36, 4  ;;  %v2839_v1 = vsel %vm1792_vm5, %v7096_v8, 0.0  ;;  %v2230_v56 = vrot.slane %v2229_v9, 2 }
 0x38c   : > { %v2740_v62 = vadd.f32 %v2739_v37, %v6946_v55  ;;  %v3291_v32 = vrot.slane %v3290_v54, 2  ;;  %v2216_v12 = vrot.slane %v2215_v10, 2  ;;  %v2840_v52 = vrot.slane %v2839_v1, 4 }
 0x38d   : > { %v2237_v30 = vrot.slane %v2236_v17, 2  ;;  %v2222_v22 = vmax.f32 %v2220_v36, %v2221_v49  ;;  %v7103_v0 = vpop.eup %5317  ;;  %v2231_v4 = vmax.f32 %v2229_v9, %v2230_v56  ;;  %v7108_v50 = vadd.f32 %v2821_v24, %v2820_v41  ;;  %v7815_v56 = vld [vmem:[#allocation67_spill] sm:$0xff] }
 0x38e   : > { %7810 = vst [vmem:[#allocation68_spill] sm:$0xff] %v7103_v0  ;;  %5327 = vrcp.f32 %v2740_v62  ;;  %v7106_v13 = vpop.eup %5319  ;;  %v7110_v39 = vadd.f32 %v2805_v42, %v2804_v53  ;;  %v2217_v3 = vmax.f32 %v2215_v10, %v2216_v12  ;;  %v2825_v36 = vsel %vm1792_vm5, %v7103_v0, 0.0 }
 0x38f   : > { %7811 = vst [vmem:[#allocation70_spill] sm:$0xff] %v7106_v13  ;;  %7812 = vst [vmem:[#allocation72_spill] sm:$0xff] %v7108_v50  ;;  %v2238_v55 = vmax.f32 %v2236_v17, %v2237_v30  ;;  %v2846_v49 = vsel %vm1792_vm5, %v7106_v13, 0.0  ;;  %v2232_v25 = vrot.slane %v2231_v4, 1  ;;  %v3208_v21 = vmul.f32 %v3032_v57, %v7813_v14 }
 0x390   : > { %v5322_v37 = vpop.eup %5321  ;;  %v7120_v41 = vadd.f32 %v3291_v32, %v3290_v54  ;;  %v2218_v53 = vrot.slane %v2217_v3, 1  ;;  %v2223_v42 = vrot.slane %v2222_v22, 2  ;;  %v7122_v24 = vadd.f32 %v2840_v52, %v2839_v1 }
 0x391   : > { %v7117_v9 = vpop.eup %5323  ;;  %v2987_v62 = vmul.f32 %v5322_v37, %v7815_v56  ;;  %v2233_v17 = vmax.f32 %v2231_v4, %v2232_v25  ;;  %v2239_v12 = vrot.slane %v2238_v55, 1  ;;  %v2807_v0 = vrot.slane %v7110_v39, 2  ;;  %v7816_v37 = vld [vmem:[#allocation69_spill] sm:$0xff] }
 0x392   : > { %7814 = vst [vmem:[#allocation73_spill] sm:$0xff] %v7117_v9  ;;  %v2832_v10 = vsel %vm1792_vm5, %v7117_v9, 0.0  ;;  %v5326_v30 = vpop.eup %5325  ;;  %v2826_v13 = vrot.slane %v2825_v36, 4  ;;  %v2847_v14 = vrot.slane %v2846_v49, 4  ;;  %v2219_v56 = vmax.f32 %v2217_v3, %v2218_v53  ;;  %v3026_v3 = vpop.xlane.xlu1 %3025 }
 0x393   : > { %v3135_v57 = vsel %vm1792_vm5, %v2987_v62, 0.0  ;;  %v2985_v54 = vmul.f32 %v5326_v30, %v7816_v37  ;;  %v2303_v32 = vsub.f32 %v7805_v26, %v2233_v17  ;;  %v3307_v52 = vrot.slane %v3208_v21, 4 }
 0x394   : > { %3136 = vadd.xlane.f32.xlu0 %v3135_v57  ;;  %v2833_v1 = vrot.slane %v2832_v10, 4  ;;  %v3293_v8 = vrot.slane %v7120_v41, 1  ;;  %v2240_v9 = vmax.f32 %v2238_v55, %v2239_v12  ;;  %v2224_v25 = vmax.f32 %v2222_v22, %v2223_v42  ;;  %v7817_v12 = vld [vmem:[#allocation71_spill] sm:$0xff] }
 0x395   : > { %v2842_v4 = vrot.slane %v7122_v24, 2  ;;  %v3129_v15 = vsel %vm1792_vm5, %v2985_v54, 0.0  ;;  %v2429_v50 = vmul.f32 1.442695, %v2303_v32  ;;  %v2301_v11 = vsub.f32 %v7806_v34, %v2219_v56 }
 0x396   : > { %v2827_v62 = vadd.f32 %v2826_v13, %v2825_v36  ;;  %v2848_v57 = vadd.f32 %v2847_v14, %v2846_v49  ;;  %3130 = vadd.xlane.f32.xlu1 %v3129_v15  ;;  %v2304_v30 = vsub.f32 %v7807_v27, %v2240_v9  ;;  %v2225_v26 = vrot.slane %v2224_v25, 1  ;;  %v7818_v13 = vld [vmem:[#allocation6_spill] sm:$0xff] }
 0x397   : > { %5329 = vpow2.f32 %v2429_v50  ;;  %v2425_v17 = vmul.f32 1.442695, %v2301_v11  ;;  %v3308_v37 = vadd.f32 %v3307_v52, %v3208_v21  ;;  %v2725_v22 = vrot.slane %v6968_v35, 1  ;;  %v3035_v52 = vpop.xlane.xlu1 %3034 }
 0x398   : > { %v5328_v53 = vpop.eup %5327  ;;  %v2834_v55 = vadd.f32 %v2833_v1, %v2832_v10  ;;  %v2431_v42 = vmul.f32 1.442695, %v2304_v30  ;;  %v2226_v32 = vmax.f32 %v2224_v25, %v2225_v26  ;;  %v3206_v27 = vmul.f32 %v3026_v3, %v7818_v13 }
 0x399   : > { %v2988_v54 = vmul.f32 %v5328_v53, %v7817_v12  ;;  %5331 = vpow2.f32 %v2425_v17  ;;  %v3309_v34 = vrot.slane %v3308_v37, 2  ;;  %v2726_v15 = vadd.f32 %v2725_v22, %v6968_v35  ;;  %v3044_v22 = vpop.xlane.xlu0 %3043 }
 0x39a   : > { %5333 = vpow2.f32 %v2431_v42  ;;  %v2302_v11 = vsub.f32 %v7808_v28, %v2226_v32  ;;  %v3739_v21 = vrot.slane %v6895_v44, 1  ;;  %v2828_v50 = vrot.slane %v2827_v62, 2 }
 0x39b   : > { %v3138_v36 = vsel %vm1792_vm5, %v2988_v54, 0.0  ;;  %5335 = vrcp.f32 %v2726_v15  ;;  %v3295_v49 = vrot.slane %v3206_v27, 4  ;;  %v3740_v9 = vrot.slane %v6895_v44, 2 }
 0x39c   : > { %3139 = vadd.xlane.f32.xlu0 %v3138_v36  ;;  %v2849_v10 = vrot.slane %v2848_v57, 2  ;;  %v2835_v14 = vrot.slane %v2834_v55, 2  ;;  %v2427_v56 = vmul.f32 1.442695, %v2302_v11  ;;  %v3859_v35 = vadd.f32 %v6895_v44, %v7016_v6  ;;  %v7820_v6 = vld [vmem:[#allocation11_spill] sm:$0xff] }
 0x39d   : > { %v7819_v1 = vrot.slane %v7087_v59, 1  ;;  %v3310_v28 = vadd.f32 %v3309_v34, %v3308_v37  ;;  %v3860_v30 = vadd.f32 %v3739_v21, %v7076_v29  ;;  %v7152_v26 = vadd.f32 %v3740_v9, %v7014_v2  ;;  %v7821_v29 = vld [vmem:[#allocation9_spill] sm:$0xff] }
 0x39e   : > { %v7155_v3 = vadd.f32 %v2807_v0, %v7110_v39  ;;  %v7158_v53 = vadd.f32 %v3293_v8, %v7120_v41  ;;  %5337 = vpow2.f32 %v2427_v56  ;;  %v3211_v17 = vmul.f32 %v3041_v19, %v7820_v6  ;;  %v4987_v19 = vld [vmem:[%s7668_s5] sm:$0xff]  }
 0x39f   : > { %v7148_v25 = vadd.f32 %v7819_v1, %v7087_v59  ;;  %v7162_v42 = vadd.f32 %v2842_v4, %v7122_v24  ;;  %v7164_v59 = vadd.f32 %v2828_v50, %v2827_v62  ;;  %v3296_v37 = vadd.f32 %v3295_v49, %v3206_v27  ;;  %v7822_v62 = vld [vmem:[#allocation12_spill] sm:$0xff]  ;;  %4889 = vmatprep.subr.bf16.mxu1 %v4987_v19 }
 0x3a0   : > { %v3209_v12 = vmul.f32 %v3035_v52, %v7821_v29  ;;  %v7167_v2 = vadd.f32 %v2849_v10, %v2848_v57  ;;  %v7169_v54 = vadd.f32 %v2835_v14, %v2834_v55  ;;  %v3325_v0 = vrot.slane %v3211_v17, 4  ;;  %4890 = vmatpush3.bf16.msra.mxu1 %v4987_v19 }
 0x3a1   : > { %v2760_v8 = vrot.slane %v6980_v5, 1  ;;  %v7175_v39 = vpop.eup %5329  ;;  %v3311_v41 = vrot.slane %v3310_v28, 1  ;;  %v3923_v24 = vmax.f32 %v3859_v35, 0.0  ;;  %v3212_v32 = vmul.f32 %v3044_v22, %v7822_v62  ;;  %v3038_v62 = vpop.xlane.xlu1 %3037 }
 0x3a2   : > { %v3313_v4 = vrot.slane %v3209_v12, 4  ;;  %v2867_v57 = vsel %vm1792_vm5, %v7175_v39, 0.0  ;;  %v3326_v34 = vadd.f32 %v3325_v0, %v3211_v17  ;;  %v3297_v36 = vrot.slane %v3296_v37, 2 }
 0x3a3   : > { %v2761_v15 = vadd.f32 %v2760_v8, %v6980_v5  ;;  %v7182_v13 = vpop.eup %5331  ;;  %v2868_v27 = vrot.slane %v2867_v57, 4  ;;  %v3924_v11 = vmax.f32 %v3860_v30, 0.0  ;;  %v3331_v10 = vrot.slane %v3212_v32, 4 }
 0x3a4   : > { %v3314_v21 = vadd.f32 %v3313_v4, %v3209_v12  ;;  %v7184_v50 = vpop.eup %5333  ;;  %v2853_v49 = vsel %vm1792_vm5, %v7182_v13, 0.0  ;;  %v3327_v9 = vrot.slane %v3326_v34, 2  ;;  %v7188_v56 = vadd.f32 %v3311_v41, %v3310_v28  ;;  %v3053_v28 = vpop.xlane.xlu0 %3052 }
 0x3a5   : > { %7823 = vst [vmem:[#allocation8_spill] sm:$0xff] %v7184_v50  ;;  %5339 = vrcp.f32 %v2761_v15  ;;  %v5336_v14 = vpop.eup %5335  ;;  %v7191_v35 = vpack.c.bf16 %v3923_v24, %v3923_v24  ;;  %v3747_v52 = vrot.slane %v6902_v7, 2  ;;  %v2854_v1 = vrot.slane %v2853_v49, 4 }
 0x3a6   : > { %v2986_v30 = vmul.f32 %v5336_v14, %v6890_v23  ;;  %v3328_v6 = vadd.f32 %v3327_v9, %v3326_v34  ;;  %v3315_v17 = vrot.slane %v3314_v21, 2  ;;  %v2874_v22 = vsel %vm1792_vm5, %v7184_v50, 0.0  ;;  %v7827_v14 = vld [vmem:[#allocation10_spill] sm:$0xff] }
 0x3a7   : > { %7824 = vst [vmem:[#allocation67_spill] sm:$0xff] %v7191_v35  ;;  %v3298_v29 = vadd.f32 %v3297_v36, %v3296_v37  ;;  %v7197_v12 = vpack.c.bf16 %v3924_v11, %v3924_v11  ;;  %v3332_v0 = vadd.f32 %v3331_v10, %v3212_v32  ;;  %v2869_v19 = vadd.f32 %v2868_v27, %v2867_v57 }
 0x3a8   : > { %v7199_v8 = vpop.eup %5337  ;;  %v3132_v41 = vsel %vm1792_vm5, %v2986_v30, 0.0  ;;  %v3329_v24 = vrot.slane %v3328_v6, 1  ;;  %v3316_v4 = vadd.f32 %v3315_v17, %v3314_v21  ;;  %v3748_v37 = vrot.slane %v6902_v7, 3 }
 0x3a9   : > { %7825 = vst [vmem:[#allocation69_spill] sm:$0xff] %v7197_v12  ;;  %7826 = vst [vmem:[#allocation71_spill] sm:$0xff] %v7199_v8  ;;  %v2860_v23 = vsel %vm1792_vm5, %v7199_v8, 0.0  ;;  %3133 = vadd.xlane.f32.xlu0 %v3132_v41  ;;  %v3333_v15 = vrot.slane %v3332_v0, 2  ;;  %v2855_v36 = vadd.f32 %v2854_v1, %v2853_v49  ;;  %v2875_v32 = vrot.slane %v2874_v22, 4  ;;  %v4988_v41 = vld [vmem:[%s7668_s5 + $0x8] sm:$0xff]  }
 0x3aa   : > { %v3330_v11 = vadd.f32 %v3329_v24, %v3328_v6  ;;  %v3317_v9 = vrot.slane %v3316_v4, 1  ;;  %v3299_v10 = vrot.slane %v3298_v29, 1  ;;  %v3210_v21 = vmul.f32 %v3038_v62, %v7827_v14  ;;  %v4989_v49 = vld [vmem:[%s7668_s5 + $0x10] sm:$0xff]   ;;  %4891 = vmatprep.subr.bf16.mxu1 %v4988_v41 }
 0x3ab   : > { %v3334_v27 = vadd.f32 %v3333_v15, %v3332_v0  ;;  %v2870_v30 = vrot.slane %v2869_v19, 2  ;;  %v2861_v17 = vrot.slane %v2860_v23, 4  ;;  %v2746_v24 = vrot.slane %v6990_v18, 1  ;;  %v3047_v15 = vpop.xlane.xlu0 %3046  ;;  %4892 = vmatpush3.bf16.msra.mxu1 %v4988_v41 }
 0x3ac   : > { %v3869_v5 = vadd.f32 %v3747_v52, %v3330_v11  ;;  %v3318_v55 = vadd.f32 %v3317_v9, %v3316_v4  ;;  %v3319_v6 = vrot.slane %v3210_v21, 4  ;;  %v2767_v0 = vrot.slane %v7007_v47, 1  ;;  %4893 = vmatprep.subr.bf16.mxu1 %v4989_v49 }
 0x3ad   : > { %v3335_v1 = vrot.slane %v3334_v27, 1  ;;  %v2856_v14 = vrot.slane %v2855_v36, 2  ;;  %v7216_v34 = vadd.f32 %v2875_v32, %v2874_v22  ;;  %v2753_v4 = vrot.slane %v7012_v33, 1 }
 0x3ae   : > { %v3867_v52 = vadd.f32 %v6902_v7, %v3318_v55  ;;  %v3320_v57 = vadd.f32 %v3319_v6, %v3210_v21  ;;  %v2747_v50 = vadd.f32 %v2746_v24, %v6990_v18  ;;  %v7222_v35 = vadd.f32 %v2861_v17, %v2860_v23  ;;  %v4990_v55 = vld [vmem:[%s7668_s5 + $0x18] sm:$0xff]   ;;  %v7828_v17 = vld [vmem:[#allocation15_spill] sm:$0xff] }
 0x3af   : > { %v5340_v62 = vpop.eup %5339  ;;  %v3336_v9 = vadd.f32 %v3335_v1, %v3334_v27  ;;  %v7224_v12 = vadd.f32 %v3299_v10, %v3298_v29  ;;  %v2768_v22 = vadd.f32 %v2767_v0, %v7007_v47  ;;  %v7231_v21 = vadd.f32 %v2870_v30, %v2869_v19  ;;  %v3056_v1 = vpop.xlane.xlu0 %3055  ;;  %4894 = vmatpush3.bf16.msra.mxu1 %v4989_v49  ;;  %v7829_v49 = vld [vmem:[#allocation13_spill] sm:$0xff] }
 0x3b0   : > { %v2991_v11 = vmul.f32 %v5340_v62, %v6930_v16  ;;  %v3931_v8 = vmax.f32 %v3867_v52, 0.0  ;;  %v3321_v27 = vrot.slane %v3320_v57, 2  ;;  %5341 = vrcp.f32 %v2747_v50  ;;  %4895 = vmatprep.subr.bf16.mxu1 %v4990_v55 }
 0x3b1   : > { %v3870_v16 = vadd.f32 %v3748_v37, %v3336_v9  ;;  %v2877_v18 = vrot.slane %v7216_v34, 2  ;;  %5343 = vrcp.f32 %v2768_v22  ;;  %v2754_v29 = vadd.f32 %v2753_v4, %v7012_v33  ;;  %v4991_v33 = vld [vmem:[%s7668_s5 + $0x20] sm:$0xff]  }
 0x3b2   : > { %v3147_v32 = vsel %vm1792_vm5, %v2991_v11, 0.0  ;;  %v7235_v23 = vadd.f32 %v2856_v14, %v2855_v36  ;;  %v3933_v47 = vmax.f32 %v3869_v5, 0.0  ;;  %v3322_v10 = vadd.f32 %v3321_v27, %v3320_v57 }
 0x3b3   : > { %3148 = vadd.xlane.f32.xlu0 %v3147_v32  ;;  %v3215_v41 = vmul.f32 %v3053_v28, %v7828_v17  ;;  %v2863_v37 = vrot.slane %v7222_v35, 2  ;;  %v3746_v50 = vrot.slane %v6902_v7, 1  ;;  %5345 = vrcp.f32 %v2754_v29  ;;  %4896 = vmatpush3.bf16.msra.mxu1 %v4990_v55  ;;  %v3050_v29 = vpop.xlane.xlu0 %3049 }
 0x3b4   : > { %v2788_v19 = vrot.slane %v7030_v46, 1  ;;  %v7244_v36 = vpack.c.bf16 %v3931_v8, %v3931_v8  ;;  %v3934_v5 = vmax.f32 %v3870_v16, 0.0  ;;  %v3323_v57 = vrot.slane %v3322_v10, 1  ;;  %4897 = vmatprep.subr.bf16.mxu1 %v4991_v33  ;;  %v7830_v16 = vld [vmem:[#allocation16_spill] sm:$0xff] }
 0x3b5   : > { %v3349_v30 = vrot.slane %v3215_v41, 4  ;;  %v3213_v6 = vmul.f32 %v3047_v15, %v7829_v49  ;;  %v2795_v24 = vrot.slane %v7068_v48, 1  ;;  %v2774_v0 = vrot.slane %v7049_v60, 1 }
 0x3b6   : > { %v2789_v28 = vadd.f32 %v2788_v19, %v7030_v46  ;;  %v7250_v62 = vpack.c.bf16 %v3933_v47, %v3933_v47  ;;  %v3324_v14 = vadd.f32 %v3323_v57, %v3322_v10  ;;  %v3751_v52 = vrot.slane %v6902_v7, 6  ;;  %v4992_v46 = vld [vmem:[%s7668_s5 + $0x28] sm:$0xff]  }
 0x3b7   : > { %v3350_v4 = vadd.f32 %v3349_v30, %v3215_v41  ;;  %v3337_v8 = vrot.slane %v3213_v6, 4  ;;  %v2796_v11 = vadd.f32 %v2795_v24, %v7068_v48  ;;  %v2775_v9 = vadd.f32 %v2774_v0, %v7049_v60  ;;  %4898 = vmatpush3.bf16.msra.mxu1 %v4991_v33  ;;  %v7831_v57 = vld [vmem:[#allocation14_spill] sm:$0xff]  ;;  %v4993_v30 = vld [vmem:[%s7668_s5 + $0x30] sm:$0xff]  }
 0x3b8   : > { %5347 = vrcp.f32 %v2789_v28  ;;  %v4146_v15 = vunpack.c.l.b16 %v7244_v36  ;;  %v3868_v22 = vadd.f32 %v3746_v50, %v3324_v14  ;;  %v3216_v27 = vmul.f32 %v3056_v1, %v7830_v16  ;;  %4899 = vmatprep.subr.bf16.mxu1 %v4992_v46 }
 0x3b9   : > { %v3351_v32 = vrot.slane %v3350_v4, 2  ;;  %v7260_v47 = vpack.c.bf16 %v3934_v5, %v3934_v5  ;;  %v3338_v55 = vadd.f32 %v3337_v8, %v3213_v6  ;;  %5349 = vrcp.f32 %v2796_v11 }
 0x3ba   : > { %v2781_v48 = vrot.slane %v7070_v63, 1  ;;  %v5342_v60 = vpop.eup %5341  ;;  %v3932_v10 = vmax.f32 %v3868_v22, 0.0  ;;  %5351 = vrcp.f32 %v2775_v9  ;;  %v3355_v41 = vrot.slane %v3216_v27, 4 }
 0x3bb   : > { %v3352_v17 = vadd.f32 %v3351_v32, %v3350_v4  ;;  %v5344_v19 = vpop.eup %5343  ;;  %v2989_v50 = vmul.f32 %v5342_v60, %v6940_v31  ;;  %v3339_v36 = vrot.slane %v3338_v55, 2  ;;  %v3214_v5 = vmul.f32 %v3050_v29, %v7831_v57  ;;  %v3065_v4 = vpop.xlane.xlu1 %3064  ;;  %4900 = vmatpush3.bf16.msra.mxu1 %v4992_v46  ;;  %v7832_v60 = vld [vmem:[#allocation19_spill] sm:$0xff] }
 0x3bc   : > { %v2782_v1 = vadd.f32 %v2781_v48, %v7070_v63  ;;  %v3996_v28 = vpack.c.bf16 %v3932_v10, %v3932_v10  ;;  %v2992_v49 = vmul.f32 %v5344_v19, %v6952_v51  ;;  %v3356_v24 = vadd.f32 %v3355_v41, %v3216_v27  ;;  %4901 = vmatprep.subr.bf16.mxu1 %v4993_v30  ;;  %v4994_v27 = vld [vmem:[%s7668_s5 + $0x38] sm:$0xff]  }
 0x3bd   : > { %v3353_v6 = vrot.slane %v3352_v17, 1  ;;  %v5346_v0 = vpop.eup %5345  ;;  %v3141_v33 = vsel %vm1792_vm5, %v2989_v50, 0.0  ;;  %v3340_v14 = vadd.f32 %v3339_v36, %v3338_v55  ;;  %v3343_v31 = vrot.slane %v3214_v5, 4 }
 0x3be   : > { %5353 = vrcp.f32 %v2782_v1  ;;  %v4147_v63 = vunpack.c.l.b16 %v3996_v28  ;;  %3142 = vadd.xlane.f32.xlu0 %v3141_v33  ;;  %v3150_v8 = vsel %vm1792_vm5, %v2992_v49, 0.0  ;;  %v3749_v9 = vrot.slane %v6902_v7, 4 }
 0x3bf   : > { %v3354_v11 = vadd.f32 %v3353_v6, %v3352_v17  ;;  %v3341_v22 = vrot.slane %v3340_v14, 1  ;;  %v3357_v32 = vrot.slane %v3356_v24, 2  ;;  %v3344_v51 = vadd.f32 %v3343_v31, %v3214_v5  ;;  %4902 = vmatpush3.bf16.msra.mxu1 %v4993_v30 }
 0x3c0   : > { %v2816_v16 = vrot.slane %v7080_v38, 1  ;;  %v4223_v29 = vrot.slane %v4147_v63, 7  ;;  %v2990_v55 = vmul.f32 %v5346_v0, %v6962_v61  ;;  %v3219_v10 = vmul.f32 %v3065_v4, %v7832_v60  ;;  %4903 = vmatprep.subr.bf16.mxu1 %v4994_v27 }
 0x3c1   : > { %v3873_v48 = vadd.f32 %v3751_v52, %v3354_v11  ;;  %v3342_v41 = vadd.f32 %v3341_v22, %v3340_v14  ;;  %v3358_v19 = vadd.f32 %v3357_v32, %v3356_v24  ;;  %v3345_v46 = vrot.slane %v3344_v51, 2 }
 0x3c2   : > { %v5348_v17 = vpop.eup %5347  ;;  %v2817_v50 = vadd.f32 %v2816_v16, %v7080_v38  ;;  %v7281_v36 = vsel %vm4203_vm14, %v4223_v29, %v4146_v15  ;;  %3151 = vadd.xlane.f32.xlu0 %v3150_v8  ;;  %v3373_v5 = vrot.slane %v3219_v10, 4  ;;  %v3752_v15 = vrot.slane %v6902_v7, 7  ;;  %v3068_v8 = vpop.xlane.xlu0 %3067 }
 0x3c3   : > { %v3937_v1 = vmax.f32 %v3873_v48, 0.0  ;;  %v2995_v57 = vmul.f32 %v5348_v17, %v6988_v20  ;;  %v5350_v28 = vpop.eup %5349  ;;  %v3871_v61 = vadd.f32 %v3749_v9, %v3342_v41  ;;  %v3359_v52 = vrot.slane %v3358_v19, 1  ;;  %4904 = vmatpush3.bf16.msra.mxu1 %v4994_v27 }
 0x3c4   : > { %v3346_v49 = vadd.f32 %v3345_v46, %v3344_v51  ;;  %5355 = vrcp.f32 %v2817_v50  ;;  %v5352_v6 = vpop.eup %5351  ;;  %v2996_v38 = vmul.f32 %v5350_v28, %v6996_v40  ;;  %v3374_v0 = vadd.f32 %v3373_v5, %v3219_v10  ;;  %v3059_v51 = vpop.xlane.xlu1 %3058 }
 0x3c5   : > { %v3159_v24 = vsel %vm1792_vm5, %v2995_v57, 0.0  ;;  %v3144_v33 = vsel %vm1792_vm5, %v2990_v55, 0.0  ;;  %v2993_v20 = vmul.f32 %v5352_v6, %v6992_v45  ;;  %v3360_v30 = vadd.f32 %v3359_v52, %v3358_v19  ;;  %v7833_v55 = vld [vmem:[#allocation20_spill] sm:$0xff] }
 0x3c6   : > { %3160 = vadd.xlane.f32.xlu1 %v3159_v24  ;;  %v3347_v14 = vrot.slane %v3346_v49, 1  ;;  %v7292_v31 = vadd.f32 %v2877_v18, %v7216_v34  ;;  %v4148_v4 = vunpack.c.l.b16 %v7250_v62  ;;  %3145 = vadd.xlane.f32.xlu0 %v3144_v33  ;;  %v3750_v40 = vrot.slane %v6902_v7, 5 }
 0x3c7   : > { %v3375_v63 = vrot.slane %v3374_v0, 2  ;;  %v4001_v9 = vpack.c.bf16 %v3937_v1, %v3937_v1  ;;  %v3162_v22 = vsel %vm1792_vm5, %v2996_v38, 0.0  ;;  %v7297_v45 = vadd.f32 %v3752_v15, %v3360_v30  ;;  %v7836_v38 = vld [vmem:[#allocation81_spill] sm:$0xff] }
 0x3c8   : > { %v5354_v11 = vpop.eup %5353  ;;  %v3348_v32 = vadd.f32 %v3347_v14, %v3346_v49  ;;  %v7302_v34 = vadd.f32 %v2863_v37, %v7222_v35  ;;  %v3153_v18 = vsel %vm1792_vm5, %v2993_v20, 0.0  ;;  %v4149_v16 = vunpack.c.l.b16 %v7260_v47  ;;  %v7834_v35 = vld [vmem:[#allocation17_spill] sm:$0xff]  ;;  %v3062_v24 = vpop.xlane.xlu1 %3061 }
 0x3c9   : > { %v2994_v7 = vmul.f32 %v5354_v11, %v7010_v43  ;;  %v3376_v62 = vadd.f32 %v3375_v63, %v3374_v0  ;;  %v3935_v27 = vmax.f32 %v3871_v61, 0.0  ;;  %v3220_v48 = vmul.f32 %v3068_v8, %v7833_v55  ;;  %v7835_v43 = vld [vmem:[#allocation74_spill] sm:$0xff] }
 0x3ca   : > { %3154 = vadd.xlane.f32.xlu1 %v3153_v18  ;;  %v3872_v29 = vadd.f32 %v3750_v40, %v3348_v32  ;;  %v7308_v60 = vrot.slane %v4148_v4, 6  ;;  %3163 = vadd.xlane.f32.xlu0 %v3162_v22  ;;  %v2802_v17 = vrot.slane %v7098_v58, 1  ;;  %v3217_v37 = vmul.f32 %v3059_v51, %v7834_v35  ;;  %v7837_v8 = vld [vmem:[#allocation18_spill] sm:$0xff] }
 0x3cb   : > { %v3377_v10 = vrot.slane %v3376_v62, 1  ;;  %v4152_v41 = vunpack.c.l.b16 %v4001_v9  ;;  %v3156_v19 = vsel %vm1792_vm5, %v2994_v7, 0.0  ;;  %v3754_v46 = vrot.slane %v7835_v43, 2 }
 0x3cc   : > { %v3379_v50 = vrot.slane %v3220_v48, 4  ;;  %v2803_v1 = vadd.f32 %v2802_v17, %v7098_v58  ;;  %v3361_v57 = vrot.slane %v3217_v37, 4  ;;  %v2844_v5 = vrot.slane %v7162_v42, 1  ;;  %v3077_v51 = vpop.xlane.xlu1 %3076 }
 0x3cd   : > { %v3378_v47 = vadd.f32 %v3377_v10, %v3376_v62  ;;  %v7316_v61 = vrot.slane %v4149_v16, 5  ;;  %v3999_v52 = vpack.c.bf16 %v3935_v27, %v3935_v27  ;;  %v2809_v6 = vrot.slane %v7155_v3, 1 }
 0x3ce   : > { %v5356_v28 = vpop.eup %5355  ;;  %3157 = vadd.xlane.f32.xlu1 %v3156_v19  ;;  %v3380_v49 = vadd.f32 %v3379_v50, %v3220_v48  ;;  %5357 = vrcp.f32 %v2803_v1  ;;  %v3362_v33 = vadd.f32 %v3361_v57, %v3217_v37  ;;  %v7320_v20 = vrot.slane %v4152_v41, 2 }
 0x3cf   : > { %v2999_v15 = vmul.f32 %v5356_v28, %v7836_v38  ;;  %v3877_v0 = vadd.f32 %v3754_v46, %v3378_v47  ;;  %v2845_v30 = vadd.f32 %v2844_v5, %v7162_v42  ;;  %v2810_v14 = vadd.f32 %v2809_v6, %v7155_v3  ;;  %v7839_v28 = vld [vmem:[#allocation23_spill] sm:$0xff] }
 0x3d0   : > { %v3381_v58 = vrot.slane %v3380_v49, 2  ;;  %v3755_v40 = vrot.slane %v7835_v43, 3  ;;  %v3363_v63 = vrot.slane %v3362_v33, 2  ;;  %v3218_v11 = vmul.f32 %v3062_v24, %v7837_v8  ;;  %v7840_v38 = vld [vmem:[#allocation7_spill] sm:$0xff] }
 0x3d1   : > { %v3171_v4 = vsel %vm1792_vm5, %v2999_v15, 0.0  ;;  %v4150_v9 = vunpack.c.l.b16 %v3999_v52  ;;  %v3936_v22 = vmax.f32 %v3872_v29, 0.0  ;;  %5359 = vrcp.f32 %v2845_v30  ;;  %v7838_v29 = vld [vmem:[#allocation72_spill] sm:$0xff] }
 0x3d2   : > { %3172 = vadd.xlane.f32.xlu1 %v3171_v4  ;;  %v3382_v32 = vadd.f32 %v3381_v58, %v3380_v49  ;;  %v3941_v18 = vmax.f32 %v3877_v0, 0.0  ;;  %v3364_v7 = vadd.f32 %v3363_v63, %v3362_v33  ;;  %5361 = vrcp.f32 %v2810_v14  ;;  %v3071_v49 = vpop.xlane.xlu1 %3070 }
 0x3d3   : > { %v3367_v62 = vrot.slane %v3218_v11, 4  ;;  %v2851_v3 = vrot.slane %v7167_v2, 1  ;;  %v2830_v16 = vrot.slane %v7164_v59, 1  ;;  %v2837_v27 = vrot.slane %v7169_v54, 1 }
 0x3d4   : > { %v3383_v42 = vrot.slane %v3382_v32, 1  ;;  %v3938_v55 = vmax.f32 %v7297_v45, 0.0  ;;  %v3365_v48 = vrot.slane %v3364_v7, 1  ;;  %v2823_v17 = vrot.slane %v7838_v29, 1 }
 0x3d5   : > { %v3368_v10 = vadd.f32 %v3367_v62, %v3218_v11  ;;  %v2852_v37 = vadd.f32 %v2851_v3, %v7167_v2  ;;  %v2831_v41 = vadd.f32 %v2830_v16, %v7164_v59  ;;  %v2838_v19 = vadd.f32 %v2837_v27, %v7169_v54 }
 0x3d6   : > { %v3384_v35 = vadd.f32 %v3383_v42, %v3382_v32  ;;  %v7335_v46 = vpack.c.bf16 %v3936_v22, %v3936_v22  ;;  %v3366_v50 = vadd.f32 %v3365_v48, %v3364_v7  ;;  %v2824_v1 = vadd.f32 %v2823_v17, %v7838_v29  ;;  %v7841_v22 = vld [vmem:[#allocation66_spill] sm:$0xff]  ;;  %v7842_v42 = vld [vmem:[#allocation5_spill] sm:$0xff]  ;;  %v3080_v16 = vpop.xlane.xlu1 %3079 }
 0x3d7   : > { %v3369_v47 = vrot.slane %v3368_v10, 2  ;;  %v4005_v57 = vpack.c.bf16 %v3941_v18, %v3941_v18  ;;  %5363 = vrcp.f32 %v2852_v37  ;;  %v3223_v52 = vmul.f32 %v3077_v51, %v7839_v28 }
 0x3d8   : > { %v3878_v5 = vadd.f32 %v3755_v40, %v3384_v35  ;;  %v5358_v6 = vpop.eup %5357  ;;  %v3875_v24 = vadd.f32 %v7835_v43, %v3366_v50  ;;  %5365 = vrcp.f32 %v2831_v41  ;;  %v2872_v59 = vrot.slane %v7231_v21, 1 }
 0x3d9   : > { %v3370_v2 = vadd.f32 %v3369_v47, %v3368_v10  ;;  %v2997_v15 = vmul.f32 %v5358_v6, %v7840_v38  ;;  %5367 = vrcp.f32 %v2838_v19  ;;  %v3397_v0 = vrot.slane %v3223_v52, 4  ;;  %v7843_v10 = vld [vmem:[#allocation21_spill] sm:$0xff] }
 0x3da   : > { %v3942_v54 = vmax.f32 %v3878_v5, 0.0  ;;  %v3939_v33 = vmax.f32 %v3875_v24, 0.0  ;;  %5369 = vrcp.f32 %v2824_v1  ;;  %v2873_v30 = vadd.f32 %v2872_v59, %v7231_v21  ;;  %v7844_v1 = vld [vmem:[#allocation24_spill] sm:$0xff]  ;;  %v7845_v59 = vld [vmem:[#allocation70_spill] sm:$0xff] }
 0x3db   : > { %v3371_v58 = vrot.slane %v3370_v2, 1  ;;  %v5360_v14 = vpop.eup %5359  ;;  %v7343_v4 = vrot.slane %v4150_v9, 4  ;;  %v4156_v40 = vunpack.c.l.b16 %v4005_v57  ;;  %v3165_v63 = vsel %vm1792_vm5, %v2997_v15, 0.0 }
 0x3dc   : > { %v3398_v8 = vadd.f32 %v3397_v0, %v3223_v52  ;;  %v5362_v11 = vpop.eup %5361  ;;  %3166 = vadd.xlane.f32.xlu1 %v3165_v63  ;;  %v3003_v32 = vmul.f32 %v5360_v14, %v7841_v22  ;;  %v3753_v18 = vrot.slane %v7835_v43, 1  ;;  %5371 = vrcp.f32 %v2873_v30  ;;  %v7847_v22 = vld [vmem:[#allocation73_spill] sm:$0xff] }
 0x3dd   : > { %v3372_v51 = vadd.f32 %v3371_v58, %v3370_v2  ;;  %v4006_v7 = vpack.c.bf16 %v3942_v54, %v3942_v54  ;;  %v4003_v62 = vpack.c.bf16 %v3939_v33, %v3939_v33  ;;  %v2998_v3 = vmul.f32 %v5362_v11, %v7842_v42  ;;  %v7846_v33 = vld [vmem:[#allocation68_spill] sm:$0xff] }
 0x3de   : > { %v3399_v21 = vrot.slane %v3398_v8, 2  ;;  %v4151_v9 = vunpack.c.l.b16 %v7335_v46  ;;  %v3183_v27 = vsel %vm1792_vm5, %v3003_v32, 0.0  ;;  %v3221_v29 = vmul.f32 %v3071_v49, %v7843_v10 }
 0x3df   : > { %v3876_v48 = vadd.f32 %v3753_v18, %v3372_v51  ;;  %v4239_v17 = vrot.slane %v4156_v40, 6  ;;  %3184 = vadd.xlane.f32.xlu0 %v3183_v27  ;;  %v3168_v35 = vsel %vm1792_vm5, %v2998_v3, 0.0  ;;  %v3758_v41 = vrot.slane %v7835_v43, 6  ;;  %v7367_v27 = vpop.xlane.xlu0 %3088 }
 0x3e0   : > { %v3400_v37 = vadd.f32 %v3399_v21, %v3398_v8  ;;  %3169 = vadd.xlane.f32.xlu1 %v3168_v35  ;;  %v3385_v50 = vrot.slane %v3221_v29, 4  ;;  %v2858_v47 = vrot.slane %v7235_v23, 1  ;;  %v3224_v57 = vmul.f32 %v3080_v16, %v7844_v1 }
 0x3e1   : > { %v3940_v19 = vmax.f32 %v3876_v48, 0.0  ;;  %v5364_v5 = vpop.eup %5363  ;;  %v4157_v28 = vunpack.c.l.b16 %v4006_v7  ;;  %v4154_v52 = vunpack.c.l.b16 %v4003_v62  ;;  %v2865_v49 = vrot.slane %v7302_v34, 1  ;;  %v7848_v7 = vld [vmem:[#allocation65_spill] sm:$0xff] }
 0x3e2   : > { %v3401_v6 = vrot.slane %v3400_v37, 1  ;;  %v5366_v24 = vpop.eup %5365  ;;  %v3004_v54 = vmul.f32 %v5364_v5, %v7845_v59  ;;  %v3386_v38 = vadd.f32 %v3385_v50, %v3221_v29  ;;  %v2859_v15 = vadd.f32 %v2858_v47, %v7235_v23 }
 0x3e3   : > { %v4004_v2 = vpack.c.bf16 %v3940_v19, %v3940_v19  ;;  %v5368_v0 = vpop.eup %5367  ;;  %v3001_v58 = vmul.f32 %v5366_v24, %v7846_v33  ;;  %v3403_v14 = vrot.slane %v3224_v57, 4  ;;  %v2866_v40 = vadd.f32 %v2865_v49, %v7302_v34 }
 0x3e4   : > { %v3402_v30 = vadd.f32 %v3401_v6, %v3400_v37  ;;  %v5370_v63 = vpop.eup %5369  ;;  %v3186_v11 = vsel %vm1792_vm5, %v3004_v54, 0.0  ;;  %v3002_v32 = vmul.f32 %v5368_v0, %v7847_v22  ;;  %v3387_v51 = vrot.slane %v3386_v38, 2  ;;  %v7849_v6 = vld [vmem:[#allocation80_spill] sm:$0xff] }
 0x3e5   : > { %v4155_v8 = vunpack.c.l.b16 %v4004_v2  ;;  %3187 = vadd.xlane.f32.xlu0 %v3186_v11  ;;  %v3177_v18 = vsel %vm1792_vm5, %v3001_v58, 0.0  ;;  %v3000_v62 = vmul.f32 %v5370_v63, %v7848_v7  ;;  %5373 = vrcp.f32 %v2859_v15  ;;  %v7390_v58 = vpop.xlane.xlu0 %3091 }
 0x3e6   : > { %v7365_v23 = vadd.f32 %v3758_v41, %v3402_v30  ;;  %v5372_v42 = vpop.eup %5371  ;;  %v4241_v3 = vrot.slane %v4157_v28, 5  ;;  %3178 = vadd.xlane.f32.xlu1 %v3177_v18  ;;  %v3388_v34 = vadd.f32 %v3387_v51, %v3386_v38  ;;  %v3404_v16 = vadd.f32 %v3403_v14, %v3224_v57 }
 0x3e7   : > { %v4237_v21 = vrot.slane %v4155_v8, 7  ;;  %v3180_v48 = vsel %vm1792_vm5, %v3002_v32, 0.0  ;;  %v3007_v10 = vmul.f32 %v5372_v42, %v7175_v39  ;;  %v3756_v29 = vrot.slane %v7835_v43, 4 }
 0x3e8   : > { %5375 = vrcp.f32 %v2866_v40  ;;  %v3389_v37 = vrot.slane %v3388_v34, 1  ;;  %v3405_v41 = vrot.slane %v3404_v16, 2  ;;  %v3744_v19 = vrot.slane %v6895_v44, 6 }
 0x3e9   : > { %v4238_v35 = vsel %vm4203_vm14, %v4237_v21, %v4154_v52  ;;  %3181 = vadd.xlane.f32.xlu0 %v3180_v48  ;;  %v3174_v47 = vsel %vm1792_vm5, %v3000_v62, 0.0  ;;  %v3743_v1 = vrot.slane %v6895_v44, 5  ;;  %v3745_v57 = vrot.slane %v6895_v44, 7 }
 0x3ea   : > { %v4240_v50 = vsel %vm4206_vm15, %v4239_v17, %v4238_v35  ;;  %3175 = vadd.xlane.f32.xlu1 %v3174_v47  ;;  %v3390_v39 = vadd.f32 %v3389_v37, %v3388_v34  ;;  %v3406_v28 = vadd.f32 %v3405_v41, %v3404_v16  ;;  %v7850_v52 = vrot.slane %v6895_v44, 3  ;;  %v3086_v37 = vpop.xlane.xlu0 %3085  ;;  %v7853_v47 = vld [vmem:[#allocation69_spill] sm:$0xff] }
 0x3eb   : > { %v4242_v5 = vsel %vm4209_vm0, %v4241_v3, %v4240_v50  ;;  %v3195_v24 = vsel %vm1792_vm5, %v3007_v10, 0.0  ;;  %v7851_v17 = vrot.slane %v6895_v44, 4  ;;  %v3864_v59 = vadd.f32 %v3743_v1, %v7224_v12  ;;  %v7852_v10 = vld [vmem:[#allocation71_spill] sm:$0xff] }
 0x3ec   : > { %v3862_v49 = vadd.f32 %v7850_v52, %v7849_v6  ;;  %v3865_v54 = vadd.f32 %v3744_v19, %v7148_v25  ;;  %v3879_v38 = vadd.f32 %v3756_v29, %v3390_v39  ;;  %v3407_v15 = vrot.slane %v3406_v28, 1  ;;  %v3074_v39 = vpop.xlane.xlu1 %3073 }
 0x3ed   : > { %v3863_v2 = vadd.f32 %v7851_v17, %v7158_v53  ;;  %v3866_v0 = vadd.f32 %v3745_v57, %v7188_v56  ;;  %v3925_v33 = vmax.f32 %v7152_v26, 0.0  ;;  %3196 = vadd.xlane.f32.xlu0 %v3195_v24  ;;  %v3759_v30 = vrot.slane %v7835_v43, 7 }
 0x3ee   : > { %v3926_v14 = vmax.f32 %v3862_v49, 0.0  ;;  %v3928_v63 = vmax.f32 %v3864_v59, 0.0  ;;  %v3943_v44 = vmax.f32 %v3879_v38, 0.0  ;;  %v3408_v53 = vadd.f32 %v3407_v15, %v3406_v28  ;;  %v3101_v59 = vpop.xlane.xlu0 %3100 }
 0x3ef   : > { %v3927_v40 = vmax.f32 %v3863_v2, 0.0  ;;  %v3929_v8 = vmax.f32 %v3865_v54, 0.0  ;;  %v3930_v12 = vmax.f32 %v3866_v0, 0.0  ;;  %v5374_v11 = vpop.eup %5373  ;;  %v3989_v25 = vpack.c.bf16 %v3925_v33, %v3925_v33 }
 0x3f0   : > { %v3990_v22 = vpack.c.bf16 %v3926_v14, %v3926_v14  ;;  %v3992_v51 = vpack.c.bf16 %v3928_v63, %v3928_v63  ;;  %v4007_v56 = vpack.c.bf16 %v3943_v44, %v3943_v44  ;;  %v3005_v26 = vmul.f32 %v5374_v11, %v7182_v13  ;;  %v3083_v11 = vpop.xlane.xlu1 %3082 }
 0x3f1   : > { %v3991_v32 = vpack.c.bf16 %v3927_v40, %v3927_v40  ;;  %v7394_v18 = vadd.f32 %v3759_v30, %v3408_v53  ;;  %v3993_v7 = vpack.c.bf16 %v3929_v8, %v3929_v8  ;;  %v4002_v42 = vpack.c.bf16 %v3938_v55, %v3938_v55  ;;  %v7857_v40 = vld [vmem:[#allocation22_spill] sm:$0xff] }
 0x3f2   : > { %v5376_v62 = vpop.eup %5375  ;;  %v3994_v3 = vpack.c.bf16 %v3930_v12, %v3930_v12  ;;  %v4140_v21 = vunpack.c.l.b16 %v3989_v25  ;;  %v4158_v16 = vunpack.c.l.b16 %v4007_v56  ;;  %v3189_v48 = vsel %vm1792_vm5, %v3005_v26, 0.0  ;;  %v7858_v56 = vld [vmem:[#allocation30_spill] sm:$0xff]  ;;  %v3095_v26 = vpop.xlane.xlu0 %3094 }
 0x3f3   : > { %v4142_v34 = vunpack.c.l.b16 %v3991_v32  ;;  %v3006_v29 = vmul.f32 %v5376_v62, %v7852_v10  ;;  %v4141_v35 = vunpack.c.l.b16 %v3990_v22  ;;  %v4231_v13 = vrot.slane %v4151_v9, 3  ;;  %3190 = vadd.xlane.f32.xlu0 %v3189_v48  ;;  %v7855_v9 = vld [vmem:[#allocation67_spill] sm:$0xff]  ;;  %v7861_v48 = vld [vmem:[#allocation32_spill] sm:$0xff] }
 0x3f4   : > { %v3945_v41 = vmax.f32 %v7365_v23, 0.0  ;;  %v4143_v19 = vunpack.c.l.b16 %v3992_v51  ;;  %v4144_v45 = vunpack.c.l.b16 %v3993_v7  ;;  %v4243_v55 = vrot.slane %v4158_v16, 4 }
 0x3f5   : > { %v4145_v50 = vunpack.c.l.b16 %v3994_v3  ;;  %v7854_v1 = vunpack.c.l.b16 %v7853_v47  ;;  %v3192_v28 = vsel %vm1792_vm5, %v3006_v29, 0.0  ;;  %v4153_v6 = vunpack.c.l.b16 %v4002_v42  ;;  %v7859_v42 = vld [vmem:[#allocation75_spill] sm:$0xff] }
 0x3f6   : > { %v4205_v52 = vrot.slane %v4140_v21, 6  ;;  %v4211_v49 = vrot.slane %v4142_v34, 4  ;;  %v7408_v46 = vsel %vm4212_vm1, %v4243_v55, %v4242_v5  ;;  %v7856_v23 = vunpack.c.l.b16 %v7855_v9  ;;  %v7860_v21 = vld [vmem:[#allocation26_spill] sm:$0xff] }
 0x3f7   : > { %v4202_v57 = vrot.slane %v7854_v1, 7  ;;  %v4208_v17 = vrot.slane %v4141_v35, 5  ;;  %v4214_v2 = vrot.slane %v4143_v19, 3  ;;  %v7413_v54 = vpack.c.bf16 %v3945_v41, %v3945_v41  ;;  %3193 = vadd.xlane.f32.xlu0 %v3192_v28  ;;  %v7862_v35 = vld [vmem:[#allocation28_spill] sm:$0xff] }
 0x3f8   : > { %v4217_v15 = vrot.slane %v4144_v45, 2  ;;  %v4220_v33 = vrot.slane %v4145_v50, 1  ;;  %v4226_v5 = vsel %vm4206_vm15, %v7308_v60, %v7281_v36  ;;  %v3222_v63 = vmul.f32 %v3074_v39, %v7857_v40  ;;  %v7863_v45 = vld [vmem:[#allocation38_spill] sm:$0xff] }
 0x3f9   : > { %v4204_v24 = vsel %vm4203_vm14, %v4202_v57, %v7856_v23  ;;  %v4228_v14 = vsel %vm4209_vm0, %v7316_v61, %v4226_v5  ;;  %v4235_v8 = vrot.slane %v4153_v6, 1  ;;  %v2879_v12 = vrot.slane %v7292_v31, 1  ;;  %v7864_v6 = vld [vmem:[#allocation34_spill] sm:$0xff] }
 0x3fa   : > { %v4207_v38 = vsel %vm4206_vm15, %v4205_v52, %v4204_v24  ;;  %v4230_v53 = vsel %vm4212_vm1, %v7343_v4, %v4228_v14  ;;  %v3391_v60 = vrot.slane %v3222_v63, 4  ;;  %v3757_v22 = vrot.slane %v7835_v43, 5 }
 0x3fb   : > { %v4210_v0 = vsel %vm4209_vm0, %v4208_v17, %v4207_v38  ;;  %v4232_v36 = vsel %vm4215_vm3, %v4231_v13, %v4230_v53  ;;  %v2880_v51 = vadd.f32 %v2879_v12, %v7292_v31  ;;  %v3227_v4 = vmul.f32 %v7367_v27, %v7858_v56 }
 0x3fc   : > { %v4213_v30 = vsel %vm4212_vm1, %v4211_v49, %v4210_v0  ;;  %v4234_v32 = vsel %vm4218_vm4, %v7320_v20, %v4232_v36  ;;  %v3392_v62 = vadd.f32 %v3391_v60, %v3222_v63  ;;  %v3761_v3 = vrot.slane %v7859_v42, 2  ;;  %v3104_v49 = vpop.xlane.xlu0 %3103 }
 0x3fd   : > { %v4216_v44 = vsel %vm4215_vm3, %v4214_v2, %v4213_v30  ;;  %v4236_v7 = vsel %vm4221_vm2, %v4235_v8, %v4234_v32  ;;  %v3225_v34 = vmul.f32 %v3083_v11, %v7860_v21  ;;  %5377 = vrcp.f32 %v2880_v51  ;;  %v7865_v30 = vld [vmem:[#allocation40_spill] sm:$0xff] }
 0x3fe   : > { %v4219_v25 = vsel %vm4218_vm4, %v4217_v15, %v4216_v44  ;;  %v3421_v43 = vrot.slane %v3227_v4, 4  ;;  %v3228_v10 = vmul.f32 %v7390_v58, %v7861_v48  ;;  %v3393_v20 = vrot.slane %v3392_v62, 2  ;;  %v7449_v15 = vpop.xlane.xlu1 %3112 }
 0x3ff   : > { %v4222_v61 = vsel %vm4221_vm2, %v4220_v33, %v4219_v25  ;;  %v3409_v29 = vrot.slane %v3225_v34, 4  ;;  %v3762_v31 = vrot.slane %v7859_v42, 3  ;;  %v3226_v27 = vmul.f32 %v3086_v37, %v7862_v35 }
 0x400   : > { %v4321_v16 = vpack.c.b16 %v4236_v7, %v4222_v61  ;;  %v3422_v13 = vadd.f32 %v3421_v43, %v3227_v4  ;;  %v3427_v41 = vrot.slane %v3228_v10, 4  ;;  %v3760_v19 = vrot.slane %v7859_v42, 1  ;;  %v7866_v4 = vld [vmem:[#allocation8_spill] sm:$0xff] }
 0x401   : > { %v3231_v55 = vmul.f32 %v3101_v59, %v7863_v45  ;;  %v3394_v50 = vadd.f32 %v3393_v20, %v3392_v62  ;;  %v3410_v47 = vadd.f32 %v3409_v29, %v3225_v34  ;;  %v3415_v1 = vrot.slane %v3226_v27, 4 }
 0x402   : > { %4905 = vmatprep.mubr.bf16.mxu1 %v4321_v16  ;;  %v3765_v57 = vrot.slane %v7859_v42, 6  ;;  %v3423_v39 = vrot.slane %v3422_v13, 2  ;;  %v3428_v58 = vadd.f32 %v3427_v41, %v3228_v10  ;;  %v3229_v52 = vmul.f32 %v3095_v26, %v7864_v6  ;;  %v3107_v48 = vpop.xlane.xlu1 %3106 }
 0x403   : > { %v3445_v28 = vrot.slane %v3231_v55, 4  ;;  %v3395_v9 = vrot.slane %v3394_v50, 1  ;;  %v3411_v37 = vrot.slane %v3410_v47, 2  ;;  %v3416_v23 = vadd.f32 %v3415_v1, %v3226_v27 }
 0x404   : > { %v3763_v24 = vrot.slane %v7859_v42, 4  ;;  %v3424_v17 = vadd.f32 %v3423_v39, %v3422_v13  ;;  %v3429_v2 = vrot.slane %v3428_v58, 2  ;;  %v3433_v59 = vrot.slane %v3229_v52, 4 }
 0x405   : > { %v3446_v38 = vadd.f32 %v3445_v28, %v3231_v55  ;;  %v3396_v0 = vadd.f32 %v3395_v9, %v3394_v50  ;;  %v3412_v33 = vadd.f32 %v3411_v37, %v3410_v47  ;;  %v3417_v5 = vrot.slane %v3416_v23, 2 }
 0x406   : > { %v3232_v14 = vmul.f32 %v3104_v49, %v7865_v30  ;;  %v3425_v40 = vrot.slane %v3424_v17, 1  ;;  %v3430_v63 = vadd.f32 %v3429_v2, %v3428_v58  ;;  %v3434_v53 = vadd.f32 %v3433_v59, %v3229_v52 }
 0x407   : > { %v3447_v44 = vrot.slane %v3446_v38, 2  ;;  %v3880_v8 = vadd.f32 %v3757_v22, %v3396_v0  ;;  %v3413_v12 = vrot.slane %v3412_v33, 1  ;;  %v3418_v11 = vadd.f32 %v3417_v5, %v3416_v23  ;;  %v5378_v36 = vpop.eup %5377  ;;  %v3098_v23 = vpop.xlane.xlu0 %3097 }
 0x408   : > { %v3451_v25 = vrot.slane %v3232_v14, 4  ;;  %v3426_v60 = vadd.f32 %v3425_v40, %v3424_v17  ;;  %v3431_v61 = vrot.slane %v3430_v63, 1  ;;  %v3435_v51 = vrot.slane %v3434_v53, 2  ;;  %v3110_v17 = vpop.xlane.xlu1 %3109 }
 0x409   : > { %v3448_v32 = vadd.f32 %v3447_v44, %v3446_v38  ;;  %v3944_v56 = vmax.f32 %v3880_v8, 0.0  ;;  %v3008_v26 = vmul.f32 %v5378_v36, %v7866_v4  ;;  %v3414_v7 = vadd.f32 %v3413_v12, %v3412_v33 }
 0x40a   : > { %v3419_v62 = vrot.slane %v3418_v11, 1  ;;  %v3885_v21 = vadd.f32 %v3761_v3, %v3426_v60  ;;  %v3432_v34 = vadd.f32 %v3431_v61, %v3430_v63  ;;  %v3436_v43 = vadd.f32 %v3435_v51, %v3434_v53 }
 0x40b   : > { %v3449_v16 = vrot.slane %v3448_v32, 1  ;;  %v4008_v10 = vpack.c.bf16 %v3944_v56, %v3944_v56  ;;  %v3198_v22 = vsel %vm1792_vm5, %v3008_v26, 0.0  ;;  %v3883_v20 = vadd.f32 %v7859_v42, %v3414_v7  ;;  %v3116_v8 = vpop.xlane.xlu0 %3115 }
 0x40c   : > { %v3420_v29 = vadd.f32 %v3419_v62, %v3418_v11  ;;  %3199 = vadd.xlane.f32.xlu0 %v3198_v22  ;;  %v3949_v35 = vmax.f32 %v3885_v21, 0.0  ;;  %v3886_v27 = vadd.f32 %v3762_v31, %v3432_v34  ;;  %v3437_v41 = vrot.slane %v3436_v43, 1  ;;  %v3125_v12 = vpop.xlane.xlu1 %3124  ;;  %v7869_v62 = vld [vmem:[#allocation46_spill] sm:$0xff] }
 0x40d   : > { %v3450_v13 = vadd.f32 %v3449_v16, %v3448_v32  ;;  %v4159_v45 = vunpack.c.l.b16 %v4008_v10  ;;  %v3947_v55 = vmax.f32 %v3883_v20, 0.0  ;;  %v3452_v47 = vadd.f32 %v3451_v25, %v3232_v14  ;;  %v7867_v14 = vld [vmem:[#allocation36_spill] sm:$0xff] }
 0x40e   : > { %v3884_v50 = vadd.f32 %v3760_v19, %v3420_v29  ;;  %v4013_v3 = vpack.c.bf16 %v3949_v35, %v3949_v35  ;;  %v3950_v1 = vmax.f32 %v3886_v27, 0.0  ;;  %v3438_v58 = vadd.f32 %v3437_v41, %v3436_v43  ;;  %v7870_v43 = vld [vmem:[#allocation42_spill] sm:$0xff] }
 0x40f   : > { %v3889_v39 = vadd.f32 %v3765_v57, %v3450_v13  ;;  %v3946_v28 = vmax.f32 %v7394_v18, 0.0  ;;  %v4245_v6 = vrot.slane %v4159_v45, 3  ;;  %v3453_v49 = vrot.slane %v3452_v47, 2  ;;  %v7871_v45 = vld [vmem:[#allocation44_spill] sm:$0xff] }
 0x410   : > { %v3948_v52 = vmax.f32 %v3884_v50, 0.0  ;;  %v4014_v9 = vpack.c.bf16 %v3950_v1, %v3950_v1  ;;  %v3887_v37 = vadd.f32 %v3763_v24, %v3438_v58  ;;  %v4011_v2 = vpack.c.bf16 %v3947_v55, %v3947_v55  ;;  %v3119_v50 = vpop.xlane.xlu1 %3118 }
 0x411   : > { %v7458_v31 = vsel %vm4215_vm3, %v4245_v6, %v7408_v46  ;;  %v3454_v38 = vadd.f32 %v3453_v49, %v3452_v47  ;;  %v4160_v59 = vunpack.c.l.b16 %v7413_v54  ;;  %v4164_v57 = vunpack.c.l.b16 %v4013_v3  ;;  %v7868_v46 = vld [vmem:[#allocation45_spill] sm:$0xff] }
 0x412   : > { %v4012_v19 = vpack.c.bf16 %v3948_v52, %v3948_v52  ;;  %v4165_v0 = vunpack.c.l.b16 %v4014_v9  ;;  %v3951_v33 = vmax.f32 %v3887_v37, 0.0  ;;  %v7461_v18 = vpack.c.bf16 %v3946_v28, %v3946_v28  ;;  %v7872_v6 = vld [vmem:[#allocation49_spill] sm:$0xff] }
 0x413   : > { %v3455_v30 = vrot.slane %v3454_v38, 1  ;;  %v3230_v24 = vmul.f32 %v3098_v23, %v7867_v14  ;;  %v3953_v40 = vmax.f32 %v3889_v39, 0.0  ;;  %v3766_v44 = vrot.slane %v7859_v42, 7  ;;  %v7873_v37 = vld [vmem:[#allocation77_spill] sm:$0xff] }
 0x414   : > { %v4163_v5 = vunpack.c.l.b16 %v4012_v19  ;;  %v4015_v63 = vpack.c.bf16 %v3951_v33, %v3951_v33  ;;  %v3235_v53 = vmul.f32 %v7449_v15, %v7868_v46  ;;  %v4162_v11 = vunpack.c.l.b16 %v4011_v2 }
 0x415   : > { %v3456_v36 = vadd.f32 %v3455_v30, %v3454_v38  ;;  %v3439_v60 = vrot.slane %v3230_v24, 4  ;;  %v4253_v61 = vrot.slane %v4164_v57, 6  ;;  %v4255_v32 = vrot.slane %v4165_v0, 5 }
 0x416   : > { %v4251_v25 = vrot.slane %v4163_v5, 7  ;;  %v4166_v51 = vunpack.c.l.b16 %v4015_v63  ;;  %v3469_v56 = vrot.slane %v3235_v53, 4  ;;  %v3236_v21 = vmul.f32 %v3116_v8, %v7869_v62  ;;  %v7874_v5 = vld [vmem:[#allocation47_spill] sm:$0xff] }
 0x417   : > { %v3890_v26 = vadd.f32 %v3766_v44, %v3456_v36  ;;  %v3440_v7 = vadd.f32 %v3439_v60, %v3230_v24  ;;  %v3233_v10 = vmul.f32 %v3107_v48, %v7870_v43  ;;  %v4161_v22 = vunpack.c.l.b16 %v7461_v18  ;;  %v3128_v44 = vpop.xlane.xlu1 %3127 }
 0x418   : > { %v4252_v4 = vsel %vm4203_vm14, %v4251_v25, %v4162_v11  ;;  %v4257_v16 = vrot.slane %v4166_v51, 4  ;;  %v3470_v15 = vadd.f32 %v3469_v56, %v3235_v53  ;;  %v3475_v35 = vrot.slane %v3236_v21, 4  ;;  %v7875_v56 = vld [vmem:[#allocation50_spill] sm:$0xff] }
 0x419   : > { %v4254_v34 = vsel %vm4206_vm15, %v4253_v61, %v4252_v4  ;;  %v3441_v29 = vrot.slane %v3440_v7, 2  ;;  %v3457_v41 = vrot.slane %v3233_v10, 4  ;;  %v3234_v55 = vmul.f32 %v3110_v17, %v7871_v45 }
 0x41a   : > { %v4256_v20 = vsel %vm4209_vm0, %v4255_v32, %v4254_v34  ;;  %v3471_v13 = vrot.slane %v3470_v15, 2  ;;  %v7477_v47 = vpack.c.bf16 %v3953_v40, %v3953_v40  ;;  %v3764_v3 = vrot.slane %v7859_v42, 5 }
 0x41b   : > { %v7474_v27 = vsel %vm4212_vm1, %v4257_v16, %v4256_v20  ;;  %v3442_v1 = vadd.f32 %v3441_v29, %v3440_v7  ;;  %v3476_v48 = vadd.f32 %v3475_v35, %v3236_v21  ;;  %v3458_v58 = vadd.f32 %v3457_v41, %v3233_v10 }
 0x41c   : > { %v3472_v39 = vadd.f32 %v3471_v13, %v3470_v15  ;;  %v3463_v28 = vrot.slane %v3234_v55, 4  ;;  %v3239_v52 = vmul.f32 %v3125_v12, %v7872_v6  ;;  %v3954_v49 = vmax.f32 %v3890_v26, 0.0  ;;  %v3122_v6 = vpop.xlane.xlu1 %3121 }
 0x41d   : > { %v3443_v9 = vrot.slane %v3442_v1, 1  ;;  %v3768_v23 = vrot.slane %v7873_v37, 2  ;;  %v3477_v2 = vrot.slane %v3476_v48, 2  ;;  %v3459_v38 = vrot.slane %v3458_v58, 2 }
 0x41e   : > { %v3473_v19 = vrot.slane %v3472_v39, 1  ;;  %v3464_v17 = vadd.f32 %v3463_v28, %v3234_v55  ;;  %v3493_v57 = vrot.slane %v3239_v52, 4  ;;  %v3769_v33 = vrot.slane %v7873_v37, 3 }
 0x41f   : > { %v3444_v0 = vadd.f32 %v3443_v9, %v3442_v1  ;;  %v3478_v42 = vadd.f32 %v3477_v2, %v3476_v48  ;;  %v3237_v30 = vmul.f32 %v3119_v50, %v7874_v5  ;;  %v3460_v24 = vadd.f32 %v3459_v38, %v3458_v58 }
 0x420   : > { %v3474_v14 = vadd.f32 %v3473_v19, %v3472_v39  ;;  %v3465_v40 = vrot.slane %v3464_v17, 2  ;;  %v3494_v63 = vadd.f32 %v3493_v57, %v3239_v52  ;;  %v4018_v46 = vpack.c.bf16 %v3954_v49, %v3954_v49 }
 0x421   : > { %v3888_v53 = vadd.f32 %v3764_v3, %v3444_v0  ;;  %v3479_v8 = vrot.slane %v3478_v42, 1  ;;  %v3481_v12 = vrot.slane %v3237_v30, 4  ;;  %v3461_v25 = vrot.slane %v3460_v24, 1  ;;  %v3137_v52 = vpop.xlane.xlu0 %3136 }
 0x422   : > { %v3893_v11 = vadd.f32 %v3768_v23, %v3474_v14  ;;  %v3466_v36 = vadd.f32 %v3465_v40, %v3464_v17  ;;  %v3495_v60 = vrot.slane %v3494_v63, 2  ;;  %v3240_v4 = vmul.f32 %v3128_v44, %v7875_v56  ;;  %v7876_v44 = vld [vmem:[#allocation48_spill] sm:$0xff]  ;;  %v7877_v56 = vld [vmem:[#allocation53_spill] sm:$0xff] }
 0x423   : > { %v3952_v61 = vmax.f32 %v3888_v53, 0.0  ;;  %v3480_v32 = vadd.f32 %v3479_v8, %v3478_v42  ;;  %v3482_v51 = vadd.f32 %v3481_v12, %v3237_v30  ;;  %v4168_v26 = vunpack.c.l.b16 %v7477_v47  ;;  %v3131_v53 = vpop.xlane.xlu1 %3130 }
 0x424   : > { %v3462_v7 = vadd.f32 %v3461_v25, %v3460_v24  ;;  %v3467_v62 = vrot.slane %v3466_v36, 1  ;;  %v3496_v21 = vadd.f32 %v3495_v60, %v3494_v63  ;;  %v3499_v43 = vrot.slane %v3240_v4, 4 }
 0x425   : > { %v4016_v34 = vpack.c.bf16 %v3952_v61, %v3952_v61  ;;  %v3894_v16 = vadd.f32 %v3769_v33, %v3480_v32  ;;  %v3483_v15 = vrot.slane %v3482_v51, 2  ;;  %v3767_v29 = vrot.slane %v7873_v37, 1 }
 0x426   : > { %v3891_v10 = vadd.f32 %v7873_v37, %v3462_v7  ;;  %v3468_v20 = vadd.f32 %v3467_v62, %v3466_v36  ;;  %v3497_v35 = vrot.slane %v3496_v21, 1  ;;  %v4169_v13 = vunpack.c.l.b16 %v4018_v46 }
 0x427   : > { %v4167_v41 = vunpack.c.l.b16 %v4016_v34  ;;  %v3484_v45 = vadd.f32 %v3483_v15, %v3482_v51  ;;  %v3500_v55 = vadd.f32 %v3499_v43, %v3240_v4  ;;  %v3772_v1 = vrot.slane %v7873_v37, 6 }
 0x428   : > { %v3955_v50 = vmax.f32 %v3891_v10, 0.0  ;;  %v3892_v3 = vadd.f32 %v3767_v29, %v3468_v20  ;;  %v3498_v47 = vadd.f32 %v3497_v35, %v3496_v21  ;;  %v4247_v48 = vrot.slane %v4160_v59, 2 }
 0x429   : > { %v4259_v39 = vrot.slane %v4167_v41, 3  ;;  %v3485_v58 = vrot.slane %v3484_v45, 1  ;;  %v3501_v28 = vrot.slane %v3500_v55, 2  ;;  %v4249_v49 = vrot.slane %v4161_v22, 1  ;;  %v3140_v8 = vpop.xlane.xlu0 %3139 }
 0x42a   : > { %v4261_v9 = vrot.slane %v4168_v26, 2  ;;  %v3956_v23 = vmax.f32 %v3892_v3, 0.0  ;;  %v3897_v2 = vadd.f32 %v3772_v1, %v3498_v47  ;;  %v3770_v17 = vrot.slane %v7873_v37, 4  ;;  %v7878_v26 = vld [vmem:[#allocation51_spill] sm:$0xff] }
 0x42b   : > { %v4260_v19 = vsel %vm4215_vm3, %v4259_v39, %v7474_v27  ;;  %v3486_v38 = vadd.f32 %v3485_v58, %v3484_v45  ;;  %v3502_v57 = vadd.f32 %v3501_v28, %v3500_v55  ;;  %v4263_v54 = vrot.slane %v4169_v13, 1  ;;  %v7880_v55 = vld [vmem:[#allocation52_spill] sm:$0xff] }
 0x42c   : > { %v3957_v59 = vmax.f32 %v3893_v11, 0.0  ;;  %v4019_v0 = vpack.c.bf16 %v3955_v50, %v3955_v50  ;;  %v4020_v33 = vpack.c.bf16 %v3956_v23, %v3956_v23  ;;  %v3958_v42 = vmax.f32 %v3894_v16, 0.0  ;;  %v7879_v16 = vld [vmem:[#allocation54_spill] sm:$0xff] }
 0x42d   : > { %v3895_v5 = vadd.f32 %v3770_v17, %v3486_v38  ;;  %v3503_v30 = vrot.slane %v3502_v57, 1  ;;  %v4248_v18 = vsel %vm4218_vm4, %v4247_v48, %v7458_v31  ;;  %v4262_v24 = vsel %vm4218_vm4, %v4261_v9, %v4260_v19 }
 0x42e   : > { %v4171_v22 = vunpack.c.l.b16 %v4020_v33  ;;  %v4250_v14 = vsel %vm4221_vm2, %v4249_v49, %v4248_v18  ;;  %v3773_v40 = vrot.slane %v7873_v37, 7  ;;  %v4264_v63 = vsel %vm4221_vm2, %v4263_v54, %v4262_v24  ;;  %v7881_v18 = vld [vmem:[#allocation79_spill] sm:$0xff] }
 0x42f   : > { %v3504_v27 = vadd.f32 %v3503_v30, %v3502_v57  ;;  %v3238_v46 = vmul.f32 %v3122_v6, %v7876_v44  ;;  %v4021_v12 = vpack.c.bf16 %v3957_v59, %v3957_v59  ;;  %v4170_v11 = vunpack.c.l.b16 %v4019_v0 }
 0x430   : > { %v4265_v25 = vrot.slane %v4171_v22, 7  ;;  %v4322_v36 = vpack.c.b16 %v4264_v63, %v4250_v14  ;;  %v4022_v60 = vpack.c.bf16 %v3958_v42, %v3958_v42  ;;  %v3959_v31 = vmax.f32 %v3895_v5, 0.0 }
 0x431   : > { %v3898_v61 = vadd.f32 %v3773_v40, %v3504_v27  ;;  %v3487_v32 = vrot.slane %v3238_v46, 4  ;;  %v3243_v4 = vmul.f32 %v3137_v52, %v7877_v56  ;;  %v3241_v7 = vmul.f32 %v3131_v53, %v7878_v26 }
 0x432   : > { %v4266_v51 = vsel %vm4203_vm14, %v4265_v25, %v4170_v11  ;;  %4906 = vmatmul.mubr.bf16.vlgmr.msra.gmra.mrb[92].mxu1 %v4322_v36  ;;  %v3244_v15 = vmul.f32 %v3140_v8, %v7879_v16  ;;  %v4172_v43 = vunpack.c.l.b16 %v4021_v12  ;;  %v4173_v10 = vunpack.c.l.b16 %v4022_v60  ;;  %v7882_v8 = vld [vmem:[#allocation57_spill] sm:$0xff] }
 0x433   : > { %v3488_v62 = vadd.f32 %v3487_v32, %v3238_v46  ;;  %v3517_v21 = vrot.slane %v3243_v4, 4  ;;  %v3505_v34 = vrot.slane %v3241_v7, 4  ;;  %v4023_v20 = vpack.c.bf16 %v3959_v31, %v3959_v31 }
 0x434   : > { %v3523_v45 = vrot.slane %v3244_v15, 4  ;;  %v3961_v3 = vmax.f32 %v3897_v2, 0.0  ;;  %v4267_v28 = vrot.slane %v4172_v43, 6  ;;  %v4269_v6 = vrot.slane %v4173_v10, 5 }
 0x435   : > { %v3489_v29 = vrot.slane %v3488_v62, 2  ;;  %v3518_v13 = vadd.f32 %v3517_v21, %v3243_v4  ;;  %v3506_v41 = vadd.f32 %v3505_v34, %v3241_v7  ;;  %v4174_v52 = vunpack.c.l.b16 %v4023_v20 }
 0x436   : > { %v3134_v35 = vpop.xlane.xlu0 %3133  ;;  %v3524_v39 = vadd.f32 %v3523_v45, %v3244_v15  ;;  %v4025_v17 = vpack.c.bf16 %v3961_v3, %v3961_v3  ;;  %v3962_v57 = vmax.f32 %v3898_v61, 0.0  ;;  %v3771_v59 = vrot.slane %v7873_v37, 5 }
 0x437   : > { %v3242_v50 = vmul.f32 %v3134_v35, %v7880_v55  ;;  %v3490_v47 = vadd.f32 %v3489_v29, %v3488_v62  ;;  %v3519_v1 = vrot.slane %v3518_v13, 2  ;;  %v3507_v48 = vrot.slane %v3506_v41, 2 }
 0x438   : > { %v3525_v19 = vrot.slane %v3524_v39, 2  ;;  %v4271_v5 = vrot.slane %v4174_v52, 4  ;;  %v3775_v22 = vrot.slane %v7881_v18, 2  ;;  %v3776_v14 = vrot.slane %v7881_v18, 3 }
 0x439   : > { %v3511_v58 = vrot.slane %v3242_v50, 4  ;;  %v3491_v49 = vrot.slane %v3490_v47, 1  ;;  %v3520_v9 = vadd.f32 %v3519_v1, %v3518_v13  ;;  %v3508_v23 = vadd.f32 %v3507_v48, %v3506_v41 }
 0x43a   : > { %v3526_v33 = vadd.f32 %v3525_v19, %v3524_v39  ;;  %v4026_v46 = vpack.c.bf16 %v3962_v57, %v3962_v57  ;;  %v4268_v37 = vsel %vm4206_vm15, %v4267_v28, %v4266_v51  ;;  %v4176_v31 = vunpack.c.l.b16 %v4025_v17  ;;  %v7883_v17 = vld [vmem:[#allocation55_spill] sm:$0xff] }
 0x43b   : > { %v3512_v38 = vadd.f32 %v3511_v58, %v3242_v50  ;;  %v3492_v54 = vadd.f32 %v3491_v49, %v3490_v47  ;;  %v3521_v0 = vrot.slane %v3520_v9, 1  ;;  %v3509_v2 = vrot.slane %v3508_v23, 1 }
 0x43c   : > { %v3527_v40 = vrot.slane %v3526_v33, 1  ;;  %v4270_v56 = vsel %vm4209_vm0, %v4269_v6, %v4268_v37  ;;  %v3774_v7 = vrot.slane %v7881_v18, 1  ;;  %v4177_v16 = vunpack.c.l.b16 %v4026_v46  ;;  %v7885_v46 = vld [vmem:[#allocation61_spill] sm:$0xff]  ;;  %v7886_v37 = vld [vmem:[#allocation56_spill] sm:$0xff] }
 0x43d   : > { %v3513_v42 = vrot.slane %v3512_v38, 2  ;;  %v3896_v30 = vadd.f32 %v3771_v59, %v3492_v54  ;;  %v3522_v24 = vadd.f32 %v3521_v0, %v3520_v9  ;;  %v3510_v27 = vadd.f32 %v3509_v2, %v3508_v23 }
 0x43e   : > { %v3528_v36 = vadd.f32 %v3527_v40, %v3526_v33  ;;  %v4272_v51 = vsel %vm4212_vm1, %v4271_v5, %v4270_v56  ;;  %v4275_v13 = vrot.slane %v4176_v31, 2  ;;  %v4277_v3 = vrot.slane %v4177_v16, 1  ;;  %v7888_v16 = vld [vmem:[#allocation62_spill] sm:$0xff] }
 0x43f   : > { %v3514_v63 = vadd.f32 %v3513_v42, %v3512_v38  ;;  %v3960_v53 = vmax.f32 %v3896_v30, 0.0  ;;  %v3901_v11 = vadd.f32 %v3775_v22, %v3522_v24  ;;  %v3899_v25 = vadd.f32 %v7881_v18, %v3510_v27  ;;  %v7884_v22 = vld [vmem:[#allocation58_spill] sm:$0xff] }
 0x440   : > { %v3149_v44 = vpop.xlane.xlu0 %3148  ;;  %v3902_v26 = vadd.f32 %v3776_v14, %v3528_v36  ;;  %v3779_v49 = vrot.slane %v7881_v18, 6 }
 0x441   : > { %v3247_v12 = vmul.f32 %v3149_v44, %v7882_v8  ;;  %v3515_v60 = vrot.slane %v3514_v63, 1  ;;  %v4024_v61 = vpack.c.bf16 %v3960_v53, %v3960_v53  ;;  %v3965_v4 = vmax.f32 %v3901_v11, 0.0 }
 0x442   : > { %v3963_v15 = vmax.f32 %v3899_v25, 0.0  ;;  %v3966_v43 = vmax.f32 %v3902_v26, 0.0  ;;  %v7887_v26 = vld [vmem:[#allocation59_spill] sm:$0xff] }
 0x443   : > { %v3541_v32 = vrot.slane %v3247_v12, 4  ;;  %v3516_v62 = vadd.f32 %v3515_v60, %v3514_v63  ;;  %v4175_v21 = vunpack.c.l.b16 %v4024_v61  ;;  %v4029_v29 = vpack.c.bf16 %v3965_v4, %v3965_v4 }
 0x444   : > { %v4030_v41 = vpack.c.bf16 %v3966_v43, %v3966_v43  ;;  %v4027_v47 = vpack.c.bf16 %v3963_v15, %v3963_v15  ;;  %v3780_v15 = vrot.slane %v7881_v18, 7  ;;  %v3778_v43 = vrot.slane %v7881_v18, 5 }
 0x445   : > { %v3542_v34 = vadd.f32 %v3541_v32, %v3247_v12  ;;  %v3900_v10 = vadd.f32 %v3774_v7, %v3516_v62  ;;  %v4273_v20 = vrot.slane %v4175_v21, 3  ;;  %v4180_v39 = vunpack.c.l.b16 %v4029_v29 }
 0x446   : > { %v4181_v6 = vunpack.c.l.b16 %v4030_v41  ;;  %v4178_v19 = vunpack.c.l.b16 %v4027_v47  ;;  %v3777_v32 = vrot.slane %v7881_v18, 4 }
 0x447   : > { %v3543_v35 = vrot.slane %v3542_v34, 2  ;;  %v3964_v45 = vmax.f32 %v3900_v10, 0.0  ;;  %v4274_v50 = vsel %vm4215_vm3, %v4273_v20, %v4272_v51  ;;  %v4281_v54 = vrot.slane %v4180_v39, 6 }
 0x448   : > { %v4276_v48 = vsel %vm4218_vm4, %v4275_v13, %v4274_v50  ;;  %v4283_v0 = vrot.slane %v4181_v6, 5  ;;  %v7889_v50 = vld [vmem:[#allocation76_spill] sm:$0xff] }
 0x449   : > { %v3544_v55 = vadd.f32 %v3543_v35, %v3542_v34  ;;  %v4028_v1 = vpack.c.bf16 %v3964_v45, %v3964_v45  ;;  %v7520_v28 = vsel %vm4221_vm2, %v4277_v3, %v4276_v48  ;;  %v3782_v3 = vrot.slane %v7889_v50, 2 }
 0x44b   : > { %v3545_v58 = vrot.slane %v3544_v55, 1  ;;  %v4179_v52 = vunpack.c.l.b16 %v4028_v1  ;;  %v3143_v23 = vpop.xlane.xlu0 %3142  ;;  %v7890_v1 = vld [vmem:[#allocation60_spill] sm:$0xff] }
 0x44c   : > { %v3245_v57 = vmul.f32 %v3143_v23, %v7883_v17 }
 0x44d   : > { %v3546_v9 = vadd.f32 %v3545_v58, %v3544_v55  ;;  %v4279_v38 = vrot.slane %v4179_v52, 7 }
 0x44e   : > { %v3529_v33 = vrot.slane %v3245_v57, 4 }
 0x44f   : > { %v7524_v59 = vadd.f32 %v3779_v49, %v3546_v9  ;;  %v4280_v2 = vsel %vm4203_vm14, %v4279_v38, %v4178_v19  ;;  %v3152_v42 = vpop.xlane.xlu0 %3151 }
 0x450   : > { %v4282_v5 = vsel %vm4206_vm15, %v4281_v54, %v4280_v2  ;;  %v3530_v30 = vadd.f32 %v3529_v33, %v3245_v57  ;;  %v3248_v14 = vmul.f32 %v3152_v42, %v7884_v22  ;;  %v7891_v42 = vld [vmem:[#allocation25_spill] sm:$0xff] }
 0x451   : > { %v7530_v24 = vsel %vm4209_vm0, %v4283_v0, %v4282_v5  ;;  %v3969_v49 = vmax.f32 %v7524_v59, 0.0 }
 0x452   : > { %v3531_v27 = vrot.slane %v3530_v30, 2  ;;  %v3547_v40 = vrot.slane %v3248_v14, 4 }
 0x453   : > { %v3161_v63 = vpop.xlane.xlu1 %3160  ;;  %v3146_v44 = vpop.xlane.xlu0 %3145 }
 0x454   : > { %v3251_v53 = vmul.f32 %v3161_v63, %v7885_v46  ;;  %v3532_v8 = vadd.f32 %v3531_v27, %v3530_v30  ;;  %v3548_v12 = vadd.f32 %v3547_v40, %v3248_v14  ;;  %v3246_v11 = vmul.f32 %v3146_v44, %v7886_v37 }
 0x455   : > { %v4033_v37 = vpack.c.bf16 %v3969_v49, %v3969_v49 }
 0x456   : > { %v3565_v25 = vrot.slane %v3251_v53, 4  ;;  %v3533_v36 = vrot.slane %v3532_v8, 1  ;;  %v3549_v60 = vrot.slane %v3548_v12, 2  ;;  %v3535_v31 = vrot.slane %v3246_v11, 4 }
 0x457   : > { %v3155_v61 = vpop.xlane.xlu1 %3154  ;;  %v3164_v4 = vpop.xlane.xlu0 %3163 }
 0x458   : > { %v3566_v56 = vadd.f32 %v3565_v25, %v3251_v53  ;;  %v3249_v7 = vmul.f32 %v3155_v61, %v7887_v26  ;;  %v3534_v62 = vadd.f32 %v3533_v36, %v3532_v8  ;;  %v3550_v21 = vadd.f32 %v3549_v60, %v3548_v12 }
 0x459   : > { %v3536_v34 = vadd.f32 %v3535_v31, %v3246_v11  ;;  %v3252_v51 = vmul.f32 %v3164_v4, %v7888_v16  ;;  %v3783_v8 = vrot.slane %v7889_v50, 3 }
 0x45a   : > { %v3567_v10 = vrot.slane %v3566_v56, 2  ;;  %v3553_v20 = vrot.slane %v3249_v7, 4  ;;  %v3903_v29 = vadd.f32 %v3777_v32, %v3534_v62  ;;  %v3551_v35 = vrot.slane %v3550_v21, 1 }
 0x45b   : > { %v3537_v13 = vrot.slane %v3536_v34, 2  ;;  %v3571_v41 = vrot.slane %v3252_v51, 4  ;;  %v3158_v45 = vpop.xlane.xlu1 %3157 }
 0x45c   : > { %v3568_v55 = vadd.f32 %v3567_v10, %v3566_v56  ;;  %v3554_v47 = vadd.f32 %v3553_v20, %v3249_v7  ;;  %v3250_v48 = vmul.f32 %v3158_v45, %v7890_v1  ;;  %v3967_v39 = vmax.f32 %v3903_v29, 0.0 }
 0x45d   : > { %v3552_v58 = vadd.f32 %v3551_v35, %v3550_v21  ;;  %v3538_v6 = vadd.f32 %v3537_v13, %v3536_v34  ;;  %v3572_v52 = vadd.f32 %v3571_v41, %v3252_v51  ;;  %v4184_v34 = vunpack.c.l.b16 %v4033_v37  ;;  %v7895_v37 = vld [vmem:[#allocation78_spill] sm:$0xff] }
 0x45e   : > { %v3569_v18 = vrot.slane %v3568_v55, 1  ;;  %v3555_v9 = vrot.slane %v3554_v47, 2  ;;  %v3559_v23 = vrot.slane %v3250_v48, 4  ;;  %v4031_v19 = vpack.c.bf16 %v3967_v39, %v3967_v39 }
 0x45f   : > { %v3906_v38 = vadd.f32 %v3780_v15, %v3552_v58  ;;  %v3539_v17 = vrot.slane %v3538_v6, 1  ;;  %v3573_v57 = vrot.slane %v3572_v52, 2  ;;  %v3173_v54 = vpop.xlane.xlu1 %3172  ;;  %v3781_v51 = vrot.slane %v7889_v50, 1 }
 0x460   : > { %v3570_v0 = vadd.f32 %v3569_v18, %v3568_v55  ;;  %v3556_v2 = vadd.f32 %v3555_v9, %v3554_v47  ;;  %v3560_v33 = vadd.f32 %v3559_v23, %v3250_v48  ;;  %v3255_v5 = vmul.f32 %v3173_v54, %v7891_v42 }
 0x461   : > { %v4182_v30 = vunpack.c.l.b16 %v4031_v19  ;;  %v3970_v22 = vmax.f32 %v3906_v38, 0.0  ;;  %v3540_v14 = vadd.f32 %v3539_v17, %v3538_v6  ;;  %v3574_v27 = vadd.f32 %v3573_v57, %v3572_v52  ;;  %v7893_v38 = vld [vmem:[#allocation33_spill] sm:$0xff] }
 0x462   : > { %v3909_v40 = vadd.f32 %v3782_v3, %v3570_v0  ;;  %v3557_v63 = vrot.slane %v3556_v2, 1  ;;  %v3561_v59 = vrot.slane %v3560_v33, 2  ;;  %v3589_v44 = vrot.slane %v3255_v5, 4  ;;  %v7892_v3 = vld [vmem:[#allocation63_spill] sm:$0xff] }
 0x463   : > { %v4285_v46 = vrot.slane %v4182_v30, 4  ;;  %v3904_v53 = vadd.f32 %v3778_v43, %v3540_v14  ;;  %v3575_v12 = vrot.slane %v3574_v27, 1  ;;  %v4034_v60 = vpack.c.bf16 %v3970_v22, %v3970_v22 }
 0x464   : > { %v3558_v11 = vadd.f32 %v3557_v63, %v3556_v2  ;;  %v3562_v25 = vadd.f32 %v3561_v59, %v3560_v33  ;;  %v3590_v36 = vadd.f32 %v3589_v44, %v3255_v5  ;;  %v3973_v62 = vmax.f32 %v3909_v40, 0.0  ;;  %v7894_v33 = vld [vmem:[#allocation64_spill] sm:$0xff] }
 0x465   : > { %v3968_v31 = vmax.f32 %v3904_v53, 0.0  ;;  %v3576_v61 = vadd.f32 %v3575_v12, %v3574_v27  ;;  %v4286_v32 = vsel %vm4212_vm1, %v4285_v46, %v7530_v24  ;;  %v4185_v29 = vunpack.c.l.b16 %v4034_v60 }
 0x466   : > { %v3907_v56 = vadd.f32 %v7889_v50, %v3558_v11  ;;  %v3563_v4 = vrot.slane %v3562_v25, 1  ;;  %v3591_v26 = vrot.slane %v3590_v36, 2  ;;  %v4037_v45 = vpack.c.bf16 %v3973_v62, %v3973_v62 }
 0x467   : > { %v4032_v7 = vpack.c.bf16 %v3968_v31, %v3968_v31  ;;  %v3910_v21 = vadd.f32 %v3783_v8, %v3576_v61  ;;  %v3786_v55 = vrot.slane %v7889_v50, 6  ;;  %v4289_v1 = vrot.slane %v4184_v34, 2 }
 0x468   : > { %v3564_v16 = vadd.f32 %v3563_v4, %v3562_v25  ;;  %v3592_v15 = vadd.f32 %v3591_v26, %v3590_v36  ;;  %v3971_v20 = vmax.f32 %v3907_v56, 0.0  ;;  %v4291_v9 = vrot.slane %v4185_v29, 1 }
 0x469   : > { %v4183_v43 = vunpack.c.l.b16 %v4032_v7  ;;  %v3974_v10 = vmax.f32 %v3910_v21, 0.0  ;;  %v3167_v41 = vpop.xlane.xlu1 %3166  ;;  %v4188_v0 = vunpack.c.l.b16 %v4037_v45  ;;  %v3784_v46 = vrot.slane %v7889_v50, 4  ;;  %v7897_v7 = vld [vmem:[#allocation29_spill] sm:$0xff]  ;;  %v7898_v45 = vld [vmem:[#allocation31_spill] sm:$0xff] }
 0x46a   : > { %v3908_v35 = vadd.f32 %v3781_v51, %v3564_v16  ;;  %v3593_v13 = vrot.slane %v3592_v15, 1  ;;  %v3253_v47 = vmul.f32 %v3167_v41, %v7892_v3  ;;  %v4035_v6 = vpack.c.bf16 %v3971_v20, %v3971_v20 }
 0x46b   : > { %v4287_v24 = vrot.slane %v4183_v43, 3  ;;  %v4038_v48 = vpack.c.bf16 %v3974_v10, %v3974_v10  ;;  %v4295_v8 = vrot.slane %v4188_v0, 6  ;;  %v3789_v11 = vrot.slane %v7895_v37, 2 }
 0x46c   : > { %v3972_v39 = vmax.f32 %v3908_v35, 0.0  ;;  %v3594_v58 = vadd.f32 %v3593_v13, %v3592_v15  ;;  %v3577_v52 = vrot.slane %v3253_v47, 4  ;;  %v3185_v49 = vpop.xlane.xlu0 %3184  ;;  %v4186_v59 = vunpack.c.l.b16 %v4035_v6 }
 0x46d   : > { %v4288_v18 = vsel %vm4215_vm3, %v4287_v24, %v4286_v32  ;;  %v3259_v17 = vmul.f32 %v3185_v49, %v7893_v38  ;;  %v3170_v57 = vpop.xlane.xlu1 %3169  ;;  %v4189_v30 = vunpack.c.l.b16 %v4038_v48  ;;  %v7896_v32 = vld [vmem:[#allocation35_spill] sm:$0xff]  ;;  %v3785_v16 = vrot.slane %v7889_v50, 5 }
 0x46e   : > { %v4036_v23 = vpack.c.bf16 %v3972_v39, %v3972_v39  ;;  %v7551_v19 = vadd.f32 %v3786_v55, %v3594_v58  ;;  %v4290_v54 = vsel %vm4218_vm4, %v4289_v1, %v4288_v18  ;;  %v3578_v2 = vadd.f32 %v3577_v52, %v3253_v47  ;;  %v7899_v39 = vld [vmem:[#allocation27_spill] sm:$0xff] }
 0x46f   : > { %v3254_v42 = vmul.f32 %v3170_v57, %v7894_v33  ;;  %v4292_v5 = vsel %vm4221_vm2, %v4291_v9, %v4290_v54  ;;  %v3613_v14 = vrot.slane %v3259_v17, 4  ;;  %v4297_v60 = vrot.slane %v4189_v30, 5  ;;  %v7900_v33 = vld [vmem:[#allocation41_spill] sm:$0xff] }
 0x470   : > { %v4187_v22 = vunpack.c.l.b16 %v4036_v23  ;;  %v4323_v27 = vpack.c.b16 %v4292_v5, %v7520_v28  ;;  %v3579_v40 = vrot.slane %v3578_v2, 2  ;;  %v3790_v20 = vrot.slane %v7895_v37, 3 }
 0x471   : > { %v3583_v63 = vrot.slane %v3254_v42, 4  ;;  %v3614_v53 = vadd.f32 %v3613_v14, %v3259_v17  ;;  %v3788_v24 = vrot.slane %v7895_v37, 1  ;;  %v3977_v6 = vmax.f32 %v7551_v19, 0.0 }
 0x472   : > { %v4293_v44 = vrot.slane %v4187_v22, 7  ;;  %4909 = vmatprep.mubr.bf16.mxu1 %v4323_v27  ;;  %v3580_v12 = vadd.f32 %v3579_v40, %v3578_v2  ;;  %v3188_v36 = vpop.xlane.xlu0 %3187  ;;  %v3787_v19 = vrot.slane %v7889_v50, 7 }
 0x473   : > { %v3584_v25 = vadd.f32 %v3583_v63, %v3254_v42  ;;  %v3615_v61 = vrot.slane %v3614_v53, 2  ;;  %v3260_v28 = vmul.f32 %v3188_v36, %v7896_v32  ;;  %v3179_v56 = vpop.xlane.xlu1 %3178 }
 0x474   : > { %v4294_v31 = vsel %vm4203_vm14, %v4293_v44, %v4186_v59  ;;  %v3581_v4 = vrot.slane %v3580_v12, 1  ;;  %v3257_v62 = vmul.f32 %v3179_v56, %v7897_v7 }
 0x475   : > { %v3585_v26 = vrot.slane %v3584_v25, 2  ;;  %v4296_v21 = vsel %vm4206_vm15, %v4295_v8, %v4294_v31  ;;  %v3616_v34 = vadd.f32 %v3615_v61, %v3614_v53  ;;  %v3619_v51 = vrot.slane %v3260_v28, 4 }
 0x476   : > { %v7566_v15 = vsel %vm4209_vm0, %v4297_v60, %v4296_v21  ;;  %v3582_v43 = vadd.f32 %v3581_v4, %v3580_v12  ;;  %v3601_v29 = vrot.slane %v3257_v62, 4  ;;  %v3182_v35 = vpop.xlane.xlu0 %3181  ;;  %v4041_v8 = vpack.c.bf16 %v3977_v6, %v3977_v6  ;;  %v7901_v21 = vld [vmem:[#allocation37_spill] sm:$0xff] }
 0x477   : > { %v3586_v10 = vadd.f32 %v3585_v26, %v3584_v25  ;;  %v3617_v13 = vrot.slane %v3616_v34, 1  ;;  %v3620_v41 = vadd.f32 %v3619_v51, %v3260_v28  ;;  %v3258_v55 = vmul.f32 %v3182_v35, %v7898_v45  ;;  %v3176_v3 = vpop.xlane.xlu1 %3175 }
 0x478   : > { %v3911_v47 = vadd.f32 %v3784_v46, %v3582_v43  ;;  %v3602_v48 = vadd.f32 %v3601_v29, %v3257_v62  ;;  %v3256_v58 = vmul.f32 %v3176_v3, %v7899_v39  ;;  %v3793_v43 = vrot.slane %v7895_v37, 6 }
 0x479   : > { %v3587_v1 = vrot.slane %v3586_v10, 1  ;;  %v3618_v52 = vadd.f32 %v3617_v13, %v3616_v34  ;;  %v3621_v49 = vrot.slane %v3620_v41, 2  ;;  %v3607_v18 = vrot.slane %v3258_v55, 4 }
 0x47a   : > { %v3975_v9 = vmax.f32 %v3911_v47, 0.0  ;;  %v3603_v38 = vrot.slane %v3602_v48, 2  ;;  %v3595_v17 = vrot.slane %v3256_v58, 4  ;;  %v3197_v57 = vpop.xlane.xlu0 %3196  ;;  %v4192_v29 = vunpack.c.l.b16 %v4041_v8  ;;  %v7902_v47 = vld [vmem:[#allocation39_spill] sm:$0xff] }
 0x47b   : > { %v3588_v23 = vadd.f32 %v3587_v1, %v3586_v10  ;;  %v3917_v54 = vadd.f32 %v3789_v11, %v3618_v52  ;;  %v3622_v0 = vadd.f32 %v3621_v49, %v3620_v41  ;;  %v3608_v2 = vadd.f32 %v3607_v18, %v3258_v55 }
 0x47c   : > { %v3263_v42 = vmul.f32 %v3197_v57, %v7900_v33  ;;  %v4039_v5 = vpack.c.bf16 %v3975_v9, %v3975_v9  ;;  %v3604_v22 = vadd.f32 %v3603_v38, %v3602_v48  ;;  %v3596_v14 = vadd.f32 %v3595_v17, %v3256_v58 }
 0x47d   : > { %v3912_v30 = vadd.f32 %v3785_v16, %v3588_v23  ;;  %v3623_v27 = vrot.slane %v3622_v0, 1  ;;  %v3609_v40 = vrot.slane %v3608_v2, 2  ;;  %v3981_v36 = vmax.f32 %v3917_v54, 0.0 }
 0x47e   : > { %v3637_v63 = vrot.slane %v3263_v42, 4  ;;  %v4190_v59 = vunpack.c.l.b16 %v4039_v5  ;;  %v3605_v46 = vrot.slane %v3604_v22, 1  ;;  %v3597_v53 = vrot.slane %v3596_v14, 2 }
 0x47f   : > { %v3976_v44 = vmax.f32 %v3912_v30, 0.0  ;;  %v3624_v12 = vadd.f32 %v3623_v27, %v3622_v0  ;;  %v3610_v11 = vadd.f32 %v3609_v40, %v3608_v2  ;;  %v4045_v48 = vpack.c.bf16 %v3981_v36, %v3981_v36 }
 0x480   : > { %v3638_v25 = vadd.f32 %v3637_v63, %v3263_v42  ;;  %v3606_v31 = vadd.f32 %v3605_v46, %v3604_v22  ;;  %v3598_v61 = vadd.f32 %v3597_v53, %v3596_v14  ;;  %v3191_v32 = vpop.xlane.xlu0 %3190  ;;  %v4299_v28 = vrot.slane %v4190_v59, 4 }
 0x481   : > { %v4040_v60 = vpack.c.bf16 %v3976_v44, %v3976_v44  ;;  %v3918_v56 = vadd.f32 %v3790_v20, %v3624_v12  ;;  %v3611_v4 = vrot.slane %v3610_v11, 1  ;;  %v3261_v34 = vmul.f32 %v3191_v32, %v7901_v21 }
 0x482   : > { %v3639_v26 = vrot.slane %v3638_v25, 2  ;;  %v3915_v50 = vadd.f32 %v7895_v37, %v3606_v31  ;;  %v3599_v62 = vrot.slane %v3598_v61, 1  ;;  %v4300_v6 = vsel %vm4212_vm1, %v4299_v28, %v7566_v15 }
 0x483   : > { %v4191_v7 = vunpack.c.l.b16 %v4040_v60  ;;  %v3982_v16 = vmax.f32 %v3918_v56, 0.0  ;;  %v3612_v51 = vadd.f32 %v3611_v4, %v3610_v11  ;;  %v3625_v41 = vrot.slane %v3261_v34, 4 }
 0x484   : > { %v3640_v10 = vadd.f32 %v3639_v26, %v3638_v25  ;;  %v3600_v13 = vadd.f32 %v3599_v62, %v3598_v61  ;;  %v3194_v45 = vpop.xlane.xlu0 %3193  ;;  %v3979_v55 = vmax.f32 %v3915_v50, 0.0  ;;  %v4303_v23 = vrot.slane %v4192_v29, 2  ;;  %v7903_v29 = vld [vmem:[#allocation43_spill] sm:$0xff] }
 0x485   : > { %v4301_v35 = vrot.slane %v4191_v7, 3  ;;  %v3916_v20 = vadd.f32 %v3788_v24, %v3612_v51  ;;  %v3262_v1 = vmul.f32 %v3194_v45, %v7902_v47  ;;  %v3626_v58 = vadd.f32 %v3625_v41, %v3261_v34 }
 0x486   : > { %v3641_v3 = vrot.slane %v3640_v10, 1  ;;  %v3914_v39 = vadd.f32 %v3787_v19, %v3600_v13  ;;  %v4046_v52 = vpack.c.bf16 %v3982_v16, %v3982_v16  ;;  %v4043_v54 = vpack.c.bf16 %v3979_v55, %v3979_v55 }
 0x487   : > { %v3980_v49 = vmax.f32 %v3916_v20, 0.0  ;;  %v3631_v9 = vrot.slane %v3262_v1, 4  ;;  %v3627_v17 = vrot.slane %v3626_v58, 2  ;;  %v4302_v57 = vsel %vm4215_vm3, %v4301_v35, %v4300_v6 }
 0x488   : > { %v3642_v18 = vadd.f32 %v3641_v3, %v3640_v10  ;;  %v3978_v38 = vmax.f32 %v3914_v39, 0.0  ;;  %v4196_v33 = vunpack.c.l.b16 %v4045_v48  ;;  %v4304_v30 = vsel %vm4218_vm4, %v4303_v23, %v4302_v57  ;;  %v4719_v57 = vld [vmem:[%s7669_s6] ss:$0 sm:$0xff] }
 0x489   : > { %v4044_v24 = vpack.c.bf16 %v3980_v49, %v3980_v49  ;;  %v3632_v2 = vadd.f32 %v3631_v9, %v3262_v1  ;;  %v3628_v5 = vadd.f32 %v3627_v17, %v3626_v58  ;;  %v4197_v22 = vunpack.c.l.b16 %v4046_v52 }
 0x48a   : > { %v3921_v0 = vadd.f32 %v3793_v43, %v3642_v18  ;;  %v4042_v42 = vpack.c.bf16 %v3978_v38, %v3978_v38  ;;  %v4194_v19 = vunpack.c.l.b16 %v4043_v54  ;;  %v4309_v44 = vrot.slane %v4196_v33, 6 }
 0x48b   : > { %v4195_v15 = vunpack.c.l.b16 %v4044_v24  ;;  %v3633_v14 = vrot.slane %v3632_v2, 2  ;;  %v3629_v27 = vrot.slane %v3628_v5, 1  ;;  %v3791_v46 = vrot.slane %v7895_v37, 4 }
 0x48c   : > { %v4193_v40 = vunpack.c.l.b16 %v4042_v42  ;;  %v4311_v12 = vrot.slane %v4197_v22, 5  ;;  %v3985_v36 = vmax.f32 %v3921_v0, 0.0  ;;  %v3792_v32 = vrot.slane %v7895_v37, 5 }
 0x48d   : > { %v4307_v63 = vrot.slane %v4195_v15, 7  ;;  %v3634_v59 = vadd.f32 %v3633_v14, %v3632_v2  ;;  %v3630_v53 = vadd.f32 %v3629_v27, %v3628_v5  ;;  %v3794_v58 = vrot.slane %v7895_v37, 7 }
 0x48e   : > { %v4305_v8 = vrot.slane %v4193_v40, 1  ;;  %v4049_v7 = vpack.c.bf16 %v3985_v36, %v3985_v36 }
 0x48f   : > { %v4308_v11 = vsel %vm4203_vm14, %v4307_v63, %v4194_v19  ;;  %v3635_v25 = vrot.slane %v3634_v59, 1  ;;  %v3919_v60 = vadd.f32 %v3791_v46, %v3630_v53 }
 0x490   : > { %v4306_v31 = vsel %vm4221_vm2, %v4305_v8, %v4304_v30  ;;  %v4310_v61 = vsel %vm4206_vm15, %v4309_v44, %v4308_v11  ;;  %v4200_v16 = vunpack.c.l.b16 %v4049_v7 }
 0x491   : > { %v3636_v28 = vadd.f32 %v3635_v25, %v3634_v59  ;;  %v4312_v56 = vsel %vm4209_vm0, %v4311_v12, %v4310_v61  ;;  %v3983_v4 = vmax.f32 %v3919_v60, 0.0 }
 0x492   : > { %v4317_v45 = vrot.slane %v4200_v16, 2 }
 0x493   : > { %v3920_v26 = vadd.f32 %v3792_v32, %v3636_v28  ;;  %v4047_v50 = vpack.c.bf16 %v3983_v4, %v3983_v4 }
 0x495   : > { %v3984_v62 = vmax.f32 %v3920_v26, 0.0  ;;  %v4198_v21 = vunpack.c.l.b16 %v4047_v50 }
 0x497   : > { %v4048_v34 = vpack.c.bf16 %v3984_v62, %v3984_v62  ;;  %v4313_v51 = vrot.slane %v4198_v21, 4 }
 0x499   : > { %v4199_v43 = vunpack.c.l.b16 %v4048_v34  ;;  %v3200_v10 = vpop.xlane.xlu0 %3199  ;;  %v4314_v13 = vsel %vm4212_vm1, %v4313_v51, %v4312_v56 }
 0x49a   : > { %v3264_v35 = vmul.f32 %v3200_v10, %v7903_v29 }
 0x49b   : > { %v4315_v41 = vrot.slane %v4199_v43, 3 }
 0x49c   : > { %v3643_v55 = vrot.slane %v3264_v35, 4 }
 0x49d   : > { %v4316_v20 = vsel %vm4215_vm3, %v4315_v41, %v4314_v13 }
 0x49e   : > { %v3644_v3 = vadd.f32 %v3643_v55, %v3264_v35  ;;  %v4318_v47 = vsel %vm4218_vm4, %v4317_v45, %v4316_v20 }
 0x4a0   : > { %v3645_v1 = vrot.slane %v3644_v3, 2 }
 0x4a2   : > { %v3646_v48 = vadd.f32 %v3645_v1, %v3644_v3 }
 0x4a4   : > { %v3647_v39 = vrot.slane %v3646_v48, 1 }
 0x4a6   : > { %v3648_v6 = vadd.f32 %v3647_v39, %v3646_v48 }
 0x4a8   : > { %v3922_v52 = vadd.f32 %v3794_v58, %v3648_v6 }
 0x4aa   : > { %v3986_v49 = vmax.f32 %v3922_v52, 0.0 }
 0x4ac   : > { %v4050_v18 = vpack.c.bf16 %v3986_v49, %v3986_v49 }
 0x4ae   : > { %v4201_v9 = vunpack.c.l.b16 %v4050_v18 }
 0x4b0   : > { %v4319_v23 = vrot.slane %v4201_v9, 1 }
 0x4b2   : > { %v4320_v38 = vsel %vm4221_vm2, %v4319_v23, %v4318_v47 }
 0x4b3   : > { %v4324_v17 = vpack.c.b16 %v4320_v38, %v4306_v31 }
 0x4b5   : > { %4910 = vmatmul.mubr.bf16.gmra.mrb[96].mxu1 %v4324_v17 }
 0x505   : > { %v4907_v54 = vpop.f32.mrb[92].mxu1 }
 0x506   : > { %v4420_v24 = vadd.f32 %v4907_v54, %v4719_v57  ;;  %v4411_v0 = vpop.f32.mrb[93].mxu1 }
 0x507   : > { %v4412_v2 = vadd.f32 %v4719_v57, %v4411_v0  ;;  %v4908_v33 = vpop.f32.mrb[94].mxu1 }
 0x508   : > { %v4730_v37 = vmul.f32 -1.442695, %v4420_v24  ;;  %v4423_v42 = vadd.f32 %v4908_v33, %v4719_v57  ;;  %v4414_v5 = vpop.f32.mrb[95].mxu1 }
 0x509   : > { %v4728_v30 = vmul.f32 -1.442695, %v4412_v2  ;;  %v4415_v22 = vadd.f32 %v4719_v57, %v4414_v5 }
 0x50a   : > { %5379 = vpow2.f32 %v4730_v37  ;;  %v4731_v15 = vmul.f32 -1.442695, %v4423_v42 }
 0x50b   : > { %5381 = vpow2.f32 %v4728_v30  ;;  %v4729_v14 = vmul.f32 -1.442695, %v4415_v22 }
 0x50c   : > { %5383 = vpow2.f32 %v4731_v15 }
 0x50d   : > { %5385 = vpow2.f32 %v4729_v14 }
 0x514   : > { %v5380_v27 = vpop.eup %5379 }
 0x515   : > { %v5382_v40 = vpop.eup %5381  ;;  %v4468_v19 = vadd.f32 1.0, %v5380_v27 }
 0x516   : > { %v5384_v63 = vpop.eup %5383  ;;  %v4466_v59 = vadd.f32 1.0, %v5382_v40 }
 0x517   : > { %v5386_v44 = vpop.eup %5385  ;;  %5387 = vrcp.f32 %v4468_v19  ;;  %v4469_v46 = vadd.f32 1.0, %v5384_v63 }
 0x518   : > { %5389 = vrcp.f32 %v4466_v59  ;;  %v4467_v53 = vadd.f32 1.0, %v5386_v44 }
 0x519   : > { %5391 = vrcp.f32 %v4469_v46 }
 0x51a   : > { %5393 = vrcp.f32 %v4467_v53 }
 0x521   : > { %v5388_v8 = vpop.eup %5387 }
 0x522   : > { %v5390_v12 = vpop.eup %5389  ;;  %4492 = vst [vmem:[%s7601_s21 + $0x10] sm:$0xff] %v5388_v8 }
 0x523   : > { %v5392_v11 = vpop.eup %5391  ;;  %4490 = vst [vmem:[%s7601_s21] sm:$0xff] %v5390_v12 }
 0x524   : > { %v5394_v25 = vpop.eup %5393  ;;  %4493 = vst [vmem:[%s7601_s21 + $0x18] sm:$0xff] %v5392_v11 }
 0x525   : > { %4491 = vst [vmem:[%s7601_s21 + $0x8] sm:$0xff] %v5394_v25 }
 0x588   : > { %v4911_v36 = vpop.f32.mrb[96].mxu1 }
 0x589   : > { %v4436_v60 = vadd.f32 %v4911_v36, %v4719_v57  ;;  %v4427_v31 = vpop.f32.mrb[97].mxu1 }
 0x58a   : > { %v4428_v61 = vadd.f32 %v4719_v57, %v4427_v31  ;;  %v4912_v32 = vpop.f32.mrb[98].mxu1 }
 0x58b   : > { %v4734_v28 = vmul.f32 -1.442695, %v4436_v60  ;;  %v4439_v56 = vadd.f32 %v4912_v32, %v4719_v57  ;;  %v4430_v4 = vpop.f32.mrb[99].mxu1 }
 0x58c   : > { %v4732_v26 = vmul.f32 -1.442695, %v4428_v61  ;;  %v4431_v7 = vadd.f32 %v4719_v57, %v4430_v4 }
 0x58d   : > { %5395 = vpow2.f32 %v4734_v28  ;;  %v4735_v50 = vmul.f32 -1.442695, %v4439_v56 }
 0x58e   : > { %5397 = vpow2.f32 %v4732_v26  ;;  %v4733_v62 = vmul.f32 -1.442695, %v4431_v7 }
 0x58f   : > { %5399 = vpow2.f32 %v4735_v50 }
 0x590   : > { %5401 = vpow2.f32 %v4733_v62 }
 0x597   : > { %v5396_v21 = vpop.eup %5395 }
 0x598   : > { %v5398_v34 = vpop.eup %5397  ;;  %v4472_v16 = vadd.f32 1.0, %v5396_v21 }
 0x599   : > { %v5400_v51 = vpop.eup %5399  ;;  %v4470_v43 = vadd.f32 1.0, %v5398_v34 }
 0x59a   : > { %v5402_v10 = vpop.eup %5401  ;;  %5403 = vrcp.f32 %v4472_v16  ;;  %v4473_v29 = vadd.f32 1.0, %v5400_v51 }
 0x59b   : > { %5405 = vrcp.f32 %v4470_v43  ;;  %v4471_v35 = vadd.f32 1.0, %v5402_v10 }
 0x59c   : > { %5407 = vrcp.f32 %v4473_v29 }
 0x59d   : > { %5409 = vrcp.f32 %v4471_v35 }
 0x5a4   : > { %v5404_v13 = vpop.eup %5403 }
 0x5a5   : > { %v5406_v41 = vpop.eup %5405  ;;  %4496 = vst [vmem:[%s7601_s21 + $0x30] sm:$0xff] %v5404_v13 }
 0x5a6   : > { %v5408_v45 = vpop.eup %5407  ;;  %4494 = vst [vmem:[%s7601_s21 + $0x20] sm:$0xff] %v5406_v41 }
 0x5a7   : > { %v5410_v55 = vpop.eup %5409  ;;  %4497 = vst [vmem:[%s7601_s21 + $0x38] sm:$0xff] %v5408_v45 }
 0x5a8   : > { %4495 = vst [vmem:[%s7601_s21 + $0x28] sm:$0xff] %v5410_v55 }
 0x5a9   : > { %5424 = shalt.err (!%p5421_p4)
}
 0x5aa   : > { %s5425_s17 = scalar_lea.hbm %s7613_s9, 1024  ;;  %s5429_s20 = scalar_lea.hbm %s7670_s7, 2048 }
 0x5ab   : > { %p5426_p7 = scmp.ne.s32.totalorder %s7613_s9, %s5425_s17  ;;  %p5430_p10 = scmp.lt.u32.totalorder %s7613_s9, %s7670_s7 }
 0x5ac   : > { %p5431_p11 = scmp.lt.u32.totalorder %s5429_s20, %s5425_s17  ;;  %p5433_p13 = scmp.lt.u32.totalorder %s5425_s17, %s7613_s9 }
 0x5ad   : > { %p5427_p8 = pnand %p5426_p7, %p5558_p5 }
 0x5ae   : > { %p5432_p12 = por %p5431_p11, %p5430_p10 }
 0x5af   : > { %p5428_p9 = pneg %p5427_p8 }
 0x5b0   : > { %p5434_p0 = por %p5433_p13, %p5432_p12 }
 0x5b2   : > { %p5435_p1 = pnand %p5434_p0, %p5428_p9 }
 0x5b4   : > { %5438 = shalt.err (!%p5435_p1)
}
 0x5b5   : > { %s5478_s29 = smov 128   ;;  %s5479_s8 = smov 8  }
 0x5b6   : > { %4922 = dma.vmem_to_hbm [thread:$0]  (%p5558_p5), %s7615_s23, 1024, %s7613_s9, %s7622_s28, %s5478_s29, %s5478_s29, %s5479_s8  }
 0x5b7 PF: > { %p4928_p2 = scmp.ge.s32.totalorder %s5473_s27, 2  ;;  %s4527_s14 = sand.u32 1, %s5461_s24  }
 0x5b8   : > { %s4528_s13 = scalar_lea.sflag [#allocation3], %s4527_s14 }
 0x5b9   : > { %p4925_p3 = pnand %p4928_p2, %p5562_p6 }
 0x5bb   : > { %5456 = dma.done.wait (!%p4925_p3), %s4528_s13, 1024  }
 0x5bc   : > { %5458 = vsyncadd (!%p4925_p3), %s4528_s13, 4294966272  ;;  %p17_p4 = scmp.ge.s32.totalorder %s5545_s30, 4   ;;  %s7904_s24 = smov %s5465_s25 }
 0x5bd   : > { %s7905_s25 = smov %s5469_s26  ;;  %s7906_s26 = smov %s5556_s10 }
 0x5be   : > { %s7907_s27 = smov %s5545_s30  ;;  %19 = sbr.rel (!%p17_p4) target bundleno = 3 (0x3), region = 86 }
 0x5c5   :  { %4533 = vsyncpa [#allocation3], 1 }
 0x5c6   :  { %4535 = vsyncpa [#allocation3 + $0x1], 1 }

// kernel: tpu_custom_call.1
= control target key start
LH: loop header
LB: loop body
LE: loop exit
PB: predicated region body
PF: predicated region fallthrough
CT: control target
= control target key end

     0   :  { %12 = vsyncpa [#allocation3], 0  ;;  %s7663_s0 = inlined_call_operand.vmem [shape: s32[1024,1], index: 0, kind: input, shape index: {}]   ;;  %s7664_s1 = inlined_call_operand.vmem [shape: s32[128,1], index: 1, kind: input, shape index: {}]   ;;  %s7665_s2 = inlined_call_operand.vmem [shape: bf16[64,256], index: 2, kind: input, shape index: {}]   ;;  %s7666_s3 = inlined_call_operand.vmem [shape: bf16[4,128], index: 3, kind: input, shape index: {}]   ;;  %s7667_s4 = inlined_call_operand.vmem [shape: bf16[128,4], index: 4, kind: input, shape index: {}]   ;;  %s7668_s5 = inlined_call_operand.vmem [shape: bf16[128,128], index: 5, kind: input, shape index: {}]   ;;  %s7669_s6 = inlined_call_operand.vmem [shape: f32[1,128], index: 6, kind: input, shape index: {}]   ;;  %s7670_s7 = inlined_call_operand.hbm [shape: f32[128,128], index: 7, kind: output, shape index: {}]  }
   0x1   :  { %14 = vsyncpa [#allocation3 + $0x1], 0  ;;  %s5520_s24 = smov 0   ;;  %s5522_s25 = smov 0  }
   0x2   :  { %s5524_s26 = smov 0   ;;  %s5526_s27 = smov 0  }
   0x3 LB: > { %s5541_s28 = sadd.s32 4294967295, %s5473_s27   ;;  %s4586_s29 = sadd.s32 4294967294, %s5473_s27   ;;  %s5473_s27 = sphi %s5526_s27, %s7907_s27   ;;  %s5469_s26 = sphi %s5524_s26, %s7906_s26   ;;  %s5465_s25 = sphi %s5522_s25, %s7905_s25   ;;  %s5461_s24 = sphi %s5520_s24, %s7904_s24  }
   0x4   : > { %s5545_s30 = sadd.s32 1, %s5473_s27   ;;  %s184_s8 = sadd.s32 1, %s5469_s26 }
   0x5   : > { %s181_s9 = ssub.s32 %s5473_s27, %s5545_s30  ;;  %p194_p0 = scmp.ne.s32.totalorder %s5469_s26, %s5465_s25 }
   0x6   : > { %p182_p1 = scmp.eq.s32.totalorder %s181_s9, 0  ;;  %p195_p2 = scmp.eq.s32.totalorder %s5541_s28, 1 }
   0x7   : > { %p200_p3 = scmp.ne.s32.totalorder %s5465_s25, %s5461_s24  ;;  %p201_p4 = scmp.eq.s32.totalorder %s4586_s29, 1 }
   0x8   : > { %s5556_s10 = scalar_select %p182_p1, %s5469_s26, %s184_s8  }
   0x9   : > { %p5558_p5 = por %p195_p2, %p194_p0  ;;  %p5562_p6 = por %p201_p4, %p200_p3 }
   0xa   : > { %p4589_p7 = scmp.ge.s32.totalorder %s5473_s27, 1  ;;  %p252_p8 = scmp.lt.s32.totalorder %s5473_s27, 3 }
   0xc   : > { %p253_p9 = pnand %p4589_p7, %p252_p8 }
   0xe   : > { %256 = sbr.rel (%p253_p9) target bundleno = 1463 (0x5b7), region = 48 }
  0x15   : > { %s4591_s13 = sshll.u32 %s5541_s28, 6  ;;  %v4967_v0 = vld [vmem:[%s7665_s2 + $0x4] ss:$8 sps:$4 sm:$0xff]   ;;  %v5475_v1 = vmov 0   ;;  %v4969_v2 = vld [vmem:[%s7665_s2] ss:$8 sps:$4 sm:$0xff]  }
  0x16   : > { %4966 = vset.pattern.permute.xlu1 %v5475_v1  ;;  %4965 = vset.pattern.permute.xlu0 %v5475_v1  ;;  %p290_p10 = scmp.lt.s32.totalorder %s4591_s13, 127  ;;  %v4970_v3 = vld [vmem:[%s7665_s2 + $0x14] ss:$8 sps:$4 sm:$0xff]   ;;  %v4972_v4 = vld [vmem:[%s7665_s2 + $0x10] ss:$8 sps:$4 sm:$0xff]   ;;  %s4593_s20 = sshll.u32 %s5541_s28, 3 }
  0x17   : > { %990 = vmatprep.subr.bf16.mxu0 %v4967_v0  ;;  %1022 = vmatprep.mubr.bf16.mxu0 %v5475_v1  ;;  %v4973_v5 = vld [vmem:[%s7665_s2 + $0x24] ss:$8 sps:$4 sm:$0xff]   ;;  %v4975_v20 = vld [vmem:[%s7665_s2 + $0x20] ss:$8 sps:$4 sm:$0xff]   ;;  %v4976_v21 = vld [vmem:[%s7665_s2 + $0x34] ss:$8 sps:$4 sm:$0xff]  }
  0x18   : > { %s7909_s13 = smov (!%p290_p10, %s4591_s13), 127  ;;  %991 = vmatpush1.bf16.msra.mxu0 %v4969_v2  ;;  %4913 = vmatprep.subr.bf16.mxu1 %v4967_v0  ;;  %v4978_v24 = vld [vmem:[%s7665_s2 + $0x30] ss:$8 sps:$4 sm:$0xff]   ;;  %p296_p11 = scmp.lt.s32.totalorder %s4593_s20, 15  ;;  %vm893_vm2 = vcmask 523264  }
  0x19   : > { %992 = vmatprep.subr.bf16.mxu0 %v4970_v3  ;;  %4917 = vmatpush1.bf16.msra.mxu1 %v4969_v2  ;;  %s4592_s22 = sshll.u32 %s7909_s13, 3  ;;  %s286_s19 = sand.u32 1, %s5465_s25  }
  0x1a   : > { %4914 = vmatprep.subr.bf16.mxu1 %v4970_v3  ;;  %1292 = vmatprep.mubr.bf16.mxu1 %v5475_v1  ;;  %s5588_s8 = scalar_lea.vmem %s7663_s0, %s4592_s22  ;;  %s7911_s20 = smov (!%p296_p11, %s4593_s20), 15 }
  0x1b   : > { %v305_v6 = vld [vmem:[%s5588_s8 + $0x10] sm:$0xff]  ;;  %v303_v7 = vld [vmem:[%s5588_s8] sm:$0xff]  ;;  %v306_v8 = vld [vmem:[%s5588_s8 + $0x18] sm:$0xff]  ;;  %s4594_s21 = sshll.u32 %s7911_s20, 3  ;;  %s4590_s20 = sshll.u32 %s286_s19, 6 }
  0x1c   : > { %993 = vmatpush1.bf16.msra.mxu0 %v4972_v4  ;;  %376 = vperm.xlu1 %4966, %v305_v6   ;;  %v304_v9 = vld [vmem:[%s5588_s8 + $0x8] sm:$0xff]  ;;  %v307_v11 = vld [vmem:[%s5588_s8 + $0x20] sm:$0xff]  ;;  %v310_v12 = vld [vmem:[%s5588_s8 + $0x38] sm:$0xff]  ;;  %s5670_s29 = scalar_lea.vmem %s7664_s1, %s4594_s21  ;;  %s7601_s21 = scalar_lea.vmem [#allocation2], %s4590_s20 }
  0x1d   : > { %370 = vperm.xlu0 %4965, %v303_v7   ;;  %994 = vmatprep.subr.bf16.mxu0 %v4973_v5  ;;  %v308_v10 = vld [vmem:[%s5588_s8 + $0x28] sm:$0xff]  ;;  %v309_v13 = vld [vmem:[%s5588_s8 + $0x30] sm:$0xff]  ;;  %v311_v15 = vld [vmem:[%s5588_s8 + $0x40] sm:$0xff]  ;;  %s4741_s22 = sshll.u32 %s5541_s28, 10  ;;  %s4512_s23 = sshll.u32 %s7601_s21, 4  ;;  %s7615_s23 = int_to_ptr.vmem [resolvable:$true] %s4512_s23 }
  0x1e   : > { %4918 = vmatpush1.bf16.msra.mxu1 %v4972_v4  ;;  %v312_v14 = vld [vmem:[%s5588_s8 + $0x48] sm:$0xff]  ;;  %v314_v16 = vld [vmem:[%s5588_s8 + $0x58] sm:$0xff]  ;;  %v313_v17 = vld [vmem:[%s5588_s8 + $0x50] sm:$0xff]  ;;  %s7613_s9 = scalar_lea.hbm %s7670_s7, %s4741_s22  ;;  %s7622_s28 = scalar_lea.sflag [#allocation3], %s286_s19 }
  0x1f   : > { %4915 = vmatprep.subr.bf16.mxu1 %v4973_v5  ;;  %v316_v18 = vld [vmem:[%s5588_s8 + $0x68] sm:$0xff]  ;;  %v315_v19 = vld [vmem:[%s5588_s8 + $0x60] sm:$0xff]  ;;  %v318_v22 = vld [vmem:[%s5588_s8 + $0x78] sm:$0xff]  ;;  %s5411_s14 = scalar_lea.vmem %s7615_s23, 1024  ;;  %s5477_s13 = smov [#allocation2]  }
  0x20   : > { %379 = vperm.xlu1 %4966, %v306_v8   ;;  %v317_v23 = vld [vmem:[%s5588_s8 + $0x70] sm:$0xff]  ;;  %995 = vmatpush1.bf16.msra.mxu0 %v4975_v20  ;;  %v320_v25 = vld [vmem:[%s5588_s8 + $0x88] sm:$0xff]  ;;  %v319_v26 = vld [vmem:[%s5588_s8 + $0x80] sm:$0xff]  ;;  %p5412_p12 = scmp.ne.s32.totalorder %s7615_s23, %s5411_s14  ;;  %s5415_s15 = sshll.u32 %s5477_s13, 4  ;;  %s5416_s15 = int_to_ptr.vmem [resolvable:$false] %s5415_s15 }
  0x21   : > { %373 = vperm.xlu0 %4965, %v304_v9   ;;  %996 = vmatprep.subr.bf16.mxu0 %v4976_v21  ;;  %v322_v27 = vld [vmem:[%s5588_s8 + $0x98] sm:$0xff]  ;;  %v321_v28 = vld [vmem:[%s5588_s8 + $0x90] sm:$0xff]  ;;  %v324_v29 = vld [vmem:[%s5588_s8 + $0xa8] sm:$0xff]  ;;  %s5417_s16 = scalar_lea.vmem %s5416_s15, 2048  ;;  %p5418_p1 = scmp.lt.s32.totalorder %s7615_s23, %s5416_s15 }
  0x22   : > { %4919 = vmatpush1.bf16.msra.mxu1 %v4975_v20  ;;  %v323_v30 = vld [vmem:[%s5588_s8 + $0xa0] sm:$0xff]  ;;  %v326_v31 = vld [vmem:[%s5588_s8 + $0xb8] sm:$0xff]  ;;  %v325_v32 = vld [vmem:[%s5588_s8 + $0xb0] sm:$0xff]  ;;  %v7671_v20 = vmov 0.0   ;;  %p5413_p13 = pnand %p5412_p12, %p5558_p5  ;;  %p5419_p2 = scmp.lt.s32.totalorder %s5417_s16, %s5411_s14 }
  0x23   : > { %4916 = vmatprep.subr.bf16.mxu1 %v4976_v21  ;;  %v328_v33 = vld [vmem:[%s5588_s8 + $0xc8] sm:$0xff]  ;;  %v327_v34 = vld [vmem:[%s5588_s8 + $0xc0] sm:$0xff]  ;;  %v330_v35 = vld [vmem:[%s5588_s8 + $0xd8] sm:$0xff] }
  0x24   : > { %385 = vperm.xlu1 %4966, %v308_v10   ;;  %997 = vmatpush1.bf16.msra.mxu0 %v4978_v24  ;;  %v329_v36 = vld [vmem:[%s5588_s8 + $0xd0] sm:$0xff]  ;;  %v332_v37 = vld [vmem:[%s5588_s8 + $0xe8] sm:$0xff]  ;;  %v331_v38 = vld [vmem:[%s5588_s8 + $0xe0] sm:$0xff]  ;;  %v367_v10 = vlaneseq  ;;  %p5414_p0 = pneg %p5413_p13  ;;  %p5420_p3 = por %p5419_p2, %p5418_p1 }
  0x25   : > { %382 = vperm.xlu0 %4965, %v307_v11   ;;  %v334_v39 = vld [vmem:[%s5588_s8 + $0xf8] sm:$0xff]  ;;  %v333_v40 = vld [vmem:[%s5588_s8 + $0xf0] sm:$0xff]  ;;  %v336_v41 = vld [vmem:[%s5588_s8 + $0x108] sm:$0xff] }
  0x26   : > { %4920 = vmatpush1.bf16.msra.mxu1 %v4978_v24  ;;  %v335_v42 = vld [vmem:[%s5588_s8 + $0x100] sm:$0xff]  ;;  %v338_v43 = vld [vmem:[%s5588_s8 + $0x118] sm:$0xff]  ;;  %v337_v44 = vld [vmem:[%s5588_s8 + $0x110] sm:$0xff]  ;;  %p5421_p4 = pnand %p5420_p3, %p5414_p0 }
  0x27   : > { %v340_v45 = vld [vmem:[%s5588_s8 + $0x128] sm:$0xff]  ;;  %v339_v46 = vld [vmem:[%s5588_s8 + $0x120] sm:$0xff]  ;;  %v342_v47 = vld [vmem:[%s5588_s8 + $0x138] sm:$0xff] }
  0x28   : > { %391 = vperm.xlu1 %4966, %v310_v12   ;;  %v341_v48 = vld [vmem:[%s5588_s8 + $0x130] sm:$0xff]  ;;  %v344_v49 = vld [vmem:[%s5588_s8 + $0x148] sm:$0xff]  ;;  %v343_v50 = vld [vmem:[%s5588_s8 + $0x140] sm:$0xff] }
  0x29   : > { %388 = vperm.xlu0 %4965, %v309_v13   ;;  %v346_v51 = vld [vmem:[%s5588_s8 + $0x158] sm:$0xff]  ;;  %v345_v52 = vld [vmem:[%s5588_s8 + $0x150] sm:$0xff]  ;;  %v348_v53 = vld [vmem:[%s5588_s8 + $0x168] sm:$0xff]  ;;  %v5674_v13 = vand.u32 127, %v367_v10 }
  0x2a   : > { %v347_v54 = vld [vmem:[%s5588_s8 + $0x160] sm:$0xff]  ;;  %v350_v55 = vld [vmem:[%s5588_s8 + $0x178] sm:$0xff]  ;;  %v349_v56 = vld [vmem:[%s5588_s8 + $0x170] sm:$0xff] }
  0x2b   : > { %v352_v57 = vld [vmem:[%s5588_s8 + $0x188] sm:$0xff]  ;;  %v351_v58 = vld [vmem:[%s5588_s8 + $0x180] sm:$0xff]  ;;  %v358_v59 = vld [vmem:[%s5588_s8 + $0x1b8] sm:$0xff] }
  0x2c   : > { %397 = vperm.xlu1 %4966, %v312_v14   ;;  %v357_v60 = vld [vmem:[%s5588_s8 + $0x1b0] sm:$0xff]  ;;  %v354_v61 = vld [vmem:[%s5588_s8 + $0x198] sm:$0xff]  ;;  %v360_v63 = vld [vmem:[%s5588_s8 + $0x1c8] sm:$0xff] }
  0x2d   : > { %394 = vperm.xlu0 %4965, %v311_v15   ;;  %v353_v62 = vld [vmem:[%s5588_s8 + $0x190] sm:$0xff]  ;;  %v359_v0 = vld [vmem:[%s5588_s8 + $0x1c0] sm:$0xff]  ;;  %v356_v2 = vld [vmem:[%s5588_s8 + $0x1a8] sm:$0xff] }
  0x2e   : > { %v355_v3 = vld [vmem:[%s5588_s8 + $0x1a0] sm:$0xff]  ;;  %v362_v4 = vld [vmem:[%s5588_s8 + $0x1d8] sm:$0xff]  ;;  %v361_v5 = vld [vmem:[%s5588_s8 + $0x1d0] sm:$0xff] }
  0x2f   : > { %v364_v6 = vld [vmem:[%s5588_s8 + $0x1e8] sm:$0xff]  ;;  %v363_v7 = vld [vmem:[%s5588_s8 + $0x1e0] sm:$0xff]  ;;  %v366_v8 = vld [vmem:[%s5588_s8 + $0x1f8] sm:$0xff] }
  0x30   : > { %403 = vperm.xlu1 %4966, %v314_v16   ;;  %v365_v9 = vld [vmem:[%s5588_s8 + $0x1f0] sm:$0xff]  ;;  %v786_v11 = vld [vmem:[%s5670_s29 + $0x8] sm:$0xff]  ;;  %v785_v12 = vld [vmem:[%s5670_s29] sm:$0xff] }
  0x31   : > { %400 = vperm.xlu0 %4965, %v313_v17   ;;  %v788_v16 = vld [vmem:[%s5670_s29 + $0x18] sm:$0xff]  ;;  %v787_v17 = vld [vmem:[%s5670_s29 + $0x10] sm:$0xff]  ;;  %v789_v24 = vld [vmem:[%s5670_s29 + $0x20] sm:$0xff] }
  0x34   : > { %409 = vperm.xlu1 %4966, %v316_v18  }
  0x35   : > { %406 = vperm.xlu0 %4965, %v315_v19  }
  0x38   : > { %415 = vperm.xlu1 %4966, %v318_v22  }
  0x39   : > { %412 = vperm.xlu0 %4965, %v317_v23   ;;  %v790_v23 = vld [vmem:[%s5670_s29 + $0x28] sm:$0xff] }
  0x3c   : > { %421 = vperm.xlu1 %4966, %v320_v25  }
  0x3d   : > { %418 = vperm.xlu0 %4965, %v319_v26  }
  0x40   : > { %427 = vperm.xlu1 %4966, %v322_v27  }
  0x41   : > { %424 = vperm.xlu0 %4965, %v321_v28   ;;  %v792_v28 = vld [vmem:[%s5670_s29 + $0x38] sm:$0xff] }
  0x44   : > { %433 = vperm.xlu1 %4966, %v324_v29   ;;  %v791_v29 = vld [vmem:[%s5670_s29 + $0x30] sm:$0xff] }
  0x45   : > { %430 = vperm.xlu0 %4965, %v323_v30  }
  0x48   : > { %439 = vperm.xlu1 %4966, %v326_v31  }
  0x49   : > { %436 = vperm.xlu0 %4965, %v325_v32  }
  0x4c   : > { %445 = vperm.xlu1 %4966, %v328_v33  }
  0x4d   : > { %442 = vperm.xlu0 %4965, %v327_v34  }
  0x50   : > { %451 = vperm.xlu1 %4966, %v330_v35  }
  0x51   : > { %448 = vperm.xlu0 %4965, %v329_v36  }
  0x54   : > { %457 = vperm.xlu1 %4966, %v332_v37  }
  0x55   : > { %454 = vperm.xlu0 %4965, %v331_v38  }
  0x58   : > { %463 = vperm.xlu1 %4966, %v334_v39  }
  0x59   : > { %460 = vperm.xlu0 %4965, %v333_v40  }
  0x5c   : > { %469 = vperm.xlu1 %4966, %v336_v41  }
  0x5d   : > { %466 = vperm.xlu0 %4965, %v335_v42  }
  0x60   : > { %475 = vperm.xlu1 %4966, %v338_v43  }
  0x61   : > { %472 = vperm.xlu0 %4965, %v337_v44  }
  0x64   : > { %481 = vperm.xlu1 %4966, %v340_v45  }
  0x65   : > { %478 = vperm.xlu0 %4965, %v339_v46  }
  0x68   : > { %487 = vperm.xlu1 %4966, %v342_v47  }
  0x69   : > { %484 = vperm.xlu0 %4965, %v341_v48  }
  0x6c   : > { %493 = vperm.xlu1 %4966, %v344_v49  }
  0x6d   : > { %490 = vperm.xlu0 %4965, %v343_v50  }
  0x70   : > { %499 = vperm.xlu1 %4966, %v346_v51  }
  0x71   : > { %496 = vperm.xlu0 %4965, %v345_v52  }
  0x74   : > { %505 = vperm.xlu1 %4966, %v348_v53  }
  0x75   : > { %502 = vperm.xlu0 %4965, %v347_v54  }
  0x78   : > { %511 = vperm.xlu1 %4966, %v350_v55  }
  0x79   : > { %508 = vperm.xlu0 %4965, %v349_v56  }
  0x7c   : > { %517 = vperm.xlu1 %4966, %v352_v57  }
  0x7d   : > { %514 = vperm.xlu0 %4965, %v351_v58  }
  0x80   : > { %535 = vperm.xlu1 %4966, %v358_v59  }
  0x81   : > { %532 = vperm.xlu0 %4965, %v357_v60  }
  0x84   : > { %523 = vperm.xlu1 %4966, %v354_v61  }
  0x85   : > { %520 = vperm.xlu0 %4965, %v353_v62  }
  0x88   : > { %541 = vperm.xlu1 %4966, %v360_v63  }
  0x89   : > { %538 = vperm.xlu0 %4965, %v359_v0  }
  0x8c   : > { %529 = vperm.xlu1 %4966, %v356_v2  }
  0x8d   : > { %526 = vperm.xlu0 %4965, %v355_v3  }
  0x90   : > { %547 = vperm.xlu1 %4966, %v362_v4  }
  0x91   : > { %544 = vperm.xlu0 %4965, %v361_v5  }
  0x94   : > { %553 = vperm.xlu1 %4966, %v364_v6  }
  0x95   : > { %550 = vperm.xlu0 %4965, %v363_v7  }
  0x98   : > { %559 = vperm.xlu1 %4966, %v366_v8  }
  0x99   : > { %556 = vperm.xlu0 %4965, %v365_v9  }
  0x9b   : > { %v377_v14 = vpop.permute.xlu1 %376 }
  0x9c   : > { %v371_v15 = vpop.permute.xlu0 %370  ;;  %797 = vperm.xlu1 %4966, %v786_v11   ;;  %vm563_vm3 = vcmp.eq.s32.totalorder %v377_v14, %v5674_v13 }
  0x9d   : > { %794 = vperm.xlu0 %4965, %v785_v12   ;;  %vm561_vm0 = vcmp.eq.s32.totalorder %v371_v15, %v5674_v13  ;;  %v4597_v32 = vsel %vm563_vm3, 1.0, %v7671_v20 }
  0x9e   : > { %v4595_v21 = vsel %vm561_vm0, 1.0, %v7671_v20 }
  0x9f   : > { %v380_v18 = vpop.permute.xlu1 %379 }
  0xa0   : > { %v374_v19 = vpop.permute.xlu0 %373  ;;  %803 = vperm.xlu1 %4966, %v788_v16   ;;  %vm564_vm4 = vcmp.eq.s32.totalorder %v380_v18, %v5674_v13 }
  0xa1   : > { %vm562_vm1 = vcmp.eq.s32.totalorder %v374_v19, %v5674_v13  ;;  %800 = vperm.xlu0 %4965, %v787_v17   ;;  %v4598_v33 = vsel %vm564_vm4, 1.0, %v7671_v20 }
  0xa2   : > { %v4596_v22 = vsel %vm562_vm1, 1.0, %v7671_v20  ;;  %v754_v34 = vpack.c.bf16 %v4598_v33, %v4597_v32 }
  0xa3   : > { %v753_v25 = vpack.c.bf16 %v4596_v22, %v4595_v21  ;;  %v386_v26 = vpop.permute.xlu1 %385 }
  0xa4   : > { %v383_v27 = vpop.permute.xlu0 %382  ;;  %809 = vperm.xlu1 %4966, %v790_v23   ;;  %vm566_vm5 = vcmp.eq.s32.totalorder %v386_v26, %v5674_v13 }
  0xa5   : > { %806 = vperm.xlu0 %4965, %v789_v24   ;;  %4675 = vmatmul.mubr.msk.bf16.vlgmr.msra.gmra.mrb[0].mxu0 %vm893_vm2, %v753_v25  ;;  %vm565_vm6 = vcmp.eq.s32.totalorder %v383_v27, %v5674_v13  ;;  %v4600_v39 = vsel %vm566_vm5, 1.0, %v7671_v20 }
  0xa6   : > { %1032 = vmatprep.mubr.bf16.mxu0 %v5475_v1  ;;  %v4599_v40 = vsel %vm565_vm6, 1.0, %v7671_v20 }
  0xa7   : > { %v392_v30 = vpop.permute.xlu1 %391  ;;  %v755_v41 = vpack.c.bf16 %v4600_v39, %v4599_v40 }
  0xa8   : > { %v389_v31 = vpop.permute.xlu0 %388  ;;  %815 = vperm.xlu1 %4966, %v792_v28   ;;  %vm568_vm7 = vcmp.eq.s32.totalorder %v392_v30, %v5674_v13 }
  0xa9   : > { %812 = vperm.xlu0 %4965, %v791_v29   ;;  %vm567_vm8 = vcmp.eq.s32.totalorder %v389_v31, %v5674_v13  ;;  %v4602_v46 = vsel %vm568_vm7, 1.0, %v7671_v20 }
  0xaa   : > { %v4601_v47 = vsel %vm567_vm8, 1.0, %v7671_v20 }
  0xab   : > { %v398_v35 = vpop.permute.xlu1 %397  ;;  %v756_v48 = vpack.c.bf16 %v4602_v46, %v4601_v47 }
  0xac   : > { %v395_v36 = vpop.permute.xlu0 %394  ;;  %vm570_vm9 = vcmp.eq.s32.totalorder %v398_v35, %v5674_v13 }
  0xad   : > { %4676 = vmatmul.mubr.msk.bf16.gmra.mrb[4].mxu0 %vm893_vm2, %v754_v34  ;;  %vm569_vm10 = vcmp.eq.s32.totalorder %v395_v36, %v5674_v13  ;;  %v4604_v53 = vsel %vm570_vm9, 1.0, %v7671_v20  ;;  %v5796_v34 = vld [vmem:[%s7667_s4] sm:$0xff]  }
  0xae   : > { %1042 = vmatprep.mubr.bf16.mxu0 %v5475_v1  ;;  %v4603_v54 = vsel %vm569_vm10, 1.0, %v7671_v20  ;;  %4799 = vmatprep.subr.bf16.mxu1 %v5796_v34 }
  0xaf   : > { %v404_v37 = vpop.permute.xlu1 %403  ;;  %v757_v55 = vpack.c.bf16 %v4604_v53, %v4603_v54 }
  0xb0   : > { %v401_v38 = vpop.permute.xlu0 %400  ;;  %vm572_vm11 = vcmp.eq.s32.totalorder %v404_v37, %v5674_v13 }
  0xb1   : > { %vm571_vm12 = vcmp.eq.s32.totalorder %v401_v38, %v5674_v13  ;;  %v4606_v60 = vsel %vm572_vm11, 1.0, %v7671_v20 }
  0xb2   : > { %v4605_v61 = vsel %vm571_vm12, 1.0, %v7671_v20 }
  0xb3   : > { %v410_v42 = vpop.permute.xlu1 %409  ;;  %v758_v62 = vpack.c.bf16 %v4606_v60, %v4605_v61 }
  0xb4   : > { %v407_v43 = vpop.permute.xlu0 %406  ;;  %vm574_vm13 = vcmp.eq.s32.totalorder %v410_v42, %v5674_v13 }
  0xb5   : > { %4677 = vmatmul.mubr.msk.bf16.gmra.mrb[8].mxu0 %vm893_vm2, %v755_v41  ;;  %vm573_vm14 = vcmp.eq.s32.totalorder %v407_v43, %v5674_v13  ;;  %v4608_v4 = vsel %vm574_vm13, 1.0, %v7671_v20 }
  0xb6   : > { %1052 = vmatprep.mubr.bf16.mxu0 %v5475_v1  ;;  %v4607_v5 = vsel %vm573_vm14, 1.0, %v7671_v20 }
  0xb7   : > { %v416_v44 = vpop.permute.xlu1 %415  ;;  %v759_v6 = vpack.c.bf16 %v4608_v4, %v4607_v5 }
  0xb8   : > { %v413_v45 = vpop.permute.xlu0 %412  ;;  %vm576_vm15 = vcmp.eq.s32.totalorder %v416_v44, %v5674_v13 }
  0xb9   : > { %vm575_vm0 = vcmp.eq.s32.totalorder %v413_v45, %v5674_v13  ;;  %v4610_v11 = vsel %vm576_vm15, 1.0, %v7671_v20 }
  0xba   : > { %v4609_v12 = vsel %vm575_vm0, 1.0, %v7671_v20 }
  0xbb   : > { %v422_v49 = vpop.permute.xlu1 %421  ;;  %v760_v14 = vpack.c.bf16 %v4610_v11, %v4609_v12 }
  0xbc   : > { %v419_v50 = vpop.permute.xlu0 %418  ;;  %vm578_vm1 = vcmp.eq.s32.totalorder %v422_v49, %v5674_v13 }
  0xbd   : > { %4678 = vmatmul.mubr.msk.bf16.gmra.mrb[12].mxu0 %vm893_vm2, %v756_v48  ;;  %vm577_vm3 = vcmp.eq.s32.totalorder %v419_v50, %v5674_v13  ;;  %v4612_v19 = vsel %vm578_vm1, 1.0, %v7671_v20 }
  0xbe   : > { %1062 = vmatprep.mubr.bf16.mxu0 %v5475_v1  ;;  %v4611_v21 = vsel %vm577_vm3, 1.0, %v7671_v20 }
  0xbf   : > { %v428_v51 = vpop.permute.xlu1 %427  ;;  %v761_v22 = vpack.c.bf16 %v4612_v19, %v4611_v21  ;;  %v4980_v21 = vld [vmem:[%s7667_s4 + $0x8] sm:$0xff]  }
  0xc0   : > { %v425_v52 = vpop.permute.xlu0 %424  ;;  %vm580_vm4 = vcmp.eq.s32.totalorder %v428_v51, %v5674_v13 }
  0xc1   : > { %vm579_vm5 = vcmp.eq.s32.totalorder %v425_v52, %v5674_v13  ;;  %v4614_v27 = vsel %vm580_vm4, 1.0, %v7671_v20 }
  0xc2   : > { %v4613_v28 = vsel %vm579_vm5, 1.0, %v7671_v20 }
  0xc3   : > { %v5710_v56 = vpop.permute.xlu1 %433  ;;  %v762_v29 = vpack.c.bf16 %v4614_v27, %v4613_v28 }
  0xc4   : > { %v5712_v57 = vpop.permute.xlu0 %430  ;;  %vm582_vm8 = vcmp.eq.s32.totalorder %v5710_v56, %v5674_v13 }
  0xc5   : > { %4679 = vmatmul.mubr.msk.bf16.gmra.mrb[16].mxu0 %vm893_vm2, %v757_v55  ;;  %vm581_vm9 = vcmp.eq.s32.totalorder %v5712_v57, %v5674_v13  ;;  %v4616_v38 = vsel %vm582_vm8, 1.0, %v7671_v20 }
  0xc6   : > { %1072 = vmatprep.mubr.bf16.mxu0 %v5475_v1  ;;  %v4615_v39 = vsel %vm581_vm9, 1.0, %v7671_v20 }
  0xc7   : > { %v5718_v58 = vpop.permute.xlu1 %439  ;;  %v763_v43 = vpack.c.bf16 %v4616_v38, %v4615_v39 }
  0xc8   : > { %v5720_v59 = vpop.permute.xlu0 %436  ;;  %vm584_vm14 = vcmp.eq.s32.totalorder %v5718_v58, %v5674_v13 }
  0xc9   : > { %vm583_vm15 = vcmp.eq.s32.totalorder %v5720_v59, %v5674_v13  ;;  %v4618_v51 = vsel %vm584_vm14, 1.0, %v7671_v20 }
  0xca   : > { %v4617_v52 = vsel %vm583_vm15, 1.0, %v7671_v20 }
  0xcb   : > { %v5724_v63 = vpop.permute.xlu1 %445  ;;  %v764_v56 = vpack.c.bf16 %v4618_v51, %v4617_v52 }
  0xcc   : > { %v5726_v0 = vpop.permute.xlu0 %442  ;;  %vm586_vm5 = vcmp.eq.s32.totalorder %v5724_v63, %v5674_v13 }
  0xcd   : > { %4680 = vmatmul.mubr.msk.bf16.gmra.mrb[20].mxu0 %vm893_vm2, %v758_v62  ;;  %v4620_v63 = vsel %vm586_vm5, 1.0, %v7671_v20 }
  0xce   : > { %1082 = vmatprep.mubr.bf16.mxu0 %v5475_v1 }
  0xcf   : > { %v5732_v2 = vpop.permute.xlu1 %451 }
  0xd0   : > { %v5734_v3 = vpop.permute.xlu0 %448 }
  0xd3   : > { %v5738_v7 = vpop.permute.xlu1 %457 }
  0xd4   : > { %v5740_v8 = vpop.permute.xlu0 %454 }
  0xd5   : > { %4681 = vmatmul.mubr.msk.bf16.gmra.mrb[24].mxu0 %vm893_vm2, %v759_v6 }
  0xd6   : > { %1092 = vmatprep.mubr.bf16.mxu0 %v5475_v1 }
  0xd7   : > { %v5746_v9 = vpop.permute.xlu1 %463 }
  0xd8   : > { %v5748_v10 = vpop.permute.xlu0 %460 }
  0xdb   : > { %v5752_v15 = vpop.permute.xlu1 %469 }
  0xdc   : > { %v5754_v16 = vpop.permute.xlu0 %466 }
  0xdd   : > { %4682 = vmatmul.mubr.msk.bf16.gmra.mrb[28].mxu0 %vm893_vm2, %v760_v14 }
  0xde   : > { %1102 = vmatprep.mubr.bf16.mxu0 %v5475_v1 }
  0xdf   : > { %v5760_v17 = vpop.permute.xlu1 %475 }
  0xe0   : > { %v5762_v18 = vpop.permute.xlu0 %472 }
  0xe3   : > { %v5766_v23 = vpop.permute.xlu1 %481 }
  0xe4   : > { %v5768_v24 = vpop.permute.xlu0 %478 }
  0xe5   : > { %4683 = vmatmul.mubr.msk.bf16.gmra.mrb[32].mxu0 %vm893_vm2, %v761_v22 }
  0xe6   : > { %1112 = vmatprep.mubr.bf16.mxu0 %v5475_v1 }
  0xe7   : > { %v5774_v25 = vpop.permute.xlu1 %487 }
  0xe8   : > { %v5776_v26 = vpop.permute.xlu0 %484 }
  0xeb   : > { %v494_v30 = vpop.permute.xlu1 %493 }
  0xec   : > { %v491_v31 = vpop.permute.xlu0 %490  ;;  %vm602_vm6 = vcmp.eq.s32.totalorder %v494_v30, %v5674_v13 }
  0xed   : > { %vm601_vm7 = vcmp.eq.s32.totalorder %v491_v31, %v5674_v13  ;;  %v5787_v32 = vsel %vm602_vm6, 1.0, %v7671_v20  ;;  %4684 = vmatmul.mubr.msk.bf16.gmra.mrb[36].mxu0 %vm893_vm2, %v762_v29  ;;  %vm585_vm6 = vcmp.eq.s32.totalorder %v5726_v0, %v5674_v13 }
  0xee   : > { %v5790_v33 = vsel %vm601_vm7, 1.0, %v7671_v20  ;;  %1122 = vmatprep.mubr.bf16.mxu0 %v5475_v1  ;;  %v4619_v5 = vsel %vm585_vm6, 1.0, %v7671_v20 }
  0xef   : > { %v773_v35 = vpack.c.bf16 %v5787_v32, %v5790_v33  ;;  %v500_v36 = vpop.permute.xlu1 %499  ;;  %v765_v12 = vpack.c.bf16 %v4620_v63, %v4619_v5 }
  0xf0   : > { %v497_v37 = vpop.permute.xlu0 %496  ;;  %vm604_vm10 = vcmp.eq.s32.totalorder %v500_v36, %v5674_v13 }
  0xf1   : > { %vm603_vm11 = vcmp.eq.s32.totalorder %v497_v37, %v5674_v13  ;;  %v5807_v40 = vsel %vm604_vm10, 1.0, %v7671_v20 }
  0xf2   : > { %v5810_v41 = vsel %vm603_vm11, 1.0, %v7671_v20  ;;  %vm588_vm11 = vcmp.eq.s32.totalorder %v5732_v2, %v5674_v13 }
  0xf3   : > { %v774_v42 = vpack.c.bf16 %v5807_v40, %v5810_v41  ;;  %v506_v44 = vpop.permute.xlu1 %505  ;;  %v4622_v30 = vsel %vm588_vm11, 1.0, %v7671_v20 }
  0xf4   : > { %v503_v45 = vpop.permute.xlu0 %502  ;;  %vm606_vm12 = vcmp.eq.s32.totalorder %v506_v44, %v5674_v13  ;;  %v4982_v44 = vld [vmem:[%s7667_s4 + $0x18] sm:$0xff]  }
  0xf5   : > { %vm605_vm13 = vcmp.eq.s32.totalorder %v503_v45, %v5674_v13  ;;  %v5821_v46 = vsel %vm606_vm12, 1.0, %v7671_v20  ;;  %4685 = vmatmul.mubr.msk.bf16.gmra.mrb[40].mxu0 %vm893_vm2, %v763_v43  ;;  %vm587_vm12 = vcmp.eq.s32.totalorder %v5734_v3, %v5674_v13  ;;  %v4981_v3 = vld [vmem:[%s7667_s4 + $0x10] sm:$0xff]  }
  0xf6   : > { %v5824_v47 = vsel %vm605_vm13, 1.0, %v7671_v20  ;;  %1132 = vmatprep.mubr.bf16.mxu0 %v5475_v1  ;;  %v4621_v31 = vsel %vm587_vm12, 1.0, %v7671_v20  ;;  %vm594_vm12 = vcmp.eq.s32.totalorder %v5752_v15, %v5674_v13 }
  0xf7   : > { %v775_v48 = vpack.c.bf16 %v5821_v46, %v5824_v47  ;;  %v512_v49 = vpop.permute.xlu1 %511  ;;  %v766_v38 = vpack.c.bf16 %v4622_v30, %v4621_v31  ;;  %v4628_v31 = vsel %vm594_vm12, 1.0, %v7671_v20 }
  0xf8   : > { %v509_v50 = vpop.permute.xlu0 %508  ;;  %vm608_vm0 = vcmp.eq.s32.totalorder %v512_v49, %v5674_v13 }
  0xf9   : > { %vm607_vm1 = vcmp.eq.s32.totalorder %v509_v50, %v5674_v13  ;;  %v5835_v53 = vsel %vm608_vm0, 1.0, %v7671_v20 }
  0xfa   : > { %v5838_v54 = vsel %vm607_vm1, 1.0, %v7671_v20  ;;  %vm590_vm1 = vcmp.eq.s32.totalorder %v5738_v7, %v5674_v13 }
  0xfb   : > { %v776_v55 = vpack.c.bf16 %v5835_v53, %v5838_v54  ;;  %v518_v57 = vpop.permute.xlu1 %517  ;;  %v4624_v52 = vsel %vm590_vm1, 1.0, %v7671_v20  ;;  %vm597_vm1 = vcmp.eq.s32.totalorder %v5768_v24, %v5674_v13 }
  0xfc   : > { %v515_v58 = vpop.permute.xlu0 %514  ;;  %vm610_vm3 = vcmp.eq.s32.totalorder %v518_v57, %v5674_v13 }
  0xfd   : > { %vm609_vm4 = vcmp.eq.s32.totalorder %v515_v58, %v5674_v13  ;;  %v5849_v59 = vsel %vm610_vm3, 1.0, %v7671_v20  ;;  %4686 = vmatmul.mubr.msk.bf16.gmra.mrb[44].mxu0 %vm893_vm2, %v764_v56  ;;  %vm589_vm3 = vcmp.eq.s32.totalorder %v5740_v8, %v5674_v13  ;;  %v4983_v8 = vld [vmem:[%s7667_s4 + $0x20] sm:$0xff]  }
  0xfe   : > { %v5852_v60 = vsel %vm609_vm4, 1.0, %v7671_v20  ;;  %1142 = vmatprep.mubr.bf16.mxu0 %v5475_v1  ;;  %v4623_v56 = vsel %vm589_vm3, 1.0, %v7671_v20  ;;  %vm600_vm3 = vcmp.eq.s32.totalorder %v5774_v25, %v5674_v13 }
  0xff   : > { %v777_v61 = vpack.c.bf16 %v5849_v59, %v5852_v60  ;;  %v536_v62 = vpop.permute.xlu1 %535 }
 0x100   : > { %v533_v4 = vpop.permute.xlu0 %532  ;;  %vm616_vm7 = vcmp.eq.s32.totalorder %v536_v62, %v5674_v13 }
 0x101   : > { %vm615_vm8 = vcmp.eq.s32.totalorder %v533_v4, %v5674_v13  ;;  %v4650_v0 = vsel %vm616_vm7, 1.0, %v7671_v20  ;;  %v767_v4 = vpack.c.bf16 %v4624_v52, %v4623_v56 }
 0x102   : > { %v4649_v6 = vsel %vm615_vm8, 1.0, %v7671_v20  ;;  %vm592_vm8 = vcmp.eq.s32.totalorder %v5746_v9, %v5674_v13 }
 0x103   : > { %v780_v11 = vpack.c.bf16 %v4650_v0, %v4649_v6  ;;  %v524_v14 = vpop.permute.xlu1 %523  ;;  %v4984_v0 = vld [vmem:[%s7667_s4 + $0x28] sm:$0xff]   ;;  %v4626_v9 = vsel %vm592_vm8, 1.0, %v7671_v20 }
 0x104   : > { %v521_v19 = vpop.permute.xlu0 %520  ;;  %vm612_vm9 = vcmp.eq.s32.totalorder %v524_v14, %v5674_v13 }
 0x105   : > { %vm611_vm10 = vcmp.eq.s32.totalorder %v521_v19, %v5674_v13  ;;  %4702 = vmatmul.mubr.msk.bf16.vlgmr.msra.gmra.mrb[0].mxu1 %vm893_vm2, %v780_v11  ;;  %v5875_v22 = vsel %vm612_vm9, 1.0, %v7671_v20  ;;  %4687 = vmatmul.mubr.msk.bf16.gmra.mrb[48].mxu0 %vm893_vm2, %v765_v12  ;;  %vm591_vm9 = vcmp.eq.s32.totalorder %v5748_v10, %v5674_v13  ;;  %v4985_v12 = vld [vmem:[%s7667_s4 + $0x30] sm:$0xff]  }
 0x106   : > { %v5878_v27 = vsel %vm611_vm10, 1.0, %v7671_v20  ;;  %1302 = vmatprep.mubr.bf16.mxu1 %v5475_v1  ;;  %1152 = vmatprep.mubr.bf16.mxu0 %v5475_v1  ;;  %v4625_v10 = vsel %vm591_vm9, 1.0, %v7671_v20 }
 0x107   : > { %v778_v28 = vpack.c.bf16 %v5875_v22, %v5878_v27  ;;  %4800 = vmatpush3.bf16.msra.mxu1 %v5796_v34  ;;  %v542_v2 = vpop.permute.xlu1 %541 }
 0x108   : > { %v539_v29 = vpop.permute.xlu0 %538  ;;  %4801 = vmatprep.subr.bf16.mxu1 %v4980_v21  ;;  %vm618_vm13 = vcmp.eq.s32.totalorder %v542_v2, %v5674_v13  ;;  %v768_v2 = vpack.c.bf16 %v4626_v9, %v4625_v10 }
 0x109   : > { %vm617_vm14 = vcmp.eq.s32.totalorder %v539_v29, %v5674_v13  ;;  %v4652_v36 = vsel %vm618_vm13, 1.0, %v7671_v20  ;;  %v4986_v29 = vld [vmem:[%s7667_s4 + $0x38] sm:$0xff]   ;;  %vm593_vm13 = vcmp.eq.s32.totalorder %v5754_v16, %v5674_v13 }
 0x10a   : > { %v4651_v37 = vsel %vm617_vm14, 1.0, %v7671_v20  ;;  %vm596_vm14 = vcmp.eq.s32.totalorder %v5760_v17, %v5674_v13 }
 0x10b   : > { %v781_v34 = vpack.c.bf16 %v4652_v36, %v4651_v37  ;;  %4802 = vmatpush3.bf16.msra.mxu1 %v4980_v21  ;;  %v530_v39 = vpop.permute.xlu1 %529  ;;  %v4627_v36 = vsel %vm593_vm13, 1.0, %v7671_v20  ;;  %v4630_v16 = vsel %vm596_vm14, 1.0, %v7671_v20  ;;  %vm4203_vm14 = vcmask 1041409  }
 0x10c   : > { %v527_v43 = vpop.permute.xlu0 %526  ;;  %4803 = vmatprep.subr.bf16.mxu1 %v4981_v3  ;;  %vm614_vm15 = vcmp.eq.s32.totalorder %v530_v39, %v5674_v13  ;;  %v769_v37 = vpack.c.bf16 %v4628_v31, %v4627_v36 }
 0x10d   : > { %vm613_vm0 = vcmp.eq.s32.totalorder %v527_v43, %v5674_v13  ;;  %4703 = vmatmul.mubr.msk.bf16.gmra.mrb[4].mxu1 %vm893_vm2, %v781_v34  ;;  %v5906_v45 = vsel %vm614_vm15, 1.0, %v7671_v20  ;;  %4688 = vmatmul.mubr.msk.bf16.gmra.mrb[52].mxu0 %vm893_vm2, %v766_v38  ;;  %vm595_vm15 = vcmp.eq.s32.totalorder %v5762_v18, %v5674_v13  ;;  %v4631_v18 = vsel %vm597_vm1, 1.0, %v7671_v20 }
 0x10e   : > { %v5909_v49 = vsel %vm613_vm0, 1.0, %v7671_v20  ;;  %1312 = vmatprep.mubr.bf16.mxu1 %v5475_v1  ;;  %1162 = vmatprep.mubr.bf16.mxu0 %v5475_v1  ;;  %v4629_v34 = vsel %vm595_vm15, 1.0, %v7671_v20  ;;  %vm598_vm0 = vcmp.eq.s32.totalorder %v5766_v23, %v5674_v13  ;;  %v4634_v23 = vsel %vm600_vm3, 1.0, %v7671_v20 }
 0x10f   : > { %v779_v50 = vpack.c.bf16 %v5906_v45, %v5909_v49  ;;  %4804 = vmatpush3.bf16.msra.mxu1 %v4981_v3  ;;  %v548_v7 = vpop.permute.xlu1 %547  ;;  %v770_v38 = vpack.c.bf16 %v4630_v16, %v4629_v34  ;;  %v4632_v17 = vsel %vm598_vm0, 1.0, %v7671_v20  ;;  %vm4206_vm15 = vcmask 1042434  }
 0x110   : > { %v545_v51 = vpop.permute.xlu0 %544  ;;  %4805 = vmatprep.subr.bf16.mxu1 %v4982_v44  ;;  %vm620_vm4 = vcmp.eq.s32.totalorder %v548_v7, %v5674_v13  ;;  %v771_v39 = vpack.c.bf16 %v4632_v17, %v4631_v18  ;;  %vm4209_vm0 = vcmask 1043459   ;;  %vm4212_vm1 = vcmask 1044484  }
 0x111   : > { %vm619_vm5 = vcmp.eq.s32.totalorder %v545_v51, %v5674_v13  ;;  %v4654_v57 = vsel %vm620_vm4, 1.0, %v7671_v20  ;;  %vm599_vm4 = vcmp.eq.s32.totalorder %v5776_v26, %v5674_v13  ;;  %vm4215_vm3 = vcmask 1045509  }
 0x112   : > { %v4653_v58 = vsel %vm619_vm5, 1.0, %v7671_v20  ;;  %v4633_v24 = vsel %vm599_vm4, 1.0, %v7671_v20  ;;  %vm1792_vm5 = vcmask 31744   ;;  %vm4218_vm4 = vcmask 1046534  }
 0x113   : > { %v782_v62 = vpack.c.bf16 %v4654_v57, %v4653_v58  ;;  %4806 = vmatpush3.bf16.msra.mxu1 %v4982_v44  ;;  %v554_v63 = vpop.permute.xlu1 %553  ;;  %v772_v43 = vpack.c.bf16 %v4634_v23, %v4633_v24 }
 0x114   : > { %v551_v5 = vpop.permute.xlu0 %550  ;;  %4807 = vmatprep.subr.bf16.mxu1 %v4983_v8  ;;  %vm622_vm6 = vcmp.eq.s32.totalorder %v554_v63, %v5674_v13 }
 0x115   : > { %vm621_vm7 = vcmp.eq.s32.totalorder %v551_v5, %v5674_v13  ;;  %4704 = vmatmul.mubr.msk.bf16.gmra.mrb[8].mxu1 %vm893_vm2, %v782_v62  ;;  %4689 = vmatmul.mubr.msk.bf16.gmra.mrb[56].mxu0 %vm893_vm2, %v767_v4  ;;  %v4656_v6 = vsel %vm622_vm6, 1.0, %v7671_v20 }
 0x116   : > { %1322 = vmatprep.mubr.bf16.mxu1 %v5475_v1  ;;  %1172 = vmatprep.mubr.bf16.mxu0 %v5475_v1  ;;  %v4655_v11 = vsel %vm621_vm7, 1.0, %v7671_v20 }
 0x117   : > { %4808 = vmatpush3.bf16.msra.mxu1 %v4983_v8  ;;  %v560_v14 = vpop.permute.xlu1 %559  ;;  %v783_v21 = vpack.c.bf16 %v4656_v6, %v4655_v11 }
 0x118   : > { %4809 = vmatprep.subr.bf16.mxu1 %v4984_v0  ;;  %v557_v19 = vpop.permute.xlu0 %556  ;;  %vm624_vm10 = vcmp.eq.s32.totalorder %v560_v14, %v5674_v13 }
 0x119   : > { %vm623_vm11 = vcmp.eq.s32.totalorder %v557_v19, %v5674_v13  ;;  %v4658_v3 = vsel %vm624_vm10, 1.0, %v7671_v20 }
 0x11a   : > { %v4657_v30 = vsel %vm623_vm11, 1.0, %v7671_v20 }
 0x11b   : > { %4810 = vmatpush3.bf16.msra.mxu1 %v4984_v0  ;;  %v784_v15 = vpack.c.bf16 %v4658_v3, %v4657_v30 }
 0x11c   : > { %4811 = vmatprep.subr.bf16.mxu1 %v4985_v12 }
 0x11d   : > { %4705 = vmatmul.mubr.msk.bf16.gmra.mrb[12].mxu1 %vm893_vm2, %v783_v21  ;;  %4690 = vmatmul.mubr.msk.bf16.gmra.mrb[60].mxu0 %vm893_vm2, %v768_v2 }
 0x11e   : > { %1332 = vmatprep.mubr.bf16.mxu1 %v5475_v1  ;;  %1182 = vmatprep.mubr.bf16.mxu0 %v5475_v1 }
 0x11f   : > { %4812 = vmatpush3.bf16.msra.mxu1 %v4985_v12 }
 0x120   : > { %4813 = vmatprep.subr.bf16.mxu1 %v4986_v29 }
 0x123   : > { %4814 = vmatpush3.bf16.msra.mxu1 %v4986_v29 }
 0x125   : > { %4706 = vmatmul.mubr.msk.bf16.gmra.mrb[16].mxu1 %vm893_vm2, %v784_v15  ;;  %4691 = vmatmul.mubr.msk.bf16.gmra.mrb[64].mxu0 %vm893_vm2, %v769_v37 }
 0x126   : > { %1192 = vmatprep.mubr.bf16.mxu0 %v5475_v1 }
 0x12d   : > { %4692 = vmatmul.mubr.msk.bf16.gmra.mrb[68].mxu0 %vm893_vm2, %v770_v38 }
 0x12e   : > { %1202 = vmatprep.mubr.bf16.mxu0 %v5475_v1 }
 0x135   : > { %4693 = vmatmul.mubr.msk.bf16.gmra.mrb[72].mxu0 %vm893_vm2, %v771_v39 }
 0x136   : > { %1212 = vmatprep.mubr.bf16.mxu0 %v5475_v1 }
 0x13d   : > { %4694 = vmatmul.mubr.msk.bf16.gmra.mrb[76].mxu0 %vm893_vm2, %v772_v43 }
 0x13e   : > { %1222 = vmatprep.mubr.bf16.mxu0 %v5475_v1 }
 0x145   : > { %4695 = vmatmul.mubr.msk.bf16.gmra.mrb[80].mxu0 %vm893_vm2, %v773_v35 }
 0x146   : > { %1232 = vmatprep.mubr.bf16.mxu0 %v5475_v1 }
 0x14d   : > { %4696 = vmatmul.mubr.msk.bf16.gmra.mrb[84].mxu0 %vm893_vm2, %v774_v42 }
 0x14e   : > { %1242 = vmatprep.mubr.bf16.mxu0 %v5475_v1 }
 0x155   : > { %4697 = vmatmul.mubr.msk.bf16.gmra.mrb[88].mxu0 %vm893_vm2, %v775_v48 }
 0x156   : > { %1252 = vmatprep.mubr.bf16.mxu0 %v5475_v1 }
 0x15d   : > { %4698 = vmatmul.mubr.msk.bf16.gmra.mrb[92].mxu0 %vm893_vm2, %v776_v55 }
 0x15e   : > { %1262 = vmatprep.mubr.bf16.mxu0 %v5475_v1 }
 0x165   : > { %4699 = vmatmul.mubr.msk.bf16.gmra.mrb[96].mxu0 %vm893_vm2, %v777_v61 }
 0x166   : > { %1272 = vmatprep.mubr.bf16.mxu0 %v5475_v1 }
 0x16d   : > { %4700 = vmatmul.mubr.msk.bf16.gmra.mrb[100].mxu0 %vm893_vm2, %v778_v28 }
 0x16e   : > { %1282 = vmatprep.mubr.bf16.mxu0 %v5475_v1 }
 0x175   : > { %4701 = vmatmul.mubr.msk.bf16.gmra.mrb[104].mxu0 %vm893_vm2, %v779_v50  ;;  %vm3662_vm2 = vcmask 1041408  }
 0x178   : > { %v1024_v25 = vpop.f32.mrb[0].mxu0 }
 0x179   : > { %v6023_v26 = vpop.f32.mrb[1].mxu0  ;;  %4995 = vtanh.f32 %v1024_v25 }
 0x17a   : > { %v1028_v32 = vpop.f32.mrb[2].mxu0 }
 0x17b   : > { %4997 = vtanh.f32 %v1028_v32  ;;  %v6025_v33 = vpop.f32.mrb[3].mxu0 }
 0x180   : > { %v1034_v35 = vpop.f32.mrb[4].mxu0 }
 0x181   : > { %v6027_v40 = vpop.f32.mrb[5].mxu0  ;;  %4999 = vtanh.f32 %v1034_v35 }
 0x182   : > { %v1038_v41 = vpop.f32.mrb[6].mxu0 }
 0x183   : > { %5001 = vtanh.f32 %v1038_v41  ;;  %v6029_v1 = vpop.f32.mrb[7].mxu0  ;;  %v4996_v42 = vpop.eup %4995 }
 0x185   : > { %v4998_v46 = vpop.eup %4997 }
 0x186   : > { %v1407_v47 = vpack.c.bf16 %v4998_v46, %v4996_v42 }
 0x188   : > { %v1044_v48 = vpop.f32.mrb[8].mxu0  ;;  %4815 = vmatprep.mubr.bf16.mxu1 %v1407_v47 }
 0x189   : > { %v6031_v53 = vpop.f32.mrb[9].mxu0  ;;  %5003 = vtanh.f32 %v1044_v48 }
 0x18a   : > { %7703 = vst [vmem:[#allocation5_spill] sm:$0xff] %v6031_v53  ;;  %v1048_v54 = vpop.f32.mrb[10].mxu0 }
 0x18b   : > { %5005 = vtanh.f32 %v1048_v54  ;;  %v6033_v55 = vpop.f32.mrb[11].mxu0  ;;  %v5000_v59 = vpop.eup %4999 }
 0x18c   : > { %7704 = vst [vmem:[#allocation6_spill] sm:$0xff] %v6033_v55 }
 0x18d   : > { %v5002_v60 = vpop.eup %5001 }
 0x18e   : > { %v1408_v61 = vpack.c.bf16 %v5002_v60, %v5000_v59 }
 0x190   : > { %v1054_v22 = vpop.f32.mrb[12].mxu0  ;;  %4816 = vmatmul.mubr.bf16.vlgmr.msra.gmra.mrb[20].mxu1 %v1408_v61 }
 0x191   : > { %v6035_v27 = vpop.f32.mrb[13].mxu0  ;;  %5007 = vtanh.f32 %v1054_v22 }
 0x192   : > { %7705 = vst [vmem:[#allocation7_spill] sm:$0xff] %v6035_v27  ;;  %v1058_v28 = vpop.f32.mrb[14].mxu0 }
 0x193   : > { %5009 = vtanh.f32 %v1058_v28  ;;  %v6037_v44 = vpop.f32.mrb[15].mxu0  ;;  %v5004_v45 = vpop.eup %5003 }
 0x194   : > { %7706 = vst [vmem:[#allocation8_spill] sm:$0xff] %v6037_v44 }
 0x195   : > { %v5006_v49 = vpop.eup %5005 }
 0x196   : > { %v1409_v50 = vpack.c.bf16 %v5006_v49, %v5004_v45 }
 0x198   : > { %v1064_v7 = vpop.f32.mrb[16].mxu0  ;;  %4819 = vmatprep.mubr.bf16.mxu1 %v1409_v50 }
 0x199   : > { %v6039_v51 = vpop.f32.mrb[17].mxu0  ;;  %5011 = vtanh.f32 %v1064_v7 }
 0x19a   : > { %7707 = vst [vmem:[#allocation9_spill] sm:$0xff] %v6039_v51  ;;  %v1068_v8 = vpop.f32.mrb[18].mxu0 }
 0x19b   : > { %5013 = vtanh.f32 %v1068_v8  ;;  %v6041_v52 = vpop.f32.mrb[19].mxu0  ;;  %v5008_v56 = vpop.eup %5007 }
 0x19c   : > { %7708 = vst [vmem:[#allocation10_spill] sm:$0xff] %v6041_v52 }
 0x19d   : > { %v5010_v57 = vpop.eup %5009 }
 0x19e   : > { %v1410_v58 = vpack.c.bf16 %v5010_v57, %v5008_v56 }
 0x1a0   : > { %v1074_v62 = vpop.f32.mrb[20].mxu0  ;;  %4820 = vmatmul.mubr.bf16.gmra.mrb[24].mxu1 %v1410_v58 }
 0x1a1   : > { %v6043_v4 = vpop.f32.mrb[21].mxu0  ;;  %5015 = vtanh.f32 %v1074_v62 }
 0x1a2   : > { %7709 = vst [vmem:[#allocation11_spill] sm:$0xff] %v6043_v4  ;;  %v1078_v63 = vpop.f32.mrb[22].mxu0 }
 0x1a3   : > { %5017 = vtanh.f32 %v1078_v63  ;;  %v6045_v5 = vpop.f32.mrb[23].mxu0  ;;  %v5012_v0 = vpop.eup %5011 }
 0x1a4   : > { %7710 = vst [vmem:[#allocation12_spill] sm:$0xff] %v6045_v5 }
 0x1a5   : > { %v5014_v6 = vpop.eup %5013 }
 0x1a6   : > { %v1411_v11 = vpack.c.bf16 %v5014_v6, %v5012_v0 }
 0x1a8   : > { %v1084_v12 = vpop.f32.mrb[24].mxu0  ;;  %4823 = vmatprep.mubr.bf16.mxu1 %v1411_v11 }
 0x1a9   : > { %v6047_v9 = vpop.f32.mrb[25].mxu0  ;;  %5019 = vtanh.f32 %v1084_v12 }
 0x1aa   : > { %7711 = vst [vmem:[#allocation13_spill] sm:$0xff] %v6047_v9  ;;  %v1088_v10 = vpop.f32.mrb[26].mxu0 }
 0x1ab   : > { %5021 = vtanh.f32 %v1088_v10  ;;  %v6049_v14 = vpop.f32.mrb[27].mxu0  ;;  %v5016_v19 = vpop.eup %5015 }
 0x1ac   : > { %7712 = vst [vmem:[#allocation14_spill] sm:$0xff] %v6049_v14 }
 0x1ad   : > { %v5018_v21 = vpop.eup %5017 }
 0x1ae   : > { %v1412_v2 = vpack.c.bf16 %v5018_v21, %v5016_v19 }
 0x1b0   : > { %v1094_v29 = vpop.f32.mrb[28].mxu0  ;;  %4824 = vmatmul.mubr.bf16.gmra.mrb[28].mxu1 %v1412_v2 }
 0x1b1   : > { %v6051_v3 = vpop.f32.mrb[29].mxu0  ;;  %5023 = vtanh.f32 %v1094_v29 }
 0x1b2   : > { %7713 = vst [vmem:[#allocation15_spill] sm:$0xff] %v6051_v3  ;;  %v1098_v30 = vpop.f32.mrb[30].mxu0 }
 0x1b3   : > { %5025 = vtanh.f32 %v1098_v30  ;;  %v6053_v31 = vpop.f32.mrb[31].mxu0  ;;  %v5020_v36 = vpop.eup %5019 }
 0x1b4   : > { %7714 = vst [vmem:[#allocation16_spill] sm:$0xff] %v6053_v31 }
 0x1b5   : > { %v5022_v15 = vpop.eup %5021 }
 0x1b6   : > { %v1413_v37 = vpack.c.bf16 %v5022_v15, %v5020_v36 }
 0x1b8   : > { %v1104_v16 = vpop.f32.mrb[32].mxu0  ;;  %4827 = vmatprep.mubr.bf16.mxu1 %v1413_v37 }
 0x1b9   : > { %v6055_v34 = vpop.f32.mrb[33].mxu0  ;;  %5027 = vtanh.f32 %v1104_v16 }
 0x1ba   : > { %7715 = vst [vmem:[#allocation17_spill] sm:$0xff] %v6055_v34  ;;  %v1108_v38 = vpop.f32.mrb[34].mxu0 }
 0x1bb   : > { %5029 = vtanh.f32 %v1108_v38  ;;  %v6057_v17 = vpop.f32.mrb[35].mxu0  ;;  %v5024_v18 = vpop.eup %5023 }
 0x1bc   : > { %7716 = vst [vmem:[#allocation18_spill] sm:$0xff] %v6057_v17 }
 0x1bd   : > { %v5026_v39 = vpop.eup %5025 }
 0x1be   : > { %v1414_v23 = vpack.c.bf16 %v5026_v39, %v5024_v18 }
 0x1c0   : > { %v1114_v24 = vpop.f32.mrb[36].mxu0  ;;  %4828 = vmatmul.mubr.bf16.gmra.mrb[32].mxu1 %v1414_v23 }
 0x1c1   : > { %v6059_v43 = vpop.f32.mrb[37].mxu0  ;;  %5031 = vtanh.f32 %v1114_v24 }
 0x1c2   : > { %7717 = vst [vmem:[#allocation19_spill] sm:$0xff] %v6059_v43  ;;  %v1118_v25 = vpop.f32.mrb[38].mxu0 }
 0x1c3   : > { %5033 = vtanh.f32 %v1118_v25  ;;  %v6061_v32 = vpop.f32.mrb[39].mxu0  ;;  %v5028_v35 = vpop.eup %5027 }
 0x1c4   : > { %7718 = vst [vmem:[#allocation20_spill] sm:$0xff] %v6061_v32 }
 0x1c5   : > { %v5030_v41 = vpop.eup %5029 }
 0x1c6   : > { %v1415_v42 = vpack.c.bf16 %v5030_v41, %v5028_v35 }
 0x1c8   : > { %v1124_v46 = vpop.f32.mrb[40].mxu0  ;;  %4831 = vmatprep.mubr.bf16.mxu1 %v1415_v42 }
 0x1c9   : > { %v6063_v47 = vpop.f32.mrb[41].mxu0  ;;  %5035 = vtanh.f32 %v1124_v46 }
 0x1ca   : > { %7719 = vst [vmem:[#allocation21_spill] sm:$0xff] %v6063_v47  ;;  %v1128_v48 = vpop.f32.mrb[42].mxu0 }
 0x1cb   : > { %5037 = vtanh.f32 %v1128_v48  ;;  %v6065_v54 = vpop.f32.mrb[43].mxu0  ;;  %v5032_v59 = vpop.eup %5031 }
 0x1cc   : > { %7720 = vst [vmem:[#allocation22_spill] sm:$0xff] %v6065_v54 }
 0x1cd   : > { %v5034_v60 = vpop.eup %5033 }
 0x1ce   : > { %v1416_v61 = vpack.c.bf16 %v5034_v60, %v5032_v59 }
 0x1d0   : > { %v1134_v22 = vpop.f32.mrb[44].mxu0  ;;  %4832 = vmatmul.mubr.bf16.gmra.mrb[36].mxu1 %v1416_v61 }
 0x1d1   : > { %v6067_v28 = vpop.f32.mrb[45].mxu0  ;;  %5039 = vtanh.f32 %v1134_v22 }
 0x1d2   : > { %7721 = vst [vmem:[#allocation23_spill] sm:$0xff] %v6067_v28  ;;  %v1138_v45 = vpop.f32.mrb[46].mxu0 }
 0x1d3   : > { %5041 = vtanh.f32 %v1138_v45  ;;  %v6069_v49 = vpop.f32.mrb[47].mxu0  ;;  %v5036_v50 = vpop.eup %5035 }
 0x1d4   : > { %7722 = vst [vmem:[#allocation24_spill] sm:$0xff] %v6069_v49 }
 0x1d5   : > { %v5038_v7 = vpop.eup %5037 }
 0x1d6   : > { %v1417_v8 = vpack.c.bf16 %v5038_v7, %v5036_v50  ;;  %v3649_v7 = vld [vmem:[%s7666_s3] sm:$0x3] }
 0x1d7   : > { %4921 = vmatprep.subr.msk.bf16.mxu1 %vm3662_vm2, %v3649_v7 }
 0x1d8   : > { %v1294_v56 = vpop.f32.mrb[0].mxu1  ;;  %v1144_v57 = vpop.f32.mrb[48].mxu0  ;;  %4835 = vmatprep.mubr.bf16.mxu1 %v1417_v8 }
 0x1d9   : > { %5043 = vtanh.f32 %v1294_v56  ;;  %v6071_v58 = vpop.f32.mrb[1].mxu1  ;;  %v6073_v62 = vpop.f32.mrb[49].mxu0 }
 0x1da   : > { %7723 = vst [vmem:[#allocation25_spill] sm:$0xff] %v6071_v58  ;;  %5045 = vtanh.f32 %v1144_v57  ;;  %7724 = vst [vmem:[#allocation26_spill] sm:$0xff] %v6073_v62  ;;  %v1298_v63 = vpop.f32.mrb[2].mxu1  ;;  %v1148_v0 = vpop.f32.mrb[50].mxu0  ;;  %v3664_v57 = vsel %vm3662_vm2, %v3649_v7, 0  ;;  %vm4221_vm2 = vcmask 1047559  }
 0x1db   : > { %5047 = vtanh.f32 %v1298_v63  ;;  %v6075_v6 = vpop.f32.mrb[3].mxu1  ;;  %v6077_v11 = vpop.f32.mrb[51].mxu0  ;;  %4880 = vmatpush3.bf16.msra.mxu1 %v3664_v57 }
 0x1dc   : > { %7725 = vst [vmem:[#allocation27_spill] sm:$0xff] %v6075_v6  ;;  %5049 = vtanh.f32 %v1148_v0  ;;  %7726 = vst [vmem:[#allocation28_spill] sm:$0xff] %v6077_v11  ;;  %v5040_v12 = vpop.eup %5039 }
 0x1dd   : > { %v5042_v10 = vpop.eup %5041 }
 0x1de   : > { %v1418_v19 = vpack.c.bf16 %v5042_v10, %v5040_v12 }
 0x1e0   : > { %v1304_v21 = vpop.f32.mrb[4].mxu1  ;;  %v1154_v2 = vpop.f32.mrb[52].mxu0  ;;  %4836 = vmatmul.mubr.bf16.gmra.mrb[40].mxu1 %v1418_v19 }
 0x1e1   : > { %5051 = vtanh.f32 %v1304_v21  ;;  %v6079_v29 = vpop.f32.mrb[5].mxu1  ;;  %v6081_v30 = vpop.f32.mrb[53].mxu0 }
 0x1e2   : > { %7727 = vst [vmem:[#allocation29_spill] sm:$0xff] %v6079_v29  ;;  %5053 = vtanh.f32 %v1154_v2  ;;  %7728 = vst [vmem:[#allocation30_spill] sm:$0xff] %v6081_v30  ;;  %v1308_v36 = vpop.f32.mrb[6].mxu1  ;;  %v1158_v37 = vpop.f32.mrb[54].mxu0 }
 0x1e3   : > { %v6083_v15 = vpop.eup %5043  ;;  %5055 = vtanh.f32 %v1308_v36  ;;  %v6085_v16 = vpop.f32.mrb[7].mxu1 }
 0x1e4   : > { %7729 = vst [vmem:[#allocation31_spill] sm:$0xff] %v6085_v16  ;;  %v5046_v38 = vpop.eup %5045  ;;  %5057 = vtanh.f32 %v1158_v37  ;;  %v6087_v18 = vpop.f32.mrb[55].mxu0 }
 0x1e5   : > { %7730 = vst [vmem:[#allocation32_spill] sm:$0xff] %v6087_v18  ;;  %v6089_v39 = vpop.eup %5047 }
 0x1e6   : > { %v5050_v23 = vpop.eup %5049 }
 0x1e7   : > { %v1419_v25 = vpack.c.bf16 %v5050_v23, %v5046_v38 }
 0x1e8   : > { %v1314_v35 = vpop.f32.mrb[8].mxu1  ;;  %v1164_v41 = vpop.f32.mrb[56].mxu0 }
 0x1e9   : > { %5059 = vtanh.f32 %v1314_v35  ;;  %4839 = vmatprep.mubr.bf16.mxu1 %v1419_v25  ;;  %v6093_v42 = vpop.f32.mrb[9].mxu1  ;;  %v6095_v46 = vpop.f32.mrb[57].mxu0 }
 0x1ea   : > { %7731 = vst [vmem:[#allocation33_spill] sm:$0xff] %v6093_v42  ;;  %5061 = vtanh.f32 %v1164_v41  ;;  %7732 = vst [vmem:[#allocation34_spill] sm:$0xff] %v6095_v46  ;;  %v1318_v48 = vpop.f32.mrb[10].mxu1  ;;  %v1168_v60 = vpop.f32.mrb[58].mxu0 }
 0x1eb   : > { %v6097_v59 = vpop.eup %5051  ;;  %5063 = vtanh.f32 %v1318_v48  ;;  %v6099_v61 = vpop.f32.mrb[11].mxu1 }
 0x1ec   : > { %7733 = vst [vmem:[#allocation35_spill] sm:$0xff] %v6099_v61  ;;  %v5054_v22 = vpop.eup %5053  ;;  %5065 = vtanh.f32 %v1168_v60  ;;  %v6101_v45 = vpop.f32.mrb[59].mxu0 }
 0x1ed   : > { %7734 = vst [vmem:[#allocation36_spill] sm:$0xff] %v6101_v45  ;;  %v6103_v50 = vpop.eup %5055 }
 0x1ee   : > { %v5058_v8 = vpop.eup %5057 }
 0x1ef   : > { %v1420_v63 = vpack.c.bf16 %v5058_v8, %v5054_v22 }
 0x1f0   : > { %v1324_v0 = vpop.f32.mrb[12].mxu1  ;;  %v1174_v12 = vpop.f32.mrb[60].mxu0 }
 0x1f1   : > { %5067 = vtanh.f32 %v1324_v0  ;;  %4840 = vmatmul.mubr.bf16.gmra.mrb[44].mxu1 %v1420_v63  ;;  %v6110_v10 = vpop.f32.mrb[13].mxu1  ;;  %v6112_v19 = vpop.f32.mrb[61].mxu0 }
 0x1f2   : > { %7735 = vst [vmem:[#allocation37_spill] sm:$0xff] %v6110_v10  ;;  %5069 = vtanh.f32 %v1174_v12  ;;  %7736 = vst [vmem:[#allocation38_spill] sm:$0xff] %v6112_v19  ;;  %v1328_v21 = vpop.f32.mrb[14].mxu1  ;;  %v1178_v36 = vpop.f32.mrb[62].mxu0 }
 0x1f3   : > { %v6114_v2 = vpop.eup %5059  ;;  %5071 = vtanh.f32 %v1328_v21  ;;  %v6116_v37 = vpop.f32.mrb[15].mxu1 }
 0x1f4   : > { %7737 = vst [vmem:[#allocation39_spill] sm:$0xff] %v6116_v37  ;;  %v5062_v38 = vpop.eup %5061  ;;  %5073 = vtanh.f32 %v1178_v36  ;;  %v6118_v23 = vpop.f32.mrb[63].mxu0 }
 0x1f5   : > { %7738 = vst [vmem:[#allocation40_spill] sm:$0xff] %v6118_v23  ;;  %v6120_v25 = vpop.eup %5063 }
 0x1f6   : > { %v5066_v35 = vpop.eup %5065 }
 0x1f7   : > { %v1421_v48 = vpack.c.bf16 %v5066_v35, %v5062_v38 }
 0x1f8   : > { %v1334_v60 = vpop.f32.mrb[16].mxu1  ;;  %v1184_v22 = vpop.f32.mrb[64].mxu0 }
 0x1f9   : > { %5075 = vtanh.f32 %v1334_v60  ;;  %4843 = vmatprep.mubr.bf16.mxu1 %v1421_v48  ;;  %v6124_v7 = vpop.f32.mrb[17].mxu1  ;;  %v6126_v8 = vpop.f32.mrb[65].mxu0 }
 0x1fa   : > { %7739 = vst [vmem:[#allocation41_spill] sm:$0xff] %v6124_v7  ;;  %5077 = vtanh.f32 %v1184_v22  ;;  %7740 = vst [vmem:[#allocation42_spill] sm:$0xff] %v6126_v8  ;;  %v1338_v57 = vpop.f32.mrb[18].mxu1  ;;  %v1188_v0 = vpop.f32.mrb[66].mxu0 }
 0x1fb   : > { %v6128_v63 = vpop.eup %5067  ;;  %5079 = vtanh.f32 %v1338_v57  ;;  %v6130_v12 = vpop.f32.mrb[19].mxu1 }
 0x1fc   : > { %7741 = vst [vmem:[#allocation43_spill] sm:$0xff] %v6130_v12  ;;  %v5070_v21 = vpop.eup %5069  ;;  %5081 = vtanh.f32 %v1188_v0  ;;  %v6132_v36 = vpop.f32.mrb[67].mxu0 }
 0x1fd   : > { %7742 = vst [vmem:[#allocation44_spill] sm:$0xff] %v6132_v36  ;;  %v6134_v38 = vpop.eup %5071 }
 0x1fe   : > { %v5074_v35 = vpop.eup %5073 }
 0x1ff   : > { %v1422_v60 = vpack.c.bf16 %v5074_v35, %v5070_v21 }
 0x200   : > { %v1194_v22 = vpop.f32.mrb[68].mxu0 }
 0x201   : > { %4844 = vmatmul.mubr.bf16.gmra.mrb[48].mxu1 %v1422_v60  ;;  %v6138_v20 = vpop.f32.mrb[69].mxu0  ;;  %5083 = vtanh.f32 %v1194_v22 }
 0x202   : > { %7743 = vst [vmem:[#allocation45_spill] sm:$0xff] %v6138_v20  ;;  %v1198_v57 = vpop.f32.mrb[70].mxu0 }
 0x203   : > { %v6140_v41 = vpop.eup %5075  ;;  %5085 = vtanh.f32 %v1198_v57  ;;  %v6142_v0 = vpop.f32.mrb[71].mxu0 }
 0x204   : > { %v5078_v56 = vpop.eup %5077  ;;  %7744 = vst [vmem:[#allocation46_spill] sm:$0xff] %v6142_v0 }
 0x205   : > { %v6144_v24 = vpop.eup %5079 }
 0x206   : > { %v5082_v12 = vpop.eup %5081 }
 0x207   : > { %v1423_v48 = vpack.c.bf16 %v5082_v12, %v5078_v56 }
 0x208   : > { %v1204_v21 = vpop.f32.mrb[72].mxu0 }
 0x209   : > { %4847 = vmatprep.mubr.bf16.mxu1 %v1423_v48  ;;  %v6148_v35 = vpop.f32.mrb[73].mxu0  ;;  %5087 = vtanh.f32 %v1204_v21 }
 0x20a   : > { %7745 = vst [vmem:[#allocation47_spill] sm:$0xff] %v6148_v35  ;;  %v1208_v60 = vpop.f32.mrb[74].mxu0 }
 0x20b   : > { %5089 = vtanh.f32 %v1208_v60  ;;  %v6150_v22 = vpop.f32.mrb[75].mxu0  ;;  %v5084_v10 = vpop.eup %5083 }
 0x20c   : > { %7746 = vst [vmem:[#allocation48_spill] sm:$0xff] %v6150_v22 }
 0x20d   : > { %v5086_v57 = vpop.eup %5085 }
 0x20e   : > { %v1424_v7 = vpack.c.bf16 %v5086_v57, %v5084_v10 }
 0x210   : > { %v1214_v6 = vpop.f32.mrb[76].mxu0  ;;  %4848 = vmatmul.mubr.bf16.gmra.mrb[52].mxu1 %v1424_v7 }
 0x211   : > { %v6152_v16 = vpop.f32.mrb[77].mxu0  ;;  %5091 = vtanh.f32 %v1214_v6 }
 0x212   : > { %7747 = vst [vmem:[#allocation49_spill] sm:$0xff] %v6152_v16  ;;  %v1218_v29 = vpop.f32.mrb[78].mxu0  ;;  %v7768_v16 = vpack.c.bf16 %v6144_v24, %v6140_v41 }
 0x213   : > { %5093 = vtanh.f32 %v1218_v29  ;;  %v6154_v56 = vpop.f32.mrb[79].mxu0  ;;  %v5088_v12 = vpop.eup %5087 }
 0x214   : > { %7748 = vst [vmem:[#allocation50_spill] sm:$0xff] %v6154_v56  ;;  %v795_v56 = vpop.permute.xlu0 %794 }
 0x215   : > { %v5090_v48 = vpop.eup %5089  ;;  %vm817_vm7 = vcmp.eq.s32.totalorder %v795_v56, %v5674_v13 }
 0x216   : > { %v1425_v37 = vpack.c.bf16 %v5090_v48, %v5088_v12 }
 0x218   : > { %v1224_v21 = vpop.f32.mrb[80].mxu0  ;;  %4851 = vmatprep.mubr.bf16.mxu1 %v1425_v37 }
 0x219   : > { %v6156_v60 = vpop.f32.mrb[81].mxu0  ;;  %5095 = vtanh.f32 %v1224_v21 }
 0x21a   : > { %7749 = vst [vmem:[#allocation51_spill] sm:$0xff] %v6156_v60  ;;  %v1228_v61 = vpop.f32.mrb[82].mxu0 }
 0x21b   : > { %5097 = vtanh.f32 %v1228_v61  ;;  %v6158_v10 = vpop.f32.mrb[83].mxu0  ;;  %v5092_v7 = vpop.eup %5091 }
 0x21c   : > { %7750 = vst [vmem:[#allocation52_spill] sm:$0xff] %v6158_v10 }
 0x21d   : > { %v5094_v57 = vpop.eup %5093 }
 0x21e   : > { %v1426_v42 = vpack.c.bf16 %v5094_v57, %v5092_v7 }
 0x220   : > { %v1234_v6 = vpop.f32.mrb[84].mxu0  ;;  %4852 = vmatmul.mubr.bf16.gmra.mrb[56].mxu1 %v1426_v42 }
 0x221   : > { %v6160_v29 = vpop.f32.mrb[85].mxu0  ;;  %5099 = vtanh.f32 %v1234_v6 }
 0x222   : > { %7751 = vst [vmem:[#allocation53_spill] sm:$0xff] %v6160_v29  ;;  %v1238_v58 = vpop.f32.mrb[86].mxu0 }
 0x223   : > { %5101 = vtanh.f32 %v1238_v58  ;;  %v6162_v12 = vpop.f32.mrb[87].mxu0  ;;  %v5096_v37 = vpop.eup %5095 }
 0x224   : > { %7752 = vst [vmem:[#allocation54_spill] sm:$0xff] %v6162_v12 }
 0x225   : > { %v5098_v48 = vpop.eup %5097 }
 0x226   : > { %v1427_v60 = vpack.c.bf16 %v5098_v48, %v5096_v37 }
 0x228   : > { %v1244_v21 = vpop.f32.mrb[88].mxu0  ;;  %4855 = vmatprep.mubr.bf16.mxu1 %v1427_v60 }
 0x229   : > { %v6164_v61 = vpop.f32.mrb[89].mxu0  ;;  %5103 = vtanh.f32 %v1244_v21 }
 0x22a   : > { %7753 = vst [vmem:[#allocation55_spill] sm:$0xff] %v6164_v61  ;;  %v1248_v10 = vpop.f32.mrb[90].mxu0 }
 0x22b   : > { %5105 = vtanh.f32 %v1248_v10  ;;  %v6166_v7 = vpop.f32.mrb[91].mxu0  ;;  %v5100_v42 = vpop.eup %5099 }
 0x22c   : > { %7754 = vst [vmem:[#allocation56_spill] sm:$0xff] %v6166_v7 }
 0x22d   : > { %v5102_v57 = vpop.eup %5101 }
 0x22e   : > { %v1428_v29 = vpack.c.bf16 %v5102_v57, %v5100_v42 }
 0x230   : > { %v1254_v6 = vpop.f32.mrb[92].mxu0  ;;  %4856 = vmatmul.mubr.bf16.gmra.mrb[60].mxu1 %v1428_v29 }
 0x231   : > { %v6168_v58 = vpop.f32.mrb[93].mxu0  ;;  %5107 = vtanh.f32 %v1254_v6 }
 0x232   : > { %7755 = vst [vmem:[#allocation57_spill] sm:$0xff] %v6168_v58  ;;  %v1258_v12 = vpop.f32.mrb[94].mxu0 }
 0x233   : > { %5109 = vtanh.f32 %v1258_v12  ;;  %v6170_v37 = vpop.f32.mrb[95].mxu0  ;;  %v5104_v60 = vpop.eup %5103 }
 0x234   : > { %7756 = vst [vmem:[#allocation58_spill] sm:$0xff] %v6170_v37 }
 0x235   : > { %v5106_v48 = vpop.eup %5105 }
 0x236   : > { %v1429_v61 = vpack.c.bf16 %v5106_v48, %v5104_v60 }
 0x238   : > { %v1264_v21 = vpop.f32.mrb[96].mxu0  ;;  %4859 = vmatprep.mubr.bf16.mxu1 %v1429_v61 }
 0x239   : > { %v6172_v10 = vpop.f32.mrb[97].mxu0  ;;  %5111 = vtanh.f32 %v1264_v21 }
 0x23a   : > { %7757 = vst [vmem:[#allocation59_spill] sm:$0xff] %v6172_v10  ;;  %v1268_v7 = vpop.f32.mrb[98].mxu0 }
 0x23b   : > { %5113 = vtanh.f32 %v1268_v7  ;;  %v6174_v42 = vpop.f32.mrb[99].mxu0  ;;  %v5108_v29 = vpop.eup %5107 }
 0x23c   : > { %7758 = vst [vmem:[#allocation60_spill] sm:$0xff] %v6174_v42 }
 0x23d   : > { %v5110_v57 = vpop.eup %5109 }
 0x23e   : > { %v1430_v58 = vpack.c.bf16 %v5110_v57, %v5108_v29 }
 0x240   : > { %v1274_v6 = vpop.f32.mrb[100].mxu0  ;;  %4860 = vmatmul.mubr.bf16.gmra.mrb[64].mxu1 %v1430_v58 }
 0x241   : > { %v6176_v12 = vpop.f32.mrb[101].mxu0  ;;  %5115 = vtanh.f32 %v1274_v6 }
 0x242   : > { %7759 = vst [vmem:[#allocation61_spill] sm:$0xff] %v6176_v12  ;;  %v1278_v37 = vpop.f32.mrb[102].mxu0 }
 0x243   : > { %5117 = vtanh.f32 %v1278_v37  ;;  %v6178_v60 = vpop.f32.mrb[103].mxu0  ;;  %v5112_v61 = vpop.eup %5111 }
 0x244   : > { %7760 = vst [vmem:[#allocation62_spill] sm:$0xff] %v6178_v60  ;;  %v798_v60 = vpop.permute.xlu1 %797 }
 0x245   : > { %v5114_v48 = vpop.eup %5113  ;;  %vm818_vm6 = vcmp.eq.s32.totalorder %v798_v60, %v5674_v13 }
 0x246   : > { %v1431_v10 = vpack.c.bf16 %v5114_v48, %v5112_v61  ;;  %v7764_v61 = vpack.c.bf16 %v6103_v50, %v6097_v59  ;;  %v801_v48 = vpop.permute.xlu0 %800 }
 0x247   : > { %vm819_vm9 = vcmp.eq.s32.totalorder %v801_v48, %v5674_v13 }
 0x248   : > { %v1284_v21 = vpop.f32.mrb[104].mxu0  ;;  %4863 = vmatprep.mubr.bf16.mxu1 %v1431_v10  ;;  %v7763_v10 = vpack.c.bf16 %v6089_v39, %v6083_v15 }
 0x249   : > { %v6180_v7 = vpop.f32.mrb[105].mxu0  ;;  %5119 = vtanh.f32 %v1284_v21  ;;  %v7765_v21 = vpack.c.bf16 %v6120_v25, %v6114_v2 }
 0x24a   : > { %7761 = vst [vmem:[#allocation63_spill] sm:$0xff] %v6180_v7  ;;  %v1288_v42 = vpop.f32.mrb[106].mxu0  ;;  %v807_v2 = vpop.permute.xlu0 %806 }
 0x24b   : > { %5121 = vtanh.f32 %v1288_v42  ;;  %v6182_v29 = vpop.f32.mrb[107].mxu0  ;;  %v5116_v58 = vpop.eup %5115  ;;  %vm821_vm11 = vcmp.eq.s32.totalorder %v807_v2, %v5674_v13 }
 0x24c   : > { %7762 = vst [vmem:[#allocation64_spill] sm:$0xff] %v6182_v29  ;;  %v804_v42 = vpop.permute.xlu1 %803 }
 0x24d   : > { %v5118_v57 = vpop.eup %5117  ;;  %vm820_vm8 = vcmp.eq.s32.totalorder %v804_v42, %v5674_v13 }
 0x24e   : > { %v1432_v12 = vpack.c.bf16 %v5118_v57, %v5116_v58 }
 0x250   : > { %4864 = vmatmul.mubr.bf16.gmra.mrb[68].mxu1 %v1432_v12  ;;  %v810_v39 = vpop.permute.xlu1 %809  ;;  %v7767_v12 = vmov 0.0  }
 0x251   : > { %v4660_v58 = vsel %vm818_vm6, 1.0, %v7767_v12  ;;  %v4659_v57 = vsel %vm817_vm7, 1.0, %v7767_v12  ;;  %vm822_vm10 = vcmp.eq.s32.totalorder %v810_v39, %v5674_v13  ;;  %v4662_v48 = vsel %vm820_vm8, 1.0, %v7767_v12 }
 0x252   : > { %v4663_v24 = vsel %vm821_vm11, 1.0, %v7767_v12 }
 0x253   : > { %v5120_v6 = vpop.eup %5119 }
 0x255   : > { %v5122_v37 = vpop.eup %5121 }
 0x256   : > { %v1433_v22 = vpack.c.bf16 %v5122_v37, %v5120_v6 }
 0x258   : > { %4867 = vmatprep.mubr.bf16.mxu1 %v1433_v22  ;;  %v7766_v22 = vpack.c.bf16 %v6134_v38, %v6128_v63 }
 0x259   : > { %4868 = vmatmul.mubr.bf16.gmra.mrb[72].mxu1 %v7763_v10 }
 0x25a   : > { %4871 = vmatprep.mubr.bf16.mxu1 %v7764_v61 }
 0x261   : > { %4872 = vmatmul.mubr.bf16.gmra.mrb[76].mxu1 %v7765_v21  ;;  %v841_v21 = vpack.c.bf16 %v4660_v58, %v4659_v57  ;;  %v816_v58 = vpop.permute.xlu1 %815  ;;  %v813_v57 = vpop.permute.xlu0 %812 }
 0x262   : > { %4875 = vmatprep.mubr.bf16.mxu1 %v7766_v22  ;;  %vm824_vm12 = vcmp.eq.s32.totalorder %v816_v58, %v5674_v13  ;;  %vm823_vm13 = vcmp.eq.s32.totalorder %v813_v57, %v5674_v13 }
 0x263   : > { %v4817_v15 = vpop.f32.mrb[20].mxu1 }
 0x264   : > { %v1807_v59 = vsel %vm1792_vm5, %v4817_v15, -inf  ;;  %v1537_v50 = vpop.f32.mrb[21].mxu1 }
 0x265   : > { %v1808_v25 = vrot.slane %v1807_v59, 4  ;;  %v1793_v6 = vsel %vm1792_vm5, %v1537_v50, -inf  ;;  %v4818_v60 = vpop.f32.mrb[22].mxu1 }
 0x266   : > { %v1794_v37 = vrot.slane %v1793_v6, 4  ;;  %v1814_v56 = vsel %vm1792_vm5, %v4818_v60, -inf  ;;  %v1540_v10 = vpop.f32.mrb[23].mxu1 }
 0x267   : > { %v1809_v63 = vmax.f32 %v1807_v59, %v1808_v25  ;;  %v1815_v38 = vrot.slane %v1814_v56, 4  ;;  %v1800_v61 = vsel %vm1792_vm5, %v1540_v10, -inf }
 0x268   : > { %v1795_v22 = vmax.f32 %v1793_v6, %v1794_v37  ;;  %v1801_v29 = vrot.slane %v1800_v61, 4  ;;  %v4661_v37 = vsel %vm819_vm9, 1.0, %v7767_v12 }
 0x269   : > { %v1810_v7 = vrot.slane %v1809_v63, 2  ;;  %v1816_v35 = vmax.f32 %v1814_v56, %v1815_v38  ;;  %4876 = vmatmul.mubr.bf16.gmra.mrb[80].mxu1 %v7768_v16  ;;  %v4664_v16 = vsel %vm822_vm10, 1.0, %v7767_v12 }
 0x26a   : > { %v1796_v59 = vrot.slane %v1795_v22, 2  ;;  %v1802_v25 = vmax.f32 %v1800_v61, %v1801_v29  ;;  %4881 = vmatprep.mubr.msk.bf16.mxu1 %vm1792_vm5, %v841_v21  ;;  %v843_v21 = vpack.c.bf16 %v4664_v16, %v4663_v24 }
 0x26b   : > { %v1811_v6 = vmax.f32 %v1809_v63, %v1810_v7  ;;  %v1817_v42 = vrot.slane %v1816_v35, 2  ;;  %v842_v7 = vpack.c.bf16 %v4662_v48, %v4661_v37 }
 0x26c   : > { %v1797_v56 = vmax.f32 %v1795_v22, %v1796_v59  ;;  %v1803_v38 = vrot.slane %v1802_v25, 2  ;;  %v4666_v22 = vsel %vm824_vm12, 1.0, %v7767_v12  ;;  %v4665_v59 = vsel %vm823_vm13, 1.0, %v7767_v12 }
 0x26d   : > { %v1812_v41 = vrot.slane %v1811_v6, 1  ;;  %v1818_v39 = vmax.f32 %v1816_v35, %v1817_v42 }
 0x26e   : > { %v1798_v29 = vrot.slane %v1797_v56, 1  ;;  %v1804_v2 = vmax.f32 %v1802_v25, %v1803_v38 }
 0x26f   : > { %v1813_v63 = vmax.f32 %v1811_v6, %v1812_v41  ;;  %v1819_v61 = vrot.slane %v1818_v39, 1  ;;  %v844_v6 = vpack.c.bf16 %v4666_v22, %v4665_v59 }
 0x270   : > { %v1799_v36 = vmax.f32 %v1797_v56, %v1798_v29  ;;  %v1805_v8 = vrot.slane %v1804_v2, 1 }
 0x271   : > { %v2243_v0 = vsub.f32 %v4817_v15, %v1813_v63  ;;  %v1820_v20 = vmax.f32 %v1818_v39, %v1819_v61  ;;  %4882 = vmatmul.mubr.msk.bf16.vlgmr.msra.gmra.mrb[84].mxu1 %vm1792_vm5, %v842_v7 }
 0x272   : > { %v2241_v35 = vsub.f32 %v1537_v50, %v1799_v36  ;;  %v1806_v58 = vmax.f32 %v1804_v2, %v1805_v8  ;;  %4885 = vmatprep.mubr.msk.bf16.mxu1 %vm1792_vm5, %v843_v21 }
 0x273   : > { %v2309_v13 = vmul.f32 1.442695, %v2243_v0  ;;  %v2244_v25 = vsub.f32 %v4818_v60, %v1820_v20  ;;  %v4821_v57 = vpop.f32.mrb[24].mxu1 }
 0x274   : > { %v2305_v42 = vmul.f32 1.442695, %v2241_v35  ;;  %v2242_v48 = vsub.f32 %v1540_v10, %v1806_v58  ;;  %v1835_v37 = vsel %vm1792_vm5, %v4821_v57, -inf  ;;  %v1553_v56 = vpop.f32.mrb[25].mxu1 }
 0x275   : > { %5123 = vpow2.f32 %v2309_v13  ;;  %v2311_v38 = vmul.f32 1.442695, %v2244_v25  ;;  %v1836_v12 = vrot.slane %v1835_v37, 4  ;;  %v1821_v15 = vsel %vm1792_vm5, %v1553_v56, -inf  ;;  %v4822_v16 = vpop.f32.mrb[26].mxu1 }
 0x276   : > { %5125 = vpow2.f32 %v2305_v42  ;;  %v2307_v36 = vmul.f32 1.442695, %v2242_v48  ;;  %v1822_v8 = vrot.slane %v1821_v15, 4  ;;  %v1842_v50 = vsel %vm1792_vm5, %v4822_v16, -inf  ;;  %v1556_v0 = vpop.f32.mrb[27].mxu1 }
 0x277   : > { %5127 = vpow2.f32 %v2311_v38  ;;  %v1837_v20 = vmax.f32 %v1835_v37, %v1836_v12  ;;  %v1843_v60 = vrot.slane %v1842_v50, 4  ;;  %v1828_v10 = vsel %vm1792_vm5, %v1556_v0, -inf }
 0x278   : > { %5129 = vpow2.f32 %v2307_v36  ;;  %v1823_v24 = vmax.f32 %v1821_v15, %v1822_v8  ;;  %v1829_v41 = vrot.slane %v1828_v10, 4 }
 0x279   : > { %v1838_v39 = vrot.slane %v1837_v20, 2  ;;  %v1844_v29 = vmax.f32 %v1842_v50, %v1843_v60  ;;  %4886 = vmatmul.mubr.msk.bf16.gmra.mrb[88].mxu1 %vm1792_vm5, %v844_v6 }
 0x27a   : > { %v1824_v2 = vrot.slane %v1823_v24, 2  ;;  %v1830_v7 = vmax.f32 %v1828_v10, %v1829_v41 }
 0x27b   : > { %v1839_v63 = vmax.f32 %v1837_v20, %v1838_v39  ;;  %v1845_v61 = vrot.slane %v1844_v29, 2 }
 0x27c   : > { %v1825_v21 = vmax.f32 %v1823_v24, %v1824_v2  ;;  %v1831_v22 = vrot.slane %v1830_v7, 2 }
 0x27d   : > { %v1840_v59 = vrot.slane %v1839_v63, 1  ;;  %v1846_v35 = vmax.f32 %v1844_v29, %v1845_v61 }
 0x27e   : > { %v1826_v58 = vrot.slane %v1825_v21, 1  ;;  %v1832_v13 = vmax.f32 %v1830_v7, %v1831_v22 }
 0x27f   : > { %v6227_v25 = vpop.eup %5123  ;;  %v1841_v42 = vmax.f32 %v1839_v63, %v1840_v59  ;;  %v1847_v48 = vrot.slane %v1846_v35, 1 }
 0x280   : > { %v6229_v37 = vpop.eup %5125  ;;  %v2447_v38 = vsel %vm1792_vm5, %v6227_v25, 0.0  ;;  %v1827_v6 = vmax.f32 %v1825_v21, %v1826_v58  ;;  %v1833_v12 = vrot.slane %v1832_v13, 1 }
 0x281   : > { %v6233_v15 = vpop.eup %5127  ;;  %v2448_v36 = vrot.slane %v2447_v38, 4  ;;  %v2433_v8 = vsel %vm1792_vm5, %v6229_v37, 0.0  ;;  %v2247_v50 = vsub.f32 %v4821_v57, %v1841_v42  ;;  %v1848_v20 = vmax.f32 %v1846_v35, %v1847_v48 }
 0x282   : > { %v6237_v60 = vpop.eup %5129  ;;  %v2434_v10 = vrot.slane %v2433_v8, 4  ;;  %v2454_v24 = vsel %vm1792_vm5, %v6233_v15, 0.0  ;;  %v2245_v41 = vsub.f32 %v1553_v56, %v1827_v6  ;;  %v1834_v39 = vmax.f32 %v1832_v13, %v1833_v12 }
 0x283   : > { %v2449_v29 = vadd.f32 %v2448_v36, %v2447_v38  ;;  %v2455_v2 = vrot.slane %v2454_v24, 4  ;;  %v2440_v7 = vsel %vm1792_vm5, %v6237_v60, 0.0  ;;  %v2317_v63 = vmul.f32 1.442695, %v2247_v50  ;;  %v6243_v61 = vpop.f32.mrb[28].mxu1 }
 0x284   : > { %v2435_v21 = vadd.f32 %v2434_v10, %v2433_v8  ;;  %v2441_v22 = vrot.slane %v2440_v7, 4  ;;  %v2313_v57 = vmul.f32 1.442695, %v2245_v41  ;;  %v2248_v59 = vsub.f32 %v4822_v16, %v1848_v20  ;;  %v6245_v35 = vpop.f32.mrb[29].mxu1 }
 0x285   : > { %v2450_v58 = vrot.slane %v2449_v29, 2  ;;  %v2456_v42 = vadd.f32 %v2455_v2, %v2454_v24  ;;  %5131 = vpow2.f32 %v2317_v63  ;;  %v2246_v48 = vsub.f32 %v1556_v0, %v1834_v39  ;;  %v6247_v56 = vpop.f32.mrb[30].mxu1 }
 0x286   : > { %v2436_v13 = vrot.slane %v2435_v21, 2  ;;  %v2442_v38 = vadd.f32 %v2441_v22, %v2440_v7  ;;  %5133 = vpow2.f32 %v2313_v57  ;;  %v2319_v6 = vmul.f32 1.442695, %v2248_v59  ;;  %v6249_v12 = vpop.f32.mrb[31].mxu1 }
 0x287   : > { %v2457_v36 = vrot.slane %v2456_v42, 2  ;;  %v2315_v50 = vmul.f32 1.442695, %v2246_v48  ;;  %v1863_v8 = vsel %vm1792_vm5, %v6243_v61, -inf  ;;  %v1849_v16 = vsel %vm1792_vm5, %v6245_v35, -inf }
 0x288   : > { %v2443_v20 = vrot.slane %v2442_v38, 2  ;;  %5135 = vpow2.f32 %v2319_v6  ;;  %v1864_v10 = vrot.slane %v1863_v8, 4  ;;  %v1850_v0 = vrot.slane %v1849_v16, 4 }
 0x289   : > { %5137 = vpow2.f32 %v2315_v50  ;;  %v1870_v24 = vsel %vm1792_vm5, %v6247_v56, -inf  ;;  %v1856_v41 = vsel %vm1792_vm5, %v6249_v12, -inf  ;;  %v2451_v39 = vadd.f32 %v2450_v58, %v2449_v29 }
 0x28a   : > { %v1865_v2 = vmax.f32 %v1863_v8, %v1864_v10  ;;  %v1851_v7 = vmax.f32 %v1849_v16, %v1850_v0  ;;  %v1871_v63 = vrot.slane %v1870_v24, 4  ;;  %v1857_v22 = vrot.slane %v1856_v41, 4 }
 0x28b   : > { %v2452_v57 = vrot.slane %v2451_v39, 1  ;;  %v2437_v59 = vadd.f32 %v2436_v13, %v2435_v21  ;;  %v2458_v48 = vadd.f32 %v2457_v36, %v2456_v42  ;;  %v2444_v45 = vadd.f32 %v2443_v20, %v2442_v38 }
 0x28c   : > { %v1866_v23 = vrot.slane %v1865_v2, 2  ;;  %v1852_v6 = vrot.slane %v1851_v7, 2  ;;  %v1872_v46 = vmax.f32 %v1870_v24, %v1871_v63  ;;  %v1858_v19 = vmax.f32 %v1856_v41, %v1857_v22 }
 0x28d   : > { %v2453_v50 = vadd.f32 %v2452_v57, %v2451_v39  ;;  %v2438_v11 = vrot.slane %v2437_v59, 1  ;;  %v2459_v18 = vrot.slane %v2458_v48, 1  ;;  %v2445_v16 = vrot.slane %v2444_v45, 1 }
 0x28e   : > { %v1867_v62 = vmax.f32 %v1865_v2, %v1866_v23  ;;  %v1853_v30 = vmax.f32 %v1851_v7, %v1852_v6  ;;  %v1873_v54 = vrot.slane %v1872_v46, 2  ;;  %v1859_v49 = vrot.slane %v1858_v19, 2 }
 0x28f   : > { %v6259_v29 = vpop.eup %5131  ;;  %5139 = vrcp.f32 %v2453_v50  ;;  %v2439_v58 = vadd.f32 %v2438_v11, %v2437_v59  ;;  %v2460_v8 = vadd.f32 %v2459_v18, %v2458_v48 }
 0x290   : > { %v6261_v21 = vpop.eup %5133  ;;  %v2475_v42 = vsel %vm1792_vm5, %v6259_v29, 0.0  ;;  %v1868_v13 = vrot.slane %v1867_v62, 1  ;;  %v1854_v38 = vrot.slane %v1853_v30, 1  ;;  %v1874_v36 = vmax.f32 %v1872_v46, %v1873_v54 }
 0x291   : > { %v2476_v20 = vrot.slane %v2475_v42, 4  ;;  %v2461_v23 = vsel %vm1792_vm5, %v6261_v21, 0.0  ;;  %v1860_v10 = vmax.f32 %v1858_v19, %v1859_v49  ;;  %5141 = vrcp.f32 %v2439_v58 }
 0x292   : > { %v6267_v0 = vpop.eup %5135  ;;  %v2462_v24 = vrot.slane %v2461_v23, 4  ;;  %v1869_v11 = vmax.f32 %v1867_v62, %v1868_v13  ;;  %v1855_v18 = vmax.f32 %v1853_v30, %v1854_v38  ;;  %v1875_v41 = vrot.slane %v1874_v36, 1 }
 0x293   : > { %v6269_v39 = vpop.eup %5137  ;;  %v6271_v2 = vadd.f32 %v2476_v20, %v2475_v42  ;;  %v2482_v7 = vsel %vm1792_vm5, %v6267_v0, 0.0  ;;  %v1861_v54 = vrot.slane %v1860_v10, 1  ;;  %v6275_v46 = vpop.f32.mrb[32].mxu1  ;;  %5143 = vrcp.f32 %v2460_v8 }
 0x294   : > { %v2463_v63 = vadd.f32 %v2462_v24, %v2461_v23  ;;  %v2468_v49 = vsel %vm1792_vm5, %v6269_v39, 0.0  ;;  %v2251_v19 = vsub.f32 %v6243_v61, %v1869_v11  ;;  %v6280_v62 = vpop.f32.mrb[33].mxu1  ;;  %v2483_v30 = vrot.slane %v2482_v7, 4 }
 0x295   : > { %v2249_v22 = vsub.f32 %v6245_v35, %v1855_v18  ;;  %v1876_v57 = vmax.f32 %v1874_v36, %v1875_v41  ;;  %v6283_v59 = vpop.f32.mrb[34].mxu1  ;;  %v2478_v48 = vrot.slane %v6271_v2, 2  ;;  %v1862_v50 = vmax.f32 %v1860_v10, %v1861_v54 }
 0x296   : > { %v2325_v6 = vmul.f32 1.442695, %v2251_v19  ;;  %v6286_v58 = vpop.f32.mrb[35].mxu1  ;;  %v2446_v8 = vadd.f32 %v2445_v16, %v2444_v45  ;;  %v2469_v42 = vrot.slane %v2468_v49, 4  ;;  %v1891_v61 = vsel %vm1792_vm5, %v6275_v46, -inf }
 0x297   : > { %v2321_v13 = vmul.f32 1.442695, %v2249_v22  ;;  %v2252_v38 = vsub.f32 %v6247_v56, %v1876_v57  ;;  %v2464_v20 = vrot.slane %v2463_v63, 2  ;;  %v2250_v35 = vsub.f32 %v6249_v12, %v1862_v50 }
 0x298   : > { %5145 = vpow2.f32 %v2325_v6  ;;  %v1892_v36 = vrot.slane %v1891_v61, 4  ;;  %v6292_v24 = vadd.f32 %v2483_v30, %v2482_v7  ;;  %v1877_v45 = vsel %vm1792_vm5, %v6280_v62, -inf }
 0x299   : > { %v5140_v23 = vpop.eup %5139  ;;  %5147 = vpow2.f32 %v2321_v13  ;;  %v2327_v10 = vmul.f32 1.442695, %v2252_v38  ;;  %v2323_v16 = vmul.f32 1.442695, %v2250_v35  ;;  %v1878_v18 = vrot.slane %v1877_v45, 4 }
 0x29a   : > { %v1893_v11 = vmax.f32 %v1891_v61, %v1892_v36  ;;  %v1898_v56 = vsel %vm1792_vm5, %v6283_v59, -inf  ;;  %v1884_v12 = vsel %vm1792_vm5, %v6286_v58, -inf  ;;  %v2947_v7 = vmul.f32 %v5140_v23, %v6227_v25 }
 0x29b   : > { %v5142_v41 = vpop.eup %5141  ;;  %5149 = vpow2.f32 %v2327_v10  ;;  %v1899_v54 = vrot.slane %v1898_v56, 4  ;;  %v1879_v30 = vmax.f32 %v1877_v45, %v1878_v18  ;;  %v1885_v22 = vrot.slane %v1884_v12, 4 }
 0x29c   : > { %5151 = vpow2.f32 %v2323_v16  ;;  %v1894_v19 = vrot.slane %v1893_v11, 2  ;;  %v3015_v50 = vsel %vm1792_vm5, %v2947_v7, 0.0  ;;  %v2945_v13 = vmul.f32 %v5142_v41, %v6229_v37 }
 0x29d   : > { %v5144_v57 = vpop.eup %5143  ;;  %v1900_v6 = vmax.f32 %v1898_v56, %v1899_v54  ;;  %5153 = vrcp.f32 %v2446_v8  ;;  %v1880_v61 = vrot.slane %v1879_v30, 2  ;;  %v1886_v35 = vmax.f32 %v1884_v12, %v1885_v22  ;;  %3016 = vadd.xlane.f32.xlu0 %v3015_v50 }
 0x29e   : > { %v1895_v38 = vmax.f32 %v1893_v11, %v1894_v19  ;;  %v2948_v36 = vmul.f32 %v5144_v57, %v6233_v15  ;;  %v2470_v10 = vadd.f32 %v2469_v42, %v2468_v49  ;;  %v3009_v25 = vsel %vm1792_vm5, %v2945_v13, 0.0 }
 0x29f   : > { %v1901_v47 = vrot.slane %v1900_v6, 2  ;;  %v1881_v45 = vmax.f32 %v1879_v30, %v1880_v61  ;;  %v1887_v16 = vrot.slane %v1886_v35, 2  ;;  %3010 = vadd.xlane.f32.xlu1 %v3009_v25  ;;  %v2479_v37 = vadd.f32 %v2478_v48, %v6271_v2 }
 0x2a0   : > { %v1896_v23 = vrot.slane %v1895_v38, 1  ;;  %v3018_v56 = vsel %vm1792_vm5, %v2948_v36, 0.0  ;;  %v2465_v8 = vadd.f32 %v2464_v20, %v2463_v63  ;;  %v2485_v41 = vrot.slane %v6292_v24, 2 }
 0x2a1   : > { %v1902_v18 = vmax.f32 %v1900_v6, %v1901_v47  ;;  %v1882_v15 = vrot.slane %v1881_v45, 1  ;;  %v1888_v49 = vmax.f32 %v1886_v35, %v1887_v16  ;;  %3019 = vadd.xlane.f32.xlu0 %v3018_v56  ;;  %v2471_v12 = vrot.slane %v2470_v10, 2 }
 0x2a2   : > { %v6307_v11 = vpop.eup %5145  ;;  %v1897_v54 = vmax.f32 %v1895_v38, %v1896_v23  ;;  %v2480_v13 = vrot.slane %v2479_v37, 1  ;;  %v2466_v38 = vrot.slane %v2465_v8, 1 }
 0x2a3   : > { %v6310_v42 = vpop.eup %5147  ;;  %v2503_v7 = vsel %vm1792_vm5, %v6307_v11, 0.0  ;;  %v1903_v47 = vrot.slane %v1902_v18, 1  ;;  %v6314_v19 = vpop.f32.mrb[36].mxu1  ;;  %v1883_v48 = vmax.f32 %v1881_v45, %v1882_v15  ;;  %v1889_v6 = vrot.slane %v1888_v49, 1 }
 0x2a4   : > { %v2504_v30 = vrot.slane %v2503_v7, 4  ;;  %v2489_v2 = vsel %vm1792_vm5, %v6310_v42, 0.0  ;;  %v2255_v63 = vsub.f32 %v6275_v46, %v1897_v54  ;;  %v6319_v20 = vpop.f32.mrb[37].mxu1  ;;  %v2486_v46 = vadd.f32 %v2485_v41, %v6292_v24 }
 0x2a5   : > { %v6321_v22 = vpop.eup %5149  ;;  %v1904_v57 = vmax.f32 %v1902_v18, %v1903_v47  ;;  %v6323_v50 = vpop.f32.mrb[38].mxu1  ;;  %v2490_v35 = vrot.slane %v2489_v2, 4  ;;  %v2253_v25 = vsub.f32 %v6280_v62, %v1883_v48  ;;  %v1919_v54 = vsel %vm1792_vm5, %v6314_v19, -inf }
 0x2a6   : > { %v6325_v61 = vpop.eup %5151  ;;  %v2333_v36 = vmul.f32 1.442695, %v2255_v63  ;;  %v6328_v23 = vpop.f32.mrb[39].mxu1  ;;  %v2505_v16 = vadd.f32 %v2504_v30, %v2503_v7  ;;  %v2510_v18 = vsel %vm1792_vm5, %v6321_v22, 0.0  ;;  %v2472_v62 = vadd.f32 %v2471_v12, %v2470_v10 }
 0x2a7   : > { %v5154_v45 = vpop.eup %5153  ;;  %v2256_v56 = vsub.f32 %v6283_v59, %v1904_v57  ;;  %v2496_v15 = vsel %vm1792_vm5, %v6325_v61, 0.0  ;;  %v2329_v47 = vmul.f32 1.442695, %v2253_v25  ;;  %v1890_v48 = vmax.f32 %v1888_v49, %v1889_v6 }
 0x2a8   : > { %5155 = vpow2.f32 %v2333_v36  ;;  %v2481_v28 = vadd.f32 %v2480_v13, %v2479_v37  ;;  %v2467_v24 = vadd.f32 %v2466_v38, %v2465_v8  ;;  %v6338_v41 = vadd.f32 %v2490_v35, %v2489_v2 }
 0x2a9   : > { %v2335_v63 = vmul.f32 1.442695, %v2256_v56  ;;  %v2511_v7 = vrot.slane %v2510_v18, 4  ;;  %v2946_v30 = vmul.f32 %v5154_v45, %v6237_v60  ;;  %v1920_v17 = vrot.slane %v1919_v54, 4 }
 0x2aa   : > { %v2506_v59 = vrot.slane %v2505_v16, 2  ;;  %v2497_v57 = vrot.slane %v2496_v15, 4  ;;  %5157 = vpow2.f32 %v2329_v47  ;;  %v1905_v34 = vsel %vm1792_vm5, %v6319_v20, -inf }
 0x2ab   : > { %5159 = vpow2.f32 %v2335_v63  ;;  %v3012_v36 = vsel %vm1792_vm5, %v2946_v30, 0.0  ;;  %v1921_v10 = vmax.f32 %v1919_v54, %v1920_v17  ;;  %v1906_v12 = vrot.slane %v1905_v34, 4 }
 0x2ac   : > { %v2254_v37 = vsub.f32 %v6286_v58, %v1890_v48  ;;  %3013 = vadd.xlane.f32.xlu0 %v3012_v36  ;;  %v1926_v8 = vsel %vm1792_vm5, %v6323_v50, -inf  ;;  %v1912_v60 = vsel %vm1792_vm5, %v6328_v23, -inf  ;;  %5161 = vrcp.f32 %v2481_v28 }
 0x2ad   : > { %v1922_v49 = vrot.slane %v1921_v10, 2  ;;  %v1907_v2 = vmax.f32 %v1905_v34, %v1906_v12  ;;  %v1927_v6 = vrot.slane %v1926_v8, 4  ;;  %v1913_v13 = vrot.slane %v1912_v60, 4 }
 0x2ae   : > { %v6349_v38 = vadd.f32 %v2511_v7, %v2510_v18  ;;  %v6351_v35 = vadd.f32 %v2497_v57, %v2496_v15  ;;  %v2487_v17 = vrot.slane %v2486_v46, 1  ;;  %v2507_v25 = vadd.f32 %v2506_v59, %v2505_v16 }
 0x2af   : > { %v1923_v45 = vmax.f32 %v1921_v10, %v1922_v49  ;;  %v1908_v58 = vrot.slane %v1907_v2, 2  ;;  %v1928_v56 = vmax.f32 %v1926_v8, %v1927_v6  ;;  %v1914_v54 = vmax.f32 %v1912_v60, %v1913_v13 }
 0x2b0   : > { %v2331_v47 = vmul.f32 1.442695, %v2254_v37  ;;  %5163 = vrcp.f32 %v2467_v24  ;;  %v2488_v63 = vadd.f32 %v2487_v17, %v2486_v46  ;;  %v2473_v48 = vrot.slane %v2472_v62, 1 }
 0x2b1   : > { %v1924_v28 = vrot.slane %v1923_v45, 1  ;;  %v1909_v34 = vmax.f32 %v1907_v2, %v1908_v58  ;;  %v1929_v36 = vrot.slane %v1928_v56, 2  ;;  %v1915_v12 = vrot.slane %v1914_v54, 2 }
 0x2b2   : > { %v6353_v30 = vpop.eup %5155  ;;  %5165 = vrcp.f32 %v2488_v63  ;;  %v2508_v15 = vrot.slane %v2507_v25, 1  ;;  %v2492_v24 = vrot.slane %v6338_v41, 2  ;;  %v2513_v37 = vrot.slane %v6349_v38, 2 }
 0x2b3   : > { %v6355_v18 = vpop.f32.mrb[40].mxu1  ;;  %v2531_v16 = vsel %vm1792_vm5, %v6353_v30, 0.0  ;;  %v1925_v7 = vmax.f32 %v1923_v45, %v1924_v28  ;;  %v1910_v59 = vrot.slane %v1909_v34, 1  ;;  %v1930_v57 = vmax.f32 %v1928_v56, %v1929_v36 }
 0x2b4   : > { %v6359_v10 = vpop.f32.mrb[41].mxu1  ;;  %v6361_v46 = vpop.eup %5157  ;;  %v1916_v8 = vmax.f32 %v1914_v54, %v1915_v12  ;;  %5167 = vpow2.f32 %v2331_v47  ;;  %v2474_v17 = vadd.f32 %v2473_v48, %v2472_v62  ;;  %v2532_v58 = vrot.slane %v2531_v16, 4 }
 0x2b5   : > { %v6365_v60 = vpop.f32.mrb[42].mxu1  ;;  %v6367_v49 = vpop.eup %5159  ;;  %v2259_v6 = vsub.f32 %v6314_v19, %v1925_v7  ;;  %v1911_v56 = vmax.f32 %v1909_v34, %v1910_v59  ;;  %v1931_v63 = vrot.slane %v1930_v57, 1  ;;  %v1947_v12 = vsel %vm1792_vm5, %v6355_v18, -inf }
 0x2b6   : > { %v6371_v13 = vpop.f32.mrb[43].mxu1  ;;  %v5162_v45 = vpop.eup %5161  ;;  %v1917_v28 = vrot.slane %v1916_v8, 1  ;;  %v2509_v32 = vadd.f32 %v2508_v15, %v2507_v25  ;;  %v1933_v19 = vsel %vm1792_vm5, %v6359_v10, -inf  ;;  %v2517_v62 = vsel %vm1792_vm5, %v6361_v46, 0.0 }
 0x2b7   : > { %v2341_v36 = vmul.f32 1.442695, %v2259_v6  ;;  %v2951_v54 = vmul.f32 %v5162_v45, %v6259_v29  ;;  %v2257_v2 = vsub.f32 %v6319_v20, %v1911_v56  ;;  %v1932_v47 = vmax.f32 %v1930_v57, %v1931_v63 }
 0x2b8   : > { %v1918_v43 = vmax.f32 %v1916_v8, %v1917_v28  ;;  %v2493_v34 = vadd.f32 %v2492_v24, %v6338_v41  ;;  %v6383_v7 = vadd.f32 %v2532_v58, %v2531_v16  ;;  %v2538_v25 = vsel %vm1792_vm5, %v6367_v49, 0.0 }
 0x2b9   : > { %5169 = vpow2.f32 %v2341_v36  ;;  %v3027_v48 = vsel %vm1792_vm5, %v2951_v54, 0.0  ;;  %v2337_v20 = vmul.f32 1.442695, %v2257_v2  ;;  %v2260_v15 = vsub.f32 %v6323_v50, %v1932_v47 }
 0x2ba   : > { %v5164_v29 = vpop.eup %5163  ;;  %3028 = vadd.xlane.f32.xlu1 %v3027_v48  ;;  %v2258_v59 = vsub.f32 %v6328_v23, %v1918_v43  ;;  %v1948_v8 = vrot.slane %v1947_v12, 4  ;;  %v1934_v6 = vrot.slane %v1933_v19, 4  ;;  %v2518_v56 = vrot.slane %v2517_v62, 4 }
 0x2bb   : > { %v2949_v57 = vmul.f32 %v5164_v29, %v6261_v21  ;;  %5171 = vpow2.f32 %v2337_v20  ;;  %v2343_v41 = vmul.f32 1.442695, %v2260_v15  ;;  %v1954_v16 = vsel %vm1792_vm5, %v6365_v60, -inf }
 0x2bc   : > { %v5166_v45 = vpop.eup %5165  ;;  %v2339_v24 = vmul.f32 1.442695, %v2258_v59  ;;  %v1949_v50 = vmax.f32 %v1947_v12, %v1948_v8  ;;  %v2539_v63 = vrot.slane %v2538_v25, 4  ;;  %v1935_v43 = vmax.f32 %v1933_v19, %v1934_v6 }
 0x2bd   : > { %v3021_v58 = vsel %vm1792_vm5, %v2949_v57, 0.0  ;;  %v2952_v2 = vmul.f32 %v5166_v45, %v6267_v0  ;;  %5173 = vpow2.f32 %v2343_v41  ;;  %v1955_v21 = vrot.slane %v1954_v16, 4 }
 0x2be   : > { %3022 = vadd.xlane.f32.xlu1 %v3021_v58  ;;  %v6394_v23 = vpop.eup %5167  ;;  %5175 = vpow2.f32 %v2339_v24  ;;  %v1950_v36 = vrot.slane %v1949_v50, 2  ;;  %v1940_v54 = vsel %vm1792_vm5, %v6371_v13, -inf  ;;  %v1936_v47 = vrot.slane %v1935_v43, 2 }
 0x2bf   : > { %v3030_v28 = vsel %vm1792_vm5, %v2952_v2, 0.0  ;;  %v1956_v48 = vmax.f32 %v1954_v16, %v1955_v21  ;;  %v1941_v29 = vrot.slane %v1940_v54, 4  ;;  %5177 = vrcp.f32 %v2474_v17 }
 0x2c0   : > { %v1951_v0 = vmax.f32 %v1949_v50, %v1950_v36  ;;  %5179 = vrcp.f32 %v2509_v32  ;;  %v2494_v12 = vrot.slane %v2493_v34, 1  ;;  %v2514_v20 = vadd.f32 %v2513_v37, %v6349_v38 }
 0x2c1   : > { %v1937_v19 = vmax.f32 %v1935_v43, %v1936_v47  ;;  %v1957_v15 = vrot.slane %v1956_v48, 2  ;;  %v1942_v59 = vmax.f32 %v1940_v54, %v1941_v29  ;;  %v7769_v57 = vrot.slane %v6351_v35, 2 }
 0x2c2   : > { %3031 = vadd.xlane.f32.xlu1 %v3030_v28  ;;  %v6407_v41 = vadd.f32 %v2518_v56, %v2517_v62  ;;  %v1952_v17 = vrot.slane %v1951_v0, 1  ;;  %v2495_v16 = vadd.f32 %v2494_v12, %v2493_v34  ;;  %v2515_v32 = vrot.slane %v2514_v20, 1 }
 0x2c3   : > { %v2500_v8 = vadd.f32 %v7769_v57, %v6351_v35  ;;  %v6405_v45 = vpop.eup %5169  ;;  %v2524_v38 = vsel %vm1792_vm5, %v6394_v23, 0.0  ;;  %v1938_v37 = vrot.slane %v1937_v19, 1  ;;  %v1958_v58 = vmax.f32 %v1956_v48, %v1957_v15 }
 0x2c4   : > { %v6403_v6 = vpop.f32.mrb[44].mxu1  ;;  %v1943_v2 = vrot.slane %v1942_v59, 2  ;;  %v2559_v35 = vsel %vm1792_vm5, %v6405_v45, 0.0  ;;  %v1953_v43 = vmax.f32 %v1951_v0, %v1952_v17  ;;  %5181 = vrcp.f32 %v2495_v16 }
 0x2c5   : > { %v6409_v24 = vpop.f32.mrb[45].mxu1  ;;  %v2516_v62 = vadd.f32 %v2515_v32, %v2514_v20  ;;  %v6419_v34 = vpop.eup %5171  ;;  %v1939_v21 = vmax.f32 %v1937_v19, %v1938_v37  ;;  %v1959_v28 = vrot.slane %v1958_v58, 1  ;;  %v2501_v54 = vrot.slane %v2500_v8, 1 }
 0x2c6   : > { %v6413_v50 = vpop.f32.mrb[46].mxu1  ;;  %v1944_v36 = vmax.f32 %v1942_v59, %v1943_v2  ;;  %v6421_v47 = vadd.f32 %v2539_v63, %v2538_v25  ;;  %v2525_v48 = vrot.slane %v2524_v38, 4  ;;  %v2263_v29 = vsub.f32 %v6355_v18, %v1953_v43 }
 0x2c7   : > { %v6417_v56 = vpop.f32.mrb[47].mxu1  ;;  %5183 = vrcp.f32 %v2516_v62  ;;  %v6424_v12 = vpop.eup %5173  ;;  %v2560_v15 = vrot.slane %v2559_v35, 4  ;;  %v2261_v0 = vsub.f32 %v6359_v10, %v1939_v21  ;;  %v1960_v20 = vmax.f32 %v1958_v58, %v1959_v28 }
 0x2c8   : > { %v1945_v57 = vrot.slane %v1944_v36, 1  ;;  %v6427_v17 = vpop.eup %5175  ;;  %v2534_v19 = vrot.slane %v6383_v7, 2  ;;  %v2349_v16 = vmul.f32 1.442695, %v2263_v29  ;;  %v2545_v63 = vsel %vm1792_vm5, %v6419_v34, 0.0 }
 0x2c9   : > { %v5178_v25 = vpop.eup %5177  ;;  %v2345_v18 = vmul.f32 1.442695, %v2261_v0  ;;  %v2502_v32 = vadd.f32 %v2501_v54, %v2500_v8  ;;  %v1975_v37 = vsel %vm1792_vm5, %v6403_v6, -inf  ;;  %v2566_v10 = vsel %vm1792_vm5, %v6424_v12, 0.0 }
 0x2ca   : > { %v5180_v2 = vpop.eup %5179  ;;  %5185 = vpow2.f32 %v2349_v16  ;;  %v2264_v58 = vsub.f32 %v6365_v60, %v1960_v20  ;;  %v1946_v43 = vmax.f32 %v1944_v36, %v1945_v57  ;;  %v6439_v21 = vadd.f32 %v2525_v48, %v2524_v38 }
 0x2cb   : > { %v6441_v28 = vadd.f32 %v2560_v15, %v2559_v35  ;;  %v2950_v29 = vmul.f32 %v5178_v25, %v6269_v39  ;;  %v2546_v8 = vrot.slane %v2545_v63, 4  ;;  %5187 = vpow2.f32 %v2345_v18 }
 0x2cc   : > { %v2262_v54 = vsub.f32 %v6371_v13, %v1946_v43  ;;  %v2955_v0 = vmul.f32 %v5180_v2, %v6307_v11  ;;  %v2567_v59 = vrot.slane %v2566_v10, 4  ;;  %5189 = vrcp.f32 %v2502_v32 }
 0x2cd   : > { %v3024_v16 = vsel %vm1792_vm5, %v2950_v29, 0.0  ;;  %v1976_v60 = vrot.slane %v1975_v37, 4  ;;  %v2552_v38 = vsel %vm1792_vm5, %v6427_v17, 0.0  ;;  %v2351_v48 = vmul.f32 1.442695, %v2264_v58 }
 0x2ce   : > { %v5182_v36 = vpop.eup %5181  ;;  %v2347_v35 = vmul.f32 1.442695, %v2262_v54  ;;  %3025 = vadd.xlane.f32.xlu1 %v3024_v16  ;;  %v3039_v39 = vsel %vm1792_vm5, %v2955_v0, 0.0  ;;  %v1961_v11 = vsel %vm1792_vm5, %v6409_v24, -inf  ;;  %v1982_v20 = vsel %vm1792_vm5, %v6413_v50, -inf }
 0x2cf   : > { %3040 = vadd.xlane.f32.xlu0 %v3039_v39  ;;  %v2953_v15 = vmul.f32 %v5182_v36, %v6310_v42  ;;  %v1977_v13 = vmax.f32 %v1975_v37, %v1976_v60  ;;  %v1962_v25 = vrot.slane %v1961_v11, 4  ;;  %v1983_v18 = vrot.slane %v1982_v20, 4 }
 0x2d0   : > { %5191 = vpow2.f32 %v2347_v35  ;;  %v1968_v32 = vsel %vm1792_vm5, %v6417_v56, -inf  ;;  %v2553_v29 = vrot.slane %v2552_v38, 4  ;;  %v2535_v39 = vadd.f32 %v2534_v19, %v6383_v7 }
 0x2d1   : > { %v5184_v57 = vpop.eup %5183  ;;  %v3033_v2 = vsel %vm1792_vm5, %v2953_v15, 0.0  ;;  %v1978_v43 = vrot.slane %v1977_v13, 2  ;;  %v1969_v42 = vrot.slane %v1968_v32, 4  ;;  %5193 = vpow2.f32 %v2351_v48 }
 0x2d2   : > { %v2956_v58 = vmul.f32 %v5184_v57, %v6321_v22  ;;  %3034 = vadd.xlane.f32.xlu1 %v3033_v2  ;;  %v1963_v54 = vmax.f32 %v1961_v11, %v1962_v25  ;;  %v1984_v0 = vmax.f32 %v1982_v20, %v1983_v18  ;;  %v6473_v25 = vadd.f32 %v2546_v8, %v2545_v63 }
 0x2d3   : > { %v1979_v36 = vmax.f32 %v1977_v13, %v1978_v43  ;;  %v1970_v35 = vmax.f32 %v1968_v32, %v1969_v42  ;;  %v7770_v7 = vrot.slane %v6407_v41, 2  ;;  %v6480_v2 = vadd.f32 %v2567_v59, %v2566_v10 }
 0x2d4   : > { %v6459_v37 = vpop.f32.mrb[48].mxu1  ;;  %v3042_v60 = vsel %vm1792_vm5, %v2956_v58, 0.0  ;;  %v6467_v22 = vpop.eup %5185  ;;  %v1964_v48 = vrot.slane %v1963_v54, 2  ;;  %v1985_v11 = vrot.slane %v1984_v0, 2  ;;  %v6482_v58 = vadd.f32 %v2553_v29, %v2552_v38 }
 0x2d5   : > { %v6461_v16 = vpop.f32.mrb[49].mxu1  ;;  %3043 = vadd.xlane.f32.xlu0 %v3042_v60  ;;  %v1980_v18 = vrot.slane %v1979_v36, 1  ;;  %v1971_v13 = vrot.slane %v1970_v35, 2  ;;  %v2521_v19 = vadd.f32 %v7770_v7, %v6407_v41  ;;  %v6478_v32 = vpop.eup %5187  ;;  %v2587_v62 = vsel %vm1792_vm5, %v6467_v22, 0.0 }
 0x2d6   : > { %v6465_v15 = vpop.f32.mrb[50].mxu1  ;;  %v1965_v43 = vmax.f32 %v1963_v54, %v1964_v48  ;;  %v1986_v42 = vmax.f32 %v1984_v0, %v1985_v11  ;;  %v5190_v60 = vpop.eup %5189  ;;  %v2536_v57 = vrot.slane %v2535_v39, 1  ;;  %v7771_v41 = vrot.slane %v6421_v47, 2 }
 0x2d7   : > { %v6471_v20 = vpop.f32.mrb[51].mxu1  ;;  %v1981_v63 = vmax.f32 %v1979_v36, %v1980_v18  ;;  %v1972_v8 = vmax.f32 %v1970_v35, %v1971_v13  ;;  %v2954_v14 = vmul.f32 %v5190_v60, %v6325_v61  ;;  %v2522_v54 = vrot.slane %v2521_v19, 1 }
 0x2d8   : > { %v1966_v31 = vrot.slane %v1965_v43, 1  ;;  %v1987_v9 = vrot.slane %v1986_v42, 1  ;;  %v2542_v59 = vadd.f32 %v7771_v41, %v6421_v47  ;;  %v2588_v48 = vrot.slane %v2587_v62, 4 }
 0x2d9   : > { %v2267_v38 = vsub.f32 %v6403_v6, %v1981_v63  ;;  %v1973_v29 = vrot.slane %v1972_v8, 1  ;;  %v2573_v36 = vsel %vm1792_vm5, %v6478_v32, 0.0  ;;  %v3036_v61 = vsel %vm1792_vm5, %v2954_v14, 0.0 }
 0x2da   : > { %v6492_v0 = vpop.eup %5191  ;;  %v1967_v35 = vmax.f32 %v1965_v43, %v1966_v31  ;;  %3037 = vadd.xlane.f32.xlu1 %v3036_v61  ;;  %v1988_v47 = vmax.f32 %v1986_v42, %v1987_v9  ;;  %v2537_v13 = vadd.f32 %v2536_v57, %v2535_v39  ;;  %v2543_v41 = vrot.slane %v2542_v59, 1 }
 0x2db   : > { %v2357_v18 = vmul.f32 1.442695, %v2267_v38  ;;  %v6498_v7 = vpop.eup %5193  ;;  %v1974_v63 = vmax.f32 %v1972_v8, %v1973_v29  ;;  %v2574_v10 = vrot.slane %v2573_v36, 4  ;;  %v2580_v3 = vsel %vm1792_vm5, %v6492_v0, 0.0 }
 0x2dc   : > { %v2265_v60 = vsub.f32 %v6409_v24, %v1967_v35  ;;  %v2268_v14 = vsub.f32 %v6413_v50, %v1988_v47  ;;  %v6505_v31 = vadd.f32 %v2588_v48, %v2587_v62  ;;  %v2523_v39 = vadd.f32 %v2522_v54, %v2521_v19 }
 0x2dd   : > { %5195 = vpow2.f32 %v2357_v18  ;;  %v2266_v9 = vsub.f32 %v6417_v56, %v1974_v63  ;;  %v2003_v24 = vsel %vm1792_vm5, %v6459_v37, -inf  ;;  %v1989_v42 = vsel %vm1792_vm5, %v6461_v16, -inf }
 0x2de   : > { %v2353_v43 = vmul.f32 1.442695, %v2265_v60  ;;  %v2359_v57 = vmul.f32 1.442695, %v2268_v14  ;;  %5197 = vrcp.f32 %v2537_v13  ;;  %v2594_v8 = vsel %vm1792_vm5, %v6498_v7, 0.0 }
 0x2df   : > { %v2581_v38 = vrot.slane %v2580_v3, 4  ;;  %v2544_v29 = vadd.f32 %v2543_v41, %v2542_v59  ;;  %v2004_v50 = vrot.slane %v2003_v24, 4  ;;  %v1990_v62 = vrot.slane %v1989_v42, 4 }
 0x2e0   : > { %5199 = vpow2.f32 %v2353_v43  ;;  %v2010_v56 = vsel %vm1792_vm5, %v6465_v15, -inf  ;;  %v1996_v19 = vsel %vm1792_vm5, %v6471_v20, -inf  ;;  %v2355_v48 = vmul.f32 1.442695, %v2266_v9 }
 0x2e1   : > { %5201 = vpow2.f32 %v2359_v57  ;;  %v2005_v61 = vmax.f32 %v2003_v24, %v2004_v50  ;;  %v2011_v35 = vrot.slane %v2010_v56, 4  ;;  %v1991_v47 = vmax.f32 %v1989_v42, %v1990_v62 }
 0x2e2   : > { %5203 = vrcp.f32 %v2523_v39  ;;  %v1997_v59 = vrot.slane %v1996_v19, 4  ;;  %v7772_v13 = vrot.slane %v6439_v21, 2  ;;  %v7773_v43 = vrot.slane %v6441_v28, 2 }
 0x2e3   : > { %v6518_v54 = vpop.f32.mrb[52].mxu1  ;;  %5205 = vrcp.f32 %v2544_v29  ;;  %v2006_v41 = vrot.slane %v2005_v61, 2  ;;  %v2012_v14 = vmax.f32 %v2010_v56, %v2011_v35  ;;  %v6532_v24 = vadd.f32 %v2574_v10, %v2573_v36 }
 0x2e4   : > { %v6520_v18 = vpop.f32.mrb[53].mxu1  ;;  %v2528_v60 = vadd.f32 %v7772_v13, %v6439_v21  ;;  %v2563_v9 = vadd.f32 %v7773_v43, %v6441_v28  ;;  %v1992_v39 = vrot.slane %v1991_v47, 2  ;;  %v1998_v42 = vmax.f32 %v1996_v19, %v1997_v59 }
 0x2e5   : > { %v6525_v63 = vpop.f32.mrb[54].mxu1  ;;  %v2595_v62 = vrot.slane %v2594_v8, 4  ;;  %v2007_v6 = vmax.f32 %v2005_v61, %v2006_v41  ;;  %v2013_v11 = vrot.slane %v2012_v14, 2  ;;  %v2582_v29 = vadd.f32 %v2581_v38, %v2580_v3 }
 0x2e6   : > { %v6530_v57 = vpop.f32.mrb[55].mxu1  ;;  %v2529_v50 = vrot.slane %v2528_v60, 1  ;;  %v2564_v21 = vrot.slane %v2563_v9, 1  ;;  %v1993_v52 = vmax.f32 %v1991_v47, %v1992_v39  ;;  %v1999_v56 = vrot.slane %v1998_v42, 2 }
 0x2e7   : > { %v6534_v13 = vpop.eup %5195  ;;  %5207 = vpow2.f32 %v2355_v48  ;;  %v2008_v5 = vrot.slane %v2007_v6, 1  ;;  %v2014_v28 = vmax.f32 %v2012_v14, %v2013_v11  ;;  %v7774_v19 = vrot.slane %v6480_v2, 2 }
 0x2e8   : > { %v2530_v35 = vadd.f32 %v2529_v50, %v2528_v60  ;;  %v2565_v43 = vadd.f32 %v2564_v21, %v2563_v9  ;;  %v5198_v51 = vpop.eup %5197  ;;  %v2615_v10 = vsel %vm1792_vm5, %v6534_v13, 0.0  ;;  %v1994_v36 = vrot.slane %v1993_v52, 1 }
 0x2e9   : > { %v2570_v61 = vadd.f32 %v7774_v19, %v6480_v2  ;;  %v2959_v59 = vmul.f32 %v5198_v51, %v6353_v30  ;;  %v2009_v3 = vmax.f32 %v2007_v6, %v2008_v5  ;;  %v2000_v38 = vmax.f32 %v1998_v42, %v1999_v56 }
 0x2ea   : > { %5209 = vrcp.f32 %v2530_v35  ;;  %v6542_v47 = vpop.eup %5199  ;;  %v2590_v11 = vrot.slane %v6505_v31, 2  ;;  %v2576_v48 = vrot.slane %v6532_v24, 2  ;;  %v1995_v60 = vmax.f32 %v1993_v52, %v1994_v36 }
 0x2eb   : > { %5211 = vrcp.f32 %v2565_v43  ;;  %v2015_v41 = vrot.slane %v2014_v28, 1  ;;  %v6546_v14 = vpop.eup %5201  ;;  %v6548_v9 = vadd.f32 %v2595_v62, %v2594_v8  ;;  %v2583_v39 = vrot.slane %v2582_v29, 2 }
 0x2ec   : > { %v3051_v2 = vsel %vm1792_vm5, %v2959_v59, 0.0  ;;  %v2271_v51 = vsub.f32 %v6459_v37, %v2009_v3  ;;  %v5204_v5 = vpop.eup %5203  ;;  %v2616_v30 = vrot.slane %v2615_v10, 4  ;;  %v2269_v6 = vsub.f32 %v6461_v16, %v1995_v60 }
 0x2ed   : > { %3052 = vadd.xlane.f32.xlu0 %v3051_v2  ;;  %v2571_v42 = vrot.slane %v2570_v61, 1  ;;  %v7775_v50 = vrot.slane %v6473_v25, 2  ;;  %v5206_v21 = vpop.eup %5205  ;;  %v2601_v8 = vsel %vm1792_vm5, %v6542_v47, 0.0  ;;  %v2957_v62 = vmul.f32 %v5204_v5, %v6361_v46 }
 0x2ee   : > { %v2365_v56 = vmul.f32 1.442695, %v2271_v51  ;;  %v2001_v35 = vrot.slane %v2000_v38, 1  ;;  %v6561_v37 = vsel %vm1792_vm5, %v6546_v14, 0.0  ;;  %v2960_v43 = vmul.f32 %v5206_v21, %v6367_v49 }
 0x2ef   : > { %v2549_v52 = vadd.f32 %v7775_v50, %v6473_v25  ;;  %v2361_v16 = vmul.f32 1.442695, %v2269_v6  ;;  %v2016_v36 = vmax.f32 %v2014_v28, %v2015_v41  ;;  %v6565_v59 = vadd.f32 %v2583_v39, %v2582_v29 }
 0x2f0   : > { %v3045_v25 = vsel %vm1792_vm5, %v2957_v62, 0.0  ;;  %5213 = vpow2.f32 %v2365_v56  ;;  %v6568_v3 = vadd.f32 %v2616_v30, %v2615_v10  ;;  %v2602_v46 = vrot.slane %v2601_v8, 4 }
 0x2f1   : > { %3046 = vadd.xlane.f32.xlu0 %v3045_v25  ;;  %5215 = vpow2.f32 %v2361_v16  ;;  %v2272_v60 = vsub.f32 %v6465_v15, %v2016_v36  ;;  %v6573_v51 = vpop.eup %5207  ;;  %v2623_v49 = vrot.slane %v6561_v37, 4  ;;  %v3054_v28 = vsel %vm1792_vm5, %v2960_v43, 0.0 }
 0x2f2   : > { %v2002_v29 = vmax.f32 %v2000_v38, %v2001_v35  ;;  %v2572_v41 = vadd.f32 %v2571_v42, %v2570_v61  ;;  %v2550_v30 = vrot.slane %v2549_v52, 1  ;;  %v7776_v6 = vrot.slane %v6482_v58, 2 }
 0x2f3   : > { %v6571_v2 = vpop.f32.mrb[56].mxu1  ;;  %v2367_v10 = vmul.f32 1.442695, %v2272_v60  ;;  %v2031_v15 = vsel %vm1792_vm5, %v6518_v54, -inf  ;;  %v2608_v35 = vsel %vm1792_vm5, %v6573_v51, 0.0 }
 0x2f4   : > { %v6577_v39 = vpop.f32.mrb[57].mxu1  ;;  %v5210_v5 = vpop.eup %5209  ;;  %v2556_v50 = vadd.f32 %v7776_v6, %v6482_v58  ;;  %v2270_v56 = vsub.f32 %v6471_v20, %v2002_v29  ;;  %5217 = vrcp.f32 %v2572_v41  ;;  %v2032_v61 = vrot.slane %v2031_v15, 4 }
 0x2f5   : > { %v6584_v21 = vpop.f32.mrb[58].mxu1  ;;  %v5212_v62 = vpop.eup %5211  ;;  %v2958_v38 = vmul.f32 %v5210_v5, %v6394_v23  ;;  %3055 = vadd.xlane.f32.xlu0 %v3054_v28  ;;  %v2551_v43 = vadd.f32 %v2550_v30, %v2549_v52  ;;  %5219 = vpow2.f32 %v2367_v10  ;;  %v2017_v20 = vsel %vm1792_vm5, %v6520_v18, -inf }
 0x2f6   : > { %v6588_v42 = vpop.f32.mrb[59].mxu1  ;;  %v2963_v58 = vmul.f32 %v5212_v62, %v6405_v45  ;;  %v2557_v16 = vrot.slane %v2556_v50, 1  ;;  %v2363_v36 = vmul.f32 1.442695, %v2270_v56  ;;  %v2033_v25 = vmax.f32 %v2031_v15, %v2032_v61 }
 0x2f7   : > { %5221 = vrcp.f32 %v2551_v43  ;;  %v2018_v29 = vrot.slane %v2017_v20, 4  ;;  %v3048_v41 = vsel %vm1792_vm5, %v2958_v38, 0.0  ;;  %v2038_v45 = vsel %vm1792_vm5, %v6525_v63, -inf }
 0x2f8   : > { %v3063_v23 = vsel %vm1792_vm5, %v2963_v58, 0.0  ;;  %v2558_v60 = vadd.f32 %v2557_v16, %v2556_v50  ;;  %v2034_v5 = vrot.slane %v2033_v25, 2  ;;  %v2024_v52 = vsel %vm1792_vm5, %v6530_v57, -inf }
 0x2f9   : > { %3064 = vadd.xlane.f32.xlu1 %v3063_v23  ;;  %3049 = vadd.xlane.f32.xlu0 %v3048_v41  ;;  %v2019_v28 = vmax.f32 %v2017_v20, %v2018_v29  ;;  %v2039_v10 = vrot.slane %v2038_v45, 4  ;;  %v2025_v30 = vrot.slane %v2024_v52, 4  ;;  %v2603_v15 = vadd.f32 %v2602_v46, %v2601_v8 }
 0x2fa   : > { %5223 = vrcp.f32 %v2558_v60  ;;  %v6601_v6 = vpop.eup %5213  ;;  %v2609_v50 = vrot.slane %v2608_v35, 4  ;;  %v2035_v62 = vmax.f32 %v2033_v25, %v2034_v5  ;;  %v2591_v56 = vadd.f32 %v2590_v11, %v6505_v31 }
 0x2fb   : > { %v6606_v38 = vpop.eup %5215  ;;  %v2643_v61 = vsel %vm1792_vm5, %v6601_v6, 0.0  ;;  %v2020_v58 = vrot.slane %v2019_v28, 2  ;;  %v2040_v43 = vmax.f32 %v2038_v45, %v2039_v10  ;;  %v2026_v16 = vmax.f32 %v2024_v52, %v2025_v30 }
 0x2fc   : > { %v2644_v20 = vrot.slane %v2643_v61, 4  ;;  %v2629_v23 = vsel %vm1792_vm5, %v6606_v38, 0.0  ;;  %5225 = vpow2.f32 %v2363_v36  ;;  %v2036_v8 = vrot.slane %v2035_v62, 1 }
 0x2fd   : > { %v2021_v46 = vmax.f32 %v2019_v28, %v2020_v58  ;;  %v2041_v25 = vrot.slane %v2040_v43, 2  ;;  %v2027_v60 = vrot.slane %v2026_v16, 2  ;;  %v2592_v29 = vrot.slane %v2591_v56, 1 }
 0x2fe   : > { %v5218_v41 = vpop.eup %5217  ;;  %v2604_v31 = vrot.slane %v2603_v15, 2  ;;  %v6613_v11 = vadd.f32 %v2623_v49, %v6561_v37  ;;  %v2037_v5 = vmax.f32 %v2035_v62, %v2036_v8  ;;  %v2577_v45 = vadd.f32 %v2576_v48, %v6532_v24 }
 0x2ff   : > { %v2630_v52 = vrot.slane %v2629_v23, 4  ;;  %v2964_v10 = vmul.f32 %v5218_v41, %v6424_v12  ;;  %v2022_v30 = vrot.slane %v2021_v46, 1  ;;  %v2042_v36 = vmax.f32 %v2040_v43, %v2041_v25  ;;  %v6619_v19 = vpop.eup %5219 }
 0x300   : > { %v2618_v28 = vrot.slane %v6568_v3, 2  ;;  %v6622_v58 = vadd.f32 %v2609_v50, %v2608_v35  ;;  %v6624_v4 = vadd.f32 %v2644_v20, %v2643_v61  ;;  %v2275_v37 = vsub.f32 %v6518_v54, %v2037_v5 }
 0x301   : > { %v5222_v49 = vpop.eup %5221  ;;  %v3066_v62 = vsel %vm1792_vm5, %v2964_v10, 0.0  ;;  %v2023_v8 = vmax.f32 %v2021_v46, %v2022_v30  ;;  %v2028_v24 = vmax.f32 %v2026_v16, %v2027_v60  ;;  %v2593_v48 = vadd.f32 %v2592_v29, %v2591_v56 }
 0x302   : > { %3067 = vadd.xlane.f32.xlu0 %v3066_v62  ;;  %v2961_v12 = vmul.f32 %v5222_v49, %v6419_v34  ;;  %v2373_v43 = vmul.f32 1.442695, %v2275_v37  ;;  %v2043_v25 = vrot.slane %v2042_v36, 1  ;;  %v2578_v41 = vrot.slane %v2577_v45, 1 }
 0x303   : > { %v6628_v55 = vpop.f32.mrb[60].mxu1  ;;  %v6633_v61 = vadd.f32 %v2604_v31, %v2603_v15  ;;  %v2625_v54 = vrot.slane %v6613_v11, 2  ;;  %v6636_v20 = vadd.f32 %v2630_v52, %v2629_v23  ;;  %v2273_v16 = vsub.f32 %v6520_v18, %v2023_v8 }
 0x304   : > { %v6631_v35 = vpop.f32.mrb[61].mxu1  ;;  %v5224_v50 = vpop.eup %5223  ;;  %v3057_v46 = vsel %vm1792_vm5, %v2961_v12, 0.0  ;;  %5227 = vpow2.f32 %v2373_v43  ;;  %v7777_v60 = vrot.slane %v6548_v9, 2  ;;  %v2044_v31 = vmax.f32 %v2042_v36, %v2043_v25 }
 0x305   : > { %v6639_v56 = vpop.f32.mrb[62].mxu1  ;;  %v2962_v34 = vmul.f32 %v5224_v50, %v6427_v17  ;;  %3058 = vadd.xlane.f32.xlu1 %v3057_v46  ;;  %v2369_v23 = vmul.f32 1.442695, %v2273_v16  ;;  %v2029_v52 = vrot.slane %v2028_v24, 1  ;;  %v2646_v10 = vrot.slane %v6624_v4, 2 }
 0x306   : > { %v2598_v29 = vadd.f32 %v7777_v60, %v6548_v9  ;;  %v6646_v5 = vpop.f32.mrb[63].mxu1  ;;  %v6649_v18 = vpop.eup %5225  ;;  %v6654_v17 = vsel %vm1792_vm5, %v6619_v19, 0.0  ;;  %5229 = vrcp.f32 %v2593_v48  ;;  %v2579_v30 = vadd.f32 %v2578_v41, %v2577_v45 }
 0x307   : > { %v2632_v9 = vrot.slane %v6636_v20, 2  ;;  %5231 = vpow2.f32 %v2369_v23  ;;  %v2276_v37 = vsub.f32 %v6525_v63, %v2044_v31  ;;  %v2030_v49 = vmax.f32 %v2028_v24, %v2029_v52 }
 0x308   : > { %v3060_v62 = vsel %vm1792_vm5, %v2962_v34, 0.0  ;;  %5233 = vrcp.f32 %v2579_v30  ;;  %v2599_v36 = vrot.slane %v2598_v29, 1  ;;  %v2059_v8 = vsel %vm1792_vm5, %v6571_v2, -inf }
 0x309   : > { %3061 = vadd.xlane.f32.xlu1 %v3060_v62  ;;  %v2375_v12 = vmul.f32 1.442695, %v2276_v37  ;;  %v2274_v43 = vsub.f32 %v6530_v57, %v2030_v49  ;;  %v2060_v25 = vrot.slane %v2059_v8, 4  ;;  %v2045_v45 = vsel %vm1792_vm5, %v6577_v39, -inf }
 0x30a   : > { %v2636_v48 = vsel %vm1792_vm5, %v6649_v18, 0.0  ;;  %v2600_v63 = vadd.f32 %v2599_v36, %v2598_v29  ;;  %v2046_v24 = vrot.slane %v2045_v45, 4  ;;  %v2066_v41 = vsel %vm1792_vm5, %v6584_v21, -inf }
 0x30b   : > { %5235 = vpow2.f32 %v2375_v12  ;;  %v2371_v50 = vmul.f32 1.442695, %v2274_v43  ;;  %v2061_v16 = vmax.f32 %v2059_v8, %v2060_v25  ;;  %v2067_v46 = vrot.slane %v2066_v41, 4 }
 0x30c   : > { %5237 = vrcp.f32 %v2600_v63  ;;  %v2047_v34 = vmax.f32 %v2045_v45, %v2046_v24  ;;  %v2052_v57 = vsel %vm1792_vm5, %v6588_v42, -inf  ;;  %v2585_v60 = vrot.slane %v6565_v59, 1 }
 0x30d   : > { %5239 = vpow2.f32 %v2371_v50  ;;  %v2062_v23 = vrot.slane %v2061_v16, 2  ;;  %v2068_v31 = vmax.f32 %v2066_v41, %v2067_v46  ;;  %v2053_v52 = vrot.slane %v2052_v57, 4 }
 0x30e   : > { %v6671_v29 = vpop.eup %5227  ;;  %v2651_v30 = vrot.slane %v6654_v17, 4  ;;  %v2048_v37 = vrot.slane %v2047_v34, 2  ;;  %v2586_v49 = vadd.f32 %v2585_v60, %v6565_v59  ;;  %v2619_v62 = vadd.f32 %v2618_v28, %v6568_v3 }
 0x30f   : > { %v2637_v36 = vrot.slane %v2636_v48, 4  ;;  %v2063_v8 = vmax.f32 %v2061_v16, %v2062_v23  ;;  %v2069_v12 = vrot.slane %v2068_v31, 2  ;;  %v2054_v43 = vmax.f32 %v2052_v57, %v2053_v52 }
 0x310   : > { %v5230_v25 = vpop.eup %5229  ;;  %v2671_v45 = vsel %vm1792_vm5, %v6671_v29, 0.0  ;;  %v2049_v63 = vmax.f32 %v2047_v34, %v2048_v37  ;;  %5241 = vrcp.f32 %v2586_v49  ;;  %v2620_v24 = vrot.slane %v2619_v62, 1 }
 0x311   : > { %v6680_v41 = vpop.eup %5231  ;;  %v2967_v50 = vmul.f32 %v5230_v25, %v6467_v22  ;;  %v2064_v59 = vrot.slane %v2063_v8, 1  ;;  %v2070_v46 = vmax.f32 %v2068_v31, %v2069_v12  ;;  %v2055_v60 = vrot.slane %v2054_v43, 2 }
 0x312   : > { %v5234_v3 = vpop.eup %5233  ;;  %v6686_v28 = vadd.f32 %v2646_v10, %v6624_v4  ;;  %v6689_v16 = vadd.f32 %v2632_v9, %v6636_v20  ;;  %v2050_v57 = vrot.slane %v2049_v63, 1  ;;  %v2621_v34 = vadd.f32 %v2620_v24, %v2619_v62 }
 0x313   : > { %v6683_v15 = vpop.f32.mrb[64].mxu1  ;;  %v2672_v52 = vrot.slane %v2671_v45, 4  ;;  %v3075_v37 = vsel %vm1792_vm5, %v2967_v50, 0.0  ;;  %v2965_v22 = vmul.f32 %v5234_v3, %v6478_v32  ;;  %v2065_v31 = vmax.f32 %v2063_v8, %v2064_v59 }
 0x314   : > { %v6691_v23 = vpop.f32.mrb[65].mxu1  ;;  %v6698_v12 = vadd.f32 %v2651_v30, %v6654_v17  ;;  %3076 = vadd.xlane.f32.xlu1 %v3075_v37  ;;  %v2051_v4 = vmax.f32 %v2049_v63, %v2050_v57  ;;  %v2071_v10 = vrot.slane %v2070_v46, 1  ;;  %v2056_v20 = vmax.f32 %v2054_v43, %v2055_v60 }
 0x315   : > { %v6695_v49 = vpop.f32.mrb[66].mxu1  ;;  %v6702_v62 = vpop.eup %5235  ;;  %v6704_v25 = vadd.f32 %v2637_v36, %v2636_v48  ;;  %v2279_v24 = vsub.f32 %v6571_v2, %v2065_v31  ;;  %5243 = vrcp.f32 %v2621_v34  ;;  %v2606_v32 = vrot.slane %v6633_v61, 1 }
 0x316   : > { %v6700_v9 = vpop.f32.mrb[67].mxu1  ;;  %v5238_v8 = vpop.eup %5237  ;;  %v2657_v17 = vsel %vm1792_vm5, %v6680_v41, 0.0  ;;  %v2678_v30 = vsel %vm1792_vm5, %v6702_v62, 0.0  ;;  %v2277_v43 = vsub.f32 %v6577_v39, %v2051_v4  ;;  %v2072_v63 = vmax.f32 %v2070_v46, %v2071_v10 }
 0x317   : > { %v6713_v50 = vpop.eup %5239  ;;  %v6715_v59 = vadd.f32 %v2672_v52, %v2671_v45  ;;  %v3069_v48 = vsel %vm1792_vm5, %v2965_v22, 0.0  ;;  %v2968_v2 = vmul.f32 %v5238_v8, %v6498_v7  ;;  %v2381_v36 = vmul.f32 1.442695, %v2279_v24 }
 0x318   : > { %v2653_v60 = vrot.slane %v6698_v12, 2  ;;  %3070 = vadd.xlane.f32.xlu1 %v3069_v48  ;;  %v2377_v3 = vmul.f32 1.442695, %v2277_v43  ;;  %v2280_v57 = vsub.f32 %v6584_v21, %v2072_v63  ;;  %v2057_v34 = vrot.slane %v2056_v20, 1 }
 0x319   : > { %v2639_v37 = vrot.slane %v6704_v25, 2  ;;  %v2658_v39 = vrot.slane %v2657_v17, 4  ;;  %v2679_v46 = vrot.slane %v2678_v30, 4  ;;  %v2664_v45 = vsel %vm1792_vm5, %v6713_v50, 0.0 }
 0x31a   : > { %v5242_v52 = vpop.eup %5241  ;;  %5245 = vpow2.f32 %v2381_v36  ;;  %v2383_v22 = vmul.f32 1.442695, %v2280_v57  ;;  %v2058_v31 = vmax.f32 %v2056_v20, %v2057_v34  ;;  %v2607_v7 = vadd.f32 %v2606_v32, %v6633_v61 }
 0x31b   : > { %v2674_v4 = vrot.slane %v6715_v59, 2  ;;  %v3078_v10 = vsel %vm1792_vm5, %v2968_v2, 0.0  ;;  %5247 = vpow2.f32 %v2377_v3  ;;  %v2966_v21 = vmul.f32 %v5242_v52, %v6492_v0 }
 0x31c   : > { %3079 = vadd.xlane.f32.xlu1 %v3078_v10  ;;  %5249 = vpow2.f32 %v2383_v22  ;;  %v2278_v24 = vsub.f32 %v6588_v42, %v2058_v31  ;;  %v2626_v8 = vadd.f32 %v2625_v54, %v6613_v11  ;;  %v7778_v20 = vrot.slane %v6622_v58, 2 }
 0x31d   : > { %v2659_v61 = vadd.f32 %v2658_v39, %v2657_v17  ;;  %v6735_v32 = vadd.f32 %v2679_v46, %v2678_v30  ;;  %v2665_v63 = vrot.slane %v2664_v45, 4  ;;  %5251 = vrcp.f32 %v2607_v7 }
 0x31e   : > { %v2612_v43 = vadd.f32 %v7778_v20, %v6622_v58  ;;  %v2379_v48 = vmul.f32 1.442695, %v2278_v24  ;;  %v2627_v2 = vrot.slane %v2626_v8, 1  ;;  %v2087_v36 = vsel %vm1792_vm5, %v6628_v55, -inf }
 0x31f   : > { %v5244_v42 = vpop.eup %5243  ;;  %v3072_v3 = vsel %vm1792_vm5, %v2966_v21, 0.0  ;;  %v2088_v57 = vrot.slane %v2087_v36, 4  ;;  %v2073_v11 = vsel %vm1792_vm5, %v6631_v35, -inf  ;;  %v2094_v58 = vsel %vm1792_vm5, %v6639_v56, -inf }
 0x320   : > { %v2613_v0 = vrot.slane %v2612_v43, 1  ;;  %5253 = vpow2.f32 %v2379_v48  ;;  %3073 = vadd.xlane.f32.xlu1 %v3072_v3  ;;  %v2971_v54 = vmul.f32 %v5244_v42, %v6534_v13  ;;  %v2628_v17 = vadd.f32 %v2627_v2, %v2626_v8 }
 0x321   : > { %v2089_v34 = vmax.f32 %v2087_v36, %v2088_v57  ;;  %v2074_v39 = vrot.slane %v2073_v11, 4  ;;  %v2095_v46 = vrot.slane %v2094_v58, 4  ;;  %v2080_v52 = vsel %vm1792_vm5, %v6646_v5, -inf }
 0x322   : > { %v2614_v30 = vadd.f32 %v2613_v0, %v2612_v43  ;;  %v3087_v31 = vsel %vm1792_vm5, %v2971_v54, 0.0  ;;  %5255 = vrcp.f32 %v2628_v17  ;;  %v2081_v7 = vrot.slane %v2080_v52, 4 }
 0x323   : > { %v6747_v22 = vpop.f32.mrb[68].mxu1  ;;  %v2648_v10 = vrot.slane %v6686_v28, 1  ;;  %3088 = vadd.xlane.f32.xlu0 %v3087_v31  ;;  %v2090_v13 = vrot.slane %v2089_v34, 2  ;;  %v2075_v24 = vmax.f32 %v2073_v11, %v2074_v39  ;;  %v2096_v8 = vmax.f32 %v2094_v58, %v2095_v46 }
 0x324   : > { %v6751_v21 = vpop.f32.mrb[69].mxu1  ;;  %5257 = vrcp.f32 %v2614_v30  ;;  %v6755_v43 = vpop.eup %5245  ;;  %v2660_v48 = vrot.slane %v2659_v61, 2  ;;  %v2666_v2 = vadd.f32 %v2665_v63, %v2664_v45  ;;  %v2082_v0 = vmax.f32 %v2080_v52, %v2081_v7 }
 0x325   : > { %v6753_v20 = vpop.f32.mrb[70].mxu1  ;;  %v2649_v36 = vadd.f32 %v2648_v10, %v6686_v28  ;;  %v6760_v3 = vpop.eup %5247  ;;  %v2699_v57 = vsel %vm1792_vm5, %v6755_v43, 0.0  ;;  %v2091_v54 = vmax.f32 %v2089_v34, %v2090_v13  ;;  %v2076_v17 = vrot.slane %v2075_v24, 2 }
 0x326   : > { %v6758_v42 = vpop.f32.mrb[71].mxu1  ;;  %v2097_v11 = vrot.slane %v2096_v8, 2  ;;  %v6764_v58 = vpop.eup %5249  ;;  %v2654_v30 = vadd.f32 %v2653_v60, %v6698_v12  ;;  %v6772_v28 = vadd.f32 %v2639_v37, %v6704_v25  ;;  %v2681_v45 = vrot.slane %v6735_v32, 2 }
 0x327   : > { %7779 = vst [vmem:[#allocation65_spill] sm:$0xff] %v6764_v58  ;;  %5259 = vrcp.f32 %v2649_v36  ;;  %v5252_v63 = vpop.eup %5251  ;;  %v2685_v34 = vsel %vm1792_vm5, %v6760_v3, 0.0  ;;  %v2092_v39 = vrot.slane %v2091_v54, 1  ;;  %v2077_v46 = vmax.f32 %v2075_v24, %v2076_v17 }
 0x328   : > { %v2083_v52 = vrot.slane %v2082_v0, 2  ;;  %v2667_v31 = vrot.slane %v2666_v2, 2  ;;  %v2700_v7 = vrot.slane %v2699_v57, 4  ;;  %v2969_v10 = vmul.f32 %v5252_v63, %v6542_v47 }
 0x329   : > { %v2098_v12 = vmax.f32 %v2096_v8, %v2097_v11  ;;  %v6781_v25 = vadd.f32 %v2674_v4, %v6715_v59  ;;  %v6783_v60 = vadd.f32 %v2660_v48, %v2659_v61  ;;  %v2093_v37 = vmax.f32 %v2091_v54, %v2092_v39 }
 0x32a   : > { %v2078_v13 = vrot.slane %v2077_v46, 1  ;;  %v6785_v36 = vpop.eup %5253  ;;  %v6788_v44 = vadd.f32 %v2681_v45, %v6735_v32  ;;  %v2686_v24 = vrot.slane %v2685_v34, 4  ;;  %v3081_v17 = vsel %vm1792_vm5, %v2969_v10, 0.0 }
 0x32b   : > { %7780 = vst [vmem:[#allocation66_spill] sm:$0xff] %v6785_v36  ;;  %v2099_v53 = vrot.slane %v2098_v12, 1  ;;  %v2706_v8 = vsel %vm1792_vm5, %v6764_v58, 0.0  ;;  %3082 = vadd.xlane.f32.xlu1 %v3081_v17  ;;  %v2283_v59 = vsub.f32 %v6628_v55, %v2093_v37  ;;  %v2084_v61 = vmax.f32 %v2082_v0, %v2083_v52 }
 0x32c   : > { %v6791_v47 = vpop.f32.mrb[72].mxu1  ;;  %v2079_v4 = vmax.f32 %v2077_v46, %v2078_v13  ;;  %v5256_v54 = vpop.eup %5255  ;;  %v6798_v11 = vadd.f32 %v2667_v31, %v2666_v2  ;;  %v6800_v32 = vadd.f32 %v2700_v7, %v2699_v57  ;;  %v2634_v63 = vrot.slane %v6689_v16, 1 }
 0x32d   : > { %v6796_v48 = vpop.f32.mrb[73].mxu1  ;;  %v2100_v45 = vmax.f32 %v2098_v12, %v2099_v53  ;;  %v2972_v58 = vmul.f32 %v5256_v54, %v6546_v14  ;;  %v2389_v17 = vmul.f32 1.442695, %v2283_v59  ;;  %v2655_v46 = vrot.slane %v2654_v30, 1 }
 0x32e   : > { %v6803_v39 = vpop.f32.mrb[74].mxu1  ;;  %v5258_v10 = vpop.eup %5257  ;;  %v2281_v55 = vsub.f32 %v6631_v35, %v2079_v4  ;;  %v6809_v52 = vadd.f32 %v2686_v24, %v2685_v34  ;;  %v2707_v2 = vrot.slane %v2706_v8, 4  ;;  %v2085_v12 = vrot.slane %v2084_v61, 1 }
 0x32f   : > { %v6807_v0 = vpop.f32.mrb[75].mxu1  ;;  %v2970_v57 = vmul.f32 %v5258_v10, %v6573_v51  ;;  %v2284_v53 = vsub.f32 %v6639_v56, %v2100_v45  ;;  %v3090_v31 = vsel %vm1792_vm5, %v2972_v58, 0.0  ;;  %5261 = vpow2.f32 %v2389_v17 }
 0x330   : > { %v2385_v7 = vmul.f32 1.442695, %v2281_v55  ;;  %v2702_v14 = vrot.slane %v6800_v32, 2  ;;  %v2692_v35 = vsel %vm1792_vm5, %v6785_v36, 0.0  ;;  %3091 = vadd.xlane.f32.xlu0 %v3090_v31  ;;  %v2635_v34 = vadd.f32 %v2634_v63, %v6689_v16 }
 0x331   : > { %v5260_v37 = vpop.eup %5259  ;;  %v2391_v13 = vmul.f32 1.442695, %v2284_v53  ;;  %v2086_v24 = vmax.f32 %v2084_v61, %v2085_v12  ;;  %v2656_v56 = vadd.f32 %v2655_v46, %v2654_v30  ;;  %v3084_v58 = vsel %vm1792_vm5, %v2970_v57, 0.0 }
 0x332   : > { %5263 = vpow2.f32 %v2385_v7  ;;  %v2975_v51 = vmul.f32 %v5260_v37, %v6601_v6  ;;  %v2115_v59 = vsel %vm1792_vm5, %v6683_v15, -inf  ;;  %v2101_v4 = vsel %vm1792_vm5, %v6691_v23, -inf }
 0x333   : > { %5265 = vpow2.f32 %v2391_v13  ;;  %v2282_v45 = vsub.f32 %v6646_v5, %v2086_v24  ;;  %v2116_v61 = vrot.slane %v2115_v59, 4  ;;  %v2102_v6 = vrot.slane %v2101_v4, 4 }
 0x334   : > { %v6824_v54 = vpop.f32.mrb[76].mxu1  ;;  %v3099_v16 = vsel %vm1792_vm5, %v2975_v51, 0.0  ;;  %5267 = vrcp.f32 %v2635_v34  ;;  %3085 = vadd.xlane.f32.xlu0 %v3084_v58  ;;  %v2122_v30 = vsel %vm1792_vm5, %v6695_v49, -inf  ;;  %v2108_v10 = vsel %vm1792_vm5, %v6700_v9, -inf }
 0x335   : > { %v6828_v63 = vpop.f32.mrb[77].mxu1  ;;  %5269 = vrcp.f32 %v2656_v56  ;;  %v2387_v55 = vmul.f32 1.442695, %v2282_v45  ;;  %v2117_v46 = vmax.f32 %v2115_v59, %v2116_v61  ;;  %v2123_v5 = vrot.slane %v2122_v30, 4 }
 0x336   : > { %v6834_v17 = vpop.f32.mrb[78].mxu1  ;;  %v2109_v57 = vrot.slane %v2108_v10, 4  ;;  %v6838_v31 = vadd.f32 %v2707_v2, %v2706_v8  ;;  %v2103_v7 = vmax.f32 %v2101_v4, %v2102_v6  ;;  %v2641_v12 = vrot.slane %v6772_v28, 1 }
 0x337   : > { %v6836_v53 = vpop.f32.mrb[79].mxu1  ;;  %v2676_v37 = vrot.slane %v6781_v25, 1  ;;  %v2688_v13 = vrot.slane %v6809_v52, 2  ;;  %v2118_v34 = vrot.slane %v2117_v46, 2  ;;  %v2124_v24 = vmax.f32 %v2122_v30, %v2123_v5 }
 0x338   : > { %v2110_v51 = vmax.f32 %v2108_v10, %v2109_v57  ;;  %v2693_v56 = vrot.slane %v2692_v35, 4  ;;  %3100 = vadd.xlane.f32.xlu0 %v3099_v16  ;;  %v2104_v58 = vrot.slane %v2103_v7, 2  ;;  %v2642_v59 = vadd.f32 %v2641_v12, %v6772_v28 }
 0x339   : > { %v2677_v45 = vadd.f32 %v2676_v37, %v6781_v25  ;;  %v6845_v61 = vpop.eup %5261  ;;  %v6848_v8 = vadd.f32 %v2702_v14, %v6800_v32  ;;  %5271 = vpow2.f32 %v2387_v55  ;;  %v2119_v2 = vmax.f32 %v2117_v46, %v2118_v34 }
 0x33a   : > { %7781 = vst [vmem:[#allocation67_spill] sm:$0xff] %v6845_v61  ;;  %v2125_v4 = vrot.slane %v2124_v24, 2  ;;  %v2727_v6 = vsel %vm1792_vm5, %v6845_v61, 0.0  ;;  %v2105_v30 = vmax.f32 %v2103_v7, %v2104_v58  ;;  %v2111_v10 = vrot.slane %v2110_v51, 2 }
 0x33b   : > { %5273 = vrcp.f32 %v2642_v59  ;;  %v2728_v25 = vrot.slane %v2727_v6, 4  ;;  %v2120_v57 = vrot.slane %v2119_v2, 1  ;;  %v6861_v55 = vadd.f32 %v2693_v56, %v2692_v35 }
 0x33c   : > { %v6852_v16 = vpop.f32.mrb[80].mxu1  ;;  %v6854_v5 = vpop.eup %5263  ;;  %v2126_v12 = vmax.f32 %v2124_v24, %v2125_v4  ;;  %v2106_v7 = vrot.slane %v2105_v30, 1  ;;  %5275 = vrcp.f32 %v2677_v45  ;;  %v2683_v24 = vrot.slane %v6788_v44, 1 }
 0x33d   : > { %7782 = vst [vmem:[#allocation68_spill] sm:$0xff] %v6852_v16  ;;  %7783 = vst [vmem:[#allocation69_spill] sm:$0xff] %v6854_v5  ;;  %v6857_v32 = vpop.f32.mrb[81].mxu1  ;;  %v6859_v14 = vpop.eup %5265  ;;  %v2713_v46 = vsel %vm1792_vm5, %v6854_v5, 0.0  ;;  %v2121_v59 = vmax.f32 %v2119_v2, %v2120_v57  ;;  %v2662_v4 = vrot.slane %v6783_v60, 1  ;;  %v6874_v45 = vadd.f32 %v2728_v25, %v2727_v6 }
 0x33e   : > { %7784 = vst [vmem:[#allocation70_spill] sm:$0xff] %v6857_v32  ;;  %7785 = vst [vmem:[#allocation71_spill] sm:$0xff] %v6859_v14  ;;  %v6865_v37 = vpop.f32.mrb[82].mxu1  ;;  %v5268_v34 = vpop.eup %5267  ;;  %v2734_v58 = vsel %vm1792_vm5, %v6859_v14, 0.0  ;;  %v2107_v61 = vmax.f32 %v2105_v30, %v2106_v7  ;;  %v2127_v5 = vrot.slane %v2126_v12, 1  ;;  %v2112_v32 = vmax.f32 %v2110_v51, %v2111_v10 }
 0x33f   : > { %7786 = vst [vmem:[#allocation72_spill] sm:$0xff] %v6865_v37  ;;  %v6871_v28 = vpop.f32.mrb[83].mxu1  ;;  %v5270_v35 = vpop.eup %5269  ;;  %v2973_v56 = vmul.f32 %v5268_v34, %v6606_v38  ;;  %v2714_v37 = vrot.slane %v2713_v46, 4  ;;  %v2735_v16 = vrot.slane %v2734_v58, 4  ;;  %v2287_v36 = vsub.f32 %v6683_v15, %v2121_v59 }
 0x340   : > { %7787 = vst [vmem:[#allocation73_spill] sm:$0xff] %v6871_v28  ;;  %v2976_v57 = vmul.f32 %v5270_v35, %v6619_v19  ;;  %v2285_v14 = vsub.f32 %v6691_v23, %v2107_v61  ;;  %v2128_v27 = vmax.f32 %v2126_v12, %v2127_v5  ;;  %v6881_v28 = vadd.f32 %v2688_v13, %v6809_v52 }
 0x341   : > { %v3093_v2 = vsel %vm1792_vm5, %v2973_v56, 0.0  ;;  %v2397_v38 = vmul.f32 1.442695, %v2287_v36  ;;  %v2684_v51 = vadd.f32 %v2683_v24, %v6788_v44  ;;  %v2669_v6 = vrot.slane %v6798_v11, 1 }
 0x342   : > { %3094 = vadd.xlane.f32.xlu0 %v3093_v2  ;;  %v2695_v30 = vrot.slane %v6861_v55, 2  ;;  %v2393_v10 = vmul.f32 1.442695, %v2285_v14  ;;  %v2288_v15 = vsub.f32 %v6695_v49, %v2128_v27  ;;  %v2663_v25 = vadd.f32 %v2662_v4, %v6783_v60 }
 0x343   : > { %v6890_v23 = vpop.eup %5271  ;;  %v2730_v52 = vrot.slane %v6874_v45, 2  ;;  %v6893_v13 = vadd.f32 %v2714_v37, %v2713_v46  ;;  %5277 = vpow2.f32 %v2397_v38  ;;  %v2113_v36 = vrot.slane %v2112_v32, 1 }
 0x344   : > { %v6888_v19 = vpop.f32.mrb[84].mxu1  ;;  %v2736_v5 = vadd.f32 %v2735_v16, %v2734_v58  ;;  %v3102_v12 = vsel %vm1792_vm5, %v2976_v57, 0.0  ;;  %5279 = vpow2.f32 %v2393_v10  ;;  %v2399_v27 = vmul.f32 1.442695, %v2288_v15 }
 0x345   : > { %7788 = vst [vmem:[#allocation74_spill] sm:$0xff] %v6888_v19  ;;  %v6895_v44 = vpop.f32.mrb[85].mxu1  ;;  %v5274_v61 = vpop.eup %5273  ;;  %v2114_v60 = vmax.f32 %v2112_v32, %v2113_v36  ;;  %5281 = vrcp.f32 %v2684_v51  ;;  %v2670_v46 = vadd.f32 %v2669_v6, %v6798_v11  ;;  %v2720_v34 = vsel %vm1792_vm5, %v6890_v23, 0.0 }
 0x346   : > { %v6898_v49 = vpop.f32.mrb[86].mxu1  ;;  %3103 = vadd.xlane.f32.xlu0 %v3102_v12  ;;  %v2974_v14 = vmul.f32 %v5274_v61, %v6649_v18  ;;  %v5276_v37 = vpop.eup %5275  ;;  %v2143_v16 = vsel %vm1792_vm5, %v6747_v22, -inf  ;;  %v2129_v58 = vsel %vm1792_vm5, %v6751_v21, -inf  ;;  %v2150_v32 = vsel %vm1792_vm5, %v6753_v20, -inf }
 0x347   : > { %7789 = vst [vmem:[#allocation75_spill] sm:$0xff] %v6898_v49  ;;  %v6902_v7 = vpop.f32.mrb[87].mxu1  ;;  %5283 = vpow2.f32 %v2399_v27  ;;  %v2286_v18 = vsub.f32 %v6700_v9, %v2114_v60  ;;  %v2979_v59 = vmul.f32 %v5276_v37, %v6671_v29  ;;  %v2144_v24 = vrot.slane %v2143_v16, 4  ;;  %v3017_v36 = vpop.xlane.xlu0 %3016 }
 0x348   : > { %v3096_v11 = vsel %vm1792_vm5, %v2974_v14, 0.0  ;;  %5285 = vrcp.f32 %v2663_v25  ;;  %v2130_v4 = vrot.slane %v2129_v58, 4  ;;  %v2151_v35 = vrot.slane %v2150_v32, 4 }
 0x349   : > { %v2721_v56 = vrot.slane %v2720_v34, 4  ;;  %v2395_v2 = vmul.f32 1.442695, %v2286_v18  ;;  %v3111_v57 = vsel %vm1792_vm5, %v2979_v59, 0.0  ;;  %5287 = vrcp.f32 %v2670_v46  ;;  %v3011_v59 = vpop.xlane.xlu1 %3010 }
 0x34a   : > { %3097 = vadd.xlane.f32.xlu0 %v3096_v11  ;;  %3112 = vadd.xlane.f32.xlu1 %v3111_v57  ;;  %v2145_v38 = vmax.f32 %v2143_v16, %v2144_v24  ;;  %v2131_v51 = vmax.f32 %v2129_v58, %v2130_v4  ;;  %v2152_v6 = vmax.f32 %v2150_v32, %v2151_v35  ;;  %v2136_v9 = vsel %vm1792_vm5, %v6758_v42, -inf }
 0x34b   : > { %v2716_v29 = vrot.slane %v6893_v13, 2  ;;  %v2737_v15 = vrot.slane %v2736_v5, 2  ;;  %5289 = vpow2.f32 %v2395_v2  ;;  %v2137_v25 = vrot.slane %v2136_v9, 4 }
 0x34c   : > { %v6918_v10 = vpop.f32.mrb[88].mxu1  ;;  %v7792_v12 = vrot.slane %v6838_v31, 2  ;;  %v2146_v60 = vrot.slane %v2145_v38, 2  ;;  %v2132_v14 = vrot.slane %v2131_v51, 2  ;;  %v2153_v46 = vrot.slane %v2152_v6, 2 }
 0x34d   : > { %7790 = vst [vmem:[#allocation76_spill] sm:$0xff] %v6918_v10  ;;  %v6921_v61 = vpop.f32.mrb[89].mxu1  ;;  %v6930_v16 = vpop.eup %5277  ;;  %v6933_v58 = vadd.f32 %v2695_v30, %v6861_v55  ;;  %v6936_v32 = vadd.f32 %v2730_v52, %v6874_v45  ;;  %v2722_v18 = vadd.f32 %v2721_v56, %v2720_v34  ;;  %v2138_v11 = vmax.f32 %v2136_v9, %v2137_v25 }
 0x34e   : > { %7791 = vst [vmem:[#allocation77_spill] sm:$0xff] %v6921_v61  ;;  %v6926_v27 = vadd.f32 %v7792_v12, %v6838_v31  ;;  %v6928_v37 = vpop.f32.mrb[90].mxu1  ;;  %v6940_v31 = vpop.eup %5279  ;;  %v2147_v4 = vmax.f32 %v2145_v38, %v2146_v60  ;;  %v2133_v35 = vmax.f32 %v2131_v51, %v2132_v14  ;;  %v2154_v2 = vmax.f32 %v2152_v6, %v2153_v46 }
 0x34f   : > { %7793 = vst [vmem:[#allocation78_spill] sm:$0xff] %v6928_v37  ;;  %v6938_v24 = vpop.f32.mrb[91].mxu1  ;;  %v3203_v57 = vmul.f32 %v3017_v36, %v6027_v40  ;;  %v5282_v12 = vpop.eup %5281  ;;  %v6944_v37 = vadd.f32 %v2716_v29, %v6893_v13  ;;  %v6946_v55 = vadd.f32 %v2737_v15, %v2736_v5  ;;  %v2755_v45 = vsel %vm1792_vm5, %v6930_v16, 0.0 }
 0x350   : > { %7794 = vst [vmem:[#allocation79_spill] sm:$0xff] %v6938_v24  ;;  %v2139_v30 = vrot.slane %v2138_v11, 2  ;;  %v2980_v52 = vmul.f32 %v5282_v12, %v6702_v62  ;;  %v2148_v34 = vrot.slane %v2147_v4, 1  ;;  %v2134_v56 = vrot.slane %v2133_v35, 1 }
 0x351   : > { %v3201_v38 = vmul.f32 %v3011_v59, %v6023_v26  ;;  %v6952_v51 = vpop.eup %5283  ;;  %v2723_v6 = vrot.slane %v2722_v18, 2  ;;  %v2741_v40 = vsel %vm1792_vm5, %v6940_v31, 0.0  ;;  %v2155_v13 = vrot.slane %v2154_v2, 1 }
 0x352   : > { %v2704_v5 = vrot.slane %v6848_v8, 1  ;;  %v5286_v9 = vpop.eup %5285  ;;  %v2756_v29 = vrot.slane %v2755_v45, 4  ;;  %v3114_v15 = vsel %vm1792_vm5, %v2980_v52, 0.0  ;;  %v2149_v25 = vmax.f32 %v2147_v4, %v2148_v34 }
 0x353   : > { %v3277_v36 = vrot.slane %v3203_v57, 4  ;;  %v5288_v62 = vpop.eup %5287  ;;  %3115 = vadd.xlane.f32.xlu0 %v3114_v15  ;;  %v2977_v60 = vmul.f32 %v5286_v9, %v6680_v41  ;;  %v2135_v26 = vmax.f32 %v2133_v35, %v2134_v56  ;;  %v2156_v14 = vmax.f32 %v2154_v2, %v2155_v13 }
 0x354   : > { %v2140_v46 = vmax.f32 %v2138_v11, %v2139_v30  ;;  %v2742_v59 = vrot.slane %v2741_v40, 4  ;;  %v2762_v12 = vsel %vm1792_vm5, %v6952_v51, 0.0  ;;  %v2291_v10 = vsub.f32 %v6747_v22, %v2149_v25 }
 0x355   : > { %v3265_v24 = vrot.slane %v3201_v38, 4  ;;  %v6962_v61 = vpop.eup %5289  ;;  %v3105_v52 = vsel %vm1792_vm5, %v2977_v60, 0.0  ;;  %v2978_v4 = vmul.f32 %v5288_v62, %v6713_v50  ;;  %v2289_v34 = vsub.f32 %v6751_v21, %v2135_v26  ;;  %v3020_v62 = vpop.xlane.xlu0 %3019 }
 0x356   : > { %v2292_v41 = vsub.f32 %v6753_v20, %v2156_v14  ;;  %v6968_v35 = vadd.f32 %v2723_v6, %v2722_v18  ;;  %v2757_v11 = vadd.f32 %v2756_v29, %v2755_v45  ;;  %3106 = vadd.xlane.f32.xlu1 %v3105_v52  ;;  %v3278_v2 = vadd.f32 %v3277_v36, %v3203_v57 }
 0x357   : > { %v2171_v30 = vsel %vm1792_vm5, %v6791_v47, -inf  ;;  %v2748_v22 = vsel %vm1792_vm5, %v6962_v61, 0.0  ;;  %v2405_v56 = vmul.f32 1.442695, %v2291_v10  ;;  %v2401_v13 = vmul.f32 1.442695, %v2289_v34 }
 0x358   : > { %v2141_v9 = vrot.slane %v2140_v46, 1  ;;  %v2743_v15 = vadd.f32 %v2742_v59, %v2741_v40  ;;  %v2763_v50 = vrot.slane %v2762_v12, 4  ;;  %v2407_v25 = vmul.f32 1.442695, %v2292_v41 }
 0x359   : > { %v3266_v21 = vadd.f32 %v3265_v24, %v3201_v38  ;;  %v3108_v20 = vsel %vm1792_vm5, %v2978_v4, 0.0  ;;  %5291 = vpow2.f32 %v2405_v56  ;;  %v2705_v57 = vadd.f32 %v2704_v5, %v6848_v8 }
 0x35a   : > { %v2142_v18 = vmax.f32 %v2140_v46, %v2141_v9  ;;  %v2758_v45 = vrot.slane %v2757_v11, 2  ;;  %v2749_v6 = vrot.slane %v2748_v22, 4  ;;  %3109 = vadd.xlane.f32.xlu1 %v3108_v20  ;;  %5293 = vpow2.f32 %v2401_v13 }
 0x35b   : > { %v2172_v29 = vrot.slane %v2171_v30, 4  ;;  %5295 = vpow2.f32 %v2407_v25  ;;  %v3279_v36 = vrot.slane %v3278_v2, 2  ;;  %v3204_v40 = vmul.f32 %v3020_v62, %v6029_v1 }
 0x35c   : > { %v2290_v10 = vsub.f32 %v6758_v42, %v2142_v18  ;;  %v2744_v60 = vrot.slane %v2743_v15, 2  ;;  %v3267_v24 = vrot.slane %v3266_v21, 2  ;;  %5297 = vrcp.f32 %v2705_v57 }
 0x35d   : > { %v2173_v38 = vmax.f32 %v2171_v30, %v2172_v29  ;;  %v2764_v26 = vadd.f32 %v2763_v50, %v2762_v12  ;;  %v3283_v46 = vrot.slane %v3204_v40, 4  ;;  %v2157_v8 = vsel %vm1792_vm5, %v6796_v48, -inf }
 0x35e   : > { %v2403_v14 = vmul.f32 1.442695, %v2290_v10  ;;  %v6980_v5 = vadd.f32 %v2758_v45, %v2757_v11  ;;  %v2750_v59 = vadd.f32 %v2749_v6, %v2748_v22  ;;  %v2158_v4 = vrot.slane %v2157_v8, 4 }
 0x35f   : > { %v2174_v52 = vrot.slane %v2173_v38, 2  ;;  %v3280_v34 = vadd.f32 %v3279_v36, %v3278_v2  ;;  %v3284_v42 = vadd.f32 %v3283_v46, %v3204_v40  ;;  %v2178_v1 = vsel %vm1792_vm5, %v6803_v39, -inf  ;;  %v3014_v36 = vpop.xlane.xlu0 %3013 }
 0x360   : > { %v2690_v41 = vrot.slane %v6881_v28, 1  ;;  %v3268_v56 = vadd.f32 %v3267_v24, %v3266_v21  ;;  %v2159_v12 = vmax.f32 %v2157_v8, %v2158_v4  ;;  %v2179_v13 = vrot.slane %v2178_v1, 4 }
 0x361   : > { %v2175_v30 = vmax.f32 %v2173_v38, %v2174_v52  ;;  %5299 = vpow2.f32 %v2403_v14  ;;  %v3285_v9 = vrot.slane %v3284_v42, 2  ;;  %v2164_v11 = vsel %vm1792_vm5, %v6807_v0, -inf }
 0x362   : > { %v2691_v50 = vadd.f32 %v2690_v41, %v6881_v28  ;;  %v2160_v25 = vrot.slane %v2159_v12, 2  ;;  %v2180_v2 = vmax.f32 %v2178_v1, %v2179_v13  ;;  %v2165_v62 = vrot.slane %v2164_v11, 4 }
 0x363   : > { %v2176_v22 = vrot.slane %v2175_v30, 1  ;;  %v6988_v20 = vpop.eup %5291  ;;  %v6990_v18 = vadd.f32 %v2744_v60, %v2743_v15  ;;  %v2765_v57 = vrot.slane %v2764_v26, 2  ;;  %v2751_v21 = vrot.slane %v2750_v59, 2  ;;  %v3041_v19 = vpop.xlane.xlu0 %3040 }
 0x364   : > { %5301 = vrcp.f32 %v2691_v50  ;;  %v6992_v45 = vpop.eup %5293  ;;  %v2783_v6 = vsel %vm1792_vm5, %v6988_v20, 0.0  ;;  %v2161_v29 = vmax.f32 %v2159_v12, %v2160_v25  ;;  %v2181_v10 = vrot.slane %v2180_v2, 2 }
 0x365   : > { %v2177_v28 = vmax.f32 %v2175_v30, %v2176_v22  ;;  %v6996_v40 = vpop.eup %5295  ;;  %v2784_v24 = vrot.slane %v2783_v6, 4  ;;  %v2769_v38 = vsel %vm1792_vm5, %v6992_v45, 0.0  ;;  %v3286_v15 = vadd.f32 %v3285_v9, %v3284_v42 }
 0x366   : > { %v2166_v60 = vmax.f32 %v2164_v11, %v2165_v62  ;;  %v5298_v14 = vpop.eup %5297  ;;  %v3281_v46 = vrot.slane %v3280_v34, 1  ;;  %v3269_v8 = vrot.slane %v3268_v56, 1  ;;  %v2162_v4 = vrot.slane %v2161_v29, 1 }
 0x367   : > { %v2295_v52 = vsub.f32 %v6791_v47, %v2177_v28  ;;  %v2770_v1 = vrot.slane %v2769_v38, 4  ;;  %v2790_v41 = vsel %vm1792_vm5, %v6996_v40, 0.0  ;;  %v2983_v30 = vmul.f32 %v5298_v14, %v6755_v43 }
 0x368   : > { %v3202_v12 = vmul.f32 %v3014_v36, %v6025_v33  ;;  %v2163_v50 = vmax.f32 %v2161_v29, %v2162_v4  ;;  %v2182_v22 = vmax.f32 %v2180_v2, %v2181_v10  ;;  %v2711_v42 = vrot.slane %v6926_v27, 1 }
 0x369   : > { %v2413_v13 = vmul.f32 1.442695, %v2295_v52  ;;  %v2785_v9 = vadd.f32 %v2784_v24, %v2783_v6  ;;  %v3123_v11 = vsel %vm1792_vm5, %v2983_v30, 0.0  ;;  %v3287_v25 = vrot.slane %v3286_v15, 1 }
 0x36a   : > { %v2167_v62 = vrot.slane %v2166_v60, 2  ;;  %v7007_v47 = vadd.f32 %v2765_v57, %v2764_v26  ;;  %v2791_v28 = vrot.slane %v2790_v41, 4  ;;  %3124 = vadd.xlane.f32.xlu1 %v3123_v11  ;;  %v2293_v49 = vsub.f32 %v6796_v48, %v2163_v50 }
 0x36b   : > { %5303 = vpow2.f32 %v2413_v13  ;;  %v7010_v43 = vpop.eup %5299  ;;  %v7012_v33 = vadd.f32 %v2751_v21, %v2750_v59  ;;  %v2771_v29 = vadd.f32 %v2770_v1, %v2769_v38  ;;  %v7014_v2 = vadd.f32 %v3281_v46, %v3280_v34 }
 0x36c   : > { %v2183_v10 = vrot.slane %v2182_v22, 1  ;;  %v7016_v6 = vadd.f32 %v3269_v8, %v3268_v56  ;;  %v2409_v36 = vmul.f32 1.442695, %v2293_v49  ;;  %v2168_v24 = vmax.f32 %v2166_v60, %v2167_v62 }
 0x36d   : > { %v3271_v14 = vrot.slane %v3202_v12, 4  ;;  %v2786_v57 = vrot.slane %v2785_v9, 2  ;;  %v7018_v52 = vadd.f32 %v3287_v25, %v3286_v15  ;;  %v2712_v48 = vadd.f32 %v2711_v42, %v6926_v27 }
 0x36e   : > { %v5302_v26 = vpop.eup %5301  ;;  %v2184_v4 = vmax.f32 %v2182_v22, %v2183_v10  ;;  %v7021_v30 = vadd.f32 %v2791_v28, %v2790_v41  ;;  %5305 = vpow2.f32 %v2409_v36  ;;  %v2169_v34 = vrot.slane %v2168_v24, 1  ;;  %v3029_v36 = vpop.xlane.xlu1 %3028 }
 0x36f   : > { %7795 = vst [vmem:[#allocation80_spill] sm:$0xff] %v7018_v52  ;;  %v2981_v59 = vmul.f32 %v5302_v26, %v6760_v3  ;;  %v2772_v21 = vrot.slane %v2771_v29, 2  ;;  %5307 = vrcp.f32 %v2712_v48  ;;  %v2199_v49 = vsel %vm1792_vm5, %v6824_v54, -inf }
 0x370   : > { %v2296_v56 = vsub.f32 %v6803_v39, %v2184_v4  ;;  %v2776_v38 = vsel %vm1792_vm5, %v7010_v43, 0.0  ;;  %v2170_v60 = vmax.f32 %v2168_v24, %v2169_v34  ;;  %v2200_v27 = vrot.slane %v2199_v49, 4 }
 0x371   : > { %v3117_v15 = vsel %vm1792_vm5, %v2981_v59, 0.0  ;;  %v7030_v46 = vadd.f32 %v2786_v57, %v2785_v9  ;;  %v2185_v3 = vsel %vm1792_vm5, %v6828_v63, -inf  ;;  %v2206_v39 = vsel %vm1792_vm5, %v6834_v17, -inf }
 0x372   : > { %v2415_v8 = vmul.f32 1.442695, %v2296_v56  ;;  %3118 = vadd.xlane.f32.xlu1 %v3117_v15  ;;  %v2294_v1 = vsub.f32 %v6807_v0, %v2170_v60  ;;  %v3272_v41 = vadd.f32 %v3271_v14, %v3202_v12  ;;  %v2201_v13 = vmax.f32 %v2199_v49, %v2200_v27  ;;  %v7797_v56 = vld [vmem:[#allocation7_spill] sm:$0xff] }
 0x373   : > { %v2186_v50 = vrot.slane %v2185_v3, 4  ;;  %v2207_v22 = vrot.slane %v2206_v39, 4  ;;  %v2697_v42 = vrot.slane %v6933_v58, 1  ;;  %v2192_v9 = vsel %vm1792_vm5, %v6836_v53, -inf }
 0x374   : > { %5309 = vpow2.f32 %v2415_v8  ;;  %v2411_v62 = vmul.f32 1.442695, %v2294_v1  ;;  %v2202_v28 = vrot.slane %v2201_v13, 2  ;;  %v2193_v14 = vrot.slane %v2192_v9, 4 }
 0x375   : > { %v7040_v11 = vpop.eup %5303  ;;  %v2187_v10 = vmax.f32 %v2185_v3, %v2186_v50  ;;  %v2208_v12 = vmax.f32 %v2206_v39, %v2207_v22  ;;  %v2698_v24 = vadd.f32 %v2697_v42, %v6933_v58  ;;  %v2777_v26 = vrot.slane %v2776_v38, 4  ;;  %v7799_v42 = vld [vmem:[#allocation65_spill] sm:$0xff] }
 0x376   : > { %7796 = vst [vmem:[#allocation81_spill] sm:$0xff] %v7040_v11  ;;  %v2811_v0 = vsel %vm1792_vm5, %v7040_v11, 0.0  ;;  %v3273_v57 = vrot.slane %v3272_v41, 2  ;;  %v2203_v4 = vmax.f32 %v2201_v13, %v2202_v28  ;;  %v2194_v34 = vmax.f32 %v2192_v9, %v2193_v14 }
 0x377   : > { %v2188_v48 = vrot.slane %v2187_v10, 2  ;;  %v2209_v59 = vrot.slane %v2208_v12, 2  ;;  %5311 = vrcp.f32 %v2698_v24  ;;  %v3207_v49 = vmul.f32 %v3029_v36, %v7797_v56 }
 0x378   : > { %v7047_v15 = vpop.eup %5305  ;;  %v7049_v60 = vadd.f32 %v2772_v21, %v2771_v29  ;;  %v2812_v27 = vrot.slane %v2811_v0, 4  ;;  %v2204_v8 = vrot.slane %v2203_v4, 1  ;;  %5313 = vpow2.f32 %v2411_v62 }
 0x379   : > { %7798 = vst [vmem:[#allocation7_spill] sm:$0xff] %v7047_v15  ;;  %v2189_v3 = vmax.f32 %v2187_v10, %v2188_v48  ;;  %v5308_v39 = vpop.eup %5307  ;;  %v2797_v58 = vsel %vm1792_vm5, %v7047_v15, 0.0  ;;  %v2210_v1 = vmax.f32 %v2208_v12, %v2209_v59  ;;  %v2195_v13 = vrot.slane %v2194_v34, 2 }
 0x37a   : > { %v2778_v50 = vadd.f32 %v2777_v26, %v2776_v38  ;;  %v3274_v22 = vadd.f32 %v3273_v57, %v3272_v41  ;;  %v2984_v9 = vmul.f32 %v5308_v39, %v7799_v42  ;;  %v2205_v28 = vmax.f32 %v2203_v4, %v2204_v8  ;;  %v3023_v26 = vpop.xlane.xlu1 %3022 }
 0x37b   : > { %v2190_v36 = vrot.slane %v2189_v3, 1  ;;  %v2211_v24 = vrot.slane %v2210_v1, 1  ;;  %v2196_v14 = vmax.f32 %v2194_v34, %v2195_v13  ;;  %v3301_v29 = vrot.slane %v3207_v49, 4 }
 0x37c   : > { %v2813_v21 = vadd.f32 %v2812_v27, %v2811_v0  ;;  %v2798_v56 = vrot.slane %v2797_v58, 4  ;;  %v3126_v10 = vsel %vm1792_vm5, %v2984_v9, 0.0  ;;  %v2299_v48 = vsub.f32 %v6824_v54, %v2205_v28 }
 0x37d   : > { %3127 = vadd.xlane.f32.xlu1 %v3126_v10  ;;  %v2191_v62 = vmax.f32 %v2189_v3, %v2190_v36  ;;  %v2212_v12 = vmax.f32 %v2210_v1, %v2211_v24  ;;  %v2197_v38 = vrot.slane %v2196_v14, 1  ;;  %v2732_v41 = vrot.slane %v6936_v32, 1  ;;  %v7801_v3 = vld [vmem:[#allocation5_spill] sm:$0xff] }
 0x37e   : > { %v7056_v25 = vpop.eup %5309  ;;  %v2779_v57 = vrot.slane %v2778_v50, 2  ;;  %v3275_v59 = vrot.slane %v3274_v22, 1  ;;  %v2421_v0 = vmul.f32 1.442695, %v2299_v48  ;;  %v3302_v8 = vadd.f32 %v3301_v29, %v3207_v49 }
 0x37f   : > { %7800 = vst [vmem:[#allocation65_spill] sm:$0xff] %v7056_v25  ;;  %v2818_v4 = vsel %vm1792_vm5, %v7056_v25, 0.0  ;;  %v2297_v34 = vsub.f32 %v6828_v63, %v2191_v62  ;;  %v2300_v27 = vsub.f32 %v6834_v17, %v2212_v12  ;;  %v2198_v54 = vmax.f32 %v2196_v14, %v2197_v38  ;;  %v7803_v17 = vld [vmem:[#allocation66_spill] sm:$0xff] }
 0x380   : > { %v2814_v39 = vrot.slane %v2813_v21, 2  ;;  %v2799_v13 = vadd.f32 %v2798_v56, %v2797_v58  ;;  %5315 = vpow2.f32 %v2421_v0  ;;  %v3205_v1 = vmul.f32 %v3023_v26, %v7801_v3  ;;  %v7805_v26 = vld [vmem:[#allocation68_spill] sm:$0xff] }
 0x381   : > { %v5312_v42 = vpop.eup %5311  ;;  %v2819_v9 = vrot.slane %v2818_v4, 4  ;;  %v2417_v28 = vmul.f32 1.442695, %v2297_v34  ;;  %v2423_v36 = vmul.f32 1.442695, %v2300_v27  ;;  %v2733_v24 = vadd.f32 %v2732_v41, %v6936_v32  ;;  %v7806_v34 = vld [vmem:[#allocation70_spill] sm:$0xff] }
 0x382   : > { %v7802_v10 = vrot.slane %v7021_v30, 2  ;;  %v7070_v63 = vadd.f32 %v2779_v57, %v2778_v50  ;;  %v2982_v49 = vmul.f32 %v5312_v42, %v7803_v17  ;;  %v2298_v58 = vsub.f32 %v6836_v53, %v2198_v54  ;;  %v7074_v14 = vpop.eup %5313  ;;  %v7807_v27 = vld [vmem:[#allocation72_spill] sm:$0xff] }
 0x383   : > { %7804 = vst [vmem:[#allocation5_spill] sm:$0xff] %v7074_v14  ;;  %v7076_v29 = vadd.f32 %v3275_v59, %v3274_v22  ;;  %5317 = vpow2.f32 %v2417_v28  ;;  %v3303_v56 = vrot.slane %v3302_v8, 2  ;;  %v2718_v62 = vrot.slane %v6944_v37, 1  ;;  %v7808_v28 = vld [vmem:[#allocation73_spill] sm:$0xff] }
 0x384   : > { %v7068_v48 = vadd.f32 %v7802_v10, %v7021_v30  ;;  %5319 = vpow2.f32 %v2423_v36  ;;  %v3120_v32 = vsel %vm1792_vm5, %v2982_v49, 0.0  ;;  %v2419_v12 = vmul.f32 1.442695, %v2298_v58 }
 0x385   : > { %v3289_v30 = vrot.slane %v3205_v1, 4  ;;  %v7080_v38 = vadd.f32 %v2814_v39, %v2813_v21  ;;  %v2800_v50 = vrot.slane %v2799_v13, 2  ;;  %v2820_v41 = vadd.f32 %v2819_v9, %v2818_v4  ;;  %3121 = vadd.xlane.f32.xlu1 %v3120_v32 }
 0x386   : > { %5321 = vrcp.f32 %v2733_v24  ;;  %v2804_v53 = vsel %vm1792_vm5, %v7074_v14, 0.0  ;;  %v2719_v22 = vadd.f32 %v2718_v62, %v6944_v37  ;;  %v2227_v57 = vsel %vm1792_vm5, %v7805_v26, -inf  ;;  %v7813_v14 = vld [vmem:[#allocation8_spill] sm:$0xff] }
 0x387   : > { %5323 = vpow2.f32 %v2419_v12  ;;  %v7087_v59 = vadd.f32 %v3303_v56, %v3302_v8  ;;  %v2228_v0 = vrot.slane %v2227_v57, 4  ;;  %v2213_v21 = vsel %vm1792_vm5, %v7806_v34, -inf }
 0x388   : > { %v2234_v4 = vsel %vm1792_vm5, %v7807_v27, -inf  ;;  %v3290_v54 = vadd.f32 %v3289_v30, %v3205_v1  ;;  %5325 = vrcp.f32 %v2719_v22  ;;  %v2214_v39 = vrot.slane %v2213_v21, 4 }
 0x389   : > { %v2235_v3 = vrot.slane %v2234_v4, 4  ;;  %v2805_v42 = vrot.slane %v2804_v53, 4  ;;  %v2229_v9 = vmax.f32 %v2227_v57, %v2228_v0  ;;  %v2739_v37 = vrot.slane %v6946_v55, 1  ;;  %v3032_v57 = vpop.xlane.xlu1 %3031 }
 0x38a   : > { %v2220_v36 = vsel %vm1792_vm5, %v7808_v28, -inf  ;;  %v7096_v8 = vpop.eup %5315  ;;  %v2821_v24 = vrot.slane %v2820_v41, 2  ;;  %v2215_v10 = vmax.f32 %v2213_v21, %v2214_v39  ;;  %v7098_v58 = vadd.f32 %v2800_v50, %v2799_v13 }
 0x38b   : > { %7809 = vst [vmem:[#allocation66_spill] sm:$0xff] %v7096_v8  ;;  %v2236_v17 = vmax.f32 %v2234_v4, %v2235_v3  ;;  %v2221_v49 = vrot.slane %v2220_v36, 4  ;;  %v2839_v1 = vsel %vm1792_vm5, %v7096_v8, 0.0  ;;  %v2230_v56 = vrot.slane %v2229_v9, 2 }
 0x38c   : > { %v2740_v62 = vadd.f32 %v2739_v37, %v6946_v55  ;;  %v3291_v32 = vrot.slane %v3290_v54, 2  ;;  %v2216_v12 = vrot.slane %v2215_v10, 2  ;;  %v2840_v52 = vrot.slane %v2839_v1, 4 }
 0x38d   : > { %v2237_v30 = vrot.slane %v2236_v17, 2  ;;  %v2222_v22 = vmax.f32 %v2220_v36, %v2221_v49  ;;  %v7103_v0 = vpop.eup %5317  ;;  %v2231_v4 = vmax.f32 %v2229_v9, %v2230_v56  ;;  %v7108_v50 = vadd.f32 %v2821_v24, %v2820_v41  ;;  %v7815_v56 = vld [vmem:[#allocation67_spill] sm:$0xff] }
 0x38e   : > { %7810 = vst [vmem:[#allocation68_spill] sm:$0xff] %v7103_v0  ;;  %5327 = vrcp.f32 %v2740_v62  ;;  %v7106_v13 = vpop.eup %5319  ;;  %v7110_v39 = vadd.f32 %v2805_v42, %v2804_v53  ;;  %v2217_v3 = vmax.f32 %v2215_v10, %v2216_v12  ;;  %v2825_v36 = vsel %vm1792_vm5, %v7103_v0, 0.0 }
 0x38f   : > { %7811 = vst [vmem:[#allocation70_spill] sm:$0xff] %v7106_v13  ;;  %7812 = vst [vmem:[#allocation72_spill] sm:$0xff] %v7108_v50  ;;  %v2238_v55 = vmax.f32 %v2236_v17, %v2237_v30  ;;  %v2846_v49 = vsel %vm1792_vm5, %v7106_v13, 0.0  ;;  %v2232_v25 = vrot.slane %v2231_v4, 1  ;;  %v3208_v21 = vmul.f32 %v3032_v57, %v7813_v14 }
 0x390   : > { %v5322_v37 = vpop.eup %5321  ;;  %v7120_v41 = vadd.f32 %v3291_v32, %v3290_v54  ;;  %v2218_v53 = vrot.slane %v2217_v3, 1  ;;  %v2223_v42 = vrot.slane %v2222_v22, 2  ;;  %v7122_v24 = vadd.f32 %v2840_v52, %v2839_v1 }
 0x391   : > { %v7117_v9 = vpop.eup %5323  ;;  %v2987_v62 = vmul.f32 %v5322_v37, %v7815_v56  ;;  %v2233_v17 = vmax.f32 %v2231_v4, %v2232_v25  ;;  %v2239_v12 = vrot.slane %v2238_v55, 1  ;;  %v2807_v0 = vrot.slane %v7110_v39, 2  ;;  %v7816_v37 = vld [vmem:[#allocation69_spill] sm:$0xff] }
 0x392   : > { %7814 = vst [vmem:[#allocation73_spill] sm:$0xff] %v7117_v9  ;;  %v2832_v10 = vsel %vm1792_vm5, %v7117_v9, 0.0  ;;  %v5326_v30 = vpop.eup %5325  ;;  %v2826_v13 = vrot.slane %v2825_v36, 4  ;;  %v2847_v14 = vrot.slane %v2846_v49, 4  ;;  %v2219_v56 = vmax.f32 %v2217_v3, %v2218_v53  ;;  %v3026_v3 = vpop.xlane.xlu1 %3025 }
 0x393   : > { %v3135_v57 = vsel %vm1792_vm5, %v2987_v62, 0.0  ;;  %v2985_v54 = vmul.f32 %v5326_v30, %v7816_v37  ;;  %v2303_v32 = vsub.f32 %v7805_v26, %v2233_v17  ;;  %v3307_v52 = vrot.slane %v3208_v21, 4 }
 0x394   : > { %3136 = vadd.xlane.f32.xlu0 %v3135_v57  ;;  %v2833_v1 = vrot.slane %v2832_v10, 4  ;;  %v3293_v8 = vrot.slane %v7120_v41, 1  ;;  %v2240_v9 = vmax.f32 %v2238_v55, %v2239_v12  ;;  %v2224_v25 = vmax.f32 %v2222_v22, %v2223_v42  ;;  %v7817_v12 = vld [vmem:[#allocation71_spill] sm:$0xff] }
 0x395   : > { %v2842_v4 = vrot.slane %v7122_v24, 2  ;;  %v3129_v15 = vsel %vm1792_vm5, %v2985_v54, 0.0  ;;  %v2429_v50 = vmul.f32 1.442695, %v2303_v32  ;;  %v2301_v11 = vsub.f32 %v7806_v34, %v2219_v56 }
 0x396   : > { %v2827_v62 = vadd.f32 %v2826_v13, %v2825_v36  ;;  %v2848_v57 = vadd.f32 %v2847_v14, %v2846_v49  ;;  %3130 = vadd.xlane.f32.xlu1 %v3129_v15  ;;  %v2304_v30 = vsub.f32 %v7807_v27, %v2240_v9  ;;  %v2225_v26 = vrot.slane %v2224_v25, 1  ;;  %v7818_v13 = vld [vmem:[#allocation6_spill] sm:$0xff] }
 0x397   : > { %5329 = vpow2.f32 %v2429_v50  ;;  %v2425_v17 = vmul.f32 1.442695, %v2301_v11  ;;  %v3308_v37 = vadd.f32 %v3307_v52, %v3208_v21  ;;  %v2725_v22 = vrot.slane %v6968_v35, 1  ;;  %v3035_v52 = vpop.xlane.xlu1 %3034 }
 0x398   : > { %v5328_v53 = vpop.eup %5327  ;;  %v2834_v55 = vadd.f32 %v2833_v1, %v2832_v10  ;;  %v2431_v42 = vmul.f32 1.442695, %v2304_v30  ;;  %v2226_v32 = vmax.f32 %v2224_v25, %v2225_v26  ;;  %v3206_v27 = vmul.f32 %v3026_v3, %v7818_v13 }
 0x399   : > { %v2988_v54 = vmul.f32 %v5328_v53, %v7817_v12  ;;  %5331 = vpow2.f32 %v2425_v17  ;;  %v3309_v34 = vrot.slane %v3308_v37, 2  ;;  %v2726_v15 = vadd.f32 %v2725_v22, %v6968_v35  ;;  %v3044_v22 = vpop.xlane.xlu0 %3043 }
 0x39a   : > { %5333 = vpow2.f32 %v2431_v42  ;;  %v2302_v11 = vsub.f32 %v7808_v28, %v2226_v32  ;;  %v3739_v21 = vrot.slane %v6895_v44, 1  ;;  %v2828_v50 = vrot.slane %v2827_v62, 2 }
 0x39b   : > { %v3138_v36 = vsel %vm1792_vm5, %v2988_v54, 0.0  ;;  %5335 = vrcp.f32 %v2726_v15  ;;  %v3295_v49 = vrot.slane %v3206_v27, 4  ;;  %v3740_v9 = vrot.slane %v6895_v44, 2 }
 0x39c   : > { %3139 = vadd.xlane.f32.xlu0 %v3138_v36  ;;  %v2849_v10 = vrot.slane %v2848_v57, 2  ;;  %v2835_v14 = vrot.slane %v2834_v55, 2  ;;  %v2427_v56 = vmul.f32 1.442695, %v2302_v11  ;;  %v3859_v35 = vadd.f32 %v6895_v44, %v7016_v6  ;;  %v7820_v6 = vld [vmem:[#allocation11_spill] sm:$0xff] }
 0x39d   : > { %v7819_v1 = vrot.slane %v7087_v59, 1  ;;  %v3310_v28 = vadd.f32 %v3309_v34, %v3308_v37  ;;  %v3860_v30 = vadd.f32 %v3739_v21, %v7076_v29  ;;  %v7152_v26 = vadd.f32 %v3740_v9, %v7014_v2  ;;  %v7821_v29 = vld [vmem:[#allocation9_spill] sm:$0xff] }
 0x39e   : > { %v7155_v3 = vadd.f32 %v2807_v0, %v7110_v39  ;;  %v7158_v53 = vadd.f32 %v3293_v8, %v7120_v41  ;;  %5337 = vpow2.f32 %v2427_v56  ;;  %v3211_v17 = vmul.f32 %v3041_v19, %v7820_v6  ;;  %v4987_v19 = vld [vmem:[%s7668_s5] sm:$0xff]  }
 0x39f   : > { %v7148_v25 = vadd.f32 %v7819_v1, %v7087_v59  ;;  %v7162_v42 = vadd.f32 %v2842_v4, %v7122_v24  ;;  %v7164_v59 = vadd.f32 %v2828_v50, %v2827_v62  ;;  %v3296_v37 = vadd.f32 %v3295_v49, %v3206_v27  ;;  %v7822_v62 = vld [vmem:[#allocation12_spill] sm:$0xff]  ;;  %4889 = vmatprep.subr.bf16.mxu1 %v4987_v19 }
 0x3a0   : > { %v3209_v12 = vmul.f32 %v3035_v52, %v7821_v29  ;;  %v7167_v2 = vadd.f32 %v2849_v10, %v2848_v57  ;;  %v7169_v54 = vadd.f32 %v2835_v14, %v2834_v55  ;;  %v3325_v0 = vrot.slane %v3211_v17, 4  ;;  %4890 = vmatpush3.bf16.msra.mxu1 %v4987_v19 }
 0x3a1   : > { %v2760_v8 = vrot.slane %v6980_v5, 1  ;;  %v7175_v39 = vpop.eup %5329  ;;  %v3311_v41 = vrot.slane %v3310_v28, 1  ;;  %v3923_v24 = vmax.f32 %v3859_v35, 0.0  ;;  %v3212_v32 = vmul.f32 %v3044_v22, %v7822_v62  ;;  %v3038_v62 = vpop.xlane.xlu1 %3037 }
 0x3a2   : > { %v3313_v4 = vrot.slane %v3209_v12, 4  ;;  %v2867_v57 = vsel %vm1792_vm5, %v7175_v39, 0.0  ;;  %v3326_v34 = vadd.f32 %v3325_v0, %v3211_v17  ;;  %v3297_v36 = vrot.slane %v3296_v37, 2 }
 0x3a3   : > { %v2761_v15 = vadd.f32 %v2760_v8, %v6980_v5  ;;  %v7182_v13 = vpop.eup %5331  ;;  %v2868_v27 = vrot.slane %v2867_v57, 4  ;;  %v3924_v11 = vmax.f32 %v3860_v30, 0.0  ;;  %v3331_v10 = vrot.slane %v3212_v32, 4 }
 0x3a4   : > { %v3314_v21 = vadd.f32 %v3313_v4, %v3209_v12  ;;  %v7184_v50 = vpop.eup %5333  ;;  %v2853_v49 = vsel %vm1792_vm5, %v7182_v13, 0.0  ;;  %v3327_v9 = vrot.slane %v3326_v34, 2  ;;  %v7188_v56 = vadd.f32 %v3311_v41, %v3310_v28  ;;  %v3053_v28 = vpop.xlane.xlu0 %3052 }
 0x3a5   : > { %7823 = vst [vmem:[#allocation8_spill] sm:$0xff] %v7184_v50  ;;  %5339 = vrcp.f32 %v2761_v15  ;;  %v5336_v14 = vpop.eup %5335  ;;  %v7191_v35 = vpack.c.bf16 %v3923_v24, %v3923_v24  ;;  %v3747_v52 = vrot.slane %v6902_v7, 2  ;;  %v2854_v1 = vrot.slane %v2853_v49, 4 }
 0x3a6   : > { %v2986_v30 = vmul.f32 %v5336_v14, %v6890_v23  ;;  %v3328_v6 = vadd.f32 %v3327_v9, %v3326_v34  ;;  %v3315_v17 = vrot.slane %v3314_v21, 2  ;;  %v2874_v22 = vsel %vm1792_vm5, %v7184_v50, 0.0  ;;  %v7827_v14 = vld [vmem:[#allocation10_spill] sm:$0xff] }
 0x3a7   : > { %7824 = vst [vmem:[#allocation67_spill] sm:$0xff] %v7191_v35  ;;  %v3298_v29 = vadd.f32 %v3297_v36, %v3296_v37  ;;  %v7197_v12 = vpack.c.bf16 %v3924_v11, %v3924_v11  ;;  %v3332_v0 = vadd.f32 %v3331_v10, %v3212_v32  ;;  %v2869_v19 = vadd.f32 %v2868_v27, %v2867_v57 }
 0x3a8   : > { %v7199_v8 = vpop.eup %5337  ;;  %v3132_v41 = vsel %vm1792_vm5, %v2986_v30, 0.0  ;;  %v3329_v24 = vrot.slane %v3328_v6, 1  ;;  %v3316_v4 = vadd.f32 %v3315_v17, %v3314_v21  ;;  %v3748_v37 = vrot.slane %v6902_v7, 3 }
 0x3a9   : > { %7825 = vst [vmem:[#allocation69_spill] sm:$0xff] %v7197_v12  ;;  %7826 = vst [vmem:[#allocation71_spill] sm:$0xff] %v7199_v8  ;;  %v2860_v23 = vsel %vm1792_vm5, %v7199_v8, 0.0  ;;  %3133 = vadd.xlane.f32.xlu0 %v3132_v41  ;;  %v3333_v15 = vrot.slane %v3332_v0, 2  ;;  %v2855_v36 = vadd.f32 %v2854_v1, %v2853_v49  ;;  %v2875_v32 = vrot.slane %v2874_v22, 4  ;;  %v4988_v41 = vld [vmem:[%s7668_s5 + $0x8] sm:$0xff]  }
 0x3aa   : > { %v3330_v11 = vadd.f32 %v3329_v24, %v3328_v6  ;;  %v3317_v9 = vrot.slane %v3316_v4, 1  ;;  %v3299_v10 = vrot.slane %v3298_v29, 1  ;;  %v3210_v21 = vmul.f32 %v3038_v62, %v7827_v14  ;;  %v4989_v49 = vld [vmem:[%s7668_s5 + $0x10] sm:$0xff]   ;;  %4891 = vmatprep.subr.bf16.mxu1 %v4988_v41 }
 0x3ab   : > { %v3334_v27 = vadd.f32 %v3333_v15, %v3332_v0  ;;  %v2870_v30 = vrot.slane %v2869_v19, 2  ;;  %v2861_v17 = vrot.slane %v2860_v23, 4  ;;  %v2746_v24 = vrot.slane %v6990_v18, 1  ;;  %v3047_v15 = vpop.xlane.xlu0 %3046  ;;  %4892 = vmatpush3.bf16.msra.mxu1 %v4988_v41 }
 0x3ac   : > { %v3869_v5 = vadd.f32 %v3747_v52, %v3330_v11  ;;  %v3318_v55 = vadd.f32 %v3317_v9, %v3316_v4  ;;  %v3319_v6 = vrot.slane %v3210_v21, 4  ;;  %v2767_v0 = vrot.slane %v7007_v47, 1  ;;  %4893 = vmatprep.subr.bf16.mxu1 %v4989_v49 }
 0x3ad   : > { %v3335_v1 = vrot.slane %v3334_v27, 1  ;;  %v2856_v14 = vrot.slane %v2855_v36, 2  ;;  %v7216_v34 = vadd.f32 %v2875_v32, %v2874_v22  ;;  %v2753_v4 = vrot.slane %v7012_v33, 1 }
 0x3ae   : > { %v3867_v52 = vadd.f32 %v6902_v7, %v3318_v55  ;;  %v3320_v57 = vadd.f32 %v3319_v6, %v3210_v21  ;;  %v2747_v50 = vadd.f32 %v2746_v24, %v6990_v18  ;;  %v7222_v35 = vadd.f32 %v2861_v17, %v2860_v23  ;;  %v4990_v55 = vld [vmem:[%s7668_s5 + $0x18] sm:$0xff]   ;;  %v7828_v17 = vld [vmem:[#allocation15_spill] sm:$0xff] }
 0x3af   : > { %v5340_v62 = vpop.eup %5339  ;;  %v3336_v9 = vadd.f32 %v3335_v1, %v3334_v27  ;;  %v7224_v12 = vadd.f32 %v3299_v10, %v3298_v29  ;;  %v2768_v22 = vadd.f32 %v2767_v0, %v7007_v47  ;;  %v7231_v21 = vadd.f32 %v2870_v30, %v2869_v19  ;;  %v3056_v1 = vpop.xlane.xlu0 %3055  ;;  %4894 = vmatpush3.bf16.msra.mxu1 %v4989_v49  ;;  %v7829_v49 = vld [vmem:[#allocation13_spill] sm:$0xff] }
 0x3b0   : > { %v2991_v11 = vmul.f32 %v5340_v62, %v6930_v16  ;;  %v3931_v8 = vmax.f32 %v3867_v52, 0.0  ;;  %v3321_v27 = vrot.slane %v3320_v57, 2  ;;  %5341 = vrcp.f32 %v2747_v50  ;;  %4895 = vmatprep.subr.bf16.mxu1 %v4990_v55 }
 0x3b1   : > { %v3870_v16 = vadd.f32 %v3748_v37, %v3336_v9  ;;  %v2877_v18 = vrot.slane %v7216_v34, 2  ;;  %5343 = vrcp.f32 %v2768_v22  ;;  %v2754_v29 = vadd.f32 %v2753_v4, %v7012_v33  ;;  %v4991_v33 = vld [vmem:[%s7668_s5 + $0x20] sm:$0xff]  }
 0x3b2   : > { %v3147_v32 = vsel %vm1792_vm5, %v2991_v11, 0.0  ;;  %v7235_v23 = vadd.f32 %v2856_v14, %v2855_v36  ;;  %v3933_v47 = vmax.f32 %v3869_v5, 0.0  ;;  %v3322_v10 = vadd.f32 %v3321_v27, %v3320_v57 }
 0x3b3   : > { %3148 = vadd.xlane.f32.xlu0 %v3147_v32  ;;  %v3215_v41 = vmul.f32 %v3053_v28, %v7828_v17  ;;  %v2863_v37 = vrot.slane %v7222_v35, 2  ;;  %v3746_v50 = vrot.slane %v6902_v7, 1  ;;  %5345 = vrcp.f32 %v2754_v29  ;;  %4896 = vmatpush3.bf16.msra.mxu1 %v4990_v55  ;;  %v3050_v29 = vpop.xlane.xlu0 %3049 }
 0x3b4   : > { %v2788_v19 = vrot.slane %v7030_v46, 1  ;;  %v7244_v36 = vpack.c.bf16 %v3931_v8, %v3931_v8  ;;  %v3934_v5 = vmax.f32 %v3870_v16, 0.0  ;;  %v3323_v57 = vrot.slane %v3322_v10, 1  ;;  %4897 = vmatprep.subr.bf16.mxu1 %v4991_v33  ;;  %v7830_v16 = vld [vmem:[#allocation16_spill] sm:$0xff] }
 0x3b5   : > { %v3349_v30 = vrot.slane %v3215_v41, 4  ;;  %v3213_v6 = vmul.f32 %v3047_v15, %v7829_v49  ;;  %v2795_v24 = vrot.slane %v7068_v48, 1  ;;  %v2774_v0 = vrot.slane %v7049_v60, 1 }
 0x3b6   : > { %v2789_v28 = vadd.f32 %v2788_v19, %v7030_v46  ;;  %v7250_v62 = vpack.c.bf16 %v3933_v47, %v3933_v47  ;;  %v3324_v14 = vadd.f32 %v3323_v57, %v3322_v10  ;;  %v3751_v52 = vrot.slane %v6902_v7, 6  ;;  %v4992_v46 = vld [vmem:[%s7668_s5 + $0x28] sm:$0xff]  }
 0x3b7   : > { %v3350_v4 = vadd.f32 %v3349_v30, %v3215_v41  ;;  %v3337_v8 = vrot.slane %v3213_v6, 4  ;;  %v2796_v11 = vadd.f32 %v2795_v24, %v7068_v48  ;;  %v2775_v9 = vadd.f32 %v2774_v0, %v7049_v60  ;;  %4898 = vmatpush3.bf16.msra.mxu1 %v4991_v33  ;;  %v7831_v57 = vld [vmem:[#allocation14_spill] sm:$0xff]  ;;  %v4993_v30 = vld [vmem:[%s7668_s5 + $0x30] sm:$0xff]  }
 0x3b8   : > { %5347 = vrcp.f32 %v2789_v28  ;;  %v4146_v15 = vunpack.c.l.b16 %v7244_v36  ;;  %v3868_v22 = vadd.f32 %v3746_v50, %v3324_v14  ;;  %v3216_v27 = vmul.f32 %v3056_v1, %v7830_v16  ;;  %4899 = vmatprep.subr.bf16.mxu1 %v4992_v46 }
 0x3b9   : > { %v3351_v32 = vrot.slane %v3350_v4, 2  ;;  %v7260_v47 = vpack.c.bf16 %v3934_v5, %v3934_v5  ;;  %v3338_v55 = vadd.f32 %v3337_v8, %v3213_v6  ;;  %5349 = vrcp.f32 %v2796_v11 }
 0x3ba   : > { %v2781_v48 = vrot.slane %v7070_v63, 1  ;;  %v5342_v60 = vpop.eup %5341  ;;  %v3932_v10 = vmax.f32 %v3868_v22, 0.0  ;;  %5351 = vrcp.f32 %v2775_v9  ;;  %v3355_v41 = vrot.slane %v3216_v27, 4 }
 0x3bb   : > { %v3352_v17 = vadd.f32 %v3351_v32, %v3350_v4  ;;  %v5344_v19 = vpop.eup %5343  ;;  %v2989_v50 = vmul.f32 %v5342_v60, %v6940_v31  ;;  %v3339_v36 = vrot.slane %v3338_v55, 2  ;;  %v3214_v5 = vmul.f32 %v3050_v29, %v7831_v57  ;;  %v3065_v4 = vpop.xlane.xlu1 %3064  ;;  %4900 = vmatpush3.bf16.msra.mxu1 %v4992_v46  ;;  %v7832_v60 = vld [vmem:[#allocation19_spill] sm:$0xff] }
 0x3bc   : > { %v2782_v1 = vadd.f32 %v2781_v48, %v7070_v63  ;;  %v3996_v28 = vpack.c.bf16 %v3932_v10, %v3932_v10  ;;  %v2992_v49 = vmul.f32 %v5344_v19, %v6952_v51  ;;  %v3356_v24 = vadd.f32 %v3355_v41, %v3216_v27  ;;  %4901 = vmatprep.subr.bf16.mxu1 %v4993_v30  ;;  %v4994_v27 = vld [vmem:[%s7668_s5 + $0x38] sm:$0xff]  }
 0x3bd   : > { %v3353_v6 = vrot.slane %v3352_v17, 1  ;;  %v5346_v0 = vpop.eup %5345  ;;  %v3141_v33 = vsel %vm1792_vm5, %v2989_v50, 0.0  ;;  %v3340_v14 = vadd.f32 %v3339_v36, %v3338_v55  ;;  %v3343_v31 = vrot.slane %v3214_v5, 4 }
 0x3be   : > { %5353 = vrcp.f32 %v2782_v1  ;;  %v4147_v63 = vunpack.c.l.b16 %v3996_v28  ;;  %3142 = vadd.xlane.f32.xlu0 %v3141_v33  ;;  %v3150_v8 = vsel %vm1792_vm5, %v2992_v49, 0.0  ;;  %v3749_v9 = vrot.slane %v6902_v7, 4 }
 0x3bf   : > { %v3354_v11 = vadd.f32 %v3353_v6, %v3352_v17  ;;  %v3341_v22 = vrot.slane %v3340_v14, 1  ;;  %v3357_v32 = vrot.slane %v3356_v24, 2  ;;  %v3344_v51 = vadd.f32 %v3343_v31, %v3214_v5  ;;  %4902 = vmatpush3.bf16.msra.mxu1 %v4993_v30 }
 0x3c0   : > { %v2816_v16 = vrot.slane %v7080_v38, 1  ;;  %v4223_v29 = vrot.slane %v4147_v63, 7  ;;  %v2990_v55 = vmul.f32 %v5346_v0, %v6962_v61  ;;  %v3219_v10 = vmul.f32 %v3065_v4, %v7832_v60  ;;  %4903 = vmatprep.subr.bf16.mxu1 %v4994_v27 }
 0x3c1   : > { %v3873_v48 = vadd.f32 %v3751_v52, %v3354_v11  ;;  %v3342_v41 = vadd.f32 %v3341_v22, %v3340_v14  ;;  %v3358_v19 = vadd.f32 %v3357_v32, %v3356_v24  ;;  %v3345_v46 = vrot.slane %v3344_v51, 2 }
 0x3c2   : > { %v5348_v17 = vpop.eup %5347  ;;  %v2817_v50 = vadd.f32 %v2816_v16, %v7080_v38  ;;  %v7281_v36 = vsel %vm4203_vm14, %v4223_v29, %v4146_v15  ;;  %3151 = vadd.xlane.f32.xlu0 %v3150_v8  ;;  %v3373_v5 = vrot.slane %v3219_v10, 4  ;;  %v3752_v15 = vrot.slane %v6902_v7, 7  ;;  %v3068_v8 = vpop.xlane.xlu0 %3067 }
 0x3c3   : > { %v3937_v1 = vmax.f32 %v3873_v48, 0.0  ;;  %v2995_v57 = vmul.f32 %v5348_v17, %v6988_v20  ;;  %v5350_v28 = vpop.eup %5349  ;;  %v3871_v61 = vadd.f32 %v3749_v9, %v3342_v41  ;;  %v3359_v52 = vrot.slane %v3358_v19, 1  ;;  %4904 = vmatpush3.bf16.msra.mxu1 %v4994_v27 }
 0x3c4   : > { %v3346_v49 = vadd.f32 %v3345_v46, %v3344_v51  ;;  %5355 = vrcp.f32 %v2817_v50  ;;  %v5352_v6 = vpop.eup %5351  ;;  %v2996_v38 = vmul.f32 %v5350_v28, %v6996_v40  ;;  %v3374_v0 = vadd.f32 %v3373_v5, %v3219_v10  ;;  %v3059_v51 = vpop.xlane.xlu1 %3058 }
 0x3c5   : > { %v3159_v24 = vsel %vm1792_vm5, %v2995_v57, 0.0  ;;  %v3144_v33 = vsel %vm1792_vm5, %v2990_v55, 0.0  ;;  %v2993_v20 = vmul.f32 %v5352_v6, %v6992_v45  ;;  %v3360_v30 = vadd.f32 %v3359_v52, %v3358_v19  ;;  %v7833_v55 = vld [vmem:[#allocation20_spill] sm:$0xff] }
 0x3c6   : > { %3160 = vadd.xlane.f32.xlu1 %v3159_v24  ;;  %v3347_v14 = vrot.slane %v3346_v49, 1  ;;  %v7292_v31 = vadd.f32 %v2877_v18, %v7216_v34  ;;  %v4148_v4 = vunpack.c.l.b16 %v7250_v62  ;;  %3145 = vadd.xlane.f32.xlu0 %v3144_v33  ;;  %v3750_v40 = vrot.slane %v6902_v7, 5 }
 0x3c7   : > { %v3375_v63 = vrot.slane %v3374_v0, 2  ;;  %v4001_v9 = vpack.c.bf16 %v3937_v1, %v3937_v1  ;;  %v3162_v22 = vsel %vm1792_vm5, %v2996_v38, 0.0  ;;  %v7297_v45 = vadd.f32 %v3752_v15, %v3360_v30  ;;  %v7836_v38 = vld [vmem:[#allocation81_spill] sm:$0xff] }
 0x3c8   : > { %v5354_v11 = vpop.eup %5353  ;;  %v3348_v32 = vadd.f32 %v3347_v14, %v3346_v49  ;;  %v7302_v34 = vadd.f32 %v2863_v37, %v7222_v35  ;;  %v3153_v18 = vsel %vm1792_vm5, %v2993_v20, 0.0  ;;  %v4149_v16 = vunpack.c.l.b16 %v7260_v47  ;;  %v7834_v35 = vld [vmem:[#allocation17_spill] sm:$0xff]  ;;  %v3062_v24 = vpop.xlane.xlu1 %3061 }
 0x3c9   : > { %v2994_v7 = vmul.f32 %v5354_v11, %v7010_v43  ;;  %v3376_v62 = vadd.f32 %v3375_v63, %v3374_v0  ;;  %v3935_v27 = vmax.f32 %v3871_v61, 0.0  ;;  %v3220_v48 = vmul.f32 %v3068_v8, %v7833_v55  ;;  %v7835_v43 = vld [vmem:[#allocation74_spill] sm:$0xff] }
 0x3ca   : > { %3154 = vadd.xlane.f32.xlu1 %v3153_v18  ;;  %v3872_v29 = vadd.f32 %v3750_v40, %v3348_v32  ;;  %v7308_v60 = vrot.slane %v4148_v4, 6  ;;  %3163 = vadd.xlane.f32.xlu0 %v3162_v22  ;;  %v2802_v17 = vrot.slane %v7098_v58, 1  ;;  %v3217_v37 = vmul.f32 %v3059_v51, %v7834_v35  ;;  %v7837_v8 = vld [vmem:[#allocation18_spill] sm:$0xff] }
 0x3cb   : > { %v3377_v10 = vrot.slane %v3376_v62, 1  ;;  %v4152_v41 = vunpack.c.l.b16 %v4001_v9  ;;  %v3156_v19 = vsel %vm1792_vm5, %v2994_v7, 0.0  ;;  %v3754_v46 = vrot.slane %v7835_v43, 2 }
 0x3cc   : > { %v3379_v50 = vrot.slane %v3220_v48, 4  ;;  %v2803_v1 = vadd.f32 %v2802_v17, %v7098_v58  ;;  %v3361_v57 = vrot.slane %v3217_v37, 4  ;;  %v2844_v5 = vrot.slane %v7162_v42, 1  ;;  %v3077_v51 = vpop.xlane.xlu1 %3076 }
 0x3cd   : > { %v3378_v47 = vadd.f32 %v3377_v10, %v3376_v62  ;;  %v7316_v61 = vrot.slane %v4149_v16, 5  ;;  %v3999_v52 = vpack.c.bf16 %v3935_v27, %v3935_v27  ;;  %v2809_v6 = vrot.slane %v7155_v3, 1 }
 0x3ce   : > { %v5356_v28 = vpop.eup %5355  ;;  %3157 = vadd.xlane.f32.xlu1 %v3156_v19  ;;  %v3380_v49 = vadd.f32 %v3379_v50, %v3220_v48  ;;  %5357 = vrcp.f32 %v2803_v1  ;;  %v3362_v33 = vadd.f32 %v3361_v57, %v3217_v37  ;;  %v7320_v20 = vrot.slane %v4152_v41, 2 }
 0x3cf   : > { %v2999_v15 = vmul.f32 %v5356_v28, %v7836_v38  ;;  %v3877_v0 = vadd.f32 %v3754_v46, %v3378_v47  ;;  %v2845_v30 = vadd.f32 %v2844_v5, %v7162_v42  ;;  %v2810_v14 = vadd.f32 %v2809_v6, %v7155_v3  ;;  %v7839_v28 = vld [vmem:[#allocation23_spill] sm:$0xff] }
 0x3d0   : > { %v3381_v58 = vrot.slane %v3380_v49, 2  ;;  %v3755_v40 = vrot.slane %v7835_v43, 3  ;;  %v3363_v63 = vrot.slane %v3362_v33, 2  ;;  %v3218_v11 = vmul.f32 %v3062_v24, %v7837_v8  ;;  %v7840_v38 = vld [vmem:[#allocation7_spill] sm:$0xff] }
 0x3d1   : > { %v3171_v4 = vsel %vm1792_vm5, %v2999_v15, 0.0  ;;  %v4150_v9 = vunpack.c.l.b16 %v3999_v52  ;;  %v3936_v22 = vmax.f32 %v3872_v29, 0.0  ;;  %5359 = vrcp.f32 %v2845_v30  ;;  %v7838_v29 = vld [vmem:[#allocation72_spill] sm:$0xff] }
 0x3d2   : > { %3172 = vadd.xlane.f32.xlu1 %v3171_v4  ;;  %v3382_v32 = vadd.f32 %v3381_v58, %v3380_v49  ;;  %v3941_v18 = vmax.f32 %v3877_v0, 0.0  ;;  %v3364_v7 = vadd.f32 %v3363_v63, %v3362_v33  ;;  %5361 = vrcp.f32 %v2810_v14  ;;  %v3071_v49 = vpop.xlane.xlu1 %3070 }
 0x3d3   : > { %v3367_v62 = vrot.slane %v3218_v11, 4  ;;  %v2851_v3 = vrot.slane %v7167_v2, 1  ;;  %v2830_v16 = vrot.slane %v7164_v59, 1  ;;  %v2837_v27 = vrot.slane %v7169_v54, 1 }
 0x3d4   : > { %v3383_v42 = vrot.slane %v3382_v32, 1  ;;  %v3938_v55 = vmax.f32 %v7297_v45, 0.0  ;;  %v3365_v48 = vrot.slane %v3364_v7, 1  ;;  %v2823_v17 = vrot.slane %v7838_v29, 1 }
 0x3d5   : > { %v3368_v10 = vadd.f32 %v3367_v62, %v3218_v11  ;;  %v2852_v37 = vadd.f32 %v2851_v3, %v7167_v2  ;;  %v2831_v41 = vadd.f32 %v2830_v16, %v7164_v59  ;;  %v2838_v19 = vadd.f32 %v2837_v27, %v7169_v54 }
 0x3d6   : > { %v3384_v35 = vadd.f32 %v3383_v42, %v3382_v32  ;;  %v7335_v46 = vpack.c.bf16 %v3936_v22, %v3936_v22  ;;  %v3366_v50 = vadd.f32 %v3365_v48, %v3364_v7  ;;  %v2824_v1 = vadd.f32 %v2823_v17, %v7838_v29  ;;  %v7841_v22 = vld [vmem:[#allocation66_spill] sm:$0xff]  ;;  %v7842_v42 = vld [vmem:[#allocation5_spill] sm:$0xff]  ;;  %v3080_v16 = vpop.xlane.xlu1 %3079 }
 0x3d7   : > { %v3369_v47 = vrot.slane %v3368_v10, 2  ;;  %v4005_v57 = vpack.c.bf16 %v3941_v18, %v3941_v18  ;;  %5363 = vrcp.f32 %v2852_v37  ;;  %v3223_v52 = vmul.f32 %v3077_v51, %v7839_v28 }
 0x3d8   : > { %v3878_v5 = vadd.f32 %v3755_v40, %v3384_v35  ;;  %v5358_v6 = vpop.eup %5357  ;;  %v3875_v24 = vadd.f32 %v7835_v43, %v3366_v50  ;;  %5365 = vrcp.f32 %v2831_v41  ;;  %v2872_v59 = vrot.slane %v7231_v21, 1 }
 0x3d9   : > { %v3370_v2 = vadd.f32 %v3369_v47, %v3368_v10  ;;  %v2997_v15 = vmul.f32 %v5358_v6, %v7840_v38  ;;  %5367 = vrcp.f32 %v2838_v19  ;;  %v3397_v0 = vrot.slane %v3223_v52, 4  ;;  %v7843_v10 = vld [vmem:[#allocation21_spill] sm:$0xff] }
 0x3da   : > { %v3942_v54 = vmax.f32 %v3878_v5, 0.0  ;;  %v3939_v33 = vmax.f32 %v3875_v24, 0.0  ;;  %5369 = vrcp.f32 %v2824_v1  ;;  %v2873_v30 = vadd.f32 %v2872_v59, %v7231_v21  ;;  %v7844_v1 = vld [vmem:[#allocation24_spill] sm:$0xff]  ;;  %v7845_v59 = vld [vmem:[#allocation70_spill] sm:$0xff] }
 0x3db   : > { %v3371_v58 = vrot.slane %v3370_v2, 1  ;;  %v5360_v14 = vpop.eup %5359  ;;  %v7343_v4 = vrot.slane %v4150_v9, 4  ;;  %v4156_v40 = vunpack.c.l.b16 %v4005_v57  ;;  %v3165_v63 = vsel %vm1792_vm5, %v2997_v15, 0.0 }
 0x3dc   : > { %v3398_v8 = vadd.f32 %v3397_v0, %v3223_v52  ;;  %v5362_v11 = vpop.eup %5361  ;;  %3166 = vadd.xlane.f32.xlu1 %v3165_v63  ;;  %v3003_v32 = vmul.f32 %v5360_v14, %v7841_v22  ;;  %v3753_v18 = vrot.slane %v7835_v43, 1  ;;  %5371 = vrcp.f32 %v2873_v30  ;;  %v7847_v22 = vld [vmem:[#allocation73_spill] sm:$0xff] }
 0x3dd   : > { %v3372_v51 = vadd.f32 %v3371_v58, %v3370_v2  ;;  %v4006_v7 = vpack.c.bf16 %v3942_v54, %v3942_v54  ;;  %v4003_v62 = vpack.c.bf16 %v3939_v33, %v3939_v33  ;;  %v2998_v3 = vmul.f32 %v5362_v11, %v7842_v42  ;;  %v7846_v33 = vld [vmem:[#allocation68_spill] sm:$0xff] }
 0x3de   : > { %v3399_v21 = vrot.slane %v3398_v8, 2  ;;  %v4151_v9 = vunpack.c.l.b16 %v7335_v46  ;;  %v3183_v27 = vsel %vm1792_vm5, %v3003_v32, 0.0  ;;  %v3221_v29 = vmul.f32 %v3071_v49, %v7843_v10 }
 0x3df   : > { %v3876_v48 = vadd.f32 %v3753_v18, %v3372_v51  ;;  %v4239_v17 = vrot.slane %v4156_v40, 6  ;;  %3184 = vadd.xlane.f32.xlu0 %v3183_v27  ;;  %v3168_v35 = vsel %vm1792_vm5, %v2998_v3, 0.0  ;;  %v3758_v41 = vrot.slane %v7835_v43, 6  ;;  %v7367_v27 = vpop.xlane.xlu0 %3088 }
 0x3e0   : > { %v3400_v37 = vadd.f32 %v3399_v21, %v3398_v8  ;;  %3169 = vadd.xlane.f32.xlu1 %v3168_v35  ;;  %v3385_v50 = vrot.slane %v3221_v29, 4  ;;  %v2858_v47 = vrot.slane %v7235_v23, 1  ;;  %v3224_v57 = vmul.f32 %v3080_v16, %v7844_v1 }
 0x3e1   : > { %v3940_v19 = vmax.f32 %v3876_v48, 0.0  ;;  %v5364_v5 = vpop.eup %5363  ;;  %v4157_v28 = vunpack.c.l.b16 %v4006_v7  ;;  %v4154_v52 = vunpack.c.l.b16 %v4003_v62  ;;  %v2865_v49 = vrot.slane %v7302_v34, 1  ;;  %v7848_v7 = vld [vmem:[#allocation65_spill] sm:$0xff] }
 0x3e2   : > { %v3401_v6 = vrot.slane %v3400_v37, 1  ;;  %v5366_v24 = vpop.eup %5365  ;;  %v3004_v54 = vmul.f32 %v5364_v5, %v7845_v59  ;;  %v3386_v38 = vadd.f32 %v3385_v50, %v3221_v29  ;;  %v2859_v15 = vadd.f32 %v2858_v47, %v7235_v23 }
 0x3e3   : > { %v4004_v2 = vpack.c.bf16 %v3940_v19, %v3940_v19  ;;  %v5368_v0 = vpop.eup %5367  ;;  %v3001_v58 = vmul.f32 %v5366_v24, %v7846_v33  ;;  %v3403_v14 = vrot.slane %v3224_v57, 4  ;;  %v2866_v40 = vadd.f32 %v2865_v49, %v7302_v34 }
 0x3e4   : > { %v3402_v30 = vadd.f32 %v3401_v6, %v3400_v37  ;;  %v5370_v63 = vpop.eup %5369  ;;  %v3186_v11 = vsel %vm1792_vm5, %v3004_v54, 0.0  ;;  %v3002_v32 = vmul.f32 %v5368_v0, %v7847_v22  ;;  %v3387_v51 = vrot.slane %v3386_v38, 2  ;;  %v7849_v6 = vld [vmem:[#allocation80_spill] sm:$0xff] }
 0x3e5   : > { %v4155_v8 = vunpack.c.l.b16 %v4004_v2  ;;  %3187 = vadd.xlane.f32.xlu0 %v3186_v11  ;;  %v3177_v18 = vsel %vm1792_vm5, %v3001_v58, 0.0  ;;  %v3000_v62 = vmul.f32 %v5370_v63, %v7848_v7  ;;  %5373 = vrcp.f32 %v2859_v15  ;;  %v7390_v58 = vpop.xlane.xlu0 %3091 }
 0x3e6   : > { %v7365_v23 = vadd.f32 %v3758_v41, %v3402_v30  ;;  %v5372_v42 = vpop.eup %5371  ;;  %v4241_v3 = vrot.slane %v4157_v28, 5  ;;  %3178 = vadd.xlane.f32.xlu1 %v3177_v18  ;;  %v3388_v34 = vadd.f32 %v3387_v51, %v3386_v38  ;;  %v3404_v16 = vadd.f32 %v3403_v14, %v3224_v57 }
 0x3e7   : > { %v4237_v21 = vrot.slane %v4155_v8, 7  ;;  %v3180_v48 = vsel %vm1792_vm5, %v3002_v32, 0.0  ;;  %v3007_v10 = vmul.f32 %v5372_v42, %v7175_v39  ;;  %v3756_v29 = vrot.slane %v7835_v43, 4 }
 0x3e8   : > { %5375 = vrcp.f32 %v2866_v40  ;;  %v3389_v37 = vrot.slane %v3388_v34, 1  ;;  %v3405_v41 = vrot.slane %v3404_v16, 2  ;;  %v3744_v19 = vrot.slane %v6895_v44, 6 }
 0x3e9   : > { %v4238_v35 = vsel %vm4203_vm14, %v4237_v21, %v4154_v52  ;;  %3181 = vadd.xlane.f32.xlu0 %v3180_v48  ;;  %v3174_v47 = vsel %vm1792_vm5, %v3000_v62, 0.0  ;;  %v3743_v1 = vrot.slane %v6895_v44, 5  ;;  %v3745_v57 = vrot.slane %v6895_v44, 7 }
 0x3ea   : > { %v4240_v50 = vsel %vm4206_vm15, %v4239_v17, %v4238_v35  ;;  %3175 = vadd.xlane.f32.xlu1 %v3174_v47  ;;  %v3390_v39 = vadd.f32 %v3389_v37, %v3388_v34  ;;  %v3406_v28 = vadd.f32 %v3405_v41, %v3404_v16  ;;  %v7850_v52 = vrot.slane %v6895_v44, 3  ;;  %v3086_v37 = vpop.xlane.xlu0 %3085  ;;  %v7853_v47 = vld [vmem:[#allocation69_spill] sm:$0xff] }
 0x3eb   : > { %v4242_v5 = vsel %vm4209_vm0, %v4241_v3, %v4240_v50  ;;  %v3195_v24 = vsel %vm1792_vm5, %v3007_v10, 0.0  ;;  %v7851_v17 = vrot.slane %v6895_v44, 4  ;;  %v3864_v59 = vadd.f32 %v3743_v1, %v7224_v12  ;;  %v7852_v10 = vld [vmem:[#allocation71_spill] sm:$0xff] }
 0x3ec   : > { %v3862_v49 = vadd.f32 %v7850_v52, %v7849_v6  ;;  %v3865_v54 = vadd.f32 %v3744_v19, %v7148_v25  ;;  %v3879_v38 = vadd.f32 %v3756_v29, %v3390_v39  ;;  %v3407_v15 = vrot.slane %v3406_v28, 1  ;;  %v3074_v39 = vpop.xlane.xlu1 %3073 }
 0x3ed   : > { %v3863_v2 = vadd.f32 %v7851_v17, %v7158_v53  ;;  %v3866_v0 = vadd.f32 %v3745_v57, %v7188_v56  ;;  %v3925_v33 = vmax.f32 %v7152_v26, 0.0  ;;  %3196 = vadd.xlane.f32.xlu0 %v3195_v24  ;;  %v3759_v30 = vrot.slane %v7835_v43, 7 }
 0x3ee   : > { %v3926_v14 = vmax.f32 %v3862_v49, 0.0  ;;  %v3928_v63 = vmax.f32 %v3864_v59, 0.0  ;;  %v3943_v44 = vmax.f32 %v3879_v38, 0.0  ;;  %v3408_v53 = vadd.f32 %v3407_v15, %v3406_v28  ;;  %v3101_v59 = vpop.xlane.xlu0 %3100 }
 0x3ef   : > { %v3927_v40 = vmax.f32 %v3863_v2, 0.0  ;;  %v3929_v8 = vmax.f32 %v3865_v54, 0.0  ;;  %v3930_v12 = vmax.f32 %v3866_v0, 0.0  ;;  %v5374_v11 = vpop.eup %5373  ;;  %v3989_v25 = vpack.c.bf16 %v3925_v33, %v3925_v33 }
 0x3f0   : > { %v3990_v22 = vpack.c.bf16 %v3926_v14, %v3926_v14  ;;  %v3992_v51 = vpack.c.bf16 %v3928_v63, %v3928_v63  ;;  %v4007_v56 = vpack.c.bf16 %v3943_v44, %v3943_v44  ;;  %v3005_v26 = vmul.f32 %v5374_v11, %v7182_v13  ;;  %v3083_v11 = vpop.xlane.xlu1 %3082 }
 0x3f1   : > { %v3991_v32 = vpack.c.bf16 %v3927_v40, %v3927_v40  ;;  %v7394_v18 = vadd.f32 %v3759_v30, %v3408_v53  ;;  %v3993_v7 = vpack.c.bf16 %v3929_v8, %v3929_v8  ;;  %v4002_v42 = vpack.c.bf16 %v3938_v55, %v3938_v55  ;;  %v7857_v40 = vld [vmem:[#allocation22_spill] sm:$0xff] }
 0x3f2   : > { %v5376_v62 = vpop.eup %5375  ;;  %v3994_v3 = vpack.c.bf16 %v3930_v12, %v3930_v12  ;;  %v4140_v21 = vunpack.c.l.b16 %v3989_v25  ;;  %v4158_v16 = vunpack.c.l.b16 %v4007_v56  ;;  %v3189_v48 = vsel %vm1792_vm5, %v3005_v26, 0.0  ;;  %v7858_v56 = vld [vmem:[#allocation30_spill] sm:$0xff]  ;;  %v3095_v26 = vpop.xlane.xlu0 %3094 }
 0x3f3   : > { %v4142_v34 = vunpack.c.l.b16 %v3991_v32  ;;  %v3006_v29 = vmul.f32 %v5376_v62, %v7852_v10  ;;  %v4141_v35 = vunpack.c.l.b16 %v3990_v22  ;;  %v4231_v13 = vrot.slane %v4151_v9, 3  ;;  %3190 = vadd.xlane.f32.xlu0 %v3189_v48  ;;  %v7855_v9 = vld [vmem:[#allocation67_spill] sm:$0xff]  ;;  %v7861_v48 = vld [vmem:[#allocation32_spill] sm:$0xff] }
 0x3f4   : > { %v3945_v41 = vmax.f32 %v7365_v23, 0.0  ;;  %v4143_v19 = vunpack.c.l.b16 %v3992_v51  ;;  %v4144_v45 = vunpack.c.l.b16 %v3993_v7  ;;  %v4243_v55 = vrot.slane %v4158_v16, 4 }
 0x3f5   : > { %v4145_v50 = vunpack.c.l.b16 %v3994_v3  ;;  %v7854_v1 = vunpack.c.l.b16 %v7853_v47  ;;  %v3192_v28 = vsel %vm1792_vm5, %v3006_v29, 0.0  ;;  %v4153_v6 = vunpack.c.l.b16 %v4002_v42  ;;  %v7859_v42 = vld [vmem:[#allocation75_spill] sm:$0xff] }
 0x3f6   : > { %v4205_v52 = vrot.slane %v4140_v21, 6  ;;  %v4211_v49 = vrot.slane %v4142_v34, 4  ;;  %v7408_v46 = vsel %vm4212_vm1, %v4243_v55, %v4242_v5  ;;  %v7856_v23 = vunpack.c.l.b16 %v7855_v9  ;;  %v7860_v21 = vld [vmem:[#allocation26_spill] sm:$0xff] }
 0x3f7   : > { %v4202_v57 = vrot.slane %v7854_v1, 7  ;;  %v4208_v17 = vrot.slane %v4141_v35, 5  ;;  %v4214_v2 = vrot.slane %v4143_v19, 3  ;;  %v7413_v54 = vpack.c.bf16 %v3945_v41, %v3945_v41  ;;  %3193 = vadd.xlane.f32.xlu0 %v3192_v28  ;;  %v7862_v35 = vld [vmem:[#allocation28_spill] sm:$0xff] }
 0x3f8   : > { %v4217_v15 = vrot.slane %v4144_v45, 2  ;;  %v4220_v33 = vrot.slane %v4145_v50, 1  ;;  %v4226_v5 = vsel %vm4206_vm15, %v7308_v60, %v7281_v36  ;;  %v3222_v63 = vmul.f32 %v3074_v39, %v7857_v40  ;;  %v7863_v45 = vld [vmem:[#allocation38_spill] sm:$0xff] }
 0x3f9   : > { %v4204_v24 = vsel %vm4203_vm14, %v4202_v57, %v7856_v23  ;;  %v4228_v14 = vsel %vm4209_vm0, %v7316_v61, %v4226_v5  ;;  %v4235_v8 = vrot.slane %v4153_v6, 1  ;;  %v2879_v12 = vrot.slane %v7292_v31, 1  ;;  %v7864_v6 = vld [vmem:[#allocation34_spill] sm:$0xff] }
 0x3fa   : > { %v4207_v38 = vsel %vm4206_vm15, %v4205_v52, %v4204_v24  ;;  %v4230_v53 = vsel %vm4212_vm1, %v7343_v4, %v4228_v14  ;;  %v3391_v60 = vrot.slane %v3222_v63, 4  ;;  %v3757_v22 = vrot.slane %v7835_v43, 5 }
 0x3fb   : > { %v4210_v0 = vsel %vm4209_vm0, %v4208_v17, %v4207_v38  ;;  %v4232_v36 = vsel %vm4215_vm3, %v4231_v13, %v4230_v53  ;;  %v2880_v51 = vadd.f32 %v2879_v12, %v7292_v31  ;;  %v3227_v4 = vmul.f32 %v7367_v27, %v7858_v56 }
 0x3fc   : > { %v4213_v30 = vsel %vm4212_vm1, %v4211_v49, %v4210_v0  ;;  %v4234_v32 = vsel %vm4218_vm4, %v7320_v20, %v4232_v36  ;;  %v3392_v62 = vadd.f32 %v3391_v60, %v3222_v63  ;;  %v3761_v3 = vrot.slane %v7859_v42, 2  ;;  %v3104_v49 = vpop.xlane.xlu0 %3103 }
 0x3fd   : > { %v4216_v44 = vsel %vm4215_vm3, %v4214_v2, %v4213_v30  ;;  %v4236_v7 = vsel %vm4221_vm2, %v4235_v8, %v4234_v32  ;;  %v3225_v34 = vmul.f32 %v3083_v11, %v7860_v21  ;;  %5377 = vrcp.f32 %v2880_v51  ;;  %v7865_v30 = vld [vmem:[#allocation40_spill] sm:$0xff] }
 0x3fe   : > { %v4219_v25 = vsel %vm4218_vm4, %v4217_v15, %v4216_v44  ;;  %v3421_v43 = vrot.slane %v3227_v4, 4  ;;  %v3228_v10 = vmul.f32 %v7390_v58, %v7861_v48  ;;  %v3393_v20 = vrot.slane %v3392_v62, 2  ;;  %v7449_v15 = vpop.xlane.xlu1 %3112 }
 0x3ff   : > { %v4222_v61 = vsel %vm4221_vm2, %v4220_v33, %v4219_v25  ;;  %v3409_v29 = vrot.slane %v3225_v34, 4  ;;  %v3762_v31 = vrot.slane %v7859_v42, 3  ;;  %v3226_v27 = vmul.f32 %v3086_v37, %v7862_v35 }
 0x400   : > { %v4321_v16 = vpack.c.b16 %v4236_v7, %v4222_v61  ;;  %v3422_v13 = vadd.f32 %v3421_v43, %v3227_v4  ;;  %v3427_v41 = vrot.slane %v3228_v10, 4  ;;  %v3760_v19 = vrot.slane %v7859_v42, 1  ;;  %v7866_v4 = vld [vmem:[#allocation8_spill] sm:$0xff] }
 0x401   : > { %v3231_v55 = vmul.f32 %v3101_v59, %v7863_v45  ;;  %v3394_v50 = vadd.f32 %v3393_v20, %v3392_v62  ;;  %v3410_v47 = vadd.f32 %v3409_v29, %v3225_v34  ;;  %v3415_v1 = vrot.slane %v3226_v27, 4 }
 0x402   : > { %4905 = vmatprep.mubr.bf16.mxu1 %v4321_v16  ;;  %v3765_v57 = vrot.slane %v7859_v42, 6  ;;  %v3423_v39 = vrot.slane %v3422_v13, 2  ;;  %v3428_v58 = vadd.f32 %v3427_v41, %v3228_v10  ;;  %v3229_v52 = vmul.f32 %v3095_v26, %v7864_v6  ;;  %v3107_v48 = vpop.xlane.xlu1 %3106 }
 0x403   : > { %v3445_v28 = vrot.slane %v3231_v55, 4  ;;  %v3395_v9 = vrot.slane %v3394_v50, 1  ;;  %v3411_v37 = vrot.slane %v3410_v47, 2  ;;  %v3416_v23 = vadd.f32 %v3415_v1, %v3226_v27 }
 0x404   : > { %v3763_v24 = vrot.slane %v7859_v42, 4  ;;  %v3424_v17 = vadd.f32 %v3423_v39, %v3422_v13  ;;  %v3429_v2 = vrot.slane %v3428_v58, 2  ;;  %v3433_v59 = vrot.slane %v3229_v52, 4 }
 0x405   : > { %v3446_v38 = vadd.f32 %v3445_v28, %v3231_v55  ;;  %v3396_v0 = vadd.f32 %v3395_v9, %v3394_v50  ;;  %v3412_v33 = vadd.f32 %v3411_v37, %v3410_v47  ;;  %v3417_v5 = vrot.slane %v3416_v23, 2 }
 0x406   : > { %v3232_v14 = vmul.f32 %v3104_v49, %v7865_v30  ;;  %v3425_v40 = vrot.slane %v3424_v17, 1  ;;  %v3430_v63 = vadd.f32 %v3429_v2, %v3428_v58  ;;  %v3434_v53 = vadd.f32 %v3433_v59, %v3229_v52 }
 0x407   : > { %v3447_v44 = vrot.slane %v3446_v38, 2  ;;  %v3880_v8 = vadd.f32 %v3757_v22, %v3396_v0  ;;  %v3413_v12 = vrot.slane %v3412_v33, 1  ;;  %v3418_v11 = vadd.f32 %v3417_v5, %v3416_v23  ;;  %v5378_v36 = vpop.eup %5377  ;;  %v3098_v23 = vpop.xlane.xlu0 %3097 }
 0x408   : > { %v3451_v25 = vrot.slane %v3232_v14, 4  ;;  %v3426_v60 = vadd.f32 %v3425_v40, %v3424_v17  ;;  %v3431_v61 = vrot.slane %v3430_v63, 1  ;;  %v3435_v51 = vrot.slane %v3434_v53, 2  ;;  %v3110_v17 = vpop.xlane.xlu1 %3109 }
 0x409   : > { %v3448_v32 = vadd.f32 %v3447_v44, %v3446_v38  ;;  %v3944_v56 = vmax.f32 %v3880_v8, 0.0  ;;  %v3008_v26 = vmul.f32 %v5378_v36, %v7866_v4  ;;  %v3414_v7 = vadd.f32 %v3413_v12, %v3412_v33 }
 0x40a   : > { %v3419_v62 = vrot.slane %v3418_v11, 1  ;;  %v3885_v21 = vadd.f32 %v3761_v3, %v3426_v60  ;;  %v3432_v34 = vadd.f32 %v3431_v61, %v3430_v63  ;;  %v3436_v43 = vadd.f32 %v3435_v51, %v3434_v53 }
 0x40b   : > { %v3449_v16 = vrot.slane %v3448_v32, 1  ;;  %v4008_v10 = vpack.c.bf16 %v3944_v56, %v3944_v56  ;;  %v3198_v22 = vsel %vm1792_vm5, %v3008_v26, 0.0  ;;  %v3883_v20 = vadd.f32 %v7859_v42, %v3414_v7  ;;  %v3116_v8 = vpop.xlane.xlu0 %3115 }
 0x40c   : > { %v3420_v29 = vadd.f32 %v3419_v62, %v3418_v11  ;;  %3199 = vadd.xlane.f32.xlu0 %v3198_v22  ;;  %v3949_v35 = vmax.f32 %v3885_v21, 0.0  ;;  %v3886_v27 = vadd.f32 %v3762_v31, %v3432_v34  ;;  %v3437_v41 = vrot.slane %v3436_v43, 1  ;;  %v3125_v12 = vpop.xlane.xlu1 %3124  ;;  %v7869_v62 = vld [vmem:[#allocation46_spill] sm:$0xff] }
 0x40d   : > { %v3450_v13 = vadd.f32 %v3449_v16, %v3448_v32  ;;  %v4159_v45 = vunpack.c.l.b16 %v4008_v10  ;;  %v3947_v55 = vmax.f32 %v3883_v20, 0.0  ;;  %v3452_v47 = vadd.f32 %v3451_v25, %v3232_v14  ;;  %v7867_v14 = vld [vmem:[#allocation36_spill] sm:$0xff] }
 0x40e   : > { %v3884_v50 = vadd.f32 %v3760_v19, %v3420_v29  ;;  %v4013_v3 = vpack.c.bf16 %v3949_v35, %v3949_v35  ;;  %v3950_v1 = vmax.f32 %v3886_v27, 0.0  ;;  %v3438_v58 = vadd.f32 %v3437_v41, %v3436_v43  ;;  %v7870_v43 = vld [vmem:[#allocation42_spill] sm:$0xff] }
 0x40f   : > { %v3889_v39 = vadd.f32 %v3765_v57, %v3450_v13  ;;  %v3946_v28 = vmax.f32 %v7394_v18, 0.0  ;;  %v4245_v6 = vrot.slane %v4159_v45, 3  ;;  %v3453_v49 = vrot.slane %v3452_v47, 2  ;;  %v7871_v45 = vld [vmem:[#allocation44_spill] sm:$0xff] }
 0x410   : > { %v3948_v52 = vmax.f32 %v3884_v50, 0.0  ;;  %v4014_v9 = vpack.c.bf16 %v3950_v1, %v3950_v1  ;;  %v3887_v37 = vadd.f32 %v3763_v24, %v3438_v58  ;;  %v4011_v2 = vpack.c.bf16 %v3947_v55, %v3947_v55  ;;  %v3119_v50 = vpop.xlane.xlu1 %3118 }
 0x411   : > { %v7458_v31 = vsel %vm4215_vm3, %v4245_v6, %v7408_v46  ;;  %v3454_v38 = vadd.f32 %v3453_v49, %v3452_v47  ;;  %v4160_v59 = vunpack.c.l.b16 %v7413_v54  ;;  %v4164_v57 = vunpack.c.l.b16 %v4013_v3  ;;  %v7868_v46 = vld [vmem:[#allocation45_spill] sm:$0xff] }
 0x412   : > { %v4012_v19 = vpack.c.bf16 %v3948_v52, %v3948_v52  ;;  %v4165_v0 = vunpack.c.l.b16 %v4014_v9  ;;  %v3951_v33 = vmax.f32 %v3887_v37, 0.0  ;;  %v7461_v18 = vpack.c.bf16 %v3946_v28, %v3946_v28  ;;  %v7872_v6 = vld [vmem:[#allocation49_spill] sm:$0xff] }
 0x413   : > { %v3455_v30 = vrot.slane %v3454_v38, 1  ;;  %v3230_v24 = vmul.f32 %v3098_v23, %v7867_v14  ;;  %v3953_v40 = vmax.f32 %v3889_v39, 0.0  ;;  %v3766_v44 = vrot.slane %v7859_v42, 7  ;;  %v7873_v37 = vld [vmem:[#allocation77_spill] sm:$0xff] }
 0x414   : > { %v4163_v5 = vunpack.c.l.b16 %v4012_v19  ;;  %v4015_v63 = vpack.c.bf16 %v3951_v33, %v3951_v33  ;;  %v3235_v53 = vmul.f32 %v7449_v15, %v7868_v46  ;;  %v4162_v11 = vunpack.c.l.b16 %v4011_v2 }
 0x415   : > { %v3456_v36 = vadd.f32 %v3455_v30, %v3454_v38  ;;  %v3439_v60 = vrot.slane %v3230_v24, 4  ;;  %v4253_v61 = vrot.slane %v4164_v57, 6  ;;  %v4255_v32 = vrot.slane %v4165_v0, 5 }
 0x416   : > { %v4251_v25 = vrot.slane %v4163_v5, 7  ;;  %v4166_v51 = vunpack.c.l.b16 %v4015_v63  ;;  %v3469_v56 = vrot.slane %v3235_v53, 4  ;;  %v3236_v21 = vmul.f32 %v3116_v8, %v7869_v62  ;;  %v7874_v5 = vld [vmem:[#allocation47_spill] sm:$0xff] }
 0x417   : > { %v3890_v26 = vadd.f32 %v3766_v44, %v3456_v36  ;;  %v3440_v7 = vadd.f32 %v3439_v60, %v3230_v24  ;;  %v3233_v10 = vmul.f32 %v3107_v48, %v7870_v43  ;;  %v4161_v22 = vunpack.c.l.b16 %v7461_v18  ;;  %v3128_v44 = vpop.xlane.xlu1 %3127 }
 0x418   : > { %v4252_v4 = vsel %vm4203_vm14, %v4251_v25, %v4162_v11  ;;  %v4257_v16 = vrot.slane %v4166_v51, 4  ;;  %v3470_v15 = vadd.f32 %v3469_v56, %v3235_v53  ;;  %v3475_v35 = vrot.slane %v3236_v21, 4  ;;  %v7875_v56 = vld [vmem:[#allocation50_spill] sm:$0xff] }
 0x419   : > { %v4254_v34 = vsel %vm4206_vm15, %v4253_v61, %v4252_v4  ;;  %v3441_v29 = vrot.slane %v3440_v7, 2  ;;  %v3457_v41 = vrot.slane %v3233_v10, 4  ;;  %v3234_v55 = vmul.f32 %v3110_v17, %v7871_v45 }
 0x41a   : > { %v4256_v20 = vsel %vm4209_vm0, %v4255_v32, %v4254_v34  ;;  %v3471_v13 = vrot.slane %v3470_v15, 2  ;;  %v7477_v47 = vpack.c.bf16 %v3953_v40, %v3953_v40  ;;  %v3764_v3 = vrot.slane %v7859_v42, 5 }
 0x41b   : > { %v7474_v27 = vsel %vm4212_vm1, %v4257_v16, %v4256_v20  ;;  %v3442_v1 = vadd.f32 %v3441_v29, %v3440_v7  ;;  %v3476_v48 = vadd.f32 %v3475_v35, %v3236_v21  ;;  %v3458_v58 = vadd.f32 %v3457_v41, %v3233_v10 }
 0x41c   : > { %v3472_v39 = vadd.f32 %v3471_v13, %v3470_v15  ;;  %v3463_v28 = vrot.slane %v3234_v55, 4  ;;  %v3239_v52 = vmul.f32 %v3125_v12, %v7872_v6  ;;  %v3954_v49 = vmax.f32 %v3890_v26, 0.0  ;;  %v3122_v6 = vpop.xlane.xlu1 %3121 }
 0x41d   : > { %v3443_v9 = vrot.slane %v3442_v1, 1  ;;  %v3768_v23 = vrot.slane %v7873_v37, 2  ;;  %v3477_v2 = vrot.slane %v3476_v48, 2  ;;  %v3459_v38 = vrot.slane %v3458_v58, 2 }
 0x41e   : > { %v3473_v19 = vrot.slane %v3472_v39, 1  ;;  %v3464_v17 = vadd.f32 %v3463_v28, %v3234_v55  ;;  %v3493_v57 = vrot.slane %v3239_v52, 4  ;;  %v3769_v33 = vrot.slane %v7873_v37, 3 }
 0x41f   : > { %v3444_v0 = vadd.f32 %v3443_v9, %v3442_v1  ;;  %v3478_v42 = vadd.f32 %v3477_v2, %v3476_v48  ;;  %v3237_v30 = vmul.f32 %v3119_v50, %v7874_v5  ;;  %v3460_v24 = vadd.f32 %v3459_v38, %v3458_v58 }
 0x420   : > { %v3474_v14 = vadd.f32 %v3473_v19, %v3472_v39  ;;  %v3465_v40 = vrot.slane %v3464_v17, 2  ;;  %v3494_v63 = vadd.f32 %v3493_v57, %v3239_v52  ;;  %v4018_v46 = vpack.c.bf16 %v3954_v49, %v3954_v49 }
 0x421   : > { %v3888_v53 = vadd.f32 %v3764_v3, %v3444_v0  ;;  %v3479_v8 = vrot.slane %v3478_v42, 1  ;;  %v3481_v12 = vrot.slane %v3237_v30, 4  ;;  %v3461_v25 = vrot.slane %v3460_v24, 1  ;;  %v3137_v52 = vpop.xlane.xlu0 %3136 }
 0x422   : > { %v3893_v11 = vadd.f32 %v3768_v23, %v3474_v14  ;;  %v3466_v36 = vadd.f32 %v3465_v40, %v3464_v17  ;;  %v3495_v60 = vrot.slane %v3494_v63, 2  ;;  %v3240_v4 = vmul.f32 %v3128_v44, %v7875_v56  ;;  %v7876_v44 = vld [vmem:[#allocation48_spill] sm:$0xff]  ;;  %v7877_v56 = vld [vmem:[#allocation53_spill] sm:$0xff] }
 0x423   : > { %v3952_v61 = vmax.f32 %v3888_v53, 0.0  ;;  %v3480_v32 = vadd.f32 %v3479_v8, %v3478_v42  ;;  %v3482_v51 = vadd.f32 %v3481_v12, %v3237_v30  ;;  %v4168_v26 = vunpack.c.l.b16 %v7477_v47  ;;  %v3131_v53 = vpop.xlane.xlu1 %3130 }
 0x424   : > { %v3462_v7 = vadd.f32 %v3461_v25, %v3460_v24  ;;  %v3467_v62 = vrot.slane %v3466_v36, 1  ;;  %v3496_v21 = vadd.f32 %v3495_v60, %v3494_v63  ;;  %v3499_v43 = vrot.slane %v3240_v4, 4 }
 0x425   : > { %v4016_v34 = vpack.c.bf16 %v3952_v61, %v3952_v61  ;;  %v3894_v16 = vadd.f32 %v3769_v33, %v3480_v32  ;;  %v3483_v15 = vrot.slane %v3482_v51, 2  ;;  %v3767_v29 = vrot.slane %v7873_v37, 1 }
 0x426   : > { %v3891_v10 = vadd.f32 %v7873_v37, %v3462_v7  ;;  %v3468_v20 = vadd.f32 %v3467_v62, %v3466_v36  ;;  %v3497_v35 = vrot.slane %v3496_v21, 1  ;;  %v4169_v13 = vunpack.c.l.b16 %v4018_v46 }
 0x427   : > { %v4167_v41 = vunpack.c.l.b16 %v4016_v34  ;;  %v3484_v45 = vadd.f32 %v3483_v15, %v3482_v51  ;;  %v3500_v55 = vadd.f32 %v3499_v43, %v3240_v4  ;;  %v3772_v1 = vrot.slane %v7873_v37, 6 }
 0x428   : > { %v3955_v50 = vmax.f32 %v3891_v10, 0.0  ;;  %v3892_v3 = vadd.f32 %v3767_v29, %v3468_v20  ;;  %v3498_v47 = vadd.f32 %v3497_v35, %v3496_v21  ;;  %v4247_v48 = vrot.slane %v4160_v59, 2 }
 0x429   : > { %v4259_v39 = vrot.slane %v4167_v41, 3  ;;  %v3485_v58 = vrot.slane %v3484_v45, 1  ;;  %v3501_v28 = vrot.slane %v3500_v55, 2  ;;  %v4249_v49 = vrot.slane %v4161_v22, 1  ;;  %v3140_v8 = vpop.xlane.xlu0 %3139 }
 0x42a   : > { %v4261_v9 = vrot.slane %v4168_v26, 2  ;;  %v3956_v23 = vmax.f32 %v3892_v3, 0.0  ;;  %v3897_v2 = vadd.f32 %v3772_v1, %v3498_v47  ;;  %v3770_v17 = vrot.slane %v7873_v37, 4  ;;  %v7878_v26 = vld [vmem:[#allocation51_spill] sm:$0xff] }
 0x42b   : > { %v4260_v19 = vsel %vm4215_vm3, %v4259_v39, %v7474_v27  ;;  %v3486_v38 = vadd.f32 %v3485_v58, %v3484_v45  ;;  %v3502_v57 = vadd.f32 %v3501_v28, %v3500_v55  ;;  %v4263_v54 = vrot.slane %v4169_v13, 1  ;;  %v7880_v55 = vld [vmem:[#allocation52_spill] sm:$0xff] }
 0x42c   : > { %v3957_v59 = vmax.f32 %v3893_v11, 0.0  ;;  %v4019_v0 = vpack.c.bf16 %v3955_v50, %v3955_v50  ;;  %v4020_v33 = vpack.c.bf16 %v3956_v23, %v3956_v23  ;;  %v3958_v42 = vmax.f32 %v3894_v16, 0.0  ;;  %v7879_v16 = vld [vmem:[#allocation54_spill] sm:$0xff] }
 0x42d   : > { %v3895_v5 = vadd.f32 %v3770_v17, %v3486_v38  ;;  %v3503_v30 = vrot.slane %v3502_v57, 1  ;;  %v4248_v18 = vsel %vm4218_vm4, %v4247_v48, %v7458_v31  ;;  %v4262_v24 = vsel %vm4218_vm4, %v4261_v9, %v4260_v19 }
 0x42e   : > { %v4171_v22 = vunpack.c.l.b16 %v4020_v33  ;;  %v4250_v14 = vsel %vm4221_vm2, %v4249_v49, %v4248_v18  ;;  %v3773_v40 = vrot.slane %v7873_v37, 7  ;;  %v4264_v63 = vsel %vm4221_vm2, %v4263_v54, %v4262_v24  ;;  %v7881_v18 = vld [vmem:[#allocation79_spill] sm:$0xff] }
 0x42f   : > { %v3504_v27 = vadd.f32 %v3503_v30, %v3502_v57  ;;  %v3238_v46 = vmul.f32 %v3122_v6, %v7876_v44  ;;  %v4021_v12 = vpack.c.bf16 %v3957_v59, %v3957_v59  ;;  %v4170_v11 = vunpack.c.l.b16 %v4019_v0 }
 0x430   : > { %v4265_v25 = vrot.slane %v4171_v22, 7  ;;  %v4322_v36 = vpack.c.b16 %v4264_v63, %v4250_v14  ;;  %v4022_v60 = vpack.c.bf16 %v3958_v42, %v3958_v42  ;;  %v3959_v31 = vmax.f32 %v3895_v5, 0.0 }
 0x431   : > { %v3898_v61 = vadd.f32 %v3773_v40, %v3504_v27  ;;  %v3487_v32 = vrot.slane %v3238_v46, 4  ;;  %v3243_v4 = vmul.f32 %v3137_v52, %v7877_v56  ;;  %v3241_v7 = vmul.f32 %v3131_v53, %v7878_v26 }
 0x432   : > { %v4266_v51 = vsel %vm4203_vm14, %v4265_v25, %v4170_v11  ;;  %4906 = vmatmul.mubr.bf16.vlgmr.msra.gmra.mrb[92].mxu1 %v4322_v36  ;;  %v3244_v15 = vmul.f32 %v3140_v8, %v7879_v16  ;;  %v4172_v43 = vunpack.c.l.b16 %v4021_v12  ;;  %v4173_v10 = vunpack.c.l.b16 %v4022_v60  ;;  %v7882_v8 = vld [vmem:[#allocation57_spill] sm:$0xff] }
 0x433   : > { %v3488_v62 = vadd.f32 %v3487_v32, %v3238_v46  ;;  %v3517_v21 = vrot.slane %v3243_v4, 4  ;;  %v3505_v34 = vrot.slane %v3241_v7, 4  ;;  %v4023_v20 = vpack.c.bf16 %v3959_v31, %v3959_v31 }
 0x434   : > { %v3523_v45 = vrot.slane %v3244_v15, 4  ;;  %v3961_v3 = vmax.f32 %v3897_v2, 0.0  ;;  %v4267_v28 = vrot.slane %v4172_v43, 6  ;;  %v4269_v6 = vrot.slane %v4173_v10, 5 }
 0x435   : > { %v3489_v29 = vrot.slane %v3488_v62, 2  ;;  %v3518_v13 = vadd.f32 %v3517_v21, %v3243_v4  ;;  %v3506_v41 = vadd.f32 %v3505_v34, %v3241_v7  ;;  %v4174_v52 = vunpack.c.l.b16 %v4023_v20 }
 0x436   : > { %v3134_v35 = vpop.xlane.xlu0 %3133  ;;  %v3524_v39 = vadd.f32 %v3523_v45, %v3244_v15  ;;  %v4025_v17 = vpack.c.bf16 %v3961_v3, %v3961_v3  ;;  %v3962_v57 = vmax.f32 %v3898_v61, 0.0  ;;  %v3771_v59 = vrot.slane %v7873_v37, 5 }
 0x437   : > { %v3242_v50 = vmul.f32 %v3134_v35, %v7880_v55  ;;  %v3490_v47 = vadd.f32 %v3489_v29, %v3488_v62  ;;  %v3519_v1 = vrot.slane %v3518_v13, 2  ;;  %v3507_v48 = vrot.slane %v3506_v41, 2 }
 0x438   : > { %v3525_v19 = vrot.slane %v3524_v39, 2  ;;  %v4271_v5 = vrot.slane %v4174_v52, 4  ;;  %v3775_v22 = vrot.slane %v7881_v18, 2  ;;  %v3776_v14 = vrot.slane %v7881_v18, 3 }
 0x439   : > { %v3511_v58 = vrot.slane %v3242_v50, 4  ;;  %v3491_v49 = vrot.slane %v3490_v47, 1  ;;  %v3520_v9 = vadd.f32 %v3519_v1, %v3518_v13  ;;  %v3508_v23 = vadd.f32 %v3507_v48, %v3506_v41 }
 0x43a   : > { %v3526_v33 = vadd.f32 %v3525_v19, %v3524_v39  ;;  %v4026_v46 = vpack.c.bf16 %v3962_v57, %v3962_v57  ;;  %v4268_v37 = vsel %vm4206_vm15, %v4267_v28, %v4266_v51  ;;  %v4176_v31 = vunpack.c.l.b16 %v4025_v17  ;;  %v7883_v17 = vld [vmem:[#allocation55_spill] sm:$0xff] }
 0x43b   : > { %v3512_v38 = vadd.f32 %v3511_v58, %v3242_v50  ;;  %v3492_v54 = vadd.f32 %v3491_v49, %v3490_v47  ;;  %v3521_v0 = vrot.slane %v3520_v9, 1  ;;  %v3509_v2 = vrot.slane %v3508_v23, 1 }
 0x43c   : > { %v3527_v40 = vrot.slane %v3526_v33, 1  ;;  %v4270_v56 = vsel %vm4209_vm0, %v4269_v6, %v4268_v37  ;;  %v3774_v7 = vrot.slane %v7881_v18, 1  ;;  %v4177_v16 = vunpack.c.l.b16 %v4026_v46  ;;  %v7885_v46 = vld [vmem:[#allocation61_spill] sm:$0xff]  ;;  %v7886_v37 = vld [vmem:[#allocation56_spill] sm:$0xff] }
 0x43d   : > { %v3513_v42 = vrot.slane %v3512_v38, 2  ;;  %v3896_v30 = vadd.f32 %v3771_v59, %v3492_v54  ;;  %v3522_v24 = vadd.f32 %v3521_v0, %v3520_v9  ;;  %v3510_v27 = vadd.f32 %v3509_v2, %v3508_v23 }
 0x43e   : > { %v3528_v36 = vadd.f32 %v3527_v40, %v3526_v33  ;;  %v4272_v51 = vsel %vm4212_vm1, %v4271_v5, %v4270_v56  ;;  %v4275_v13 = vrot.slane %v4176_v31, 2  ;;  %v4277_v3 = vrot.slane %v4177_v16, 1  ;;  %v7888_v16 = vld [vmem:[#allocation62_spill] sm:$0xff] }
 0x43f   : > { %v3514_v63 = vadd.f32 %v3513_v42, %v3512_v38  ;;  %v3960_v53 = vmax.f32 %v3896_v30, 0.0  ;;  %v3901_v11 = vadd.f32 %v3775_v22, %v3522_v24  ;;  %v3899_v25 = vadd.f32 %v7881_v18, %v3510_v27  ;;  %v7884_v22 = vld [vmem:[#allocation58_spill] sm:$0xff] }
 0x440   : > { %v3149_v44 = vpop.xlane.xlu0 %3148  ;;  %v3902_v26 = vadd.f32 %v3776_v14, %v3528_v36  ;;  %v3779_v49 = vrot.slane %v7881_v18, 6 }
 0x441   : > { %v3247_v12 = vmul.f32 %v3149_v44, %v7882_v8  ;;  %v3515_v60 = vrot.slane %v3514_v63, 1  ;;  %v4024_v61 = vpack.c.bf16 %v3960_v53, %v3960_v53  ;;  %v3965_v4 = vmax.f32 %v3901_v11, 0.0 }
 0x442   : > { %v3963_v15 = vmax.f32 %v3899_v25, 0.0  ;;  %v3966_v43 = vmax.f32 %v3902_v26, 0.0  ;;  %v7887_v26 = vld [vmem:[#allocation59_spill] sm:$0xff] }
 0x443   : > { %v3541_v32 = vrot.slane %v3247_v12, 4  ;;  %v3516_v62 = vadd.f32 %v3515_v60, %v3514_v63  ;;  %v4175_v21 = vunpack.c.l.b16 %v4024_v61  ;;  %v4029_v29 = vpack.c.bf16 %v3965_v4, %v3965_v4 }
 0x444   : > { %v4030_v41 = vpack.c.bf16 %v3966_v43, %v3966_v43  ;;  %v4027_v47 = vpack.c.bf16 %v3963_v15, %v3963_v15  ;;  %v3780_v15 = vrot.slane %v7881_v18, 7  ;;  %v3778_v43 = vrot.slane %v7881_v18, 5 }
 0x445   : > { %v3542_v34 = vadd.f32 %v3541_v32, %v3247_v12  ;;  %v3900_v10 = vadd.f32 %v3774_v7, %v3516_v62  ;;  %v4273_v20 = vrot.slane %v4175_v21, 3  ;;  %v4180_v39 = vunpack.c.l.b16 %v4029_v29 }
 0x446   : > { %v4181_v6 = vunpack.c.l.b16 %v4030_v41  ;;  %v4178_v19 = vunpack.c.l.b16 %v4027_v47  ;;  %v3777_v32 = vrot.slane %v7881_v18, 4 }
 0x447   : > { %v3543_v35 = vrot.slane %v3542_v34, 2  ;;  %v3964_v45 = vmax.f32 %v3900_v10, 0.0  ;;  %v4274_v50 = vsel %vm4215_vm3, %v4273_v20, %v4272_v51  ;;  %v4281_v54 = vrot.slane %v4180_v39, 6 }
 0x448   : > { %v4276_v48 = vsel %vm4218_vm4, %v4275_v13, %v4274_v50  ;;  %v4283_v0 = vrot.slane %v4181_v6, 5  ;;  %v7889_v50 = vld [vmem:[#allocation76_spill] sm:$0xff] }
 0x449   : > { %v3544_v55 = vadd.f32 %v3543_v35, %v3542_v34  ;;  %v4028_v1 = vpack.c.bf16 %v3964_v45, %v3964_v45  ;;  %v7520_v28 = vsel %vm4221_vm2, %v4277_v3, %v4276_v48  ;;  %v3782_v3 = vrot.slane %v7889_v50, 2 }
 0x44b   : > { %v3545_v58 = vrot.slane %v3544_v55, 1  ;;  %v4179_v52 = vunpack.c.l.b16 %v4028_v1  ;;  %v3143_v23 = vpop.xlane.xlu0 %3142  ;;  %v7890_v1 = vld [vmem:[#allocation60_spill] sm:$0xff] }
 0x44c   : > { %v3245_v57 = vmul.f32 %v3143_v23, %v7883_v17 }
 0x44d   : > { %v3546_v9 = vadd.f32 %v3545_v58, %v3544_v55  ;;  %v4279_v38 = vrot.slane %v4179_v52, 7 }
 0x44e   : > { %v3529_v33 = vrot.slane %v3245_v57, 4 }
 0x44f   : > { %v7524_v59 = vadd.f32 %v3779_v49, %v3546_v9  ;;  %v4280_v2 = vsel %vm4203_vm14, %v4279_v38, %v4178_v19  ;;  %v3152_v42 = vpop.xlane.xlu0 %3151 }
 0x450   : > { %v4282_v5 = vsel %vm4206_vm15, %v4281_v54, %v4280_v2  ;;  %v3530_v30 = vadd.f32 %v3529_v33, %v3245_v57  ;;  %v3248_v14 = vmul.f32 %v3152_v42, %v7884_v22  ;;  %v7891_v42 = vld [vmem:[#allocation25_spill] sm:$0xff] }
 0x451   : > { %v7530_v24 = vsel %vm4209_vm0, %v4283_v0, %v4282_v5  ;;  %v3969_v49 = vmax.f32 %v7524_v59, 0.0 }
 0x452   : > { %v3531_v27 = vrot.slane %v3530_v30, 2  ;;  %v3547_v40 = vrot.slane %v3248_v14, 4 }
 0x453   : > { %v3161_v63 = vpop.xlane.xlu1 %3160  ;;  %v3146_v44 = vpop.xlane.xlu0 %3145 }
 0x454   : > { %v3251_v53 = vmul.f32 %v3161_v63, %v7885_v46  ;;  %v3532_v8 = vadd.f32 %v3531_v27, %v3530_v30  ;;  %v3548_v12 = vadd.f32 %v3547_v40, %v3248_v14  ;;  %v3246_v11 = vmul.f32 %v3146_v44, %v7886_v37 }
 0x455   : > { %v4033_v37 = vpack.c.bf16 %v3969_v49, %v3969_v49 }
 0x456   : > { %v3565_v25 = vrot.slane %v3251_v53, 4  ;;  %v3533_v36 = vrot.slane %v3532_v8, 1  ;;  %v3549_v60 = vrot.slane %v3548_v12, 2  ;;  %v3535_v31 = vrot.slane %v3246_v11, 4 }
 0x457   : > { %v3155_v61 = vpop.xlane.xlu1 %3154  ;;  %v3164_v4 = vpop.xlane.xlu0 %3163 }
 0x458   : > { %v3566_v56 = vadd.f32 %v3565_v25, %v3251_v53  ;;  %v3249_v7 = vmul.f32 %v3155_v61, %v7887_v26  ;;  %v3534_v62 = vadd.f32 %v3533_v36, %v3532_v8  ;;  %v3550_v21 = vadd.f32 %v3549_v60, %v3548_v12 }
 0x459   : > { %v3536_v34 = vadd.f32 %v3535_v31, %v3246_v11  ;;  %v3252_v51 = vmul.f32 %v3164_v4, %v7888_v16  ;;  %v3783_v8 = vrot.slane %v7889_v50, 3 }
 0x45a   : > { %v3567_v10 = vrot.slane %v3566_v56, 2  ;;  %v3553_v20 = vrot.slane %v3249_v7, 4  ;;  %v3903_v29 = vadd.f32 %v3777_v32, %v3534_v62  ;;  %v3551_v35 = vrot.slane %v3550_v21, 1 }
 0x45b   : > { %v3537_v13 = vrot.slane %v3536_v34, 2  ;;  %v3571_v41 = vrot.slane %v3252_v51, 4  ;;  %v3158_v45 = vpop.xlane.xlu1 %3157 }
 0x45c   : > { %v3568_v55 = vadd.f32 %v3567_v10, %v3566_v56  ;;  %v3554_v47 = vadd.f32 %v3553_v20, %v3249_v7  ;;  %v3250_v48 = vmul.f32 %v3158_v45, %v7890_v1  ;;  %v3967_v39 = vmax.f32 %v3903_v29, 0.0 }
 0x45d   : > { %v3552_v58 = vadd.f32 %v3551_v35, %v3550_v21  ;;  %v3538_v6 = vadd.f32 %v3537_v13, %v3536_v34  ;;  %v3572_v52 = vadd.f32 %v3571_v41, %v3252_v51  ;;  %v4184_v34 = vunpack.c.l.b16 %v4033_v37  ;;  %v7895_v37 = vld [vmem:[#allocation78_spill] sm:$0xff] }
 0x45e   : > { %v3569_v18 = vrot.slane %v3568_v55, 1  ;;  %v3555_v9 = vrot.slane %v3554_v47, 2  ;;  %v3559_v23 = vrot.slane %v3250_v48, 4  ;;  %v4031_v19 = vpack.c.bf16 %v3967_v39, %v3967_v39 }
 0x45f   : > { %v3906_v38 = vadd.f32 %v3780_v15, %v3552_v58  ;;  %v3539_v17 = vrot.slane %v3538_v6, 1  ;;  %v3573_v57 = vrot.slane %v3572_v52, 2  ;;  %v3173_v54 = vpop.xlane.xlu1 %3172  ;;  %v3781_v51 = vrot.slane %v7889_v50, 1 }
 0x460   : > { %v3570_v0 = vadd.f32 %v3569_v18, %v3568_v55  ;;  %v3556_v2 = vadd.f32 %v3555_v9, %v3554_v47  ;;  %v3560_v33 = vadd.f32 %v3559_v23, %v3250_v48  ;;  %v3255_v5 = vmul.f32 %v3173_v54, %v7891_v42 }
 0x461   : > { %v4182_v30 = vunpack.c.l.b16 %v4031_v19  ;;  %v3970_v22 = vmax.f32 %v3906_v38, 0.0  ;;  %v3540_v14 = vadd.f32 %v3539_v17, %v3538_v6  ;;  %v3574_v27 = vadd.f32 %v3573_v57, %v3572_v52  ;;  %v7893_v38 = vld [vmem:[#allocation33_spill] sm:$0xff] }
 0x462   : > { %v3909_v40 = vadd.f32 %v3782_v3, %v3570_v0  ;;  %v3557_v63 = vrot.slane %v3556_v2, 1  ;;  %v3561_v59 = vrot.slane %v3560_v33, 2  ;;  %v3589_v44 = vrot.slane %v3255_v5, 4  ;;  %v7892_v3 = vld [vmem:[#allocation63_spill] sm:$0xff] }
 0x463   : > { %v4285_v46 = vrot.slane %v4182_v30, 4  ;;  %v3904_v53 = vadd.f32 %v3778_v43, %v3540_v14  ;;  %v3575_v12 = vrot.slane %v3574_v27, 1  ;;  %v4034_v60 = vpack.c.bf16 %v3970_v22, %v3970_v22 }
 0x464   : > { %v3558_v11 = vadd.f32 %v3557_v63, %v3556_v2  ;;  %v3562_v25 = vadd.f32 %v3561_v59, %v3560_v33  ;;  %v3590_v36 = vadd.f32 %v3589_v44, %v3255_v5  ;;  %v3973_v62 = vmax.f32 %v3909_v40, 0.0  ;;  %v7894_v33 = vld [vmem:[#allocation64_spill] sm:$0xff] }
 0x465   : > { %v3968_v31 = vmax.f32 %v3904_v53, 0.0  ;;  %v3576_v61 = vadd.f32 %v3575_v12, %v3574_v27  ;;  %v4286_v32 = vsel %vm4212_vm1, %v4285_v46, %v7530_v24  ;;  %v4185_v29 = vunpack.c.l.b16 %v4034_v60 }
 0x466   : > { %v3907_v56 = vadd.f32 %v7889_v50, %v3558_v11  ;;  %v3563_v4 = vrot.slane %v3562_v25, 1  ;;  %v3591_v26 = vrot.slane %v3590_v36, 2  ;;  %v4037_v45 = vpack.c.bf16 %v3973_v62, %v3973_v62 }
 0x467   : > { %v4032_v7 = vpack.c.bf16 %v3968_v31, %v3968_v31  ;;  %v3910_v21 = vadd.f32 %v3783_v8, %v3576_v61  ;;  %v3786_v55 = vrot.slane %v7889_v50, 6  ;;  %v4289_v1 = vrot.slane %v4184_v34, 2 }
 0x468   : > { %v3564_v16 = vadd.f32 %v3563_v4, %v3562_v25  ;;  %v3592_v15 = vadd.f32 %v3591_v26, %v3590_v36  ;;  %v3971_v20 = vmax.f32 %v3907_v56, 0.0  ;;  %v4291_v9 = vrot.slane %v4185_v29, 1 }
 0x469   : > { %v4183_v43 = vunpack.c.l.b16 %v4032_v7  ;;  %v3974_v10 = vmax.f32 %v3910_v21, 0.0  ;;  %v3167_v41 = vpop.xlane.xlu1 %3166  ;;  %v4188_v0 = vunpack.c.l.b16 %v4037_v45  ;;  %v3784_v46 = vrot.slane %v7889_v50, 4  ;;  %v7897_v7 = vld [vmem:[#allocation29_spill] sm:$0xff]  ;;  %v7898_v45 = vld [vmem:[#allocation31_spill] sm:$0xff] }
 0x46a   : > { %v3908_v35 = vadd.f32 %v3781_v51, %v3564_v16  ;;  %v3593_v13 = vrot.slane %v3592_v15, 1  ;;  %v3253_v47 = vmul.f32 %v3167_v41, %v7892_v3  ;;  %v4035_v6 = vpack.c.bf16 %v3971_v20, %v3971_v20 }
 0x46b   : > { %v4287_v24 = vrot.slane %v4183_v43, 3  ;;  %v4038_v48 = vpack.c.bf16 %v3974_v10, %v3974_v10  ;;  %v4295_v8 = vrot.slane %v4188_v0, 6  ;;  %v3789_v11 = vrot.slane %v7895_v37, 2 }
 0x46c   : > { %v3972_v39 = vmax.f32 %v3908_v35, 0.0  ;;  %v3594_v58 = vadd.f32 %v3593_v13, %v3592_v15  ;;  %v3577_v52 = vrot.slane %v3253_v47, 4  ;;  %v3185_v49 = vpop.xlane.xlu0 %3184  ;;  %v4186_v59 = vunpack.c.l.b16 %v4035_v6 }
 0x46d   : > { %v4288_v18 = vsel %vm4215_vm3, %v4287_v24, %v4286_v32  ;;  %v3259_v17 = vmul.f32 %v3185_v49, %v7893_v38  ;;  %v3170_v57 = vpop.xlane.xlu1 %3169  ;;  %v4189_v30 = vunpack.c.l.b16 %v4038_v48  ;;  %v7896_v32 = vld [vmem:[#allocation35_spill] sm:$0xff]  ;;  %v3785_v16 = vrot.slane %v7889_v50, 5 }
 0x46e   : > { %v4036_v23 = vpack.c.bf16 %v3972_v39, %v3972_v39  ;;  %v7551_v19 = vadd.f32 %v3786_v55, %v3594_v58  ;;  %v4290_v54 = vsel %vm4218_vm4, %v4289_v1, %v4288_v18  ;;  %v3578_v2 = vadd.f32 %v3577_v52, %v3253_v47  ;;  %v7899_v39 = vld [vmem:[#allocation27_spill] sm:$0xff] }
 0x46f   : > { %v3254_v42 = vmul.f32 %v3170_v57, %v7894_v33  ;;  %v4292_v5 = vsel %vm4221_vm2, %v4291_v9, %v4290_v54  ;;  %v3613_v14 = vrot.slane %v3259_v17, 4  ;;  %v4297_v60 = vrot.slane %v4189_v30, 5  ;;  %v7900_v33 = vld [vmem:[#allocation41_spill] sm:$0xff] }
 0x470   : > { %v4187_v22 = vunpack.c.l.b16 %v4036_v23  ;;  %v4323_v27 = vpack.c.b16 %v4292_v5, %v7520_v28  ;;  %v3579_v40 = vrot.slane %v3578_v2, 2  ;;  %v3790_v20 = vrot.slane %v7895_v37, 3 }
 0x471   : > { %v3583_v63 = vrot.slane %v3254_v42, 4  ;;  %v3614_v53 = vadd.f32 %v3613_v14, %v3259_v17  ;;  %v3788_v24 = vrot.slane %v7895_v37, 1  ;;  %v3977_v6 = vmax.f32 %v7551_v19, 0.0 }
 0x472   : > { %v4293_v44 = vrot.slane %v4187_v22, 7  ;;  %4909 = vmatprep.mubr.bf16.mxu1 %v4323_v27  ;;  %v3580_v12 = vadd.f32 %v3579_v40, %v3578_v2  ;;  %v3188_v36 = vpop.xlane.xlu0 %3187  ;;  %v3787_v19 = vrot.slane %v7889_v50, 7 }
 0x473   : > { %v3584_v25 = vadd.f32 %v3583_v63, %v3254_v42  ;;  %v3615_v61 = vrot.slane %v3614_v53, 2  ;;  %v3260_v28 = vmul.f32 %v3188_v36, %v7896_v32  ;;  %v3179_v56 = vpop.xlane.xlu1 %3178 }
 0x474   : > { %v4294_v31 = vsel %vm4203_vm14, %v4293_v44, %v4186_v59  ;;  %v3581_v4 = vrot.slane %v3580_v12, 1  ;;  %v3257_v62 = vmul.f32 %v3179_v56, %v7897_v7 }
 0x475   : > { %v3585_v26 = vrot.slane %v3584_v25, 2  ;;  %v4296_v21 = vsel %vm4206_vm15, %v4295_v8, %v4294_v31  ;;  %v3616_v34 = vadd.f32 %v3615_v61, %v3614_v53  ;;  %v3619_v51 = vrot.slane %v3260_v28, 4 }
 0x476   : > { %v7566_v15 = vsel %vm4209_vm0, %v4297_v60, %v4296_v21  ;;  %v3582_v43 = vadd.f32 %v3581_v4, %v3580_v12  ;;  %v3601_v29 = vrot.slane %v3257_v62, 4  ;;  %v3182_v35 = vpop.xlane.xlu0 %3181  ;;  %v4041_v8 = vpack.c.bf16 %v3977_v6, %v3977_v6  ;;  %v7901_v21 = vld [vmem:[#allocation37_spill] sm:$0xff] }
 0x477   : > { %v3586_v10 = vadd.f32 %v3585_v26, %v3584_v25  ;;  %v3617_v13 = vrot.slane %v3616_v34, 1  ;;  %v3620_v41 = vadd.f32 %v3619_v51, %v3260_v28  ;;  %v3258_v55 = vmul.f32 %v3182_v35, %v7898_v45  ;;  %v3176_v3 = vpop.xlane.xlu1 %3175 }
 0x478   : > { %v3911_v47 = vadd.f32 %v3784_v46, %v3582_v43  ;;  %v3602_v48 = vadd.f32 %v3601_v29, %v3257_v62  ;;  %v3256_v58 = vmul.f32 %v3176_v3, %v7899_v39  ;;  %v3793_v43 = vrot.slane %v7895_v37, 6 }
 0x479   : > { %v3587_v1 = vrot.slane %v3586_v10, 1  ;;  %v3618_v52 = vadd.f32 %v3617_v13, %v3616_v34  ;;  %v3621_v49 = vrot.slane %v3620_v41, 2  ;;  %v3607_v18 = vrot.slane %v3258_v55, 4 }
 0x47a   : > { %v3975_v9 = vmax.f32 %v3911_v47, 0.0  ;;  %v3603_v38 = vrot.slane %v3602_v48, 2  ;;  %v3595_v17 = vrot.slane %v3256_v58, 4  ;;  %v3197_v57 = vpop.xlane.xlu0 %3196  ;;  %v4192_v29 = vunpack.c.l.b16 %v4041_v8  ;;  %v7902_v47 = vld [vmem:[#allocation39_spill] sm:$0xff] }
 0x47b   : > { %v3588_v23 = vadd.f32 %v3587_v1, %v3586_v10  ;;  %v3917_v54 = vadd.f32 %v3789_v11, %v3618_v52  ;;  %v3622_v0 = vadd.f32 %v3621_v49, %v3620_v41  ;;  %v3608_v2 = vadd.f32 %v3607_v18, %v3258_v55 }
 0x47c   : > { %v3263_v42 = vmul.f32 %v3197_v57, %v7900_v33  ;;  %v4039_v5 = vpack.c.bf16 %v3975_v9, %v3975_v9  ;;  %v3604_v22 = vadd.f32 %v3603_v38, %v3602_v48  ;;  %v3596_v14 = vadd.f32 %v3595_v17, %v3256_v58 }
 0x47d   : > { %v3912_v30 = vadd.f32 %v3785_v16, %v3588_v23  ;;  %v3623_v27 = vrot.slane %v3622_v0, 1  ;;  %v3609_v40 = vrot.slane %v3608_v2, 2  ;;  %v3981_v36 = vmax.f32 %v3917_v54, 0.0 }
 0x47e   : > { %v3637_v63 = vrot.slane %v3263_v42, 4  ;;  %v4190_v59 = vunpack.c.l.b16 %v4039_v5  ;;  %v3605_v46 = vrot.slane %v3604_v22, 1  ;;  %v3597_v53 = vrot.slane %v3596_v14, 2 }
 0x47f   : > { %v3976_v44 = vmax.f32 %v3912_v30, 0.0  ;;  %v3624_v12 = vadd.f32 %v3623_v27, %v3622_v0  ;;  %v3610_v11 = vadd.f32 %v3609_v40, %v3608_v2  ;;  %v4045_v48 = vpack.c.bf16 %v3981_v36, %v3981_v36 }
 0x480   : > { %v3638_v25 = vadd.f32 %v3637_v63, %v3263_v42  ;;  %v3606_v31 = vadd.f32 %v3605_v46, %v3604_v22  ;;  %v3598_v61 = vadd.f32 %v3597_v53, %v3596_v14  ;;  %v3191_v32 = vpop.xlane.xlu0 %3190  ;;  %v4299_v28 = vrot.slane %v4190_v59, 4 }
 0x481   : > { %v4040_v60 = vpack.c.bf16 %v3976_v44, %v3976_v44  ;;  %v3918_v56 = vadd.f32 %v3790_v20, %v3624_v12  ;;  %v3611_v4 = vrot.slane %v3610_v11, 1  ;;  %v3261_v34 = vmul.f32 %v3191_v32, %v7901_v21 }
 0x482   : > { %v3639_v26 = vrot.slane %v3638_v25, 2  ;;  %v3915_v50 = vadd.f32 %v7895_v37, %v3606_v31  ;;  %v3599_v62 = vrot.slane %v3598_v61, 1  ;;  %v4300_v6 = vsel %vm4212_vm1, %v4299_v28, %v7566_v15 }
 0x483   : > { %v4191_v7 = vunpack.c.l.b16 %v4040_v60  ;;  %v3982_v16 = vmax.f32 %v3918_v56, 0.0  ;;  %v3612_v51 = vadd.f32 %v3611_v4, %v3610_v11  ;;  %v3625_v41 = vrot.slane %v3261_v34, 4 }
 0x484   : > { %v3640_v10 = vadd.f32 %v3639_v26, %v3638_v25  ;;  %v3600_v13 = vadd.f32 %v3599_v62, %v3598_v61  ;;  %v3194_v45 = vpop.xlane.xlu0 %3193  ;;  %v3979_v55 = vmax.f32 %v3915_v50, 0.0  ;;  %v4303_v23 = vrot.slane %v4192_v29, 2  ;;  %v7903_v29 = vld [vmem:[#allocation43_spill] sm:$0xff] }
 0x485   : > { %v4301_v35 = vrot.slane %v4191_v7, 3  ;;  %v3916_v20 = vadd.f32 %v3788_v24, %v3612_v51  ;;  %v3262_v1 = vmul.f32 %v3194_v45, %v7902_v47  ;;  %v3626_v58 = vadd.f32 %v3625_v41, %v3261_v34 }
 0x486   : > { %v3641_v3 = vrot.slane %v3640_v10, 1  ;;  %v3914_v39 = vadd.f32 %v3787_v19, %v3600_v13  ;;  %v4046_v52 = vpack.c.bf16 %v3982_v16, %v3982_v16  ;;  %v4043_v54 = vpack.c.bf16 %v3979_v55, %v3979_v55 }
 0x487   : > { %v3980_v49 = vmax.f32 %v3916_v20, 0.0  ;;  %v3631_v9 = vrot.slane %v3262_v1, 4  ;;  %v3627_v17 = vrot.slane %v3626_v58, 2  ;;  %v4302_v57 = vsel %vm4215_vm3, %v4301_v35, %v4300_v6 }
 0x488   : > { %v3642_v18 = vadd.f32 %v3641_v3, %v3640_v10  ;;  %v3978_v38 = vmax.f32 %v3914_v39, 0.0  ;;  %v4196_v33 = vunpack.c.l.b16 %v4045_v48  ;;  %v4304_v30 = vsel %vm4218_vm4, %v4303_v23, %v4302_v57  ;;  %v4719_v57 = vld [vmem:[%s7669_s6] ss:$0 sm:$0xff] }
 0x489   : > { %v4044_v24 = vpack.c.bf16 %v3980_v49, %v3980_v49  ;;  %v3632_v2 = vadd.f32 %v3631_v9, %v3262_v1  ;;  %v3628_v5 = vadd.f32 %v3627_v17, %v3626_v58  ;;  %v4197_v22 = vunpack.c.l.b16 %v4046_v52 }
 0x48a   : > { %v3921_v0 = vadd.f32 %v3793_v43, %v3642_v18  ;;  %v4042_v42 = vpack.c.bf16 %v3978_v38, %v3978_v38  ;;  %v4194_v19 = vunpack.c.l.b16 %v4043_v54  ;;  %v4309_v44 = vrot.slane %v4196_v33, 6 }
 0x48b   : > { %v4195_v15 = vunpack.c.l.b16 %v4044_v24  ;;  %v3633_v14 = vrot.slane %v3632_v2, 2  ;;  %v3629_v27 = vrot.slane %v3628_v5, 1  ;;  %v3791_v46 = vrot.slane %v7895_v37, 4 }
 0x48c   : > { %v4193_v40 = vunpack.c.l.b16 %v4042_v42  ;;  %v4311_v12 = vrot.slane %v4197_v22, 5  ;;  %v3985_v36 = vmax.f32 %v3921_v0, 0.0  ;;  %v3792_v32 = vrot.slane %v7895_v37, 5 }
 0x48d   : > { %v4307_v63 = vrot.slane %v4195_v15, 7  ;;  %v3634_v59 = vadd.f32 %v3633_v14, %v3632_v2  ;;  %v3630_v53 = vadd.f32 %v3629_v27, %v3628_v5  ;;  %v3794_v58 = vrot.slane %v7895_v37, 7 }
 0x48e   : > { %v4305_v8 = vrot.slane %v4193_v40, 1  ;;  %v4049_v7 = vpack.c.bf16 %v3985_v36, %v3985_v36 }
 0x48f   : > { %v4308_v11 = vsel %vm4203_vm14, %v4307_v63, %v4194_v19  ;;  %v3635_v25 = vrot.slane %v3634_v59, 1  ;;  %v3919_v60 = vadd.f32 %v3791_v46, %v3630_v53 }
 0x490   : > { %v4306_v31 = vsel %vm4221_vm2, %v4305_v8, %v4304_v30  ;;  %v4310_v61 = vsel %vm4206_vm15, %v4309_v44, %v4308_v11  ;;  %v4200_v16 = vunpack.c.l.b16 %v4049_v7 }
 0x491   : > { %v3636_v28 = vadd.f32 %v3635_v25, %v3634_v59  ;;  %v4312_v56 = vsel %vm4209_vm0, %v4311_v12, %v4310_v61  ;;  %v3983_v4 = vmax.f32 %v3919_v60, 0.0 }
 0x492   : > { %v4317_v45 = vrot.slane %v4200_v16, 2 }
 0x493   : > { %v3920_v26 = vadd.f32 %v3792_v32, %v3636_v28  ;;  %v4047_v50 = vpack.c.bf16 %v3983_v4, %v3983_v4 }
 0x495   : > { %v3984_v62 = vmax.f32 %v3920_v26, 0.0  ;;  %v4198_v21 = vunpack.c.l.b16 %v4047_v50 }
 0x497   : > { %v4048_v34 = vpack.c.bf16 %v3984_v62, %v3984_v62  ;;  %v4313_v51 = vrot.slane %v4198_v21, 4 }
 0x499   : > { %v4199_v43 = vunpack.c.l.b16 %v4048_v34  ;;  %v3200_v10 = vpop.xlane.xlu0 %3199  ;;  %v4314_v13 = vsel %vm4212_vm1, %v4313_v51, %v4312_v56 }
 0x49a   : > { %v3264_v35 = vmul.f32 %v3200_v10, %v7903_v29 }
 0x49b   : > { %v4315_v41 = vrot.slane %v4199_v43, 3 }
 0x49c   : > { %v3643_v55 = vrot.slane %v3264_v35, 4 }
 0x49d   : > { %v4316_v20 = vsel %vm4215_vm3, %v4315_v41, %v4314_v13 }
 0x49e   : > { %v3644_v3 = vadd.f32 %v3643_v55, %v3264_v35  ;;  %v4318_v47 = vsel %vm4218_vm4, %v4317_v45, %v4316_v20 }
 0x4a0   : > { %v3645_v1 = vrot.slane %v3644_v3, 2 }
 0x4a2   : > { %v3646_v48 = vadd.f32 %v3645_v1, %v3644_v3 }
 0x4a4   : > { %v3647_v39 = vrot.slane %v3646_v48, 1 }
 0x4a6   : > { %v3648_v6 = vadd.f32 %v3647_v39, %v3646_v48 }
 0x4a8   : > { %v3922_v52 = vadd.f32 %v3794_v58, %v3648_v6 }
 0x4aa   : > { %v3986_v49 = vmax.f32 %v3922_v52, 0.0 }
 0x4ac   : > { %v4050_v18 = vpack.c.bf16 %v3986_v49, %v3986_v49 }
 0x4ae   : > { %v4201_v9 = vunpack.c.l.b16 %v4050_v18 }
 0x4b0   : > { %v4319_v23 = vrot.slane %v4201_v9, 1 }
 0x4b2   : > { %v4320_v38 = vsel %vm4221_vm2, %v4319_v23, %v4318_v47 }
 0x4b3   : > { %v4324_v17 = vpack.c.b16 %v4320_v38, %v4306_v31 }
 0x4b5   : > { %4910 = vmatmul.mubr.bf16.gmra.mrb[96].mxu1 %v4324_v17 }
 0x505   : > { %v4907_v54 = vpop.f32.mrb[92].mxu1 }
 0x506   : > { %v4420_v24 = vadd.f32 %v4907_v54, %v4719_v57  ;;  %v4411_v0 = vpop.f32.mrb[93].mxu1 }
 0x507   : > { %v4412_v2 = vadd.f32 %v4719_v57, %v4411_v0  ;;  %v4908_v33 = vpop.f32.mrb[94].mxu1 }
 0x508   : > { %v4730_v37 = vmul.f32 -1.442695, %v4420_v24  ;;  %v4423_v42 = vadd.f32 %v4908_v33, %v4719_v57  ;;  %v4414_v5 = vpop.f32.mrb[95].mxu1 }
 0x509   : > { %v4728_v30 = vmul.f32 -1.442695, %v4412_v2  ;;  %v4415_v22 = vadd.f32 %v4719_v57, %v4414_v5 }
 0x50a   : > { %5379 = vpow2.f32 %v4730_v37  ;;  %v4731_v15 = vmul.f32 -1.442695, %v4423_v42 }
 0x50b   : > { %5381 = vpow2.f32 %v4728_v30  ;;  %v4729_v14 = vmul.f32 -1.442695, %v4415_v22 }
 0x50c   : > { %5383 = vpow2.f32 %v4731_v15 }
 0x50d   : > { %5385 = vpow2.f32 %v4729_v14 }
 0x514   : > { %v5380_v27 = vpop.eup %5379 }
 0x515   : > { %v5382_v40 = vpop.eup %5381  ;;  %v4468_v19 = vadd.f32 1.0, %v5380_v27 }
 0x516   : > { %v5384_v63 = vpop.eup %5383  ;;  %v4466_v59 = vadd.f32 1.0, %v5382_v40 }
 0x517   : > { %v5386_v44 = vpop.eup %5385  ;;  %5387 = vrcp.f32 %v4468_v19  ;;  %v4469_v46 = vadd.f32 1.0, %v5384_v63 }
 0x518   : > { %5389 = vrcp.f32 %v4466_v59  ;;  %v4467_v53 = vadd.f32 1.0, %v5386_v44 }
 0x519   : > { %5391 = vrcp.f32 %v4469_v46 }
 0x51a   : > { %5393 = vrcp.f32 %v4467_v53 }
 0x521   : > { %v5388_v8 = vpop.eup %5387 }
 0x522   : > { %v5390_v12 = vpop.eup %5389  ;;  %4492 = vst [vmem:[%s7601_s21 + $0x10] sm:$0xff] %v5388_v8 }
 0x523   : > { %v5392_v11 = vpop.eup %5391  ;;  %4490 = vst [vmem:[%s7601_s21] sm:$0xff] %v5390_v12 }
 0x524   : > { %v5394_v25 = vpop.eup %5393  ;;  %4493 = vst [vmem:[%s7601_s21 + $0x18] sm:$0xff] %v5392_v11 }
 0x525   : > { %4491 = vst [vmem:[%s7601_s21 + $0x8] sm:$0xff] %v5394_v25 }
 0x588   : > { %v4911_v36 = vpop.f32.mrb[96].mxu1 }
 0x589   : > { %v4436_v60 = vadd.f32 %v4911_v36, %v4719_v57  ;;  %v4427_v31 = vpop.f32.mrb[97].mxu1 }
 0x58a   : > { %v4428_v61 = vadd.f32 %v4719_v57, %v4427_v31  ;;  %v4912_v32 = vpop.f32.mrb[98].mxu1 }
 0x58b   : > { %v4734_v28 = vmul.f32 -1.442695, %v4436_v60  ;;  %v4439_v56 = vadd.f32 %v4912_v32, %v4719_v57  ;;  %v4430_v4 = vpop.f32.mrb[99].mxu1 }
 0x58c   : > { %v4732_v26 = vmul.f32 -1.442695, %v4428_v61  ;;  %v4431_v7 = vadd.f32 %v4719_v57, %v4430_v4 }
 0x58d   : > { %5395 = vpow2.f32 %v4734_v28  ;;  %v4735_v50 = vmul.f32 -1.442695, %v4439_v56 }
 0x58e   : > { %5397 = vpow2.f32 %v4732_v26  ;;  %v4733_v62 = vmul.f32 -1.442695, %v4431_v7 }
 0x58f   : > { %5399 = vpow2.f32 %v4735_v50 }
 0x590   : > { %5401 = vpow2.f32 %v4733_v62 }
 0x597   : > { %v5396_v21 = vpop.eup %5395 }
 0x598   : > { %v5398_v34 = vpop.eup %5397  ;;  %v4472_v16 = vadd.f32 1.0, %v5396_v21 }
 0x599   : > { %v5400_v51 = vpop.eup %5399  ;;  %v4470_v43 = vadd.f32 1.0, %v5398_v34 }
 0x59a   : > { %v5402_v10 = vpop.eup %5401  ;;  %5403 = vrcp.f32 %v4472_v16  ;;  %v4473_v29 = vadd.f32 1.0, %v5400_v51 }
 0x59b   : > { %5405 = vrcp.f32 %v4470_v43  ;;  %v4471_v35 = vadd.f32 1.0, %v5402_v10 }
 0x59c   : > { %5407 = vrcp.f32 %v4473_v29 }
 0x59d   : > { %5409 = vrcp.f32 %v4471_v35 }
 0x5a4   : > { %v5404_v13 = vpop.eup %5403 }
 0x5a5   : > { %v5406_v41 = vpop.eup %5405  ;;  %4496 = vst [vmem:[%s7601_s21 + $0x30] sm:$0xff] %v5404_v13 }
 0x5a6   : > { %v5408_v45 = vpop.eup %5407  ;;  %4494 = vst [vmem:[%s7601_s21 + $0x20] sm:$0xff] %v5406_v41 }
 0x5a7   : > { %v5410_v55 = vpop.eup %5409  ;;  %4497 = vst [vmem:[%s7601_s21 + $0x38] sm:$0xff] %v5408_v45 }
 0x5a8   : > { %4495 = vst [vmem:[%s7601_s21 + $0x28] sm:$0xff] %v5410_v55 }
 0x5a9   : > { %5424 = shalt.err (!%p5421_p4)
}
 0x5aa   : > { %s5425_s17 = scalar_lea.hbm %s7613_s9, 1024  ;;  %s5429_s20 = scalar_lea.hbm %s7670_s7, 2048 }
 0x5ab   : > { %p5426_p7 = scmp.ne.s32.totalorder %s7613_s9, %s5425_s17  ;;  %p5430_p10 = scmp.lt.u32.totalorder %s7613_s9, %s7670_s7 }
 0x5ac   : > { %p5431_p11 = scmp.lt.u32.totalorder %s5429_s20, %s5425_s17  ;;  %p5433_p13 = scmp.lt.u32.totalorder %s5425_s17, %s7613_s9 }
 0x5ad   : > { %p5427_p8 = pnand %p5426_p7, %p5558_p5 }
 0x5ae   : > { %p5432_p12 = por %p5431_p11, %p5430_p10 }
 0x5af   : > { %p5428_p9 = pneg %p5427_p8 }
 0x5b0   : > { %p5434_p0 = por %p5433_p13, %p5432_p12 }
 0x5b2   : > { %p5435_p1 = pnand %p5434_p0, %p5428_p9 }
 0x5b4   : > { %5438 = shalt.err (!%p5435_p1)
}
 0x5b5   : > { %s5478_s29 = smov 128   ;;  %s5479_s8 = smov 8  }
 0x5b6   : > { %4922 = dma.vmem_to_hbm [thread:$0]  (%p5558_p5), %s7615_s23, 1024, %s7613_s9, %s7622_s28, %s5478_s29, %s5478_s29, %s5479_s8  }
 0x5b7 PF: > { %p4928_p2 = scmp.ge.s32.totalorder %s5473_s27, 2  ;;  %s4527_s14 = sand.u32 1, %s5461_s24  }
 0x5b8   : > { %s4528_s13 = scalar_lea.sflag [#allocation3], %s4527_s14 }
 0x5b9   : > { %p4925_p3 = pnand %p4928_p2, %p5562_p6 }
 0x5bb   : > { %5456 = dma.done.wait (!%p4925_p3), %s4528_s13, 1024  }
 0x5bc   : > { %5458 = vsyncadd (!%p4925_p3), %s4528_s13, 4294966272  ;;  %p17_p4 = scmp.ge.s32.totalorder %s5545_s30, 4   ;;  %s7904_s24 = smov %s5465_s25 }
 0x5bd   : > { %s7905_s25 = smov %s5469_s26  ;;  %s7906_s26 = smov %s5556_s10 }
 0x5be   : > { %s7907_s27 = smov %s5545_s30  ;;  %19 = sbr.rel (!%p17_p4) target bundleno = 3 (0x3), region = 86 }
 0x5c5   :  { %4533 = vsyncpa [#allocation3], 1 }
 0x5c6   :  { %4535 = vsyncpa [#allocation3 + $0x1], 1 }

</bundles_post_ra>
